<compile_context>
chip_gen: v6e
topology: v6e:2x2x1
jax: 0.10.0
libtpu: 0.0.40
codegen_flags: <defaults>
</compile_context>

<pallas_src>
import math

import jax
import jax.numpy as jnp
from jax import lax
from jax.experimental import pallas as pl
from jax.experimental.pallas import tpu as pltpu

# ----------------------------- sizes ----------------------------------------
B = 2                      # batch
IMG_C, IMG_HW = 4, 16      # image channels / spatial
PATCH = 4
NUM_PATCHES = (IMG_HW // PATCH) ** 2          # encoder.total_tokens = 16
NUM_COMPRESSED = 8                            # encoder.num_compressed_tokens
EMBED_DIM = 32                                # encoder embed_dim
DEC_EMBED_DIM = 32                            # decoder_embed_dim (== EMBED_DIM, required
                                              # by the double decoder_embed call in forward)
BASE_EMBED_DIM = 32                           # baseline_embed_dim
NHEAD = 4
HEAD_DIM = DEC_EMBED_DIM // NHEAD             # 8
DIM_FF = 64
NUM_DEC_LAYERS = 2
PATCH_DIM = IMG_C * PATCH * PATCH             # 64
LN_EPS = 1e-5
ATTN_SCALE = 1.0 / math.sqrt(HEAD_DIM)


# ------------------------- in-kernel helpers ---------------------------------
def _mm(a, w):
    return jnp.dot(a, w, preferred_element_type=jnp.float32)


def _ln(x, g, b):
    """Row-wise LayerNorm over the last dim (all f32 math)."""
    xf = x.astype(jnp.float32)
    mu = jnp.mean(xf, axis=-1, keepdims=True)
    var = jnp.mean((xf - mu) ** 2, axis=-1, keepdims=True)
    return (xf - mu) * lax.rsqrt(var + LN_EPS) * g + b


def _softmax_rows(s):
    s = s - jnp.max(s, axis=-1, keepdims=True)
    p = jnp.exp(s)
    return p / jnp.sum(p, axis=-1, keepdims=True)


def _attend(q, k, v, tq, tk):
    """Multi-head attention on batch-folded 2-D slabs.

    q: (B*tq, D), k/v: (B*tk, D).  Batch blocks are sublane-aligned static
    slices; heads are static lane slices; contractions use dot_general on the
    last dims (no transposes)."""
    outs = []
    for b in range(B):
        qb = q[b * tq:(b + 1) * tq, :]
        kb = k[b * tk:(b + 1) * tk, :]
        vb = v[b * tk:(b + 1) * tk, :]
        heads = []
        for h in range(NHEAD):
            sl = slice(h * HEAD_DIM, (h + 1) * HEAD_DIM)
            s = lax.dot_general(qb[:, sl], kb[:, sl], (((1,), (1,)), ((), ())),
                                preferred_element_type=jnp.float32) * ATTN_SCALE
            p = _softmax_rows(s)
            heads.append(lax.dot_general(p, vb[:, sl], (((1,), (0,)), ((), ())),
                                         preferred_element_type=jnp.float32))
        outs.append(jnp.concatenate(heads, axis=-1))
    return jnp.concatenate(outs, axis=0)


# --------------------------- fused Pallas kernel ------------------------------
def _fused_kernel(
    xp_ref,                                                   # (B*16, 64) patchified images
    enc_w_ref, enc_b_ref, enc_pos_ref, enc_g_ref, enc_beta_ref,
    dembed_w_ref, dembed_b_ref,
    maskpos_ref,
    sa_wqkv_ref, sa_bqkv_ref, sa_wo_ref, sa_bo_ref,
    ca_wq_ref, ca_bq_ref, ca_wkv_ref, ca_bkv_ref, ca_wo_ref, ca_bo_ref,
    ff1_w_ref, ff1_b_ref, ff2_w_ref, ff2_b_ref,
    n1_g_ref, n1_b_ref, n2_g_ref, n2_b_ref, n3_g_ref, n3_b_ref,
    dnorm_g_ref, dnorm_b_ref,
    dpred_w_ref, dpred_b_ref,
    bproj_w_ref, bproj_b_ref,
    bcls_ref, bln_g_ref, bln_b_ref,
    out_ref,                                                  # (1, 1) final mean loss
):
    D = DEC_EMBED_DIM
    T = NUM_PATCHES
    Tc = NUM_COMPRESSED

    # ---- encoder stub: patch-embed + pos + LayerNorm + token compression ----
    # TODO(synk): the real encoder is an external CompViT backbone (definition
    # not provided); deterministic patch-embed stand-in producing 'x_norm'.
    tok = _mm(xp_ref[...], enc_w_ref[...]) + enc_b_ref[...]                  # (B*T, E)
    tok = tok + jnp.concatenate([enc_pos_ref[...]] * B, axis=0)
    comp = jnp.concatenate(
        [tok[b * T:b * T + Tc, :] for b in range(B)], axis=0)                # (B*Tc, E)
    comp = _ln(comp, enc_g_ref[...], enc_beta_ref[...])

    # ---- decoder_embed on encoder outputs -> memory ----
    mem = _mm(comp, dembed_w_ref[...]) + dembed_b_ref[...]                   # (B*Tc, D)

    # ---- Mask.forward: mask_token + decoder_pos_embed, tiled over batch ----
    tgt = jnp.concatenate([maskpos_ref[...]] * B, axis=0)                    # (B*T, D)

    # ---- nn.TransformerDecoder: post-norm layers, ReLU, dropout=0 ----
    for l in range(NUM_DEC_LAYERS):
        # self-attention (fused QKV projection)
        qkv = _mm(tgt, sa_wqkv_ref[l]) + sa_bqkv_ref[l]                      # (B*T, 3D)
        q, k, v = qkv[:, :D], qkv[:, D:2 * D], qkv[:, 2 * D:]
        sa = _attend(q, k, v, T, T)
        sa = _mm(sa, sa_wo_ref[l]) + sa_bo_ref[l]
        tgt = _ln(tgt + sa, n1_g_ref[l], n1_b_ref[l])

        # cross-attention (fused KV projection from memory)
        qc = _mm(tgt, ca_wq_ref[l]) + ca_bq_ref[l]                           # (B*T, D)
        kv = _mm(mem, ca_wkv_ref[l]) + ca_bkv_ref[l]                         # (B*Tc, 2D)
        kc, vc = kv[:, :D], kv[:, D:]
        ca = _attend(qc, kc, vc, T, Tc)
        ca = _mm(ca, ca_wo_ref[l]) + ca_bo_ref[l]
        tgt = _ln(tgt + ca, n2_g_ref[l], n2_b_ref[l])

        # feed-forward
        ff = jnp.maximum(_mm(tgt, ff1_w_ref[l]) + ff1_b_ref[l], 0.0)
        ff = _mm(ff, ff2_w_ref[l]) + ff2_b_ref[l]
        tgt = _ln(tgt + ff, n3_g_ref[l], n3_b_ref[l])

    dec = _ln(tgt, dnorm_g_ref[...], dnorm_b_ref[...])                       # (B*T, D)

    # ---- pooled tokens -> decoder_embed (second time, as in reference) ----
    pooled = jnp.concatenate(
        [jnp.mean(dec[b * T:(b + 1) * T, :], axis=0, keepdims=True)
         for b in range(B)], axis=0)                                         # (B, D)
    pooled = _mm(pooled, dembed_w_ref[...]) + dembed_b_ref[...]
    pred = _mm(pooled, dpred_w_ref[...]) + dpred_b_ref[...]                  # (B, Cb)

    # ---- baseline CLS stub + baseline_proj ----
    # TODO(synk): the real baseline is an external DINOv2/ViT backbone (definition
    # not provided); only its CLS token feeds the loss, so the stand-in is
    # LayerNorm(cls_token + cls_pos) and xbaseline does not enter the stub.
    cls = _ln(bcls_ref[...], bln_g_ref[...], bln_b_ref[...])                 # (1, Cb)
    base = _mm(cls, bproj_w_ref[...]) + bproj_b_ref[...]                     # (1, Cb)

    # ---- smooth-L1 (beta=1), reduction='mean' finished in-kernel ----
    d = pred - base
    ad = jnp.abs(d)
    lelem = jnp.where(ad < 1.0, 0.5 * d * d, ad - 0.5)                       # (B, Cb)
    per = jnp.sum(lelem, axis=-1, keepdims=True)                             # (B, 1)
    tot = jnp.sum(per, axis=0, keepdims=True)                                # (1, 1)
    out_ref[...] = tot * (1.0 / float(B * 1 * BASE_EMBED_DIM))


# ----------------------------- model glue ------------------------------------
def patchify(img, p=PATCH):
    # img: (B, C, H, W) NCHW -> (B, (H/p)*(W/p), C*p*p)
    Bx, C, H, W = img.shape
    x = img.reshape(Bx, C, H // p, p, W // p, p)
    x = x.transpose(0, 2, 4, 1, 3, 5)
    return x.reshape(Bx, (H // p) * (W // p), C * p * p)


def mae_compvit_forward(params, x, xbaseline):
    # xbaseline is accepted for interface parity; the baseline stand-in only
    # uses its (parameter-defined) CLS token — see TODO(synk) in the kernel.
    del xbaseline

    xp = patchify(x).reshape(B * NUM_PATCHES, PATCH_DIM)                     # (32, 64)
    mask_pos = params["mask_token"][0] + params["decoder_pos_embed"][0]      # (16, D)
    bcls = params["base_cls"][0] + params["base_pos_cls"][0]                 # (1, Cb)

    inputs = [
        xp,
        params["enc_patch_w"], params["enc_patch_b"], params["enc_pos"][0],
        params["enc_ln_g"], params["enc_ln_b"],
        params["dec_embed_w"], params["dec_embed_b"],
        mask_pos,
        params["sa_wqkv"], params["sa_bqkv"], params["sa_wo"], params["sa_bo"],
        params["ca_wq"], params["ca_bq"], params["ca_wkv"], params["ca_bkv"],
        params["ca_wo"], params["ca_bo"],
        params["ffn1_w"], params["ffn1_b"], params["ffn2_w"], params["ffn2_b"],
        params["norm1_g"], params["norm1_b"], params["norm2_g"], params["norm2_b"],
        params["norm3_g"], params["norm3_b"],
        params["dec_norm_g"], params["dec_norm_b"],
        params["dec_pred_w"], params["dec_pred_b"],
        params["base_proj_w"], params["base_proj_b"],
        bcls, params["base_ln_g"], params["base_ln_b"],
    ]
    vmem_spec = pl.BlockSpec(memory_space=pltpu.MemorySpace.VMEM)

    loss = pl.pallas_call(
        _fused_kernel,
        out_shape=jax.ShapeDtypeStruct((1, 1), jnp.float32),
        in_specs=[vmem_spec] * len(inputs),
        out_specs=vmem_spec,
    )(*inputs)

    # smooth_l1_loss(..., reduction='mean') — already averaged in-kernel.
    return loss[0, 0]


# ----------------------------- parameters ------------------------------------
def init_params(key):
    keys = iter(jax.random.split(key, 64))

    def nrm(shape, std=0.02):
        return (std * jax.random.normal(next(keys), shape)).astype(jnp.float32)

    def zeros(shape):
        return jnp.zeros(shape, jnp.float32)

    def ones(shape):
        return jnp.ones(shape, jnp.float32)

    def per_layer(shape, init=None):
        init = nrm if init is None else init
        return jnp.stack([init(shape) for _ in range(NUM_DEC_LAYERS)], axis=0)

    D, F, Cb = DEC_EMBED_DIM, DIM_FF, BASE_EMBED_DIM
    params = dict(
        # encoder stub
        enc_patch_w=nrm((PATCH_DIM, EMBED_DIM)), enc_patch_b=zeros((1, EMBED_DIM)),
        enc_pos=nrm((1, NUM_PATCHES, EMBED_DIM)),
        enc_ln_g=ones((1, EMBED_DIM)), enc_ln_b=zeros((1, EMBED_DIM)),
        # baseline stub (CLS token path only)
        base_cls=nrm((1, 1, Cb)), base_pos_cls=nrm((1, 1, Cb)),
        base_ln_g=ones((1, Cb)), base_ln_b=zeros((1, Cb)),
        # MAECompVit params
        mask_token=nrm((1, 1, D)),                            # Mask.mask_token
        decoder_pos_embed=nrm((1, NUM_PATCHES, D)),
        dec_embed_w=nrm((EMBED_DIM, D)), dec_embed_b=zeros((1, D)),
        dec_pred_w=nrm((D, Cb)), dec_pred_b=zeros((1, Cb)),
        base_proj_w=nrm((Cb, Cb)), base_proj_b=zeros((1, Cb)),
        dec_norm_g=ones((1, D)), dec_norm_b=zeros((1, D)),
        # decoder layers, stacked along a leading layer axis; QKV (and KV) fused
        sa_wqkv=per_layer((D, 3 * D)), sa_bqkv=per_layer((3 * D,), zeros),
        sa_wo=per_layer((D, D)), sa_bo=per_layer((D,), zeros),
        ca_wq=per_layer((D, D)), ca_bq=per_layer((D,), zeros),
        ca_wkv=per_layer((D, 2 * D)), ca_bkv=per_layer((2 * D,), zeros),
        ca_wo=per_layer((D, D)), ca_bo=per_layer((D,), zeros),
        ffn1_w=per_layer((D, F)), ffn1_b=per_layer((F,), zeros),
        ffn2_w=per_layer((F, D)), ffn2_b=per_layer((D,), zeros),
        norm1_g=per_layer((D,), ones), norm1_b=per_layer((D,), zeros),
        norm2_g=per_layer((D,), ones), norm2_b=per_layer((D,), zeros),
        norm3_g=per_layer((D,), ones), norm3_b=per_layer((D,), zeros),
    )
    return params


# ------------------------------- main -----------------------------------------
if __name__ == "__main__":
    key = jax.random.PRNGKey(0)
    kp, kx, kb = jax.random.split(key, 3)
    params = init_params(kp)
    x = jax.random.normal(kx, (B, IMG_C, IMG_HW, IMG_HW), jnp.float32)          # NCHW
    xbaseline = jax.random.normal(kb, (B, IMG_C, IMG_HW, IMG_HW), jnp.float32)  # NCHW

    loss = jax.jit(mae_compvit_forward)(params, x, xbaseline)
    loss = jax.block_until_ready(loss)
    assert jnp.isfinite(loss)
    print("KERNEL_OK")
</pallas_src>

<mosaic_0001>
module attributes {stable_mosaic.version = 11 : i64} {
  func.func @_fused_kernel(%arg0: memref<32x64xf32, #tpu.memory_space<vmem>>, %arg1: memref<64x32xf32, #tpu.memory_space<vmem>>, %arg2: memref<1x32xf32, #tpu.memory_space<vmem>>, %arg3: memref<16x32xf32, #tpu.memory_space<vmem>>, %arg4: memref<1x32xf32, #tpu.memory_space<vmem>>, %arg5: memref<1x32xf32, #tpu.memory_space<vmem>>, %arg6: memref<32x32xf32, #tpu.memory_space<vmem>>, %arg7: memref<1x32xf32, #tpu.memory_space<vmem>>, %arg8: memref<16x32xf32, #tpu.memory_space<vmem>>, %arg9: memref<2x32x96xf32, #tpu.memory_space<vmem>>, %arg10: memref<2x96xf32, #tpu.memory_space<vmem>>, %arg11: memref<2x32x32xf32, #tpu.memory_space<vmem>>, %arg12: memref<2x32xf32, #tpu.memory_space<vmem>>, %arg13: memref<2x32x32xf32, #tpu.memory_space<vmem>>, %arg14: memref<2x32xf32, #tpu.memory_space<vmem>>, %arg15: memref<2x32x64xf32, #tpu.memory_space<vmem>>, %arg16: memref<2x64xf32, #tpu.memory_space<vmem>>, %arg17: memref<2x32x32xf32, #tpu.memory_space<vmem>>, %arg18: memref<2x32xf32, #tpu.memory_space<vmem>>, %arg19: memref<2x32x64xf32, #tpu.memory_space<vmem>>, %arg20: memref<2x64xf32, #tpu.memory_space<vmem>>, %arg21: memref<2x64x32xf32, #tpu.memory_space<vmem>>, %arg22: memref<2x32xf32, #tpu.memory_space<vmem>>, %arg23: memref<2x32xf32, #tpu.memory_space<vmem>>, %arg24: memref<2x32xf32, #tpu.memory_space<vmem>>, %arg25: memref<2x32xf32, #tpu.memory_space<vmem>>, %arg26: memref<2x32xf32, #tpu.memory_space<vmem>>, %arg27: memref<2x32xf32, #tpu.memory_space<vmem>>, %arg28: memref<2x32xf32, #tpu.memory_space<vmem>>, %arg29: memref<1x32xf32, #tpu.memory_space<vmem>>, %arg30: memref<1x32xf32, #tpu.memory_space<vmem>>, %arg31: memref<32x32xf32, #tpu.memory_space<vmem>>, %arg32: memref<1x32xf32, #tpu.memory_space<vmem>>, %arg33: memref<32x32xf32, #tpu.memory_space<vmem>>, %arg34: memref<1x32xf32, #tpu.memory_space<vmem>>, %arg35: memref<1x32xf32, #tpu.memory_space<vmem>>, %arg36: memref<1x32xf32, #tpu.memory_space<vmem>>, %arg37: memref<1x32xf32, #tpu.memory_space<vmem>>, %arg38: memref<1x1xf32, #tpu.memory_space<vmem>>) attributes {dimension_semantics = [], scalar_prefetch = 0 : i64, scratch_operands = 0 : i64, tpu.core_type = #tpu.core_type<tc>} {
    %c0 = arith.constant 0 : index
    %c0_0 = arith.constant 0 : index
    %0 = vector.load %arg0[%c0, %c0_0] : memref<32x64xf32, #tpu.memory_space<vmem>>, vector<32x64xf32>
    %c0_1 = arith.constant 0 : index
    %c0_2 = arith.constant 0 : index
    %1 = vector.load %arg1[%c0_1, %c0_2] : memref<64x32xf32, #tpu.memory_space<vmem>>, vector<64x32xf32>
    %cst = arith.constant dense<0.000000e+00> : vector<32x32xf32>
    %2 = tpu.matmul %0, %1, %cst {dimension_numbers = #tpu.dot_dimension_numbers<[1], [0], [0], [1], [0, 0, 1, 1], [], []>} : vector<32x64xf32>, vector<64x32xf32>, vector<32x32xf32> -> vector<32x32xf32>
    %c0_3 = arith.constant 0 : index
    %c0_4 = arith.constant 0 : index
    %3 = vector.load %arg2[%c0_3, %c0_4] : memref<1x32xf32, #tpu.memory_space<vmem>>, vector<1x32xf32>
    %4 = vector.broadcast %3 : vector<1x32xf32> to vector<32x32xf32>
    %5 = arith.addf %2, %4 : vector<32x32xf32>
    %c0_5 = arith.constant 0 : index
    %c0_6 = arith.constant 0 : index
    %6 = vector.load %arg3[%c0_5, %c0_6] : memref<16x32xf32, #tpu.memory_space<vmem>>, vector<16x32xf32>
    %7 = tpu.concatenate %6, %6 in 0 : vector<16x32xf32>, vector<16x32xf32> -> vector<32x32xf32>
    %8 = arith.addf %5, %7 : vector<32x32xf32>
    %9 = vector.extract_strided_slice %8 {offsets = [0, 0], sizes = [8, 32], strides = [1, 1]} : vector<32x32xf32> to vector<8x32xf32>
    %10 = vector.extract_strided_slice %8 {offsets = [16, 0], sizes = [8, 32], strides = [1, 1]} : vector<32x32xf32> to vector<8x32xf32>
    %11 = tpu.concatenate %9, %10 in 0 : vector<8x32xf32>, vector<8x32xf32> -> vector<16x32xf32>
    %c0_7 = arith.constant 0 : index
    %c0_8 = arith.constant 0 : index
    %12 = vector.load %arg4[%c0_7, %c0_8] : memref<1x32xf32, #tpu.memory_space<vmem>>, vector<1x32xf32>
    %c0_9 = arith.constant 0 : index
    %c0_10 = arith.constant 0 : index
    %13 = vector.load %arg5[%c0_9, %c0_10] : memref<1x32xf32, #tpu.memory_space<vmem>>, vector<1x32xf32>
    %cst_11 = arith.constant dense<0.000000e+00> : vector<16xf32>
    %14 = vector.multi_reduction <add>, %11, %cst_11 [1] : vector<16x32xf32> to vector<16xf32>
    %15 = vector.shape_cast %14 : vector<16xf32> to vector<16x1xf32>
    %cst_12 = arith.constant 3.200000e+01 : f32
    %16 = vector.broadcast %cst_12 : f32 to vector<16x1xf32>
    %17 = arith.divf %15, %16 : vector<16x1xf32>
    %18 = vector.broadcast %17 : vector<16x1xf32> to vector<16x32xf32>
    %19 = arith.subf %11, %18 : vector<16x32xf32>
    %20 = arith.mulf %19, %19 : vector<16x32xf32>
    %cst_13 = arith.constant dense<0.000000e+00> : vector<16xf32>
    %21 = vector.multi_reduction <add>, %20, %cst_13 [1] : vector<16x32xf32> to vector<16xf32>
    %22 = vector.shape_cast %21 : vector<16xf32> to vector<16x1xf32>
    %cst_14 = arith.constant 3.200000e+01 : f32
    %23 = vector.broadcast %cst_14 : f32 to vector<16x1xf32>
    %24 = arith.divf %22, %23 : vector<16x1xf32>
    %25 = vector.broadcast %17 : vector<16x1xf32> to vector<16x32xf32>
    %26 = arith.subf %11, %25 : vector<16x32xf32>
    %cst_15 = arith.constant 9.99999974E-6 : f32
    %27 = vector.broadcast %cst_15 : f32 to vector<16x1xf32>
    %28 = arith.addf %24, %27 : vector<16x1xf32>
    %29 = math.rsqrt %28 : vector<16x1xf32>
    %30 = vector.broadcast %29 : vector<16x1xf32> to vector<16x32xf32>
    %31 = arith.mulf %26, %30 : vector<16x32xf32>
    %32 = vector.broadcast %12 : vector<1x32xf32> to vector<16x32xf32>
    %33 = arith.mulf %31, %32 : vector<16x32xf32>
    %34 = vector.broadcast %13 : vector<1x32xf32> to vector<16x32xf32>
    %35 = arith.addf %33, %34 : vector<16x32xf32>
    %c0_16 = arith.constant 0 : index
    %c0_17 = arith.constant 0 : index
    %36 = vector.load %arg6[%c0_16, %c0_17] : memref<32x32xf32, #tpu.memory_space<vmem>>, vector<32x32xf32>
    %cst_18 = arith.constant dense<0.000000e+00> : vector<16x32xf32>
    %37 = tpu.matmul %35, %36, %cst_18 {dimension_numbers = #tpu.dot_dimension_numbers<[1], [0], [0], [1], [0, 0, 1, 1], [], []>} : vector<16x32xf32>, vector<32x32xf32>, vector<16x32xf32> -> vector<16x32xf32>
    %c0_19 = arith.constant 0 : index
    %c0_20 = arith.constant 0 : index
    %38 = vector.load %arg7[%c0_19, %c0_20] : memref<1x32xf32, #tpu.memory_space<vmem>>, vector<1x32xf32>
    %39 = vector.broadcast %38 : vector<1x32xf32> to vector<16x32xf32>
    %40 = arith.addf %37, %39 : vector<16x32xf32>
    %c0_21 = arith.constant 0 : index
    %c0_22 = arith.constant 0 : index
    %41 = vector.load %arg8[%c0_21, %c0_22] : memref<16x32xf32, #tpu.memory_space<vmem>>, vector<16x32xf32>
    %42 = tpu.concatenate %41, %41 in 0 : vector<16x32xf32>, vector<16x32xf32> -> vector<32x32xf32>
    %c0_23 = arith.constant 0 : index
    %c0_24 = arith.constant 0 : index
    %c0_25 = arith.constant 0 : index
    %43 = vector.load %arg9[%c0_23, %c0_24, %c0_25] : memref<2x32x96xf32, #tpu.memory_space<vmem>>, vector<1x32x96xf32>
    %44 = vector.shape_cast %43 : vector<1x32x96xf32> to vector<32x96xf32>
    %cst_26 = arith.constant dense<0.000000e+00> : vector<32x96xf32>
    %45 = tpu.matmul %42, %44, %cst_26 {dimension_numbers = #tpu.dot_dimension_numbers<[1], [0], [0], [1], [0, 0, 1, 1], [], []>} : vector<32x32xf32>, vector<32x96xf32>, vector<32x96xf32> -> vector<32x96xf32>
    %c0_27 = arith.constant 0 : index
    %c0_28 = arith.constant 0 : index
    %46 = vector.load %arg10[%c0_27, %c0_28] : memref<2x96xf32, #tpu.memory_space<vmem>>, vector<1x96xf32>
    %47 = vector.shape_cast %46 : vector<1x96xf32> to vector<96xf32>
    %48 = vector.shape_cast %47 : vector<96xf32> to vector<1x96xf32>
    %49 = vector.broadcast %48 : vector<1x96xf32> to vector<32x96xf32>
    %50 = arith.addf %45, %49 : vector<32x96xf32>
    %51 = vector.extract_strided_slice %50 {offsets = [0, 0], sizes = [32, 32], strides = [1, 1]} : vector<32x96xf32> to vector<32x32xf32>
    %52 = vector.extract_strided_slice %50 {offsets = [0, 32], sizes = [32, 32], strides = [1, 1]} : vector<32x96xf32> to vector<32x32xf32>
    %53 = vector.extract_strided_slice %50 {offsets = [0, 64], sizes = [32, 32], strides = [1, 1]} : vector<32x96xf32> to vector<32x32xf32>
    %54 = vector.extract_strided_slice %51 {offsets = [0, 0], sizes = [16, 32], strides = [1, 1]} : vector<32x32xf32> to vector<16x32xf32>
    %55 = vector.extract_strided_slice %52 {offsets = [0, 0], sizes = [16, 32], strides = [1, 1]} : vector<32x32xf32> to vector<16x32xf32>
    %56 = vector.extract_strided_slice %53 {offsets = [0, 0], sizes = [16, 32], strides = [1, 1]} : vector<32x32xf32> to vector<16x32xf32>
    %57 = vector.extract_strided_slice %54 {offsets = [0, 0], sizes = [16, 8], strides = [1, 1]} : vector<16x32xf32> to vector<16x8xf32>
    %58 = vector.extract_strided_slice %55 {offsets = [0, 0], sizes = [16, 8], strides = [1, 1]} : vector<16x32xf32> to vector<16x8xf32>
    %cst_29 = arith.constant dense<0.000000e+00> : vector<16x16xf32>
    %59 = tpu.matmul %57, %58, %cst_29 {dimension_numbers = #tpu.dot_dimension_numbers<[1], [1], [0], [0], [0, 0, 1, 0], [], []>} : vector<16x8xf32>, vector<16x8xf32>, vector<16x16xf32> -> vector<16x16xf32>
    %cst_30 = arith.constant 0.353553385 : f32
    %60 = vector.broadcast %cst_30 : f32 to vector<16x16xf32>
    %61 = arith.mulf %59, %60 : vector<16x16xf32>
    %cst_31 = arith.constant dense<0xFF800000> : vector<16xf32>
    %62 = vector.multi_reduction <maximumf>, %61, %cst_31 [1] : vector<16x16xf32> to vector<16xf32>
    %63 = vector.shape_cast %62 : vector<16xf32> to vector<16x1xf32>
    %64 = vector.broadcast %63 : vector<16x1xf32> to vector<16x16xf32>
    %65 = arith.subf %61, %64 : vector<16x16xf32>
    %66 = math.exp %65 : vector<16x16xf32>
    %cst_32 = arith.constant dense<0.000000e+00> : vector<16xf32>
    %67 = vector.multi_reduction <add>, %66, %cst_32 [1] : vector<16x16xf32> to vector<16xf32>
    %68 = vector.shape_cast %67 : vector<16xf32> to vector<16x1xf32>
    %69 = vector.broadcast %68 : vector<16x1xf32> to vector<16x16xf32>
    %70 = arith.divf %66, %69 : vector<16x16xf32>
    %71 = vector.extract_strided_slice %56 {offsets = [0, 0], sizes = [16, 8], strides = [1, 1]} : vector<16x32xf32> to vector<16x8xf32>
    %cst_33 = arith.constant dense<0.000000e+00> : vector<16x8xf32>
    %72 = tpu.matmul %70, %71, %cst_33 {dimension_numbers = #tpu.dot_dimension_numbers<[1], [0], [0], [1], [0, 0, 1, 1], [], []>} : vector<16x16xf32>, vector<16x8xf32>, vector<16x8xf32> -> vector<16x8xf32>
    %73 = vector.extract_strided_slice %54 {offsets = [0, 8], sizes = [16, 8], strides = [1, 1]} : vector<16x32xf32> to vector<16x8xf32>
    %74 = vector.extract_strided_slice %55 {offsets = [0, 8], sizes = [16, 8], strides = [1, 1]} : vector<16x32xf32> to vector<16x8xf32>
    %cst_34 = arith.constant dense<0.000000e+00> : vector<16x16xf32>
    %75 = tpu.matmul %73, %74, %cst_34 {dimension_numbers = #tpu.dot_dimension_numbers<[1], [1], [0], [0], [0, 0, 1, 0], [], []>} : vector<16x8xf32>, vector<16x8xf32>, vector<16x16xf32> -> vector<16x16xf32>
    %cst_35 = arith.constant 0.353553385 : f32
    %76 = vector.broadcast %cst_35 : f32 to vector<16x16xf32>
    %77 = arith.mulf %75, %76 : vector<16x16xf32>
    %cst_36 = arith.constant dense<0xFF800000> : vector<16xf32>
    %78 = vector.multi_reduction <maximumf>, %77, %cst_36 [1] : vector<16x16xf32> to vector<16xf32>
    %79 = vector.shape_cast %78 : vector<16xf32> to vector<16x1xf32>
    %80 = vector.broadcast %79 : vector<16x1xf32> to vector<16x16xf32>
    %81 = arith.subf %77, %80 : vector<16x16xf32>
    %82 = math.exp %81 : vector<16x16xf32>
    %cst_37 = arith.constant dense<0.000000e+00> : vector<16xf32>
    %83 = vector.multi_reduction <add>, %82, %cst_37 [1] : vector<16x16xf32> to vector<16xf32>
    %84 = vector.shape_cast %83 : vector<16xf32> to vector<16x1xf32>
    %85 = vector.broadcast %84 : vector<16x1xf32> to vector<16x16xf32>
    %86 = arith.divf %82, %85 : vector<16x16xf32>
    %87 = vector.extract_strided_slice %56 {offsets = [0, 8], sizes = [16, 8], strides = [1, 1]} : vector<16x32xf32> to vector<16x8xf32>
    %cst_38 = arith.constant dense<0.000000e+00> : vector<16x8xf32>
    %88 = tpu.matmul %86, %87, %cst_38 {dimension_numbers = #tpu.dot_dimension_numbers<[1], [0], [0], [1], [0, 0, 1, 1], [], []>} : vector<16x16xf32>, vector<16x8xf32>, vector<16x8xf32> -> vector<16x8xf32>
    %89 = vector.extract_strided_slice %54 {offsets = [0, 16], sizes = [16, 8], strides = [1, 1]} : vector<16x32xf32> to vector<16x8xf32>
    %90 = vector.extract_strided_slice %55 {offsets = [0, 16], sizes = [16, 8], strides = [1, 1]} : vector<16x32xf32> to vector<16x8xf32>
    %cst_39 = arith.constant dense<0.000000e+00> : vector<16x16xf32>
    %91 = tpu.matmul %89, %90, %cst_39 {dimension_numbers = #tpu.dot_dimension_numbers<[1], [1], [0], [0], [0, 0, 1, 0], [], []>} : vector<16x8xf32>, vector<16x8xf32>, vector<16x16xf32> -> vector<16x16xf32>
    %cst_40 = arith.constant 0.353553385 : f32
    %92 = vector.broadcast %cst_40 : f32 to vector<16x16xf32>
    %93 = arith.mulf %91, %92 : vector<16x16xf32>
    %cst_41 = arith.constant dense<0xFF800000> : vector<16xf32>
    %94 = vector.multi_reduction <maximumf>, %93, %cst_41 [1] : vector<16x16xf32> to vector<16xf32>
    %95 = vector.shape_cast %94 : vector<16xf32> to vector<16x1xf32>
    %96 = vector.broadcast %95 : vector<16x1xf32> to vector<16x16xf32>
    %97 = arith.subf %93, %96 : vector<16x16xf32>
    %98 = math.exp %97 : vector<16x16xf32>
    %cst_42 = arith.constant dense<0.000000e+00> : vector<16xf32>
    %99 = vector.multi_reduction <add>, %98, %cst_42 [1] : vector<16x16xf32> to vector<16xf32>
    %100 = vector.shape_cast %99 : vector<16xf32> to vector<16x1xf32>
    %101 = vector.broadcast %100 : vector<16x1xf32> to vector<16x16xf32>
    %102 = arith.divf %98, %101 : vector<16x16xf32>
    %103 = vector.extract_strided_slice %56 {offsets = [0, 16], sizes = [16, 8], strides = [1, 1]} : vector<16x32xf32> to vector<16x8xf32>
    %cst_43 = arith.constant dense<0.000000e+00> : vector<16x8xf32>
    %104 = tpu.matmul %102, %103, %cst_43 {dimension_numbers = #tpu.dot_dimension_numbers<[1], [0], [0], [1], [0, 0, 1, 1], [], []>} : vector<16x16xf32>, vector<16x8xf32>, vector<16x8xf32> -> vector<16x8xf32>
    %105 = vector.extract_strided_slice %54 {offsets = [0, 24], sizes = [16, 8], strides = [1, 1]} : vector<16x32xf32> to vector<16x8xf32>
    %106 = vector.extract_strided_slice %55 {offsets = [0, 24], sizes = [16, 8], strides = [1, 1]} : vector<16x32xf32> to vector<16x8xf32>
    %cst_44 = arith.constant dense<0.000000e+00> : vector<16x16xf32>
    %107 = tpu.matmul %105, %106, %cst_44 {dimension_numbers = #tpu.dot_dimension_numbers<[1], [1], [0], [0], [0, 0, 1, 0], [], []>} : vector<16x8xf32>, vector<16x8xf32>, vector<16x16xf32> -> vector<16x16xf32>
    %cst_45 = arith.constant 0.353553385 : f32
    %108 = vector.broadcast %cst_45 : f32 to vector<16x16xf32>
    %109 = arith.mulf %107, %108 : vector<16x16xf32>
    %cst_46 = arith.constant dense<0xFF800000> : vector<16xf32>
    %110 = vector.multi_reduction <maximumf>, %109, %cst_46 [1] : vector<16x16xf32> to vector<16xf32>
    %111 = vector.shape_cast %110 : vector<16xf32> to vector<16x1xf32>
    %112 = vector.broadcast %111 : vector<16x1xf32> to vector<16x16xf32>
    %113 = arith.subf %109, %112 : vector<16x16xf32>
    %114 = math.exp %113 : vector<16x16xf32>
    %cst_47 = arith.constant dense<0.000000e+00> : vector<16xf32>
    %115 = vector.multi_reduction <add>, %114, %cst_47 [1] : vector<16x16xf32> to vector<16xf32>
    %116 = vector.shape_cast %115 : vector<16xf32> to vector<16x1xf32>
    %117 = vector.broadcast %116 : vector<16x1xf32> to vector<16x16xf32>
    %118 = arith.divf %114, %117 : vector<16x16xf32>
    %119 = vector.extract_strided_slice %56 {offsets = [0, 24], sizes = [16, 8], strides = [1, 1]} : vector<16x32xf32> to vector<16x8xf32>
    %cst_48 = arith.constant dense<0.000000e+00> : vector<16x8xf32>
    %120 = tpu.matmul %118, %119, %cst_48 {dimension_numbers = #tpu.dot_dimension_numbers<[1], [0], [0], [1], [0, 0, 1, 1], [], []>} : vector<16x16xf32>, vector<16x8xf32>, vector<16x8xf32> -> vector<16x8xf32>
    %121 = tpu.concatenate %72, %88, %104, %120 in 1 : vector<16x8xf32>, vector<16x8xf32>, vector<16x8xf32>, vector<16x8xf32> -> vector<16x32xf32>
    %122 = vector.extract_strided_slice %51 {offsets = [16, 0], sizes = [16, 32], strides = [1, 1]} : vector<32x32xf32> to vector<16x32xf32>
    %123 = vector.extract_strided_slice %52 {offsets = [16, 0], sizes = [16, 32], strides = [1, 1]} : vector<32x32xf32> to vector<16x32xf32>
    %124 = vector.extract_strided_slice %53 {offsets = [16, 0], sizes = [16, 32], strides = [1, 1]} : vector<32x32xf32> to vector<16x32xf32>
    %125 = vector.extract_strided_slice %122 {offsets = [0, 0], sizes = [16, 8], strides = [1, 1]} : vector<16x32xf32> to vector<16x8xf32>
    %126 = vector.extract_strided_slice %123 {offsets = [0, 0], sizes = [16, 8], strides = [1, 1]} : vector<16x32xf32> to vector<16x8xf32>
    %cst_49 = arith.constant dense<0.000000e+00> : vector<16x16xf32>
    %127 = tpu.matmul %125, %126, %cst_49 {dimension_numbers = #tpu.dot_dimension_numbers<[1], [1], [0], [0], [0, 0, 1, 0], [], []>} : vector<16x8xf32>, vector<16x8xf32>, vector<16x16xf32> -> vector<16x16xf32>
    %cst_50 = arith.constant 0.353553385 : f32
    %128 = vector.broadcast %cst_50 : f32 to vector<16x16xf32>
    %129 = arith.mulf %127, %128 : vector<16x16xf32>
    %cst_51 = arith.constant dense<0xFF800000> : vector<16xf32>
    %130 = vector.multi_reduction <maximumf>, %129, %cst_51 [1] : vector<16x16xf32> to vector<16xf32>
    %131 = vector.shape_cast %130 : vector<16xf32> to vector<16x1xf32>
    %132 = vector.broadcast %131 : vector<16x1xf32> to vector<16x16xf32>
    %133 = arith.subf %129, %132 : vector<16x16xf32>
    %134 = math.exp %133 : vector<16x16xf32>
    %cst_52 = arith.constant dense<0.000000e+00> : vector<16xf32>
    %135 = vector.multi_reduction <add>, %134, %cst_52 [1] : vector<16x16xf32> to vector<16xf32>
    %136 = vector.shape_cast %135 : vector<16xf32> to vector<16x1xf32>
    %137 = vector.broadcast %136 : vector<16x1xf32> to vector<16x16xf32>
    %138 = arith.divf %134, %137 : vector<16x16xf32>
    %139 = vector.extract_strided_slice %124 {offsets = [0, 0], sizes = [16, 8], strides = [1, 1]} : vector<16x32xf32> to vector<16x8xf32>
    %cst_53 = arith.constant dense<0.000000e+00> : vector<16x8xf32>
    %140 = tpu.matmul %138, %139, %cst_53 {dimension_numbers = #tpu.dot_dimension_numbers<[1], [0], [0], [1], [0, 0, 1, 1], [], []>} : vector<16x16xf32>, vector<16x8xf32>, vector<16x8xf32> -> vector<16x8xf32>
    %141 = vector.extract_strided_slice %122 {offsets = [0, 8], sizes = [16, 8], strides = [1, 1]} : vector<16x32xf32> to vector<16x8xf32>
    %142 = vector.extract_strided_slice %123 {offsets = [0, 8], sizes = [16, 8], strides = [1, 1]} : vector<16x32xf32> to vector<16x8xf32>
    %cst_54 = arith.constant dense<0.000000e+00> : vector<16x16xf32>
    %143 = tpu.matmul %141, %142, %cst_54 {dimension_numbers = #tpu.dot_dimension_numbers<[1], [1], [0], [0], [0, 0, 1, 0], [], []>} : vector<16x8xf32>, vector<16x8xf32>, vector<16x16xf32> -> vector<16x16xf32>
    %cst_55 = arith.constant 0.353553385 : f32
    %144 = vector.broadcast %cst_55 : f32 to vector<16x16xf32>
    %145 = arith.mulf %143, %144 : vector<16x16xf32>
    %cst_56 = arith.constant dense<0xFF800000> : vector<16xf32>
    %146 = vector.multi_reduction <maximumf>, %145, %cst_56 [1] : vector<16x16xf32> to vector<16xf32>
    %147 = vector.shape_cast %146 : vector<16xf32> to vector<16x1xf32>
    %148 = vector.broadcast %147 : vector<16x1xf32> to vector<16x16xf32>
    %149 = arith.subf %145, %148 : vector<16x16xf32>
    %150 = math.exp %149 : vector<16x16xf32>
    %cst_57 = arith.constant dense<0.000000e+00> : vector<16xf32>
    %151 = vector.multi_reduction <add>, %150, %cst_57 [1] : vector<16x16xf32> to vector<16xf32>
    %152 = vector.shape_cast %151 : vector<16xf32> to vector<16x1xf32>
    %153 = vector.broadcast %152 : vector<16x1xf32> to vector<16x16xf32>
    %154 = arith.divf %150, %153 : vector<16x16xf32>
    %155 = vector.extract_strided_slice %124 {offsets = [0, 8], sizes = [16, 8], strides = [1, 1]} : vector<16x32xf32> to vector<16x8xf32>
    %cst_58 = arith.constant dense<0.000000e+00> : vector<16x8xf32>
    %156 = tpu.matmul %154, %155, %cst_58 {dimension_numbers = #tpu.dot_dimension_numbers<[1], [0], [0], [1], [0, 0, 1, 1], [], []>} : vector<16x16xf32>, vector<16x8xf32>, vector<16x8xf32> -> vector<16x8xf32>
    %157 = vector.extract_strided_slice %122 {offsets = [0, 16], sizes = [16, 8], strides = [1, 1]} : vector<16x32xf32> to vector<16x8xf32>
    %158 = vector.extract_strided_slice %123 {offsets = [0, 16], sizes = [16, 8], strides = [1, 1]} : vector<16x32xf32> to vector<16x8xf32>
    %cst_59 = arith.constant dense<0.000000e+00> : vector<16x16xf32>
    %159 = tpu.matmul %157, %158, %cst_59 {dimension_numbers = #tpu.dot_dimension_numbers<[1], [1], [0], [0], [0, 0, 1, 0], [], []>} : vector<16x8xf32>, vector<16x8xf32>, vector<16x16xf32> -> vector<16x16xf32>
    %cst_60 = arith.constant 0.353553385 : f32
    %160 = vector.broadcast %cst_60 : f32 to vector<16x16xf32>
    %161 = arith.mulf %159, %160 : vector<16x16xf32>
    %cst_61 = arith.constant dense<0xFF800000> : vector<16xf32>
    %162 = vector.multi_reduction <maximumf>, %161, %cst_61 [1] : vector<16x16xf32> to vector<16xf32>
    %163 = vector.shape_cast %162 : vector<16xf32> to vector<16x1xf32>
    %164 = vector.broadcast %163 : vector<16x1xf32> to vector<16x16xf32>
    %165 = arith.subf %161, %164 : vector<16x16xf32>
    %166 = math.exp %165 : vector<16x16xf32>
    %cst_62 = arith.constant dense<0.000000e+00> : vector<16xf32>
    %167 = vector.multi_reduction <add>, %166, %cst_62 [1] : vector<16x16xf32> to vector<16xf32>
    %168 = vector.shape_cast %167 : vector<16xf32> to vector<16x1xf32>
    %169 = vector.broadcast %168 : vector<16x1xf32> to vector<16x16xf32>
    %170 = arith.divf %166, %169 : vector<16x16xf32>
    %171 = vector.extract_strided_slice %124 {offsets = [0, 16], sizes = [16, 8], strides = [1, 1]} : vector<16x32xf32> to vector<16x8xf32>
    %cst_63 = arith.constant dense<0.000000e+00> : vector<16x8xf32>
    %172 = tpu.matmul %170, %171, %cst_63 {dimension_numbers = #tpu.dot_dimension_numbers<[1], [0], [0], [1], [0, 0, 1, 1], [], []>} : vector<16x16xf32>, vector<16x8xf32>, vector<16x8xf32> -> vector<16x8xf32>
    %173 = vector.extract_strided_slice %122 {offsets = [0, 24], sizes = [16, 8], strides = [1, 1]} : vector<16x32xf32> to vector<16x8xf32>
    %174 = vector.extract_strided_slice %123 {offsets = [0, 24], sizes = [16, 8], strides = [1, 1]} : vector<16x32xf32> to vector<16x8xf32>
    %cst_64 = arith.constant dense<0.000000e+00> : vector<16x16xf32>
    %175 = tpu.matmul %173, %174, %cst_64 {dimension_numbers = #tpu.dot_dimension_numbers<[1], [1], [0], [0], [0, 0, 1, 0], [], []>} : vector<16x8xf32>, vector<16x8xf32>, vector<16x16xf32> -> vector<16x16xf32>
    %cst_65 = arith.constant 0.353553385 : f32
    %176 = vector.broadcast %cst_65 : f32 to vector<16x16xf32>
    %177 = arith.mulf %175, %176 : vector<16x16xf32>
    %cst_66 = arith.constant dense<0xFF800000> : vector<16xf32>
    %178 = vector.multi_reduction <maximumf>, %177, %cst_66 [1] : vector<16x16xf32> to vector<16xf32>
    %179 = vector.shape_cast %178 : vector<16xf32> to vector<16x1xf32>
    %180 = vector.broadcast %179 : vector<16x1xf32> to vector<16x16xf32>
    %181 = arith.subf %177, %180 : vector<16x16xf32>
    %182 = math.exp %181 : vector<16x16xf32>
    %cst_67 = arith.constant dense<0.000000e+00> : vector<16xf32>
    %183 = vector.multi_reduction <add>, %182, %cst_67 [1] : vector<16x16xf32> to vector<16xf32>
    %184 = vector.shape_cast %183 : vector<16xf32> to vector<16x1xf32>
    %185 = vector.broadcast %184 : vector<16x1xf32> to vector<16x16xf32>
    %186 = arith.divf %182, %185 : vector<16x16xf32>
    %187 = vector.extract_strided_slice %124 {offsets = [0, 24], sizes = [16, 8], strides = [1, 1]} : vector<16x32xf32> to vector<16x8xf32>
    %cst_68 = arith.constant dense<0.000000e+00> : vector<16x8xf32>
    %188 = tpu.matmul %186, %187, %cst_68 {dimension_numbers = #tpu.dot_dimension_numbers<[1], [0], [0], [1], [0, 0, 1, 1], [], []>} : vector<16x16xf32>, vector<16x8xf32>, vector<16x8xf32> -> vector<16x8xf32>
    %189 = tpu.concatenate %140, %156, %172, %188 in 1 : vector<16x8xf32>, vector<16x8xf32>, vector<16x8xf32>, vector<16x8xf32> -> vector<16x32xf32>
    %190 = tpu.concatenate %121, %189 in 0 : vector<16x32xf32>, vector<16x32xf32> -> vector<32x32xf32>
    %c0_69 = arith.constant 0 : index
    %c0_70 = arith.constant 0 : index
    %c0_71 = arith.constant 0 : index
    %191 = vector.load %arg11[%c0_69, %c0_70, %c0_71] : memref<2x32x32xf32, #tpu.memory_space<vmem>>, vector<1x32x32xf32>
    %192 = vector.shape_cast %191 : vector<1x32x32xf32> to vector<32x32xf32>
    %cst_72 = arith.constant dense<0.000000e+00> : vector<32x32xf32>
    %193 = tpu.matmul %190, %192, %cst_72 {dimension_numbers = #tpu.dot_dimension_numbers<[1], [0], [0], [1], [0, 0, 1, 1], [], []>} : vector<32x32xf32>, vector<32x32xf32>, vector<32x32xf32> -> vector<32x32xf32>
    %c0_73 = arith.constant 0 : index
    %c0_74 = arith.constant 0 : index
    %194 = vector.load %arg12[%c0_73, %c0_74] : memref<2x32xf32, #tpu.memory_space<vmem>>, vector<1x32xf32>
    %195 = vector.shape_cast %194 : vector<1x32xf32> to vector<32xf32>
    %196 = vector.shape_cast %195 : vector<32xf32> to vector<1x32xf32>
    %197 = vector.broadcast %196 : vector<1x32xf32> to vector<32x32xf32>
    %198 = arith.addf %193, %197 : vector<32x32xf32>
    %199 = arith.addf %42, %198 : vector<32x32xf32>
    %c0_75 = arith.constant 0 : index
    %c0_76 = arith.constant 0 : index
    %200 = vector.load %arg23[%c0_75, %c0_76] : memref<2x32xf32, #tpu.memory_space<vmem>>, vector<1x32xf32>
    %201 = vector.shape_cast %200 : vector<1x32xf32> to vector<32xf32>
    %c0_77 = arith.constant 0 : index
    %c0_78 = arith.constant 0 : index
    %202 = vector.load %arg24[%c0_77, %c0_78] : memref<2x32xf32, #tpu.memory_space<vmem>>, vector<1x32xf32>
    %203 = vector.shape_cast %202 : vector<1x32xf32> to vector<32xf32>
    %cst_79 = arith.constant dense<0.000000e+00> : vector<32xf32>
    %204 = vector.multi_reduction <add>, %199, %cst_79 [1] : vector<32x32xf32> to vector<32xf32>
    %205 = vector.shape_cast %204 : vector<32xf32> to vector<32x1xf32>
    %cst_80 = arith.constant 3.200000e+01 : f32
    %206 = vector.broadcast %cst_80 : f32 to vector<32x1xf32>
    %207 = arith.divf %205, %206 : vector<32x1xf32>
    %208 = vector.broadcast %207 : vector<32x1xf32> to vector<32x32xf32>
    %209 = arith.subf %199, %208 : vector<32x32xf32>
    %210 = arith.mulf %209, %209 : vector<32x32xf32>
    %cst_81 = arith.constant dense<0.000000e+00> : vector<32xf32>
    %211 = vector.multi_reduction <add>, %210, %cst_81 [1] : vector<32x32xf32> to vector<32xf32>
    %212 = vector.shape_cast %211 : vector<32xf32> to vector<32x1xf32>
    %cst_82 = arith.constant 3.200000e+01 : f32
    %213 = vector.broadcast %cst_82 : f32 to vector<32x1xf32>
    %214 = arith.divf %212, %213 : vector<32x1xf32>
    %215 = vector.broadcast %207 : vector<32x1xf32> to vector<32x32xf32>
    %216 = arith.subf %199, %215 : vector<32x32xf32>
    %cst_83 = arith.constant 9.99999974E-6 : f32
    %217 = vector.broadcast %cst_83 : f32 to vector<32x1xf32>
    %218 = arith.addf %214, %217 : vector<32x1xf32>
    %219 = math.rsqrt %218 : vector<32x1xf32>
    %220 = vector.broadcast %219 : vector<32x1xf32> to vector<32x32xf32>
    %221 = arith.mulf %216, %220 : vector<32x32xf32>
    %222 = vector.shape_cast %201 : vector<32xf32> to vector<1x32xf32>
    %223 = vector.broadcast %222 : vector<1x32xf32> to vector<32x32xf32>
    %224 = arith.mulf %221, %223 : vector<32x32xf32>
    %225 = vector.shape_cast %203 : vector<32xf32> to vector<1x32xf32>
    %226 = vector.broadcast %225 : vector<1x32xf32> to vector<32x32xf32>
    %227 = arith.addf %224, %226 : vector<32x32xf32>
    %c0_84 = arith.constant 0 : index
    %c0_85 = arith.constant 0 : index
    %c0_86 = arith.constant 0 : index
    %228 = vector.load %arg13[%c0_84, %c0_85, %c0_86] : memref<2x32x32xf32, #tpu.memory_space<vmem>>, vector<1x32x32xf32>
    %229 = vector.shape_cast %228 : vector<1x32x32xf32> to vector<32x32xf32>
    %cst_87 = arith.constant dense<0.000000e+00> : vector<32x32xf32>
    %230 = tpu.matmul %227, %229, %cst_87 {dimension_numbers = #tpu.dot_dimension_numbers<[1], [0], [0], [1], [0, 0, 1, 1], [], []>} : vector<32x32xf32>, vector<32x32xf32>, vector<32x32xf32> -> vector<32x32xf32>
    %c0_88 = arith.constant 0 : index
    %c0_89 = arith.constant 0 : index
    %231 = vector.load %arg14[%c0_88, %c0_89] : memref<2x32xf32, #tpu.memory_space<vmem>>, vector<1x32xf32>
    %232 = vector.shape_cast %231 : vector<1x32xf32> to vector<32xf32>
    %233 = vector.shape_cast %232 : vector<32xf32> to vector<1x32xf32>
    %234 = vector.broadcast %233 : vector<1x32xf32> to vector<32x32xf32>
    %235 = arith.addf %230, %234 : vector<32x32xf32>
    %c0_90 = arith.constant 0 : index
    %c0_91 = arith.constant 0 : index
    %c0_92 = arith.constant 0 : index
    %236 = vector.load %arg15[%c0_90, %c0_91, %c0_92] : memref<2x32x64xf32, #tpu.memory_space<vmem>>, vector<1x32x64xf32>
    %237 = vector.shape_cast %236 : vector<1x32x64xf32> to vector<32x64xf32>
    %cst_93 = arith.constant dense<0.000000e+00> : vector<16x64xf32>
    %238 = tpu.matmul %40, %237, %cst_93 {dimension_numbers = #tpu.dot_dimension_numbers<[1], [0], [0], [1], [0, 0, 1, 1], [], []>} : vector<16x32xf32>, vector<32x64xf32>, vector<16x64xf32> -> vector<16x64xf32>
    %c0_94 = arith.constant 0 : index
    %c0_95 = arith.constant 0 : index
    %239 = vector.load %arg16[%c0_94, %c0_95] : memref<2x64xf32, #tpu.memory_space<vmem>>, vector<1x64xf32>
    %240 = vector.shape_cast %239 : vector<1x64xf32> to vector<64xf32>
    %241 = vector.shape_cast %240 : vector<64xf32> to vector<1x64xf32>
    %242 = vector.broadcast %241 : vector<1x64xf32> to vector<16x64xf32>
    %243 = arith.addf %238, %242 : vector<16x64xf32>
    %244 = vector.extract_strided_slice %243 {offsets = [0, 0], sizes = [16, 32], strides = [1, 1]} : vector<16x64xf32> to vector<16x32xf32>
    %245 = vector.extract_strided_slice %243 {offsets = [0, 32], sizes = [16, 32], strides = [1, 1]} : vector<16x64xf32> to vector<16x32xf32>
    %246 = vector.extract_strided_slice %235 {offsets = [0, 0], sizes = [16, 32], strides = [1, 1]} : vector<32x32xf32> to vector<16x32xf32>
    %247 = vector.extract_strided_slice %244 {offsets = [0, 0], sizes = [8, 32], strides = [1, 1]} : vector<16x32xf32> to vector<8x32xf32>
    %248 = vector.extract_strided_slice %245 {offsets = [0, 0], sizes = [8, 32], strides = [1, 1]} : vector<16x32xf32> to vector<8x32xf32>
    %249 = vector.extract_strided_slice %246 {offsets = [0, 0], sizes = [16, 8], strides = [1, 1]} : vector<16x32xf32> to vector<16x8xf32>
    %250 = vector.extract_strided_slice %247 {offsets = [0, 0], sizes = [8, 8], strides = [1, 1]} : vector<8x32xf32> to vector<8x8xf32>
    %cst_96 = arith.constant dense<0.000000e+00> : vector<16x8xf32>
    %251 = tpu.matmul %249, %250, %cst_96 {dimension_numbers = #tpu.dot_dimension_numbers<[1], [1], [0], [0], [0, 0, 1, 0], [], []>} : vector<16x8xf32>, vector<8x8xf32>, vector<16x8xf32> -> vector<16x8xf32>
    %cst_97 = arith.constant 0.353553385 : f32
    %252 = vector.broadcast %cst_97 : f32 to vector<16x8xf32>
    %253 = arith.mulf %251, %252 : vector<16x8xf32>
    %cst_98 = arith.constant dense<0xFF800000> : vector<16xf32>
    %254 = vector.multi_reduction <maximumf>, %253, %cst_98 [1] : vector<16x8xf32> to vector<16xf32>
    %255 = vector.shape_cast %254 : vector<16xf32> to vector<16x1xf32>
    %256 = vector.broadcast %255 : vector<16x1xf32> to vector<16x8xf32>
    %257 = arith.subf %253, %256 : vector<16x8xf32>
    %258 = math.exp %257 : vector<16x8xf32>
    %cst_99 = arith.constant dense<0.000000e+00> : vector<16xf32>
    %259 = vector.multi_reduction <add>, %258, %cst_99 [1] : vector<16x8xf32> to vector<16xf32>
    %260 = vector.shape_cast %259 : vector<16xf32> to vector<16x1xf32>
    %261 = vector.broadcast %260 : vector<16x1xf32> to vector<16x8xf32>
    %262 = arith.divf %258, %261 : vector<16x8xf32>
    %263 = vector.extract_strided_slice %248 {offsets = [0, 0], sizes = [8, 8], strides = [1, 1]} : vector<8x32xf32> to vector<8x8xf32>
    %cst_100 = arith.constant dense<0.000000e+00> : vector<16x8xf32>
    %264 = tpu.matmul %262, %263, %cst_100 {dimension_numbers = #tpu.dot_dimension_numbers<[1], [0], [0], [1], [0, 0, 1, 1], [], []>} : vector<16x8xf32>, vector<8x8xf32>, vector<16x8xf32> -> vector<16x8xf32>
    %265 = vector.extract_strided_slice %246 {offsets = [0, 8], sizes = [16, 8], strides = [1, 1]} : vector<16x32xf32> to vector<16x8xf32>
    %266 = vector.extract_strided_slice %247 {offsets = [0, 8], sizes = [8, 8], strides = [1, 1]} : vector<8x32xf32> to vector<8x8xf32>
    %cst_101 = arith.constant dense<0.000000e+00> : vector<16x8xf32>
    %267 = tpu.matmul %265, %266, %cst_101 {dimension_numbers = #tpu.dot_dimension_numbers<[1], [1], [0], [0], [0, 0, 1, 0], [], []>} : vector<16x8xf32>, vector<8x8xf32>, vector<16x8xf32> -> vector<16x8xf32>
    %cst_102 = arith.constant 0.353553385 : f32
    %268 = vector.broadcast %cst_102 : f32 to vector<16x8xf32>
    %269 = arith.mulf %267, %268 : vector<16x8xf32>
    %cst_103 = arith.constant dense<0xFF800000> : vector<16xf32>
    %270 = vector.multi_reduction <maximumf>, %269, %cst_103 [1] : vector<16x8xf32> to vector<16xf32>
    %271 = vector.shape_cast %270 : vector<16xf32> to vector<16x1xf32>
    %272 = vector.broadcast %271 : vector<16x1xf32> to vector<16x8xf32>
    %273 = arith.subf %269, %272 : vector<16x8xf32>
    %274 = math.exp %273 : vector<16x8xf32>
    %cst_104 = arith.constant dense<0.000000e+00> : vector<16xf32>
    %275 = vector.multi_reduction <add>, %274, %cst_104 [1] : vector<16x8xf32> to vector<16xf32>
    %276 = vector.shape_cast %275 : vector<16xf32> to vector<16x1xf32>
    %277 = vector.broadcast %276 : vector<16x1xf32> to vector<16x8xf32>
    %278 = arith.divf %274, %277 : vector<16x8xf32>
    %279 = vector.extract_strided_slice %248 {offsets = [0, 8], sizes = [8, 8], strides = [1, 1]} : vector<8x32xf32> to vector<8x8xf32>
    %cst_105 = arith.constant dense<0.000000e+00> : vector<16x8xf32>
    %280 = tpu.matmul %278, %279, %cst_105 {dimension_numbers = #tpu.dot_dimension_numbers<[1], [0], [0], [1], [0, 0, 1, 1], [], []>} : vector<16x8xf32>, vector<8x8xf32>, vector<16x8xf32> -> vector<16x8xf32>
    %281 = vector.extract_strided_slice %246 {offsets = [0, 16], sizes = [16, 8], strides = [1, 1]} : vector<16x32xf32> to vector<16x8xf32>
    %282 = vector.extract_strided_slice %247 {offsets = [0, 16], sizes = [8, 8], strides = [1, 1]} : vector<8x32xf32> to vector<8x8xf32>
    %cst_106 = arith.constant dense<0.000000e+00> : vector<16x8xf32>
    %283 = tpu.matmul %281, %282, %cst_106 {dimension_numbers = #tpu.dot_dimension_numbers<[1], [1], [0], [0], [0, 0, 1, 0], [], []>} : vector<16x8xf32>, vector<8x8xf32>, vector<16x8xf32> -> vector<16x8xf32>
    %cst_107 = arith.constant 0.353553385 : f32
    %284 = vector.broadcast %cst_107 : f32 to vector<16x8xf32>
    %285 = arith.mulf %283, %284 : vector<16x8xf32>
    %cst_108 = arith.constant dense<0xFF800000> : vector<16xf32>
    %286 = vector.multi_reduction <maximumf>, %285, %cst_108 [1] : vector<16x8xf32> to vector<16xf32>
    %287 = vector.shape_cast %286 : vector<16xf32> to vector<16x1xf32>
    %288 = vector.broadcast %287 : vector<16x1xf32> to vector<16x8xf32>
    %289 = arith.subf %285, %288 : vector<16x8xf32>
    %290 = math.exp %289 : vector<16x8xf32>
    %cst_109 = arith.constant dense<0.000000e+00> : vector<16xf32>
    %291 = vector.multi_reduction <add>, %290, %cst_109 [1] : vector<16x8xf32> to vector<16xf32>
    %292 = vector.shape_cast %291 : vector<16xf32> to vector<16x1xf32>
    %293 = vector.broadcast %292 : vector<16x1xf32> to vector<16x8xf32>
    %294 = arith.divf %290, %293 : vector<16x8xf32>
    %295 = vector.extract_strided_slice %248 {offsets = [0, 16], sizes = [8, 8], strides = [1, 1]} : vector<8x32xf32> to vector<8x8xf32>
    %cst_110 = arith.constant dense<0.000000e+00> : vector<16x8xf32>
    %296 = tpu.matmul %294, %295, %cst_110 {dimension_numbers = #tpu.dot_dimension_numbers<[1], [0], [0], [1], [0, 0, 1, 1], [], []>} : vector<16x8xf32>, vector<8x8xf32>, vector<16x8xf32> -> vector<16x8xf32>
    %297 = vector.extract_strided_slice %246 {offsets = [0, 24], sizes = [16, 8], strides = [1, 1]} : vector<16x32xf32> to vector<16x8xf32>
    %298 = vector.extract_strided_slice %247 {offsets = [0, 24], sizes = [8, 8], strides = [1, 1]} : vector<8x32xf32> to vector<8x8xf32>
    %cst_111 = arith.constant dense<0.000000e+00> : vector<16x8xf32>
    %299 = tpu.matmul %297, %298, %cst_111 {dimension_numbers = #tpu.dot_dimension_numbers<[1], [1], [0], [0], [0, 0, 1, 0], [], []>} : vector<16x8xf32>, vector<8x8xf32>, vector<16x8xf32> -> vector<16x8xf32>
    %cst_112 = arith.constant 0.353553385 : f32
    %300 = vector.broadcast %cst_112 : f32 to vector<16x8xf32>
    %301 = arith.mulf %299, %300 : vector<16x8xf32>
    %cst_113 = arith.constant dense<0xFF800000> : vector<16xf32>
    %302 = vector.multi_reduction <maximumf>, %301, %cst_113 [1] : vector<16x8xf32> to vector<16xf32>
    %303 = vector.shape_cast %302 : vector<16xf32> to vector<16x1xf32>
    %304 = vector.broadcast %303 : vector<16x1xf32> to vector<16x8xf32>
    %305 = arith.subf %301, %304 : vector<16x8xf32>
    %306 = math.exp %305 : vector<16x8xf32>
    %cst_114 = arith.constant dense<0.000000e+00> : vector<16xf32>
    %307 = vector.multi_reduction <add>, %306, %cst_114 [1] : vector<16x8xf32> to vector<16xf32>
    %308 = vector.shape_cast %307 : vector<16xf32> to vector<16x1xf32>
    %309 = vector.broadcast %308 : vector<16x1xf32> to vector<16x8xf32>
    %310 = arith.divf %306, %309 : vector<16x8xf32>
    %311 = vector.extract_strided_slice %248 {offsets = [0, 24], sizes = [8, 8], strides = [1, 1]} : vector<8x32xf32> to vector<8x8xf32>
    %cst_115 = arith.constant dense<0.000000e+00> : vector<16x8xf32>
    %312 = tpu.matmul %310, %311, %cst_115 {dimension_numbers = #tpu.dot_dimension_numbers<[1], [0], [0], [1], [0, 0, 1, 1], [], []>} : vector<16x8xf32>, vector<8x8xf32>, vector<16x8xf32> -> vector<16x8xf32>
    %313 = tpu.concatenate %264, %280, %296, %312 in 1 : vector<16x8xf32>, vector<16x8xf32>, vector<16x8xf32>, vector<16x8xf32> -> vector<16x32xf32>
    %314 = vector.extract_strided_slice %235 {offsets = [16, 0], sizes = [16, 32], strides = [1, 1]} : vector<32x32xf32> to vector<16x32xf32>
    %315 = vector.extract_strided_slice %244 {offsets = [8, 0], sizes = [8, 32], strides = [1, 1]} : vector<16x32xf32> to vector<8x32xf32>
    %316 = vector.extract_strided_slice %245 {offsets = [8, 0], sizes = [8, 32], strides = [1, 1]} : vector<16x32xf32> to vector<8x32xf32>
    %317 = vector.extract_strided_slice %314 {offsets = [0, 0], sizes = [16, 8], strides = [1, 1]} : vector<16x32xf32> to vector<16x8xf32>
    %318 = vector.extract_strided_slice %315 {offsets = [0, 0], sizes = [8, 8], strides = [1, 1]} : vector<8x32xf32> to vector<8x8xf32>
    %cst_116 = arith.constant dense<0.000000e+00> : vector<16x8xf32>
    %319 = tpu.matmul %317, %318, %cst_116 {dimension_numbers = #tpu.dot_dimension_numbers<[1], [1], [0], [0], [0, 0, 1, 0], [], []>} : vector<16x8xf32>, vector<8x8xf32>, vector<16x8xf32> -> vector<16x8xf32>
    %cst_117 = arith.constant 0.353553385 : f32
    %320 = vector.broadcast %cst_117 : f32 to vector<16x8xf32>
    %321 = arith.mulf %319, %320 : vector<16x8xf32>
    %cst_118 = arith.constant dense<0xFF800000> : vector<16xf32>
    %322 = vector.multi_reduction <maximumf>, %321, %cst_118 [1] : vector<16x8xf32> to vector<16xf32>
    %323 = vector.shape_cast %322 : vector<16xf32> to vector<16x1xf32>
    %324 = vector.broadcast %323 : vector<16x1xf32> to vector<16x8xf32>
    %325 = arith.subf %321, %324 : vector<16x8xf32>
    %326 = math.exp %325 : vector<16x8xf32>
    %cst_119 = arith.constant dense<0.000000e+00> : vector<16xf32>
    %327 = vector.multi_reduction <add>, %326, %cst_119 [1] : vector<16x8xf32> to vector<16xf32>
    %328 = vector.shape_cast %327 : vector<16xf32> to vector<16x1xf32>
    %329 = vector.broadcast %328 : vector<16x1xf32> to vector<16x8xf32>
    %330 = arith.divf %326, %329 : vector<16x8xf32>
    %331 = vector.extract_strided_slice %316 {offsets = [0, 0], sizes = [8, 8], strides = [1, 1]} : vector<8x32xf32> to vector<8x8xf32>
    %cst_120 = arith.constant dense<0.000000e+00> : vector<16x8xf32>
    %332 = tpu.matmul %330, %331, %cst_120 {dimension_numbers = #tpu.dot_dimension_numbers<[1], [0], [0], [1], [0, 0, 1, 1], [], []>} : vector<16x8xf32>, vector<8x8xf32>, vector<16x8xf32> -> vector<16x8xf32>
    %333 = vector.extract_strided_slice %314 {offsets = [0, 8], sizes = [16, 8], strides = [1, 1]} : vector<16x32xf32> to vector<16x8xf32>
    %334 = vector.extract_strided_slice %315 {offsets = [0, 8], sizes = [8, 8], strides = [1, 1]} : vector<8x32xf32> to vector<8x8xf32>
    %cst_121 = arith.constant dense<0.000000e+00> : vector<16x8xf32>
    %335 = tpu.matmul %333, %334, %cst_121 {dimension_numbers = #tpu.dot_dimension_numbers<[1], [1], [0], [0], [0, 0, 1, 0], [], []>} : vector<16x8xf32>, vector<8x8xf32>, vector<16x8xf32> -> vector<16x8xf32>
    %cst_122 = arith.constant 0.353553385 : f32
    %336 = vector.broadcast %cst_122 : f32 to vector<16x8xf32>
    %337 = arith.mulf %335, %336 : vector<16x8xf32>
    %cst_123 = arith.constant dense<0xFF800000> : vector<16xf32>
    %338 = vector.multi_reduction <maximumf>, %337, %cst_123 [1] : vector<16x8xf32> to vector<16xf32>
    %339 = vector.shape_cast %338 : vector<16xf32> to vector<16x1xf32>
    %340 = vector.broadcast %339 : vector<16x1xf32> to vector<16x8xf32>
    %341 = arith.subf %337, %340 : vector<16x8xf32>
    %342 = math.exp %341 : vector<16x8xf32>
    %cst_124 = arith.constant dense<0.000000e+00> : vector<16xf32>
    %343 = vector.multi_reduction <add>, %342, %cst_124 [1] : vector<16x8xf32> to vector<16xf32>
    %344 = vector.shape_cast %343 : vector<16xf32> to vector<16x1xf32>
    %345 = vector.broadcast %344 : vector<16x1xf32> to vector<16x8xf32>
    %346 = arith.divf %342, %345 : vector<16x8xf32>
    %347 = vector.extract_strided_slice %316 {offsets = [0, 8], sizes = [8, 8], strides = [1, 1]} : vector<8x32xf32> to vector<8x8xf32>
    %cst_125 = arith.constant dense<0.000000e+00> : vector<16x8xf32>
    %348 = tpu.matmul %346, %347, %cst_125 {dimension_numbers = #tpu.dot_dimension_numbers<[1], [0], [0], [1], [0, 0, 1, 1], [], []>} : vector<16x8xf32>, vector<8x8xf32>, vector<16x8xf32> -> vector<16x8xf32>
    %349 = vector.extract_strided_slice %314 {offsets = [0, 16], sizes = [16, 8], strides = [1, 1]} : vector<16x32xf32> to vector<16x8xf32>
    %350 = vector.extract_strided_slice %315 {offsets = [0, 16], sizes = [8, 8], strides = [1, 1]} : vector<8x32xf32> to vector<8x8xf32>
    %cst_126 = arith.constant dense<0.000000e+00> : vector<16x8xf32>
    %351 = tpu.matmul %349, %350, %cst_126 {dimension_numbers = #tpu.dot_dimension_numbers<[1], [1], [0], [0], [0, 0, 1, 0], [], []>} : vector<16x8xf32>, vector<8x8xf32>, vector<16x8xf32> -> vector<16x8xf32>
    %cst_127 = arith.constant 0.353553385 : f32
    %352 = vector.broadcast %cst_127 : f32 to vector<16x8xf32>
    %353 = arith.mulf %351, %352 : vector<16x8xf32>
    %cst_128 = arith.constant dense<0xFF800000> : vector<16xf32>
    %354 = vector.multi_reduction <maximumf>, %353, %cst_128 [1] : vector<16x8xf32> to vector<16xf32>
    %355 = vector.shape_cast %354 : vector<16xf32> to vector<16x1xf32>
    %356 = vector.broadcast %355 : vector<16x1xf32> to vector<16x8xf32>
    %357 = arith.subf %353, %356 : vector<16x8xf32>
    %358 = math.exp %357 : vector<16x8xf32>
    %cst_129 = arith.constant dense<0.000000e+00> : vector<16xf32>
    %359 = vector.multi_reduction <add>, %358, %cst_129 [1] : vector<16x8xf32> to vector<16xf32>
    %360 = vector.shape_cast %359 : vector<16xf32> to vector<16x1xf32>
    %361 = vector.broadcast %360 : vector<16x1xf32> to vector<16x8xf32>
    %362 = arith.divf %358, %361 : vector<16x8xf32>
    %363 = vector.extract_strided_slice %316 {offsets = [0, 16], sizes = [8, 8], strides = [1, 1]} : vector<8x32xf32> to vector<8x8xf32>
    %cst_130 = arith.constant dense<0.000000e+00> : vector<16x8xf32>
    %364 = tpu.matmul %362, %363, %cst_130 {dimension_numbers = #tpu.dot_dimension_numbers<[1], [0], [0], [1], [0, 0, 1, 1], [], []>} : vector<16x8xf32>, vector<8x8xf32>, vector<16x8xf32> -> vector<16x8xf32>
    %365 = vector.extract_strided_slice %314 {offsets = [0, 24], sizes = [16, 8], strides = [1, 1]} : vector<16x32xf32> to vector<16x8xf32>
    %366 = vector.extract_strided_slice %315 {offsets = [0, 24], sizes = [8, 8], strides = [1, 1]} : vector<8x32xf32> to vector<8x8xf32>
    %cst_131 = arith.constant dense<0.000000e+00> : vector<16x8xf32>
    %367 = tpu.matmul %365, %366, %cst_131 {dimension_numbers = #tpu.dot_dimension_numbers<[1], [1], [0], [0], [0, 0, 1, 0], [], []>} : vector<16x8xf32>, vector<8x8xf32>, vector<16x8xf32> -> vector<16x8xf32>
    %cst_132 = arith.constant 0.353553385 : f32
    %368 = vector.broadcast %cst_132 : f32 to vector<16x8xf32>
    %369 = arith.mulf %367, %368 : vector<16x8xf32>
    %cst_133 = arith.constant dense<0xFF800000> : vector<16xf32>
    %370 = vector.multi_reduction <maximumf>, %369, %cst_133 [1] : vector<16x8xf32> to vector<16xf32>
    %371 = vector.shape_cast %370 : vector<16xf32> to vector<16x1xf32>
    %372 = vector.broadcast %371 : vector<16x1xf32> to vector<16x8xf32>
    %373 = arith.subf %369, %372 : vector<16x8xf32>
    %374 = math.exp %373 : vector<16x8xf32>
    %cst_134 = arith.constant dense<0.000000e+00> : vector<16xf32>
    %375 = vector.multi_reduction <add>, %374, %cst_134 [1] : vector<16x8xf32> to vector<16xf32>
    %376 = vector.shape_cast %375 : vector<16xf32> to vector<16x1xf32>
    %377 = vector.broadcast %376 : vector<16x1xf32> to vector<16x8xf32>
    %378 = arith.divf %374, %377 : vector<16x8xf32>
    %379 = vector.extract_strided_slice %316 {offsets = [0, 24], sizes = [8, 8], strides = [1, 1]} : vector<8x32xf32> to vector<8x8xf32>
    %cst_135 = arith.constant dense<0.000000e+00> : vector<16x8xf32>
    %380 = tpu.matmul %378, %379, %cst_135 {dimension_numbers = #tpu.dot_dimension_numbers<[1], [0], [0], [1], [0, 0, 1, 1], [], []>} : vector<16x8xf32>, vector<8x8xf32>, vector<16x8xf32> -> vector<16x8xf32>
    %381 = tpu.concatenate %332, %348, %364, %380 in 1 : vector<16x8xf32>, vector<16x8xf32>, vector<16x8xf32>, vector<16x8xf32> -> vector<16x32xf32>
    %382 = tpu.concatenate %313, %381 in 0 : vector<16x32xf32>, vector<16x32xf32> -> vector<32x32xf32>
    %c0_136 = arith.constant 0 : index
    %c0_137 = arith.constant 0 : index
    %c0_138 = arith.constant 0 : index
    %383 = vector.load %arg17[%c0_136, %c0_137, %c0_138] : memref<2x32x32xf32, #tpu.memory_space<vmem>>, vector<1x32x32xf32>
    %384 = vector.shape_cast %383 : vector<1x32x32xf32> to vector<32x32xf32>
    %cst_139 = arith.constant dense<0.000000e+00> : vector<32x32xf32>
    %385 = tpu.matmul %382, %384, %cst_139 {dimension_numbers = #tpu.dot_dimension_numbers<[1], [0], [0], [1], [0, 0, 1, 1], [], []>} : vector<32x32xf32>, vector<32x32xf32>, vector<32x32xf32> -> vector<32x32xf32>
    %c0_140 = arith.constant 0 : index
    %c0_141 = arith.constant 0 : index
    %386 = vector.load %arg18[%c0_140, %c0_141] : memref<2x32xf32, #tpu.memory_space<vmem>>, vector<1x32xf32>
    %387 = vector.shape_cast %386 : vector<1x32xf32> to vector<32xf32>
    %388 = vector.shape_cast %387 : vector<32xf32> to vector<1x32xf32>
    %389 = vector.broadcast %388 : vector<1x32xf32> to vector<32x32xf32>
    %390 = arith.addf %385, %389 : vector<32x32xf32>
    %391 = arith.addf %227, %390 : vector<32x32xf32>
    %c0_142 = arith.constant 0 : index
    %c0_143 = arith.constant 0 : index
    %392 = vector.load %arg25[%c0_142, %c0_143] : memref<2x32xf32, #tpu.memory_space<vmem>>, vector<1x32xf32>
    %393 = vector.shape_cast %392 : vector<1x32xf32> to vector<32xf32>
    %c0_144 = arith.constant 0 : index
    %c0_145 = arith.constant 0 : index
    %394 = vector.load %arg26[%c0_144, %c0_145] : memref<2x32xf32, #tpu.memory_space<vmem>>, vector<1x32xf32>
    %395 = vector.shape_cast %394 : vector<1x32xf32> to vector<32xf32>
    %cst_146 = arith.constant dense<0.000000e+00> : vector<32xf32>
    %396 = vector.multi_reduction <add>, %391, %cst_146 [1] : vector<32x32xf32> to vector<32xf32>
    %397 = vector.shape_cast %396 : vector<32xf32> to vector<32x1xf32>
    %cst_147 = arith.constant 3.200000e+01 : f32
    %398 = vector.broadcast %cst_147 : f32 to vector<32x1xf32>
    %399 = arith.divf %397, %398 : vector<32x1xf32>
    %400 = vector.broadcast %399 : vector<32x1xf32> to vector<32x32xf32>
    %401 = arith.subf %391, %400 : vector<32x32xf32>
    %402 = arith.mulf %401, %401 : vector<32x32xf32>
    %cst_148 = arith.constant dense<0.000000e+00> : vector<32xf32>
    %403 = vector.multi_reduction <add>, %402, %cst_148 [1] : vector<32x32xf32> to vector<32xf32>
    %404 = vector.shape_cast %403 : vector<32xf32> to vector<32x1xf32>
    %cst_149 = arith.constant 3.200000e+01 : f32
    %405 = vector.broadcast %cst_149 : f32 to vector<32x1xf32>
    %406 = arith.divf %404, %405 : vector<32x1xf32>
    %407 = vector.broadcast %399 : vector<32x1xf32> to vector<32x32xf32>
    %408 = arith.subf %391, %407 : vector<32x32xf32>
    %cst_150 = arith.constant 9.99999974E-6 : f32
    %409 = vector.broadcast %cst_150 : f32 to vector<32x1xf32>
    %410 = arith.addf %406, %409 : vector<32x1xf32>
    %411 = math.rsqrt %410 : vector<32x1xf32>
    %412 = vector.broadcast %411 : vector<32x1xf32> to vector<32x32xf32>
    %413 = arith.mulf %408, %412 : vector<32x32xf32>
    %414 = vector.shape_cast %393 : vector<32xf32> to vector<1x32xf32>
    %415 = vector.broadcast %414 : vector<1x32xf32> to vector<32x32xf32>
    %416 = arith.mulf %413, %415 : vector<32x32xf32>
    %417 = vector.shape_cast %395 : vector<32xf32> to vector<1x32xf32>
    %418 = vector.broadcast %417 : vector<1x32xf32> to vector<32x32xf32>
    %419 = arith.addf %416, %418 : vector<32x32xf32>
    %c0_151 = arith.constant 0 : index
    %c0_152 = arith.constant 0 : index
    %c0_153 = arith.constant 0 : index
    %420 = vector.load %arg19[%c0_151, %c0_152, %c0_153] : memref<2x32x64xf32, #tpu.memory_space<vmem>>, vector<1x32x64xf32>
    %421 = vector.shape_cast %420 : vector<1x32x64xf32> to vector<32x64xf32>
    %cst_154 = arith.constant dense<0.000000e+00> : vector<32x64xf32>
    %422 = tpu.matmul %419, %421, %cst_154 {dimension_numbers = #tpu.dot_dimension_numbers<[1], [0], [0], [1], [0, 0, 1, 1], [], []>} : vector<32x32xf32>, vector<32x64xf32>, vector<32x64xf32> -> vector<32x64xf32>
    %c0_155 = arith.constant 0 : index
    %c0_156 = arith.constant 0 : index
    %423 = vector.load %arg20[%c0_155, %c0_156] : memref<2x64xf32, #tpu.memory_space<vmem>>, vector<1x64xf32>
    %424 = vector.shape_cast %423 : vector<1x64xf32> to vector<64xf32>
    %425 = vector.shape_cast %424 : vector<64xf32> to vector<1x64xf32>
    %426 = vector.broadcast %425 : vector<1x64xf32> to vector<32x64xf32>
    %427 = arith.addf %422, %426 : vector<32x64xf32>
    %cst_157 = arith.constant 0.000000e+00 : f32
    %428 = vector.broadcast %cst_157 : f32 to vector<32x64xf32>
    %429 = arith.maximumf %427, %428 : vector<32x64xf32>
    %c0_158 = arith.constant 0 : index
    %c0_159 = arith.constant 0 : index
    %c0_160 = arith.constant 0 : index
    %430 = vector.load %arg21[%c0_158, %c0_159, %c0_160] : memref<2x64x32xf32, #tpu.memory_space<vmem>>, vector<1x64x32xf32>
    %431 = vector.shape_cast %430 : vector<1x64x32xf32> to vector<64x32xf32>
    %cst_161 = arith.constant dense<0.000000e+00> : vector<32x32xf32>
    %432 = tpu.matmul %429, %431, %cst_161 {dimension_numbers = #tpu.dot_dimension_numbers<[1], [0], [0], [1], [0, 0, 1, 1], [], []>} : vector<32x64xf32>, vector<64x32xf32>, vector<32x32xf32> -> vector<32x32xf32>
    %c0_162 = arith.constant 0 : index
    %c0_163 = arith.constant 0 : index
    %433 = vector.load %arg22[%c0_162, %c0_163] : memref<2x32xf32, #tpu.memory_space<vmem>>, vector<1x32xf32>
    %434 = vector.shape_cast %433 : vector<1x32xf32> to vector<32xf32>
    %435 = vector.shape_cast %434 : vector<32xf32> to vector<1x32xf32>
    %436 = vector.broadcast %435 : vector<1x32xf32> to vector<32x32xf32>
    %437 = arith.addf %432, %436 : vector<32x32xf32>
    %438 = arith.addf %419, %437 : vector<32x32xf32>
    %c0_164 = arith.constant 0 : index
    %c0_165 = arith.constant 0 : index
    %439 = vector.load %arg27[%c0_164, %c0_165] : memref<2x32xf32, #tpu.memory_space<vmem>>, vector<1x32xf32>
    %440 = vector.shape_cast %439 : vector<1x32xf32> to vector<32xf32>
    %c0_166 = arith.constant 0 : index
    %c0_167 = arith.constant 0 : index
    %441 = vector.load %arg28[%c0_166, %c0_167] : memref<2x32xf32, #tpu.memory_space<vmem>>, vector<1x32xf32>
    %442 = vector.shape_cast %441 : vector<1x32xf32> to vector<32xf32>
    %cst_168 = arith.constant dense<0.000000e+00> : vector<32xf32>
    %443 = vector.multi_reduction <add>, %438, %cst_168 [1] : vector<32x32xf32> to vector<32xf32>
    %444 = vector.shape_cast %443 : vector<32xf32> to vector<32x1xf32>
    %cst_169 = arith.constant 3.200000e+01 : f32
    %445 = vector.broadcast %cst_169 : f32 to vector<32x1xf32>
    %446 = arith.divf %444, %445 : vector<32x1xf32>
    %447 = vector.broadcast %446 : vector<32x1xf32> to vector<32x32xf32>
    %448 = arith.subf %438, %447 : vector<32x32xf32>
    %449 = arith.mulf %448, %448 : vector<32x32xf32>
    %cst_170 = arith.constant dense<0.000000e+00> : vector<32xf32>
    %450 = vector.multi_reduction <add>, %449, %cst_170 [1] : vector<32x32xf32> to vector<32xf32>
    %451 = vector.shape_cast %450 : vector<32xf32> to vector<32x1xf32>
    %cst_171 = arith.constant 3.200000e+01 : f32
    %452 = vector.broadcast %cst_171 : f32 to vector<32x1xf32>
    %453 = arith.divf %451, %452 : vector<32x1xf32>
    %454 = vector.broadcast %446 : vector<32x1xf32> to vector<32x32xf32>
    %455 = arith.subf %438, %454 : vector<32x32xf32>
    %cst_172 = arith.constant 9.99999974E-6 : f32
    %456 = vector.broadcast %cst_172 : f32 to vector<32x1xf32>
    %457 = arith.addf %453, %456 : vector<32x1xf32>
    %458 = math.rsqrt %457 : vector<32x1xf32>
    %459 = vector.broadcast %458 : vector<32x1xf32> to vector<32x32xf32>
    %460 = arith.mulf %455, %459 : vector<32x32xf32>
    %461 = vector.shape_cast %440 : vector<32xf32> to vector<1x32xf32>
    %462 = vector.broadcast %461 : vector<1x32xf32> to vector<32x32xf32>
    %463 = arith.mulf %460, %462 : vector<32x32xf32>
    %464 = vector.shape_cast %442 : vector<32xf32> to vector<1x32xf32>
    %465 = vector.broadcast %464 : vector<1x32xf32> to vector<32x32xf32>
    %466 = arith.addf %463, %465 : vector<32x32xf32>
    %c1 = arith.constant 1 : index
    %c0_173 = arith.constant 0 : index
    %c0_174 = arith.constant 0 : index
    %467 = vector.load %arg9[%c1, %c0_173, %c0_174] : memref<2x32x96xf32, #tpu.memory_space<vmem>>, vector<1x32x96xf32>
    %468 = vector.shape_cast %467 : vector<1x32x96xf32> to vector<32x96xf32>
    %cst_175 = arith.constant dense<0.000000e+00> : vector<32x96xf32>
    %469 = tpu.matmul %466, %468, %cst_175 {dimension_numbers = #tpu.dot_dimension_numbers<[1], [0], [0], [1], [0, 0, 1, 1], [], []>} : vector<32x32xf32>, vector<32x96xf32>, vector<32x96xf32> -> vector<32x96xf32>
    %c1_176 = arith.constant 1 : index
    %c0_177 = arith.constant 0 : index
    %470 = vector.load %arg10[%c1_176, %c0_177] : memref<2x96xf32, #tpu.memory_space<vmem>>, vector<1x96xf32>
    %471 = vector.shape_cast %470 : vector<1x96xf32> to vector<96xf32>
    %472 = vector.shape_cast %471 : vector<96xf32> to vector<1x96xf32>
    %473 = vector.broadcast %472 : vector<1x96xf32> to vector<32x96xf32>
    %474 = arith.addf %469, %473 : vector<32x96xf32>
    %475 = vector.extract_strided_slice %474 {offsets = [0, 0], sizes = [32, 32], strides = [1, 1]} : vector<32x96xf32> to vector<32x32xf32>
    %476 = vector.extract_strided_slice %474 {offsets = [0, 32], sizes = [32, 32], strides = [1, 1]} : vector<32x96xf32> to vector<32x32xf32>
    %477 = vector.extract_strided_slice %474 {offsets = [0, 64], sizes = [32, 32], strides = [1, 1]} : vector<32x96xf32> to vector<32x32xf32>
    %478 = vector.extract_strided_slice %475 {offsets = [0, 0], sizes = [16, 32], strides = [1, 1]} : vector<32x32xf32> to vector<16x32xf32>
    %479 = vector.extract_strided_slice %476 {offsets = [0, 0], sizes = [16, 32], strides = [1, 1]} : vector<32x32xf32> to vector<16x32xf32>
    %480 = vector.extract_strided_slice %477 {offsets = [0, 0], sizes = [16, 32], strides = [1, 1]} : vector<32x32xf32> to vector<16x32xf32>
    %481 = vector.extract_strided_slice %478 {offsets = [0, 0], sizes = [16, 8], strides = [1, 1]} : vector<16x32xf32> to vector<16x8xf32>
    %482 = vector.extract_strided_slice %479 {offsets = [0, 0], sizes = [16, 8], strides = [1, 1]} : vector<16x32xf32> to vector<16x8xf32>
    %cst_178 = arith.constant dense<0.000000e+00> : vector<16x16xf32>
    %483 = tpu.matmul %481, %482, %cst_178 {dimension_numbers = #tpu.dot_dimension_numbers<[1], [1], [0], [0], [0, 0, 1, 0], [], []>} : vector<16x8xf32>, vector<16x8xf32>, vector<16x16xf32> -> vector<16x16xf32>
    %cst_179 = arith.constant 0.353553385 : f32
    %484 = vector.broadcast %cst_179 : f32 to vector<16x16xf32>
    %485 = arith.mulf %483, %484 : vector<16x16xf32>
    %cst_180 = arith.constant dense<0xFF800000> : vector<16xf32>
    %486 = vector.multi_reduction <maximumf>, %485, %cst_180 [1] : vector<16x16xf32> to vector<16xf32>
    %487 = vector.shape_cast %486 : vector<16xf32> to vector<16x1xf32>
    %488 = vector.broadcast %487 : vector<16x1xf32> to vector<16x16xf32>
    %489 = arith.subf %485, %488 : vector<16x16xf32>
    %490 = math.exp %489 : vector<16x16xf32>
    %cst_181 = arith.constant dense<0.000000e+00> : vector<16xf32>
    %491 = vector.multi_reduction <add>, %490, %cst_181 [1] : vector<16x16xf32> to vector<16xf32>
    %492 = vector.shape_cast %491 : vector<16xf32> to vector<16x1xf32>
    %493 = vector.broadcast %492 : vector<16x1xf32> to vector<16x16xf32>
    %494 = arith.divf %490, %493 : vector<16x16xf32>
    %495 = vector.extract_strided_slice %480 {offsets = [0, 0], sizes = [16, 8], strides = [1, 1]} : vector<16x32xf32> to vector<16x8xf32>
    %cst_182 = arith.constant dense<0.000000e+00> : vector<16x8xf32>
    %496 = tpu.matmul %494, %495, %cst_182 {dimension_numbers = #tpu.dot_dimension_numbers<[1], [0], [0], [1], [0, 0, 1, 1], [], []>} : vector<16x16xf32>, vector<16x8xf32>, vector<16x8xf32> -> vector<16x8xf32>
    %497 = vector.extract_strided_slice %478 {offsets = [0, 8], sizes = [16, 8], strides = [1, 1]} : vector<16x32xf32> to vector<16x8xf32>
    %498 = vector.extract_strided_slice %479 {offsets = [0, 8], sizes = [16, 8], strides = [1, 1]} : vector<16x32xf32> to vector<16x8xf32>
    %cst_183 = arith.constant dense<0.000000e+00> : vector<16x16xf32>
    %499 = tpu.matmul %497, %498, %cst_183 {dimension_numbers = #tpu.dot_dimension_numbers<[1], [1], [0], [0], [0, 0, 1, 0], [], []>} : vector<16x8xf32>, vector<16x8xf32>, vector<16x16xf32> -> vector<16x16xf32>
    %cst_184 = arith.constant 0.353553385 : f32
    %500 = vector.broadcast %cst_184 : f32 to vector<16x16xf32>
    %501 = arith.mulf %499, %500 : vector<16x16xf32>
    %cst_185 = arith.constant dense<0xFF800000> : vector<16xf32>
    %502 = vector.multi_reduction <maximumf>, %501, %cst_185 [1] : vector<16x16xf32> to vector<16xf32>
    %503 = vector.shape_cast %502 : vector<16xf32> to vector<16x1xf32>
    %504 = vector.broadcast %503 : vector<16x1xf32> to vector<16x16xf32>
    %505 = arith.subf %501, %504 : vector<16x16xf32>
    %506 = math.exp %505 : vector<16x16xf32>
    %cst_186 = arith.constant dense<0.000000e+00> : vector<16xf32>
    %507 = vector.multi_reduction <add>, %506, %cst_186 [1] : vector<16x16xf32> to vector<16xf32>
    %508 = vector.shape_cast %507 : vector<16xf32> to vector<16x1xf32>
    %509 = vector.broadcast %508 : vector<16x1xf32> to vector<16x16xf32>
    %510 = arith.divf %506, %509 : vector<16x16xf32>
    %511 = vector.extract_strided_slice %480 {offsets = [0, 8], sizes = [16, 8], strides = [1, 1]} : vector<16x32xf32> to vector<16x8xf32>
    %cst_187 = arith.constant dense<0.000000e+00> : vector<16x8xf32>
    %512 = tpu.matmul %510, %511, %cst_187 {dimension_numbers = #tpu.dot_dimension_numbers<[1], [0], [0], [1], [0, 0, 1, 1], [], []>} : vector<16x16xf32>, vector<16x8xf32>, vector<16x8xf32> -> vector<16x8xf32>
    %513 = vector.extract_strided_slice %478 {offsets = [0, 16], sizes = [16, 8], strides = [1, 1]} : vector<16x32xf32> to vector<16x8xf32>
    %514 = vector.extract_strided_slice %479 {offsets = [0, 16], sizes = [16, 8], strides = [1, 1]} : vector<16x32xf32> to vector<16x8xf32>
    %cst_188 = arith.constant dense<0.000000e+00> : vector<16x16xf32>
    %515 = tpu.matmul %513, %514, %cst_188 {dimension_numbers = #tpu.dot_dimension_numbers<[1], [1], [0], [0], [0, 0, 1, 0], [], []>} : vector<16x8xf32>, vector<16x8xf32>, vector<16x16xf32> -> vector<16x16xf32>
    %cst_189 = arith.constant 0.353553385 : f32
    %516 = vector.broadcast %cst_189 : f32 to vector<16x16xf32>
    %517 = arith.mulf %515, %516 : vector<16x16xf32>
    %cst_190 = arith.constant dense<0xFF800000> : vector<16xf32>
    %518 = vector.multi_reduction <maximumf>, %517, %cst_190 [1] : vector<16x16xf32> to vector<16xf32>
    %519 = vector.shape_cast %518 : vector<16xf32> to vector<16x1xf32>
    %520 = vector.broadcast %519 : vector<16x1xf32> to vector<16x16xf32>
    %521 = arith.subf %517, %520 : vector<16x16xf32>
    %522 = math.exp %521 : vector<16x16xf32>
    %cst_191 = arith.constant dense<0.000000e+00> : vector<16xf32>
    %523 = vector.multi_reduction <add>, %522, %cst_191 [1] : vector<16x16xf32> to vector<16xf32>
    %524 = vector.shape_cast %523 : vector<16xf32> to vector<16x1xf32>
    %525 = vector.broadcast %524 : vector<16x1xf32> to vector<16x16xf32>
    %526 = arith.divf %522, %525 : vector<16x16xf32>
    %527 = vector.extract_strided_slice %480 {offsets = [0, 16], sizes = [16, 8], strides = [1, 1]} : vector<16x32xf32> to vector<16x8xf32>
    %cst_192 = arith.constant dense<0.000000e+00> : vector<16x8xf32>
    %528 = tpu.matmul %526, %527, %cst_192 {dimension_numbers = #tpu.dot_dimension_numbers<[1], [0], [0], [1], [0, 0, 1, 1], [], []>} : vector<16x16xf32>, vector<16x8xf32>, vector<16x8xf32> -> vector<16x8xf32>
    %529 = vector.extract_strided_slice %478 {offsets = [0, 24], sizes = [16, 8], strides = [1, 1]} : vector<16x32xf32> to vector<16x8xf32>
    %530 = vector.extract_strided_slice %479 {offsets = [0, 24], sizes = [16, 8], strides = [1, 1]} : vector<16x32xf32> to vector<16x8xf32>
    %cst_193 = arith.constant dense<0.000000e+00> : vector<16x16xf32>
    %531 = tpu.matmul %529, %530, %cst_193 {dimension_numbers = #tpu.dot_dimension_numbers<[1], [1], [0], [0], [0, 0, 1, 0], [], []>} : vector<16x8xf32>, vector<16x8xf32>, vector<16x16xf32> -> vector<16x16xf32>
    %cst_194 = arith.constant 0.353553385 : f32
    %532 = vector.broadcast %cst_194 : f32 to vector<16x16xf32>
    %533 = arith.mulf %531, %532 : vector<16x16xf32>
    %cst_195 = arith.constant dense<0xFF800000> : vector<16xf32>
    %534 = vector.multi_reduction <maximumf>, %533, %cst_195 [1] : vector<16x16xf32> to vector<16xf32>
    %535 = vector.shape_cast %534 : vector<16xf32> to vector<16x1xf32>
    %536 = vector.broadcast %535 : vector<16x1xf32> to vector<16x16xf32>
    %537 = arith.subf %533, %536 : vector<16x16xf32>
    %538 = math.exp %537 : vector<16x16xf32>
    %cst_196 = arith.constant dense<0.000000e+00> : vector<16xf32>
    %539 = vector.multi_reduction <add>, %538, %cst_196 [1] : vector<16x16xf32> to vector<16xf32>
    %540 = vector.shape_cast %539 : vector<16xf32> to vector<16x1xf32>
    %541 = vector.broadcast %540 : vector<16x1xf32> to vector<16x16xf32>
    %542 = arith.divf %538, %541 : vector<16x16xf32>
    %543 = vector.extract_strided_slice %480 {offsets = [0, 24], sizes = [16, 8], strides = [1, 1]} : vector<16x32xf32> to vector<16x8xf32>
    %cst_197 = arith.constant dense<0.000000e+00> : vector<16x8xf32>
    %544 = tpu.matmul %542, %543, %cst_197 {dimension_numbers = #tpu.dot_dimension_numbers<[1], [0], [0], [1], [0, 0, 1, 1], [], []>} : vector<16x16xf32>, vector<16x8xf32>, vector<16x8xf32> -> vector<16x8xf32>
    %545 = tpu.concatenate %496, %512, %528, %544 in 1 : vector<16x8xf32>, vector<16x8xf32>, vector<16x8xf32>, vector<16x8xf32> -> vector<16x32xf32>
    %546 = vector.extract_strided_slice %475 {offsets = [16, 0], sizes = [16, 32], strides = [1, 1]} : vector<32x32xf32> to vector<16x32xf32>
    %547 = vector.extract_strided_slice %476 {offsets = [16, 0], sizes = [16, 32], strides = [1, 1]} : vector<32x32xf32> to vector<16x32xf32>
    %548 = vector.extract_strided_slice %477 {offsets = [16, 0], sizes = [16, 32], strides = [1, 1]} : vector<32x32xf32> to vector<16x32xf32>
    %549 = vector.extract_strided_slice %546 {offsets = [0, 0], sizes = [16, 8], strides = [1, 1]} : vector<16x32xf32> to vector<16x8xf32>
    %550 = vector.extract_strided_slice %547 {offsets = [0, 0], sizes = [16, 8], strides = [1, 1]} : vector<16x32xf32> to vector<16x8xf32>
    %cst_198 = arith.constant dense<0.000000e+00> : vector<16x16xf32>
    %551 = tpu.matmul %549, %550, %cst_198 {dimension_numbers = #tpu.dot_dimension_numbers<[1], [1], [0], [0], [0, 0, 1, 0], [], []>} : vector<16x8xf32>, vector<16x8xf32>, vector<16x16xf32> -> vector<16x16xf32>
    %cst_199 = arith.constant 0.353553385 : f32
    %552 = vector.broadcast %cst_199 : f32 to vector<16x16xf32>
    %553 = arith.mulf %551, %552 : vector<16x16xf32>
    %cst_200 = arith.constant dense<0xFF800000> : vector<16xf32>
    %554 = vector.multi_reduction <maximumf>, %553, %cst_200 [1] : vector<16x16xf32> to vector<16xf32>
    %555 = vector.shape_cast %554 : vector<16xf32> to vector<16x1xf32>
    %556 = vector.broadcast %555 : vector<16x1xf32> to vector<16x16xf32>
    %557 = arith.subf %553, %556 : vector<16x16xf32>
    %558 = math.exp %557 : vector<16x16xf32>
    %cst_201 = arith.constant dense<0.000000e+00> : vector<16xf32>
    %559 = vector.multi_reduction <add>, %558, %cst_201 [1] : vector<16x16xf32> to vector<16xf32>
    %560 = vector.shape_cast %559 : vector<16xf32> to vector<16x1xf32>
    %561 = vector.broadcast %560 : vector<16x1xf32> to vector<16x16xf32>
    %562 = arith.divf %558, %561 : vector<16x16xf32>
    %563 = vector.extract_strided_slice %548 {offsets = [0, 0], sizes = [16, 8], strides = [1, 1]} : vector<16x32xf32> to vector<16x8xf32>
    %cst_202 = arith.constant dense<0.000000e+00> : vector<16x8xf32>
    %564 = tpu.matmul %562, %563, %cst_202 {dimension_numbers = #tpu.dot_dimension_numbers<[1], [0], [0], [1], [0, 0, 1, 1], [], []>} : vector<16x16xf32>, vector<16x8xf32>, vector<16x8xf32> -> vector<16x8xf32>
    %565 = vector.extract_strided_slice %546 {offsets = [0, 8], sizes = [16, 8], strides = [1, 1]} : vector<16x32xf32> to vector<16x8xf32>
    %566 = vector.extract_strided_slice %547 {offsets = [0, 8], sizes = [16, 8], strides = [1, 1]} : vector<16x32xf32> to vector<16x8xf32>
    %cst_203 = arith.constant dense<0.000000e+00> : vector<16x16xf32>
    %567 = tpu.matmul %565, %566, %cst_203 {dimension_numbers = #tpu.dot_dimension_numbers<[1], [1], [0], [0], [0, 0, 1, 0], [], []>} : vector<16x8xf32>, vector<16x8xf32>, vector<16x16xf32> -> vector<16x16xf32>
    %cst_204 = arith.constant 0.353553385 : f32
    %568 = vector.broadcast %cst_204 : f32 to vector<16x16xf32>
    %569 = arith.mulf %567, %568 : vector<16x16xf32>
    %cst_205 = arith.constant dense<0xFF800000> : vector<16xf32>
    %570 = vector.multi_reduction <maximumf>, %569, %cst_205 [1] : vector<16x16xf32> to vector<16xf32>
    %571 = vector.shape_cast %570 : vector<16xf32> to vector<16x1xf32>
    %572 = vector.broadcast %571 : vector<16x1xf32> to vector<16x16xf32>
    %573 = arith.subf %569, %572 : vector<16x16xf32>
    %574 = math.exp %573 : vector<16x16xf32>
    %cst_206 = arith.constant dense<0.000000e+00> : vector<16xf32>
    %575 = vector.multi_reduction <add>, %574, %cst_206 [1] : vector<16x16xf32> to vector<16xf32>
    %576 = vector.shape_cast %575 : vector<16xf32> to vector<16x1xf32>
    %577 = vector.broadcast %576 : vector<16x1xf32> to vector<16x16xf32>
    %578 = arith.divf %574, %577 : vector<16x16xf32>
    %579 = vector.extract_strided_slice %548 {offsets = [0, 8], sizes = [16, 8], strides = [1, 1]} : vector<16x32xf32> to vector<16x8xf32>
    %cst_207 = arith.constant dense<0.000000e+00> : vector<16x8xf32>
    %580 = tpu.matmul %578, %579, %cst_207 {dimension_numbers = #tpu.dot_dimension_numbers<[1], [0], [0], [1], [0, 0, 1, 1], [], []>} : vector<16x16xf32>, vector<16x8xf32>, vector<16x8xf32> -> vector<16x8xf32>
    %581 = vector.extract_strided_slice %546 {offsets = [0, 16], sizes = [16, 8], strides = [1, 1]} : vector<16x32xf32> to vector<16x8xf32>
    %582 = vector.extract_strided_slice %547 {offsets = [0, 16], sizes = [16, 8], strides = [1, 1]} : vector<16x32xf32> to vector<16x8xf32>
    %cst_208 = arith.constant dense<0.000000e+00> : vector<16x16xf32>
    %583 = tpu.matmul %581, %582, %cst_208 {dimension_numbers = #tpu.dot_dimension_numbers<[1], [1], [0], [0], [0, 0, 1, 0], [], []>} : vector<16x8xf32>, vector<16x8xf32>, vector<16x16xf32> -> vector<16x16xf32>
    %cst_209 = arith.constant 0.353553385 : f32
    %584 = vector.broadcast %cst_209 : f32 to vector<16x16xf32>
    %585 = arith.mulf %583, %584 : vector<16x16xf32>
    %cst_210 = arith.constant dense<0xFF800000> : vector<16xf32>
    %586 = vector.multi_reduction <maximumf>, %585, %cst_210 [1] : vector<16x16xf32> to vector<16xf32>
    %587 = vector.shape_cast %586 : vector<16xf32> to vector<16x1xf32>
    %588 = vector.broadcast %587 : vector<16x1xf32> to vector<16x16xf32>
    %589 = arith.subf %585, %588 : vector<16x16xf32>
    %590 = math.exp %589 : vector<16x16xf32>
    %cst_211 = arith.constant dense<0.000000e+00> : vector<16xf32>
    %591 = vector.multi_reduction <add>, %590, %cst_211 [1] : vector<16x16xf32> to vector<16xf32>
    %592 = vector.shape_cast %591 : vector<16xf32> to vector<16x1xf32>
    %593 = vector.broadcast %592 : vector<16x1xf32> to vector<16x16xf32>
    %594 = arith.divf %590, %593 : vector<16x16xf32>
    %595 = vector.extract_strided_slice %548 {offsets = [0, 16], sizes = [16, 8], strides = [1, 1]} : vector<16x32xf32> to vector<16x8xf32>
    %cst_212 = arith.constant dense<0.000000e+00> : vector<16x8xf32>
    %596 = tpu.matmul %594, %595, %cst_212 {dimension_numbers = #tpu.dot_dimension_numbers<[1], [0], [0], [1], [0, 0, 1, 1], [], []>} : vector<16x16xf32>, vector<16x8xf32>, vector<16x8xf32> -> vector<16x8xf32>
    %597 = vector.extract_strided_slice %546 {offsets = [0, 24], sizes = [16, 8], strides = [1, 1]} : vector<16x32xf32> to vector<16x8xf32>
    %598 = vector.extract_strided_slice %547 {offsets = [0, 24], sizes = [16, 8], strides = [1, 1]} : vector<16x32xf32> to vector<16x8xf32>
    %cst_213 = arith.constant dense<0.000000e+00> : vector<16x16xf32>
    %599 = tpu.matmul %597, %598, %cst_213 {dimension_numbers = #tpu.dot_dimension_numbers<[1], [1], [0], [0], [0, 0, 1, 0], [], []>} : vector<16x8xf32>, vector<16x8xf32>, vector<16x16xf32> -> vector<16x16xf32>
    %cst_214 = arith.constant 0.353553385 : f32
    %600 = vector.broadcast %cst_214 : f32 to vector<16x16xf32>
    %601 = arith.mulf %599, %600 : vector<16x16xf32>
    %cst_215 = arith.constant dense<0xFF800000> : vector<16xf32>
    %602 = vector.multi_reduction <maximumf>, %601, %cst_215 [1] : vector<16x16xf32> to vector<16xf32>
    %603 = vector.shape_cast %602 : vector<16xf32> to vector<16x1xf32>
    %604 = vector.broadcast %603 : vector<16x1xf32> to vector<16x16xf32>
    %605 = arith.subf %601, %604 : vector<16x16xf32>
    %606 = math.exp %605 : vector<16x16xf32>
    %cst_216 = arith.constant dense<0.000000e+00> : vector<16xf32>
    %607 = vector.multi_reduction <add>, %606, %cst_216 [1] : vector<16x16xf32> to vector<16xf32>
    %608 = vector.shape_cast %607 : vector<16xf32> to vector<16x1xf32>
    %609 = vector.broadcast %608 : vector<16x1xf32> to vector<16x16xf32>
    %610 = arith.divf %606, %609 : vector<16x16xf32>
    %611 = vector.extract_strided_slice %548 {offsets = [0, 24], sizes = [16, 8], strides = [1, 1]} : vector<16x32xf32> to vector<16x8xf32>
    %cst_217 = arith.constant dense<0.000000e+00> : vector<16x8xf32>
    %612 = tpu.matmul %610, %611, %cst_217 {dimension_numbers = #tpu.dot_dimension_numbers<[1], [0], [0], [1], [0, 0, 1, 1], [], []>} : vector<16x16xf32>, vector<16x8xf32>, vector<16x8xf32> -> vector<16x8xf32>
    %613 = tpu.concatenate %564, %580, %596, %612 in 1 : vector<16x8xf32>, vector<16x8xf32>, vector<16x8xf32>, vector<16x8xf32> -> vector<16x32xf32>
    %614 = tpu.concatenate %545, %613 in 0 : vector<16x32xf32>, vector<16x32xf32> -> vector<32x32xf32>
    %c1_218 = arith.constant 1 : index
    %c0_219 = arith.constant 0 : index
    %c0_220 = arith.constant 0 : index
    %615 = vector.load %arg11[%c1_218, %c0_219, %c0_220] : memref<2x32x32xf32, #tpu.memory_space<vmem>>, vector<1x32x32xf32>
    %616 = vector.shape_cast %615 : vector<1x32x32xf32> to vector<32x32xf32>
    %cst_221 = arith.constant dense<0.000000e+00> : vector<32x32xf32>
    %617 = tpu.matmul %614, %616, %cst_221 {dimension_numbers = #tpu.dot_dimension_numbers<[1], [0], [0], [1], [0, 0, 1, 1], [], []>} : vector<32x32xf32>, vector<32x32xf32>, vector<32x32xf32> -> vector<32x32xf32>
    %c1_222 = arith.constant 1 : index
    %c0_223 = arith.constant 0 : index
    %618 = vector.load %arg12[%c1_222, %c0_223] : memref<2x32xf32, #tpu.memory_space<vmem>>, vector<1x32xf32>
    %619 = vector.shape_cast %618 : vector<1x32xf32> to vector<32xf32>
    %620 = vector.shape_cast %619 : vector<32xf32> to vector<1x32xf32>
    %621 = vector.broadcast %620 : vector<1x32xf32> to vector<32x32xf32>
    %622 = arith.addf %617, %621 : vector<32x32xf32>
    %623 = arith.addf %466, %622 : vector<32x32xf32>
    %c1_224 = arith.constant 1 : index
    %c0_225 = arith.constant 0 : index
    %624 = vector.load %arg23[%c1_224, %c0_225] : memref<2x32xf32, #tpu.memory_space<vmem>>, vector<1x32xf32>
    %625 = vector.shape_cast %624 : vector<1x32xf32> to vector<32xf32>
    %c1_226 = arith.constant 1 : index
    %c0_227 = arith.constant 0 : index
    %626 = vector.load %arg24[%c1_226, %c0_227] : memref<2x32xf32, #tpu.memory_space<vmem>>, vector<1x32xf32>
    %627 = vector.shape_cast %626 : vector<1x32xf32> to vector<32xf32>
    %cst_228 = arith.constant dense<0.000000e+00> : vector<32xf32>
    %628 = vector.multi_reduction <add>, %623, %cst_228 [1] : vector<32x32xf32> to vector<32xf32>
    %629 = vector.shape_cast %628 : vector<32xf32> to vector<32x1xf32>
    %cst_229 = arith.constant 3.200000e+01 : f32
    %630 = vector.broadcast %cst_229 : f32 to vector<32x1xf32>
    %631 = arith.divf %629, %630 : vector<32x1xf32>
    %632 = vector.broadcast %631 : vector<32x1xf32> to vector<32x32xf32>
    %633 = arith.subf %623, %632 : vector<32x32xf32>
    %634 = arith.mulf %633, %633 : vector<32x32xf32>
    %cst_230 = arith.constant dense<0.000000e+00> : vector<32xf32>
    %635 = vector.multi_reduction <add>, %634, %cst_230 [1] : vector<32x32xf32> to vector<32xf32>
    %636 = vector.shape_cast %635 : vector<32xf32> to vector<32x1xf32>
    %cst_231 = arith.constant 3.200000e+01 : f32
    %637 = vector.broadcast %cst_231 : f32 to vector<32x1xf32>
    %638 = arith.divf %636, %637 : vector<32x1xf32>
    %639 = vector.broadcast %631 : vector<32x1xf32> to vector<32x32xf32>
    %640 = arith.subf %623, %639 : vector<32x32xf32>
    %cst_232 = arith.constant 9.99999974E-6 : f32
    %641 = vector.broadcast %cst_232 : f32 to vector<32x1xf32>
    %642 = arith.addf %638, %641 : vector<32x1xf32>
    %643 = math.rsqrt %642 : vector<32x1xf32>
    %644 = vector.broadcast %643 : vector<32x1xf32> to vector<32x32xf32>
    %645 = arith.mulf %640, %644 : vector<32x32xf32>
    %646 = vector.shape_cast %625 : vector<32xf32> to vector<1x32xf32>
    %647 = vector.broadcast %646 : vector<1x32xf32> to vector<32x32xf32>
    %648 = arith.mulf %645, %647 : vector<32x32xf32>
    %649 = vector.shape_cast %627 : vector<32xf32> to vector<1x32xf32>
    %650 = vector.broadcast %649 : vector<1x32xf32> to vector<32x32xf32>
    %651 = arith.addf %648, %650 : vector<32x32xf32>
    %c1_233 = arith.constant 1 : index
    %c0_234 = arith.constant 0 : index
    %c0_235 = arith.constant 0 : index
    %652 = vector.load %arg13[%c1_233, %c0_234, %c0_235] : memref<2x32x32xf32, #tpu.memory_space<vmem>>, vector<1x32x32xf32>
    %653 = vector.shape_cast %652 : vector<1x32x32xf32> to vector<32x32xf32>
    %cst_236 = arith.constant dense<0.000000e+00> : vector<32x32xf32>
    %654 = tpu.matmul %651, %653, %cst_236 {dimension_numbers = #tpu.dot_dimension_numbers<[1], [0], [0], [1], [0, 0, 1, 1], [], []>} : vector<32x32xf32>, vector<32x32xf32>, vector<32x32xf32> -> vector<32x32xf32>
    %c1_237 = arith.constant 1 : index
    %c0_238 = arith.constant 0 : index
    %655 = vector.load %arg14[%c1_237, %c0_238] : memref<2x32xf32, #tpu.memory_space<vmem>>, vector<1x32xf32>
    %656 = vector.shape_cast %655 : vector<1x32xf32> to vector<32xf32>
    %657 = vector.shape_cast %656 : vector<32xf32> to vector<1x32xf32>
    %658 = vector.broadcast %657 : vector<1x32xf32> to vector<32x32xf32>
    %659 = arith.addf %654, %658 : vector<32x32xf32>
    %c1_239 = arith.constant 1 : index
    %c0_240 = arith.constant 0 : index
    %c0_241 = arith.constant 0 : index
    %660 = vector.load %arg15[%c1_239, %c0_240, %c0_241] : memref<2x32x64xf32, #tpu.memory_space<vmem>>, vector<1x32x64xf32>
    %661 = vector.shape_cast %660 : vector<1x32x64xf32> to vector<32x64xf32>
    %cst_242 = arith.constant dense<0.000000e+00> : vector<16x64xf32>
    %662 = tpu.matmul %40, %661, %cst_242 {dimension_numbers = #tpu.dot_dimension_numbers<[1], [0], [0], [1], [0, 0, 1, 1], [], []>} : vector<16x32xf32>, vector<32x64xf32>, vector<16x64xf32> -> vector<16x64xf32>
    %c1_243 = arith.constant 1 : index
    %c0_244 = arith.constant 0 : index
    %663 = vector.load %arg16[%c1_243, %c0_244] : memref<2x64xf32, #tpu.memory_space<vmem>>, vector<1x64xf32>
    %664 = vector.shape_cast %663 : vector<1x64xf32> to vector<64xf32>
    %665 = vector.shape_cast %664 : vector<64xf32> to vector<1x64xf32>
    %666 = vector.broadcast %665 : vector<1x64xf32> to vector<16x64xf32>
    %667 = arith.addf %662, %666 : vector<16x64xf32>
    %668 = vector.extract_strided_slice %667 {offsets = [0, 0], sizes = [16, 32], strides = [1, 1]} : vector<16x64xf32> to vector<16x32xf32>
    %669 = vector.extract_strided_slice %667 {offsets = [0, 32], sizes = [16, 32], strides = [1, 1]} : vector<16x64xf32> to vector<16x32xf32>
    %670 = vector.extract_strided_slice %659 {offsets = [0, 0], sizes = [16, 32], strides = [1, 1]} : vector<32x32xf32> to vector<16x32xf32>
    %671 = vector.extract_strided_slice %668 {offsets = [0, 0], sizes = [8, 32], strides = [1, 1]} : vector<16x32xf32> to vector<8x32xf32>
    %672 = vector.extract_strided_slice %669 {offsets = [0, 0], sizes = [8, 32], strides = [1, 1]} : vector<16x32xf32> to vector<8x32xf32>
    %673 = vector.extract_strided_slice %670 {offsets = [0, 0], sizes = [16, 8], strides = [1, 1]} : vector<16x32xf32> to vector<16x8xf32>
    %674 = vector.extract_strided_slice %671 {offsets = [0, 0], sizes = [8, 8], strides = [1, 1]} : vector<8x32xf32> to vector<8x8xf32>
    %cst_245 = arith.constant dense<0.000000e+00> : vector<16x8xf32>
    %675 = tpu.matmul %673, %674, %cst_245 {dimension_numbers = #tpu.dot_dimension_numbers<[1], [1], [0], [0], [0, 0, 1, 0], [], []>} : vector<16x8xf32>, vector<8x8xf32>, vector<16x8xf32> -> vector<16x8xf32>
    %cst_246 = arith.constant 0.353553385 : f32
    %676 = vector.broadcast %cst_246 : f32 to vector<16x8xf32>
    %677 = arith.mulf %675, %676 : vector<16x8xf32>
    %cst_247 = arith.constant dense<0xFF800000> : vector<16xf32>
    %678 = vector.multi_reduction <maximumf>, %677, %cst_247 [1] : vector<16x8xf32> to vector<16xf32>
    %679 = vector.shape_cast %678 : vector<16xf32> to vector<16x1xf32>
    %680 = vector.broadcast %679 : vector<16x1xf32> to vector<16x8xf32>
    %681 = arith.subf %677, %680 : vector<16x8xf32>
    %682 = math.exp %681 : vector<16x8xf32>
    %cst_248 = arith.constant dense<0.000000e+00> : vector<16xf32>
    %683 = vector.multi_reduction <add>, %682, %cst_248 [1] : vector<16x8xf32> to vector<16xf32>
    %684 = vector.shape_cast %683 : vector<16xf32> to vector<16x1xf32>
    %685 = vector.broadcast %684 : vector<16x1xf32> to vector<16x8xf32>
    %686 = arith.divf %682, %685 : vector<16x8xf32>
    %687 = vector.extract_strided_slice %672 {offsets = [0, 0], sizes = [8, 8], strides = [1, 1]} : vector<8x32xf32> to vector<8x8xf32>
    %cst_249 = arith.constant dense<0.000000e+00> : vector<16x8xf32>
    %688 = tpu.matmul %686, %687, %cst_249 {dimension_numbers = #tpu.dot_dimension_numbers<[1], [0], [0], [1], [0, 0, 1, 1], [], []>} : vector<16x8xf32>, vector<8x8xf32>, vector<16x8xf32> -> vector<16x8xf32>
    %689 = vector.extract_strided_slice %670 {offsets = [0, 8], sizes = [16, 8], strides = [1, 1]} : vector<16x32xf32> to vector<16x8xf32>
    %690 = vector.extract_strided_slice %671 {offsets = [0, 8], sizes = [8, 8], strides = [1, 1]} : vector<8x32xf32> to vector<8x8xf32>
    %cst_250 = arith.constant dense<0.000000e+00> : vector<16x8xf32>
    %691 = tpu.matmul %689, %690, %cst_250 {dimension_numbers = #tpu.dot_dimension_numbers<[1], [1], [0], [0], [0, 0, 1, 0], [], []>} : vector<16x8xf32>, vector<8x8xf32>, vector<16x8xf32> -> vector<16x8xf32>
    %cst_251 = arith.constant 0.353553385 : f32
    %692 = vector.broadcast %cst_251 : f32 to vector<16x8xf32>
    %693 = arith.mulf %691, %692 : vector<16x8xf32>
    %cst_252 = arith.constant dense<0xFF800000> : vector<16xf32>
    %694 = vector.multi_reduction <maximumf>, %693, %cst_252 [1] : vector<16x8xf32> to vector<16xf32>
    %695 = vector.shape_cast %694 : vector<16xf32> to vector<16x1xf32>
    %696 = vector.broadcast %695 : vector<16x1xf32> to vector<16x8xf32>
    %697 = arith.subf %693, %696 : vector<16x8xf32>
    %698 = math.exp %697 : vector<16x8xf32>
    %cst_253 = arith.constant dense<0.000000e+00> : vector<16xf32>
    %699 = vector.multi_reduction <add>, %698, %cst_253 [1] : vector<16x8xf32> to vector<16xf32>
    %700 = vector.shape_cast %699 : vector<16xf32> to vector<16x1xf32>
    %701 = vector.broadcast %700 : vector<16x1xf32> to vector<16x8xf32>
    %702 = arith.divf %698, %701 : vector<16x8xf32>
    %703 = vector.extract_strided_slice %672 {offsets = [0, 8], sizes = [8, 8], strides = [1, 1]} : vector<8x32xf32> to vector<8x8xf32>
    %cst_254 = arith.constant dense<0.000000e+00> : vector<16x8xf32>
    %704 = tpu.matmul %702, %703, %cst_254 {dimension_numbers = #tpu.dot_dimension_numbers<[1], [0], [0], [1], [0, 0, 1, 1], [], []>} : vector<16x8xf32>, vector<8x8xf32>, vector<16x8xf32> -> vector<16x8xf32>
    %705 = vector.extract_strided_slice %670 {offsets = [0, 16], sizes = [16, 8], strides = [1, 1]} : vector<16x32xf32> to vector<16x8xf32>
    %706 = vector.extract_strided_slice %671 {offsets = [0, 16], sizes = [8, 8], strides = [1, 1]} : vector<8x32xf32> to vector<8x8xf32>
    %cst_255 = arith.constant dense<0.000000e+00> : vector<16x8xf32>
    %707 = tpu.matmul %705, %706, %cst_255 {dimension_numbers = #tpu.dot_dimension_numbers<[1], [1], [0], [0], [0, 0, 1, 0], [], []>} : vector<16x8xf32>, vector<8x8xf32>, vector<16x8xf32> -> vector<16x8xf32>
    %cst_256 = arith.constant 0.353553385 : f32
    %708 = vector.broadcast %cst_256 : f32 to vector<16x8xf32>
    %709 = arith.mulf %707, %708 : vector<16x8xf32>
    %cst_257 = arith.constant dense<0xFF800000> : vector<16xf32>
    %710 = vector.multi_reduction <maximumf>, %709, %cst_257 [1] : vector<16x8xf32> to vector<16xf32>
    %711 = vector.shape_cast %710 : vector<16xf32> to vector<16x1xf32>
    %712 = vector.broadcast %711 : vector<16x1xf32> to vector<16x8xf32>
    %713 = arith.subf %709, %712 : vector<16x8xf32>
    %714 = math.exp %713 : vector<16x8xf32>
    %cst_258 = arith.constant dense<0.000000e+00> : vector<16xf32>
    %715 = vector.multi_reduction <add>, %714, %cst_258 [1] : vector<16x8xf32> to vector<16xf32>
    %716 = vector.shape_cast %715 : vector<16xf32> to vector<16x1xf32>
    %717 = vector.broadcast %716 : vector<16x1xf32> to vector<16x8xf32>
    %718 = arith.divf %714, %717 : vector<16x8xf32>
    %719 = vector.extract_strided_slice %672 {offsets = [0, 16], sizes = [8, 8], strides = [1, 1]} : vector<8x32xf32> to vector<8x8xf32>
    %cst_259 = arith.constant dense<0.000000e+00> : vector<16x8xf32>
    %720 = tpu.matmul %718, %719, %cst_259 {dimension_numbers = #tpu.dot_dimension_numbers<[1], [0], [0], [1], [0, 0, 1, 1], [], []>} : vector<16x8xf32>, vector<8x8xf32>, vector<16x8xf32> -> vector<16x8xf32>
    %721 = vector.extract_strided_slice %670 {offsets = [0, 24], sizes = [16, 8], strides = [1, 1]} : vector<16x32xf32> to vector<16x8xf32>
    %722 = vector.extract_strided_slice %671 {offsets = [0, 24], sizes = [8, 8], strides = [1, 1]} : vector<8x32xf32> to vector<8x8xf32>
    %cst_260 = arith.constant dense<0.000000e+00> : vector<16x8xf32>
    %723 = tpu.matmul %721, %722, %cst_260 {dimension_numbers = #tpu.dot_dimension_numbers<[1], [1], [0], [0], [0, 0, 1, 0], [], []>} : vector<16x8xf32>, vector<8x8xf32>, vector<16x8xf32> -> vector<16x8xf32>
    %cst_261 = arith.constant 0.353553385 : f32
    %724 = vector.broadcast %cst_261 : f32 to vector<16x8xf32>
    %725 = arith.mulf %723, %724 : vector<16x8xf32>
    %cst_262 = arith.constant dense<0xFF800000> : vector<16xf32>
    %726 = vector.multi_reduction <maximumf>, %725, %cst_262 [1] : vector<16x8xf32> to vector<16xf32>
    %727 = vector.shape_cast %726 : vector<16xf32> to vector<16x1xf32>
    %728 = vector.broadcast %727 : vector<16x1xf32> to vector<16x8xf32>
    %729 = arith.subf %725, %728 : vector<16x8xf32>
    %730 = math.exp %729 : vector<16x8xf32>
    %cst_263 = arith.constant dense<0.000000e+00> : vector<16xf32>
    %731 = vector.multi_reduction <add>, %730, %cst_263 [1] : vector<16x8xf32> to vector<16xf32>
    %732 = vector.shape_cast %731 : vector<16xf32> to vector<16x1xf32>
    %733 = vector.broadcast %732 : vector<16x1xf32> to vector<16x8xf32>
    %734 = arith.divf %730, %733 : vector<16x8xf32>
    %735 = vector.extract_strided_slice %672 {offsets = [0, 24], sizes = [8, 8], strides = [1, 1]} : vector<8x32xf32> to vector<8x8xf32>
    %cst_264 = arith.constant dense<0.000000e+00> : vector<16x8xf32>
    %736 = tpu.matmul %734, %735, %cst_264 {dimension_numbers = #tpu.dot_dimension_numbers<[1], [0], [0], [1], [0, 0, 1, 1], [], []>} : vector<16x8xf32>, vector<8x8xf32>, vector<16x8xf32> -> vector<16x8xf32>
    %737 = tpu.concatenate %688, %704, %720, %736 in 1 : vector<16x8xf32>, vector<16x8xf32>, vector<16x8xf32>, vector<16x8xf32> -> vector<16x32xf32>
    %738 = vector.extract_strided_slice %659 {offsets = [16, 0], sizes = [16, 32], strides = [1, 1]} : vector<32x32xf32> to vector<16x32xf32>
    %739 = vector.extract_strided_slice %668 {offsets = [8, 0], sizes = [8, 32], strides = [1, 1]} : vector<16x32xf32> to vector<8x32xf32>
    %740 = vector.extract_strided_slice %669 {offsets = [8, 0], sizes = [8, 32], strides = [1, 1]} : vector<16x32xf32> to vector<8x32xf32>
    %741 = vector.extract_strided_slice %738 {offsets = [0, 0], sizes = [16, 8], strides = [1, 1]} : vector<16x32xf32> to vector<16x8xf32>
    %742 = vector.extract_strided_slice %739 {offsets = [0, 0], sizes = [8, 8], strides = [1, 1]} : vector<8x32xf32> to vector<8x8xf32>
    %cst_265 = arith.constant dense<0.000000e+00> : vector<16x8xf32>
    %743 = tpu.matmul %741, %742, %cst_265 {dimension_numbers = #tpu.dot_dimension_numbers<[1], [1], [0], [0], [0, 0, 1, 0], [], []>} : vector<16x8xf32>, vector<8x8xf32>, vector<16x8xf32> -> vector<16x8xf32>
    %cst_266 = arith.constant 0.353553385 : f32
    %744 = vector.broadcast %cst_266 : f32 to vector<16x8xf32>
    %745 = arith.mulf %743, %744 : vector<16x8xf32>
    %cst_267 = arith.constant dense<0xFF800000> : vector<16xf32>
    %746 = vector.multi_reduction <maximumf>, %745, %cst_267 [1] : vector<16x8xf32> to vector<16xf32>
    %747 = vector.shape_cast %746 : vector<16xf32> to vector<16x1xf32>
    %748 = vector.broadcast %747 : vector<16x1xf32> to vector<16x8xf32>
    %749 = arith.subf %745, %748 : vector<16x8xf32>
    %750 = math.exp %749 : vector<16x8xf32>
    %cst_268 = arith.constant dense<0.000000e+00> : vector<16xf32>
    %751 = vector.multi_reduction <add>, %750, %cst_268 [1] : vector<16x8xf32> to vector<16xf32>
    %752 = vector.shape_cast %751 : vector<16xf32> to vector<16x1xf32>
    %753 = vector.broadcast %752 : vector<16x1xf32> to vector<16x8xf32>
    %754 = arith.divf %750, %753 : vector<16x8xf32>
    %755 = vector.extract_strided_slice %740 {offsets = [0, 0], sizes = [8, 8], strides = [1, 1]} : vector<8x32xf32> to vector<8x8xf32>
    %cst_269 = arith.constant dense<0.000000e+00> : vector<16x8xf32>
    %756 = tpu.matmul %754, %755, %cst_269 {dimension_numbers = #tpu.dot_dimension_numbers<[1], [0], [0], [1], [0, 0, 1, 1], [], []>} : vector<16x8xf32>, vector<8x8xf32>, vector<16x8xf32> -> vector<16x8xf32>
    %757 = vector.extract_strided_slice %738 {offsets = [0, 8], sizes = [16, 8], strides = [1, 1]} : vector<16x32xf32> to vector<16x8xf32>
    %758 = vector.extract_strided_slice %739 {offsets = [0, 8], sizes = [8, 8], strides = [1, 1]} : vector<8x32xf32> to vector<8x8xf32>
    %cst_270 = arith.constant dense<0.000000e+00> : vector<16x8xf32>
    %759 = tpu.matmul %757, %758, %cst_270 {dimension_numbers = #tpu.dot_dimension_numbers<[1], [1], [0], [0], [0, 0, 1, 0], [], []>} : vector<16x8xf32>, vector<8x8xf32>, vector<16x8xf32> -> vector<16x8xf32>
    %cst_271 = arith.constant 0.353553385 : f32
    %760 = vector.broadcast %cst_271 : f32 to vector<16x8xf32>
    %761 = arith.mulf %759, %760 : vector<16x8xf32>
    %cst_272 = arith.constant dense<0xFF800000> : vector<16xf32>
    %762 = vector.multi_reduction <maximumf>, %761, %cst_272 [1] : vector<16x8xf32> to vector<16xf32>
    %763 = vector.shape_cast %762 : vector<16xf32> to vector<16x1xf32>
    %764 = vector.broadcast %763 : vector<16x1xf32> to vector<16x8xf32>
    %765 = arith.subf %761, %764 : vector<16x8xf32>
    %766 = math.exp %765 : vector<16x8xf32>
    %cst_273 = arith.constant dense<0.000000e+00> : vector<16xf32>
    %767 = vector.multi_reduction <add>, %766, %cst_273 [1] : vector<16x8xf32> to vector<16xf32>
    %768 = vector.shape_cast %767 : vector<16xf32> to vector<16x1xf32>
    %769 = vector.broadcast %768 : vector<16x1xf32> to vector<16x8xf32>
    %770 = arith.divf %766, %769 : vector<16x8xf32>
    %771 = vector.extract_strided_slice %740 {offsets = [0, 8], sizes = [8, 8], strides = [1, 1]} : vector<8x32xf32> to vector<8x8xf32>
    %cst_274 = arith.constant dense<0.000000e+00> : vector<16x8xf32>
    %772 = tpu.matmul %770, %771, %cst_274 {dimension_numbers = #tpu.dot_dimension_numbers<[1], [0], [0], [1], [0, 0, 1, 1], [], []>} : vector<16x8xf32>, vector<8x8xf32>, vector<16x8xf32> -> vector<16x8xf32>
    %773 = vector.extract_strided_slice %738 {offsets = [0, 16], sizes = [16, 8], strides = [1, 1]} : vector<16x32xf32> to vector<16x8xf32>
    %774 = vector.extract_strided_slice %739 {offsets = [0, 16], sizes = [8, 8], strides = [1, 1]} : vector<8x32xf32> to vector<8x8xf32>
    %cst_275 = arith.constant dense<0.000000e+00> : vector<16x8xf32>
    %775 = tpu.matmul %773, %774, %cst_275 {dimension_numbers = #tpu.dot_dimension_numbers<[1], [1], [0], [0], [0, 0, 1, 0], [], []>} : vector<16x8xf32>, vector<8x8xf32>, vector<16x8xf32> -> vector<16x8xf32>
    %cst_276 = arith.constant 0.353553385 : f32
    %776 = vector.broadcast %cst_276 : f32 to vector<16x8xf32>
    %777 = arith.mulf %775, %776 : vector<16x8xf32>
    %cst_277 = arith.constant dense<0xFF800000> : vector<16xf32>
    %778 = vector.multi_reduction <maximumf>, %777, %cst_277 [1] : vector<16x8xf32> to vector<16xf32>
    %779 = vector.shape_cast %778 : vector<16xf32> to vector<16x1xf32>
    %780 = vector.broadcast %779 : vector<16x1xf32> to vector<16x8xf32>
    %781 = arith.subf %777, %780 : vector<16x8xf32>
    %782 = math.exp %781 : vector<16x8xf32>
    %cst_278 = arith.constant dense<0.000000e+00> : vector<16xf32>
    %783 = vector.multi_reduction <add>, %782, %cst_278 [1] : vector<16x8xf32> to vector<16xf32>
    %784 = vector.shape_cast %783 : vector<16xf32> to vector<16x1xf32>
    %785 = vector.broadcast %784 : vector<16x1xf32> to vector<16x8xf32>
    %786 = arith.divf %782, %785 : vector<16x8xf32>
    %787 = vector.extract_strided_slice %740 {offsets = [0, 16], sizes = [8, 8], strides = [1, 1]} : vector<8x32xf32> to vector<8x8xf32>
    %cst_279 = arith.constant dense<0.000000e+00> : vector<16x8xf32>
    %788 = tpu.matmul %786, %787, %cst_279 {dimension_numbers = #tpu.dot_dimension_numbers<[1], [0], [0], [1], [0, 0, 1, 1], [], []>} : vector<16x8xf32>, vector<8x8xf32>, vector<16x8xf32> -> vector<16x8xf32>
    %789 = vector.extract_strided_slice %738 {offsets = [0, 24], sizes = [16, 8], strides = [1, 1]} : vector<16x32xf32> to vector<16x8xf32>
    %790 = vector.extract_strided_slice %739 {offsets = [0, 24], sizes = [8, 8], strides = [1, 1]} : vector<8x32xf32> to vector<8x8xf32>
    %cst_280 = arith.constant dense<0.000000e+00> : vector<16x8xf32>
    %791 = tpu.matmul %789, %790, %cst_280 {dimension_numbers = #tpu.dot_dimension_numbers<[1], [1], [0], [0], [0, 0, 1, 0], [], []>} : vector<16x8xf32>, vector<8x8xf32>, vector<16x8xf32> -> vector<16x8xf32>
    %cst_281 = arith.constant 0.353553385 : f32
    %792 = vector.broadcast %cst_281 : f32 to vector<16x8xf32>
    %793 = arith.mulf %791, %792 : vector<16x8xf32>
    %cst_282 = arith.constant dense<0xFF800000> : vector<16xf32>
    %794 = vector.multi_reduction <maximumf>, %793, %cst_282 [1] : vector<16x8xf32> to vector<16xf32>
    %795 = vector.shape_cast %794 : vector<16xf32> to vector<16x1xf32>
    %796 = vector.broadcast %795 : vector<16x1xf32> to vector<16x8xf32>
    %797 = arith.subf %793, %796 : vector<16x8xf32>
    %798 = math.exp %797 : vector<16x8xf32>
    %cst_283 = arith.constant dense<0.000000e+00> : vector<16xf32>
    %799 = vector.multi_reduction <add>, %798, %cst_283 [1] : vector<16x8xf32> to vector<16xf32>
    %800 = vector.shape_cast %799 : vector<16xf32> to vector<16x1xf32>
    %801 = vector.broadcast %800 : vector<16x1xf32> to vector<16x8xf32>
    %802 = arith.divf %798, %801 : vector<16x8xf32>
    %803 = vector.extract_strided_slice %740 {offsets = [0, 24], sizes = [8, 8], strides = [1, 1]} : vector<8x32xf32> to vector<8x8xf32>
    %cst_284 = arith.constant dense<0.000000e+00> : vector<16x8xf32>
    %804 = tpu.matmul %802, %803, %cst_284 {dimension_numbers = #tpu.dot_dimension_numbers<[1], [0], [0], [1], [0, 0, 1, 1], [], []>} : vector<16x8xf32>, vector<8x8xf32>, vector<16x8xf32> -> vector<16x8xf32>
    %805 = tpu.concatenate %756, %772, %788, %804 in 1 : vector<16x8xf32>, vector<16x8xf32>, vector<16x8xf32>, vector<16x8xf32> -> vector<16x32xf32>
    %806 = tpu.concatenate %737, %805 in 0 : vector<16x32xf32>, vector<16x32xf32> -> vector<32x32xf32>
    %c1_285 = arith.constant 1 : index
    %c0_286 = arith.constant 0 : index
    %c0_287 = arith.constant 0 : index
    %807 = vector.load %arg17[%c1_285, %c0_286, %c0_287] : memref<2x32x32xf32, #tpu.memory_space<vmem>>, vector<1x32x32xf32>
    %808 = vector.shape_cast %807 : vector<1x32x32xf32> to vector<32x32xf32>
    %cst_288 = arith.constant dense<0.000000e+00> : vector<32x32xf32>
    %809 = tpu.matmul %806, %808, %cst_288 {dimension_numbers = #tpu.dot_dimension_numbers<[1], [0], [0], [1], [0, 0, 1, 1], [], []>} : vector<32x32xf32>, vector<32x32xf32>, vector<32x32xf32> -> vector<32x32xf32>
    %c1_289 = arith.constant 1 : index
    %c0_290 = arith.constant 0 : index
    %810 = vector.load %arg18[%c1_289, %c0_290] : memref<2x32xf32, #tpu.memory_space<vmem>>, vector<1x32xf32>
    %811 = vector.shape_cast %810 : vector<1x32xf32> to vector<32xf32>
    %812 = vector.shape_cast %811 : vector<32xf32> to vector<1x32xf32>
    %813 = vector.broadcast %812 : vector<1x32xf32> to vector<32x32xf32>
    %814 = arith.addf %809, %813 : vector<32x32xf32>
    %815 = arith.addf %651, %814 : vector<32x32xf32>
    %c1_291 = arith.constant 1 : index
    %c0_292 = arith.constant 0 : index
    %816 = vector.load %arg25[%c1_291, %c0_292] : memref<2x32xf32, #tpu.memory_space<vmem>>, vector<1x32xf32>
    %817 = vector.shape_cast %816 : vector<1x32xf32> to vector<32xf32>
    %c1_293 = arith.constant 1 : index
    %c0_294 = arith.constant 0 : index
    %818 = vector.load %arg26[%c1_293, %c0_294] : memref<2x32xf32, #tpu.memory_space<vmem>>, vector<1x32xf32>
    %819 = vector.shape_cast %818 : vector<1x32xf32> to vector<32xf32>
    %cst_295 = arith.constant dense<0.000000e+00> : vector<32xf32>
    %820 = vector.multi_reduction <add>, %815, %cst_295 [1] : vector<32x32xf32> to vector<32xf32>
    %821 = vector.shape_cast %820 : vector<32xf32> to vector<32x1xf32>
    %cst_296 = arith.constant 3.200000e+01 : f32
    %822 = vector.broadcast %cst_296 : f32 to vector<32x1xf32>
    %823 = arith.divf %821, %822 : vector<32x1xf32>
    %824 = vector.broadcast %823 : vector<32x1xf32> to vector<32x32xf32>
    %825 = arith.subf %815, %824 : vector<32x32xf32>
    %826 = arith.mulf %825, %825 : vector<32x32xf32>
    %cst_297 = arith.constant dense<0.000000e+00> : vector<32xf32>
    %827 = vector.multi_reduction <add>, %826, %cst_297 [1] : vector<32x32xf32> to vector<32xf32>
    %828 = vector.shape_cast %827 : vector<32xf32> to vector<32x1xf32>
    %cst_298 = arith.constant 3.200000e+01 : f32
    %829 = vector.broadcast %cst_298 : f32 to vector<32x1xf32>
    %830 = arith.divf %828, %829 : vector<32x1xf32>
    %831 = vector.broadcast %823 : vector<32x1xf32> to vector<32x32xf32>
    %832 = arith.subf %815, %831 : vector<32x32xf32>
    %cst_299 = arith.constant 9.99999974E-6 : f32
    %833 = vector.broadcast %cst_299 : f32 to vector<32x1xf32>
    %834 = arith.addf %830, %833 : vector<32x1xf32>
    %835 = math.rsqrt %834 : vector<32x1xf32>
    %836 = vector.broadcast %835 : vector<32x1xf32> to vector<32x32xf32>
    %837 = arith.mulf %832, %836 : vector<32x32xf32>
    %838 = vector.shape_cast %817 : vector<32xf32> to vector<1x32xf32>
    %839 = vector.broadcast %838 : vector<1x32xf32> to vector<32x32xf32>
    %840 = arith.mulf %837, %839 : vector<32x32xf32>
    %841 = vector.shape_cast %819 : vector<32xf32> to vector<1x32xf32>
    %842 = vector.broadcast %841 : vector<1x32xf32> to vector<32x32xf32>
    %843 = arith.addf %840, %842 : vector<32x32xf32>
    %c1_300 = arith.constant 1 : index
    %c0_301 = arith.constant 0 : index
    %c0_302 = arith.constant 0 : index
    %844 = vector.load %arg19[%c1_300, %c0_301, %c0_302] : memref<2x32x64xf32, #tpu.memory_space<vmem>>, vector<1x32x64xf32>
    %845 = vector.shape_cast %844 : vector<1x32x64xf32> to vector<32x64xf32>
    %cst_303 = arith.constant dense<0.000000e+00> : vector<32x64xf32>
    %846 = tpu.matmul %843, %845, %cst_303 {dimension_numbers = #tpu.dot_dimension_numbers<[1], [0], [0], [1], [0, 0, 1, 1], [], []>} : vector<32x32xf32>, vector<32x64xf32>, vector<32x64xf32> -> vector<32x64xf32>
    %c1_304 = arith.constant 1 : index
    %c0_305 = arith.constant 0 : index
    %847 = vector.load %arg20[%c1_304, %c0_305] : memref<2x64xf32, #tpu.memory_space<vmem>>, vector<1x64xf32>
    %848 = vector.shape_cast %847 : vector<1x64xf32> to vector<64xf32>
    %849 = vector.shape_cast %848 : vector<64xf32> to vector<1x64xf32>
    %850 = vector.broadcast %849 : vector<1x64xf32> to vector<32x64xf32>
    %851 = arith.addf %846, %850 : vector<32x64xf32>
    %cst_306 = arith.constant 0.000000e+00 : f32
    %852 = vector.broadcast %cst_306 : f32 to vector<32x64xf32>
    %853 = arith.maximumf %851, %852 : vector<32x64xf32>
    %c1_307 = arith.constant 1 : index
    %c0_308 = arith.constant 0 : index
    %c0_309 = arith.constant 0 : index
    %854 = vector.load %arg21[%c1_307, %c0_308, %c0_309] : memref<2x64x32xf32, #tpu.memory_space<vmem>>, vector<1x64x32xf32>
    %855 = vector.shape_cast %854 : vector<1x64x32xf32> to vector<64x32xf32>
    %cst_310 = arith.constant dense<0.000000e+00> : vector<32x32xf32>
    %856 = tpu.matmul %853, %855, %cst_310 {dimension_numbers = #tpu.dot_dimension_numbers<[1], [0], [0], [1], [0, 0, 1, 1], [], []>} : vector<32x64xf32>, vector<64x32xf32>, vector<32x32xf32> -> vector<32x32xf32>
    %c1_311 = arith.constant 1 : index
    %c0_312 = arith.constant 0 : index
    %857 = vector.load %arg22[%c1_311, %c0_312] : memref<2x32xf32, #tpu.memory_space<vmem>>, vector<1x32xf32>
    %858 = vector.shape_cast %857 : vector<1x32xf32> to vector<32xf32>
    %859 = vector.shape_cast %858 : vector<32xf32> to vector<1x32xf32>
    %860 = vector.broadcast %859 : vector<1x32xf32> to vector<32x32xf32>
    %861 = arith.addf %856, %860 : vector<32x32xf32>
    %862 = arith.addf %843, %861 : vector<32x32xf32>
    %c1_313 = arith.constant 1 : index
    %c0_314 = arith.constant 0 : index
    %863 = vector.load %arg27[%c1_313, %c0_314] : memref<2x32xf32, #tpu.memory_space<vmem>>, vector<1x32xf32>
    %864 = vector.shape_cast %863 : vector<1x32xf32> to vector<32xf32>
    %c1_315 = arith.constant 1 : index
    %c0_316 = arith.constant 0 : index
    %865 = vector.load %arg28[%c1_315, %c0_316] : memref<2x32xf32, #tpu.memory_space<vmem>>, vector<1x32xf32>
    %866 = vector.shape_cast %865 : vector<1x32xf32> to vector<32xf32>
    %cst_317 = arith.constant dense<0.000000e+00> : vector<32xf32>
    %867 = vector.multi_reduction <add>, %862, %cst_317 [1] : vector<32x32xf32> to vector<32xf32>
    %868 = vector.shape_cast %867 : vector<32xf32> to vector<32x1xf32>
    %cst_318 = arith.constant 3.200000e+01 : f32
    %869 = vector.broadcast %cst_318 : f32 to vector<32x1xf32>
    %870 = arith.divf %868, %869 : vector<32x1xf32>
    %871 = vector.broadcast %870 : vector<32x1xf32> to vector<32x32xf32>
    %872 = arith.subf %862, %871 : vector<32x32xf32>
    %873 = arith.mulf %872, %872 : vector<32x32xf32>
    %cst_319 = arith.constant dense<0.000000e+00> : vector<32xf32>
    %874 = vector.multi_reduction <add>, %873, %cst_319 [1] : vector<32x32xf32> to vector<32xf32>
    %875 = vector.shape_cast %874 : vector<32xf32> to vector<32x1xf32>
    %cst_320 = arith.constant 3.200000e+01 : f32
    %876 = vector.broadcast %cst_320 : f32 to vector<32x1xf32>
    %877 = arith.divf %875, %876 : vector<32x1xf32>
    %878 = vector.broadcast %870 : vector<32x1xf32> to vector<32x32xf32>
    %879 = arith.subf %862, %878 : vector<32x32xf32>
    %cst_321 = arith.constant 9.99999974E-6 : f32
    %880 = vector.broadcast %cst_321 : f32 to vector<32x1xf32>
    %881 = arith.addf %877, %880 : vector<32x1xf32>
    %882 = math.rsqrt %881 : vector<32x1xf32>
    %883 = vector.broadcast %882 : vector<32x1xf32> to vector<32x32xf32>
    %884 = arith.mulf %879, %883 : vector<32x32xf32>
    %885 = vector.shape_cast %864 : vector<32xf32> to vector<1x32xf32>
    %886 = vector.broadcast %885 : vector<1x32xf32> to vector<32x32xf32>
    %887 = arith.mulf %884, %886 : vector<32x32xf32>
    %888 = vector.shape_cast %866 : vector<32xf32> to vector<1x32xf32>
    %889 = vector.broadcast %888 : vector<1x32xf32> to vector<32x32xf32>
    %890 = arith.addf %887, %889 : vector<32x32xf32>
    %c0_322 = arith.constant 0 : index
    %c0_323 = arith.constant 0 : index
    %891 = vector.load %arg29[%c0_322, %c0_323] : memref<1x32xf32, #tpu.memory_space<vmem>>, vector<1x32xf32>
    %c0_324 = arith.constant 0 : index
    %c0_325 = arith.constant 0 : index
    %892 = vector.load %arg30[%c0_324, %c0_325] : memref<1x32xf32, #tpu.memory_space<vmem>>, vector<1x32xf32>
    %cst_326 = arith.constant dense<0.000000e+00> : vector<32xf32>
    %893 = vector.multi_reduction <add>, %890, %cst_326 [1] : vector<32x32xf32> to vector<32xf32>
    %894 = vector.shape_cast %893 : vector<32xf32> to vector<32x1xf32>
    %cst_327 = arith.constant 3.200000e+01 : f32
    %895 = vector.broadcast %cst_327 : f32 to vector<32x1xf32>
    %896 = arith.divf %894, %895 : vector<32x1xf32>
    %897 = vector.broadcast %896 : vector<32x1xf32> to vector<32x32xf32>
    %898 = arith.subf %890, %897 : vector<32x32xf32>
    %899 = arith.mulf %898, %898 : vector<32x32xf32>
    %cst_328 = arith.constant dense<0.000000e+00> : vector<32xf32>
    %900 = vector.multi_reduction <add>, %899, %cst_328 [1] : vector<32x32xf32> to vector<32xf32>
    %901 = vector.shape_cast %900 : vector<32xf32> to vector<32x1xf32>
    %cst_329 = arith.constant 3.200000e+01 : f32
    %902 = vector.broadcast %cst_329 : f32 to vector<32x1xf32>
    %903 = arith.divf %901, %902 : vector<32x1xf32>
    %904 = vector.broadcast %896 : vector<32x1xf32> to vector<32x32xf32>
    %905 = arith.subf %890, %904 : vector<32x32xf32>
    %cst_330 = arith.constant 9.99999974E-6 : f32
    %906 = vector.broadcast %cst_330 : f32 to vector<32x1xf32>
    %907 = arith.addf %903, %906 : vector<32x1xf32>
    %908 = math.rsqrt %907 : vector<32x1xf32>
    %909 = vector.broadcast %908 : vector<32x1xf32> to vector<32x32xf32>
    %910 = arith.mulf %905, %909 : vector<32x32xf32>
    %911 = vector.broadcast %891 : vector<1x32xf32> to vector<32x32xf32>
    %912 = arith.mulf %910, %911 : vector<32x32xf32>
    %913 = vector.broadcast %892 : vector<1x32xf32> to vector<32x32xf32>
    %914 = arith.addf %912, %913 : vector<32x32xf32>
    %915 = vector.extract_strided_slice %914 {offsets = [0, 0], sizes = [16, 32], strides = [1, 1]} : vector<32x32xf32> to vector<16x32xf32>
    %cst_331 = arith.constant dense<0.000000e+00> : vector<32xf32>
    %916 = vector.multi_reduction <add>, %915, %cst_331 [0] : vector<16x32xf32> to vector<32xf32>
    %917 = vector.shape_cast %916 : vector<32xf32> to vector<1x32xf32>
    %cst_332 = arith.constant 1.600000e+01 : f32
    %918 = vector.broadcast %cst_332 : f32 to vector<1x32xf32>
    %919 = arith.divf %917, %918 : vector<1x32xf32>
    %920 = vector.extract_strided_slice %914 {offsets = [16, 0], sizes = [16, 32], strides = [1, 1]} : vector<32x32xf32> to vector<16x32xf32>
    %cst_333 = arith.constant dense<0.000000e+00> : vector<32xf32>
    %921 = vector.multi_reduction <add>, %920, %cst_333 [0] : vector<16x32xf32> to vector<32xf32>
    %922 = vector.shape_cast %921 : vector<32xf32> to vector<1x32xf32>
    %cst_334 = arith.constant 1.600000e+01 : f32
    %923 = vector.broadcast %cst_334 : f32 to vector<1x32xf32>
    %924 = arith.divf %922, %923 : vector<1x32xf32>
    %925 = tpu.concatenate %919, %924 in 0 : vector<1x32xf32>, vector<1x32xf32> -> vector<2x32xf32>
    %c0_335 = arith.constant 0 : index
    %c0_336 = arith.constant 0 : index
    %926 = vector.load %arg6[%c0_335, %c0_336] : memref<32x32xf32, #tpu.memory_space<vmem>>, vector<32x32xf32>
    %cst_337 = arith.constant dense<0.000000e+00> : vector<2x32xf32>
    %927 = tpu.matmul %925, %926, %cst_337 {dimension_numbers = #tpu.dot_dimension_numbers<[1], [0], [0], [1], [0, 0, 1, 1], [], []>} : vector<2x32xf32>, vector<32x32xf32>, vector<2x32xf32> -> vector<2x32xf32>
    %c0_338 = arith.constant 0 : index
    %c0_339 = arith.constant 0 : index
    %928 = vector.load %arg7[%c0_338, %c0_339] : memref<1x32xf32, #tpu.memory_space<vmem>>, vector<1x32xf32>
    %929 = vector.broadcast %928 : vector<1x32xf32> to vector<2x32xf32>
    %930 = arith.addf %927, %929 : vector<2x32xf32>
    %c0_340 = arith.constant 0 : index
    %c0_341 = arith.constant 0 : index
    %931 = vector.load %arg31[%c0_340, %c0_341] : memref<32x32xf32, #tpu.memory_space<vmem>>, vector<32x32xf32>
    %cst_342 = arith.constant dense<0.000000e+00> : vector<2x32xf32>
    %932 = tpu.matmul %930, %931, %cst_342 {dimension_numbers = #tpu.dot_dimension_numbers<[1], [0], [0], [1], [0, 0, 1, 1], [], []>} : vector<2x32xf32>, vector<32x32xf32>, vector<2x32xf32> -> vector<2x32xf32>
    %c0_343 = arith.constant 0 : index
    %c0_344 = arith.constant 0 : index
    %933 = vector.load %arg32[%c0_343, %c0_344] : memref<1x32xf32, #tpu.memory_space<vmem>>, vector<1x32xf32>
    %934 = vector.broadcast %933 : vector<1x32xf32> to vector<2x32xf32>
    %935 = arith.addf %932, %934 : vector<2x32xf32>
    %c0_345 = arith.constant 0 : index
    %c0_346 = arith.constant 0 : index
    %936 = vector.load %arg35[%c0_345, %c0_346] : memref<1x32xf32, #tpu.memory_space<vmem>>, vector<1x32xf32>
    %c0_347 = arith.constant 0 : index
    %c0_348 = arith.constant 0 : index
    %937 = vector.load %arg36[%c0_347, %c0_348] : memref<1x32xf32, #tpu.memory_space<vmem>>, vector<1x32xf32>
    %c0_349 = arith.constant 0 : index
    %c0_350 = arith.constant 0 : index
    %938 = vector.load %arg37[%c0_349, %c0_350] : memref<1x32xf32, #tpu.memory_space<vmem>>, vector<1x32xf32>
    %cst_351 = arith.constant dense<0.000000e+00> : vector<1xf32>
    %939 = vector.multi_reduction <add>, %936, %cst_351 [1] : vector<1x32xf32> to vector<1xf32>
    %940 = vector.shape_cast %939 : vector<1xf32> to vector<1x1xf32>
    %cst_352 = arith.constant 3.200000e+01 : f32
    %941 = vector.broadcast %cst_352 : f32 to vector<1x1xf32>
    %942 = arith.divf %940, %941 : vector<1x1xf32>
    %943 = vector.broadcast %942 : vector<1x1xf32> to vector<1x32xf32>
    %944 = arith.subf %936, %943 : vector<1x32xf32>
    %945 = arith.mulf %944, %944 : vector<1x32xf32>
    %cst_353 = arith.constant dense<0.000000e+00> : vector<1xf32>
    %946 = vector.multi_reduction <add>, %945, %cst_353 [1] : vector<1x32xf32> to vector<1xf32>
    %947 = vector.shape_cast %946 : vector<1xf32> to vector<1x1xf32>
    %cst_354 = arith.constant 3.200000e+01 : f32
    %948 = vector.broadcast %cst_354 : f32 to vector<1x1xf32>
    %949 = arith.divf %947, %948 : vector<1x1xf32>
    %950 = vector.broadcast %942 : vector<1x1xf32> to vector<1x32xf32>
    %951 = arith.subf %936, %950 : vector<1x32xf32>
    %cst_355 = arith.constant 9.99999974E-6 : f32
    %952 = vector.broadcast %cst_355 : f32 to vector<1x1xf32>
    %953 = arith.addf %949, %952 : vector<1x1xf32>
    %954 = math.rsqrt %953 : vector<1x1xf32>
    %955 = vector.broadcast %954 : vector<1x1xf32> to vector<1x32xf32>
    %956 = arith.mulf %951, %955 : vector<1x32xf32>
    %957 = arith.mulf %956, %937 : vector<1x32xf32>
    %958 = arith.addf %957, %938 : vector<1x32xf32>
    %c0_356 = arith.constant 0 : index
    %c0_357 = arith.constant 0 : index
    %959 = vector.load %arg33[%c0_356, %c0_357] : memref<32x32xf32, #tpu.memory_space<vmem>>, vector<32x32xf32>
    %cst_358 = arith.constant dense<0.000000e+00> : vector<1x32xf32>
    %960 = tpu.matmul %958, %959, %cst_358 {dimension_numbers = #tpu.dot_dimension_numbers<[1], [0], [0], [1], [0, 0, 1, 1], [], []>} : vector<1x32xf32>, vector<32x32xf32>, vector<1x32xf32> -> vector<1x32xf32>
    %c0_359 = arith.constant 0 : index
    %c0_360 = arith.constant 0 : index
    %961 = vector.load %arg34[%c0_359, %c0_360] : memref<1x32xf32, #tpu.memory_space<vmem>>, vector<1x32xf32>
    %962 = arith.addf %960, %961 : vector<1x32xf32>
    %963 = vector.broadcast %962 : vector<1x32xf32> to vector<2x32xf32>
    %964 = arith.subf %935, %963 : vector<2x32xf32>
    %965 = math.absf %964 : vector<2x32xf32>
    %cst_361 = arith.constant 1.000000e+00 : f32
    %966 = vector.broadcast %cst_361 : f32 to vector<2x32xf32>
    %967 = arith.cmpf olt, %965, %966 : vector<2x32xf32>
    %cst_362 = arith.constant 5.000000e-01 : f32
    %968 = vector.broadcast %cst_362 : f32 to vector<2x32xf32>
    %969 = arith.mulf %968, %964 : vector<2x32xf32>
    %970 = arith.mulf %969, %964 : vector<2x32xf32>
    %cst_363 = arith.constant 5.000000e-01 : f32
    %971 = vector.broadcast %cst_363 : f32 to vector<2x32xf32>
    %972 = arith.subf %965, %971 : vector<2x32xf32>
    %973 = arith.select %967, %970, %972 : vector<2x32xi1>, vector<2x32xf32>
    %cst_364 = arith.constant dense<0.000000e+00> : vector<2xf32>
    %974 = vector.multi_reduction <add>, %973, %cst_364 [1] : vector<2x32xf32> to vector<2xf32>
    %975 = vector.shape_cast %974 : vector<2xf32> to vector<2x1xf32>
    %cst_365 = arith.constant dense<0.000000e+00> : vector<1xf32>
    %976 = vector.multi_reduction <add>, %975, %cst_365 [0] : vector<2x1xf32> to vector<1xf32>
    %977 = vector.shape_cast %976 : vector<1xf32> to vector<1x1xf32>
    %cst_366 = arith.constant 1.562500e-02 : f32
    %978 = vector.broadcast %cst_366 : f32 to vector<1x1xf32>
    %979 = arith.mulf %977, %978 : vector<1x1xf32>
    %c0_367 = arith.constant 0 : index
    %c0_368 = arith.constant 0 : index
    %980 = vector.load %arg38[%c0_367, %c0_368] : memref<1x1xf32, #tpu.memory_space<vmem>>, vector<1x1xf32>
    tpu.vector_store %arg38[%c0_367, %c0_368], %979 {strides = array<i32>} : memref<1x1xf32, #tpu.memory_space<vmem>>, vector<1x1xf32>,
    return
  }
}

</mosaic_0001>

<bundles_post_ra>
// kernel: mae_compvit_forward.1
= control target key start
LH: loop header
LB: loop body
LE: loop exit
PB: predicated region body
PF: predicated region fallthrough
CT: control target
= control target key end

     0   :  { %s11062_s6 = smov 1   ;;  %s11063_s10 = smov 2   ;;  %s12753_s0 = inlined_call_operand.smem [shape: u32[39], index: -1, kind: input, shape index: {}] }
   0x1   :  { %s11125_s5 = sld [smem:[%s12753_s0]]   ;;  %s11064_s14 = smov 3  }
   0x2   :  { %s11130_s9 = sld [smem:[%s12753_s0 + %s11062_s6]]   ;;  %s11065_s18 = smov 4  }
   0x3   :  { %s11135_s13 = sld [smem:[%s12753_s0 + %s11063_s10]]   ;;  %s11066_s22 = smov 5  }
   0x4   :  { %s11140_s17 = sld [smem:[%s12753_s0 + %s11064_s14]]   ;;  %s11067_s26 = smov 6  }
   0x5   :  { %s11145_s21 = sld [smem:[%s12753_s0 + %s11065_s18]]   ;;  %s11068_s30 = smov 7  }
   0x6   :  { %s11150_s25 = sld [smem:[%s12753_s0 + %s11066_s22]]   ;;  %s11069_s4 = smov 8  }
   0x7   :  { %s11155_s29 = sld [smem:[%s12753_s0 + %s11067_s26]]   ;;  %s11070_s10 = smov 9  }
   0x8   :  { %s11160_s3 = sld [smem:[%s12753_s0 + %s11068_s30]]   ;;  %s11071_s15 = smov 10  }
   0x9   :  { %s11165_s8 = sld [smem:[%s12753_s0 + %s11069_s4]]   ;;  %s11072_s20 = smov 11  }
   0xa   :  { %s11170_s14 = sld [smem:[%s12753_s0 + %s11070_s10]]   ;;  %s11073_s26 = smov 12  }
   0xb   :  { %s11175_s19 = sld [smem:[%s12753_s0 + %s11071_s15]]   ;;  %s11074_s1 = smov 13  }
   0xc   :  { %s11180_s24 = sld [smem:[%s12753_s0 + %s11072_s20]]   ;;  %s11075_s7 = smov 14  }
   0xd   :  { %s11185_s30 = sld [smem:[%s12753_s0 + %s11073_s26]]   ;;  %s11076_s15 = smov 15  }
   0xe   :  { %12800 = sst [smem:[#allocation5_spill]] %s11160_s3  ;;  %s11077_s22 = smov 16  }
   0xf   :  { %s11190_s6 = sld [smem:[%s12753_s0 + %s11074_s1]]   ;;  %s11078_s28 = smov 17  }
  0x10   :  { %s11195_s12 = sld [smem:[%s12753_s0 + %s11075_s7]]   ;;  %s11079_s7 = smov 18  }
  0x11   :  { %s11200_s20 = sld [smem:[%s12753_s0 + %s11076_s15]]   ;;  %s11080_s15 = smov 19  }
  0x12   :  { %s11205_s27 = sld [smem:[%s12753_s0 + %s11077_s22]]   ;;  %s11081_s22 = smov 20  }
  0x13   :  { %s11210_s4 = sld [smem:[%s12753_s0 + %s11078_s28]]   ;;  %s11082_s28 = smov 21  }
  0x15   :  { %12801 = sst [smem:[#allocation6_spill]] %s11190_s6 }
  0x16   :  { %12802 = sst [smem:[#allocation7_spill]] %s11195_s12 }
  0x17   :  { %s11215_s12 = sld [smem:[%s12753_s0 + %s11079_s7]]   ;;  %s11083_s7 = smov 22  }
  0x18   :  { %12803 = sst [smem:[#allocation8_spill]] %s11205_s27 }
  0x19   :  { %12804 = sst [smem:[#allocation9_spill]] %s11210_s4 }
  0x1a   :  { %s11220_s6 = sld [smem:[%s12753_s0 + %s11080_s15]]   ;;  %s11084_s15 = smov 23  }
  0x1b   :  { %s11225_s27 = sld [smem:[%s12753_s0 + %s11081_s22]]   ;;  %s11085_s22 = smov 24  }
  0x1c   :  { %s11230_s4 = sld [smem:[%s12753_s0 + %s11082_s28]]   ;;  %s11086_s28 = smov 25  }
  0x1d   :  { %12805 = sst [smem:[#allocation10_spill]] %s11215_s12 }
  0x1e   :  { %s11235_s12 = sld [smem:[%s12753_s0 + %s11083_s7]]   ;;  %s11087_s7 = smov 26  }
  0x20   :  { %12806 = sst [smem:[#allocation11_spill]] %s11220_s6 }
  0x21   :  { %12807 = sst [smem:[#allocation12_spill]] %s11225_s27 }
  0x22   :  { %12808 = sst [smem:[#allocation13_spill]] %s11230_s4 }
  0x23   :  { %s11240_s6 = sld [smem:[%s12753_s0 + %s11084_s15]]   ;;  %s11088_s15 = smov 27  }
  0x24   :  { %12809 = sst [smem:[#allocation14_spill]] %s11235_s12 }
  0x25   :  { %s11245_s27 = sld [smem:[%s12753_s0 + %s11085_s22]]   ;;  %s11089_s22 = smov 28  }
  0x26   :  { %s11250_s4 = sld [smem:[%s12753_s0 + %s11086_s28]]   ;;  %s11090_s28 = smov 29  }
  0x27   :  { %s11255_s12 = sld [smem:[%s12753_s0 + %s11087_s7]]   ;;  %s11091_s7 = smov 30  }
  0x29   :  { %12810 = sst [smem:[#allocation15_spill]] %s11240_s6 }
  0x2a   :  { %s11260_s6 = sld [smem:[%s12753_s0 + %s11088_s15]]   ;;  %s11092_s15 = smov 31  }
  0x2b   :  { %12811 = sst [smem:[#allocation16_spill]] %s11245_s27 }
  0x2c   :  { %12812 = sst [smem:[#allocation17_spill]] %s11250_s4 }
  0x2d   :  { %12813 = sst [smem:[#allocation18_spill]] %s11255_s12 }
  0x2e   :  { %s11265_s27 = sld [smem:[%s12753_s0 + %s11089_s22]]   ;;  %s11093_s22 = smov 32  }
  0x2f   :  { %s11270_s4 = sld [smem:[%s12753_s0 + %s11090_s28]]   ;;  %s11094_s28 = smov 33  }
  0x30   :  { %12814 = sst [smem:[#allocation19_spill]] %s11260_s6 }
  0x31   :  { %s11275_s12 = sld [smem:[%s12753_s0 + %s11091_s7]]   ;;  %s11095_s7 = smov 34  }
  0x32   :  { %s11280_s6 = sld [smem:[%s12753_s0 + %s11092_s15]]   ;;  %s11096_s15 = smov 35  }
  0x34   :  { %12815 = sst [smem:[#allocation20_spill]] %s11265_s27 }
  0x35   :  { %12816 = sst [smem:[#allocation21_spill]] %s11270_s4 }
  0x36   :  { %s11285_s27 = sld [smem:[%s12753_s0 + %s11093_s22]]   ;;  %s11097_s22 = smov 36  }
  0x37   :  { %12817 = sst [smem:[#allocation22_spill]] %s11275_s12 }
  0x38   :  { %12818 = sst [smem:[#allocation23_spill]] %s11280_s6 }
  0x39   :  { %s11290_s4 = sld [smem:[%s12753_s0 + %s11094_s28]]   ;;  %s11098_s28 = smov 37  }
  0x3a   :  { %s11295_s12 = sld [smem:[%s12753_s0 + %s11095_s7]]   ;;  %s11099_s7 = smov 38  }
  0x3b   :  { %s11300_s6 = sld [smem:[%s12753_s0 + %s11096_s15]]  }
  0x3c   :  { %12819 = sst [smem:[#allocation24_spill]] %s11285_s27 }
  0x3d   :  { %s11305_s27 = sld [smem:[%s12753_s0 + %s11097_s22]]  }
  0x3f   :  { %12820 = sst [smem:[#allocation25_spill]] %s11290_s4 }
  0x40   :  { %12821 = sst [smem:[#allocation26_spill]] %s11295_s12 }
  0x41   :  { %s11310_s4 = sld [smem:[%s12753_s0 + %s11098_s28]]  }
  0x42   :  { %s11315_s12 = sld [smem:[%s12753_s0 + %s11099_s7]]  }
  0x47   :  { %12822 = sst [smem:[#allocation27_spill]] %s11310_s4 }
  0x48   :  { %12823 = sst [smem:[#allocation28_spill]] %s11315_s12 }
  0x49   :  { %v170_v0 = vld [vmem:[%s11130_s9 + $0x38] sm:$0xff]  ;;  %v169_v1 = vld [vmem:[%s11130_s9 + $0x30] sm:$0xff]  ;;  %vm178_vm0 = vcmask 523264   ;;  %v168_v2 = vld [vmem:[%s11130_s9 + $0x28] sm:$0xff] }
  0x4a   :  { %10004 = vmatprep.subr.mxu0 %v170_v0  ;;  %v159_v3 = vld [vmem:[%s11125_s5] sm:$0xff] }
  0x4b   :  { %10005 = vmatpush3.msra.mxu0 %v170_v0  ;;  %10020 = vmatprep.mubr.msk.f32.mxu0 %vm178_vm0, %v159_v3  ;;  %v167_v4 = vld [vmem:[%s11130_s9 + $0x20] sm:$0xff] }
  0x4c   :  { %10006 = vmatprep.subr.mxu0 %v169_v1 }
  0x4d   :  { %10007 = vmatpush3.msra.mxu0 %v169_v1 }
  0x4e   :  { %82 = vsyncpa [#allocation3], 0  ;;  %10008 = vmatprep.subr.mxu0 %v168_v2  ;;  %v166_v5 = vld [vmem:[%s11130_s9 + $0x18] sm:$0xff]  ;;  %v165_v6 = vld [vmem:[%s11130_s9 + $0x10] sm:$0xff]  ;;  %vm279_vm1 = vcmask 261120   ;;  %vm523_vm2 = vcmask 64512  }
  0x4f   :  { %10009 = vmatpush3.msra.mxu0 %v168_v2  ;;  %v164_v7 = vld [vmem:[%s11130_s9 + $0x8] sm:$0xff]  ;;  %v163_v8 = vld [vmem:[%s11130_s9] sm:$0xff]  ;;  %v161_v10 = vld [vmem:[%s11125_s5 + $0x10] sm:$0xff]  ;;  %s12797_s0 = smov 96   ;;  %s12795_s9 = smov 88   ;;  %vm609_vm3 = vcmask 130048  }
  0x50   :  { %10010 = vmatprep.subr.mxu0 %v167_v4  ;;  %v160_v9 = vld [vmem:[%s11125_s5 + $0x8] sm:$0xff]  ;;  %v162_v11 = vld [vmem:[%s11125_s5 + $0x18] sm:$0xff]  ;;  %v9328_v13 = vld [vmem:[%s11135_s13] ss:$0 sm:$0xff]  ;;  %s12793_s5 = smov 120   ;;  %s12787_s13 = smov 64  }
  0x51   :  { %10011 = vmatpush3.msra.mxu0 %v167_v4  ;;  %v274_v15 = vld [vmem:[%s11140_s17] sm:$0xff]  ;;  %v326_v34 = vld [vmem:[%s11155_s29 + $0x18] sm:$0xff]  ;;  %v325_v35 = vld [vmem:[%s11155_s29 + $0x10] sm:$0xff]  ;;  %s12785_s17 = smov 56   ;;  %s12783_s15 = smov 48   ;;  %vm1353_vm4 = vcmask 195584  }
  0x52   :  { %10012 = vmatprep.subr.mxu0 %v166_v5  ;;  %10026 = vmatprep.subr.mxu1 %v326_v34  ;;  %v324_v36 = vld [vmem:[%s11155_s29 + $0x8] sm:$0xff]  ;;  %v323_v37 = vld [vmem:[%s11155_s29] sm:$0xff]  ;;  %v420_v38 = vld [vmem:[%s11170_s14 + $0x18] sm:$0xff]  ;;  %s12781_s16 = smov 72   ;;  %s12779_s18 = smov 104   ;;  %vm9156_vm5 = vcmask 253952  }
  0x53   :  { %10013 = vmatpush3.msra.mxu0 %v166_v5  ;;  %10027 = vmatpush3.msra.mxu1 %v326_v34  ;;  %v9333_v46 = vld [vmem:[%s11145_s21] ss:$0 sm:$0xff]  ;;  %v419_v56 = vld [vmem:[%s11170_s14 + $0x10] sm:$0xff]  ;;  %v418_v57 = vld [vmem:[%s11170_s14 + $0x8] sm:$0xff]  ;;  %s12791_s21 = smov 80   ;;  %s12771_s22 = smov 40  }
  0x54   :  { %10014 = vmatprep.subr.mxu0 %v165_v6  ;;  %10028 = vmatprep.subr.mxu1 %v325_v35  ;;  %v9334_v48 = vld [vmem:[%s11150_s25] ss:$0 sm:$0xff]  ;;  %v416_v59 = vld [vmem:[%s11165_s8 + $0x8] sm:$0xff]  ;;  %s12789_s25 = smov 112   ;;  %s12777_s23 = smov 8   ;;  %vm11115_vm6 = vmmov 0  }
  0x55   :  { %10015 = vmatpush3.msra.mxu0 %v165_v6  ;;  %10029 = vmatpush3.msra.mxu1 %v325_v35  ;;  %v415_v55 = vld [vmem:[%s11165_s8] sm:$0xff]  ;;  %s12775_s26 = smov 16   ;;  %s12773_s28 = smov 24   ;;  %vm8994_vm7 = vcmask 1040384   ;;  %vm9261_vm9 = vcmask 254976   ;;  %vm9265_vm10 = vcmask 1041408  }
  0x56   :  { %10016 = vmatprep.subr.mxu0 %v164_v7  ;;  %10030 = vmatprep.subr.mxu1 %v324_v36  ;;  %v417_v58 = vld [vmem:[%s11170_s14] sm:$0xff]  ;;  %s12825_s1 = sld [smem:[#allocation8_spill]]  ;;  %s12846_s12 = smov 120   ;;  %vm9274_vm11 = vcmask 0  }
  0x57   :  { %10017 = vmatpush3.msra.mxu0 %v164_v7  ;;  %10031 = vmatpush3.msra.mxu1 %v324_v36  ;;  %v11362_v62 = vld [vmem:[%s11175_s19] ss:$0 sm:$0xff]  ;;  %s12826_s2 = sld [smem:[#allocation15_spill]]  ;;  %s12851_s4 = smov 24  }
  0x58   :  { %10018 = vmatprep.subr.mxu0 %v163_v8  ;;  %10032 = vmatprep.subr.mxu1 %v323_v37  ;;  %s12827_s7 = sld [smem:[#allocation16_spill]] }
  0x59   :  { %10019 = vmatpush3.msra.mxu0 %v163_v8  ;;  %10033 = vmatpush3.msra.mxu1 %v323_v37  ;;  %s12828_s10 = sld [smem:[#allocation7_spill]] }
  0x5a   :  { %10021 = vmatmul.mubr.msk.f32.vlgmr.msra.gmra.mxu0 %vm178_vm0, %v160_v9  ;;  %10037 = vmatprep.subr.mxu1 %v420_v38  ;;  %s12829_s11 = sld [smem:[#allocation9_spill]] }
  0x5b   :  { %10023 = vmatprep.mubr.msk.f32.mxu0 %vm178_vm0, %v161_v10 }
  0x5e   :  { %10024 = vmatmul.mubr.msk.f32.gmra.mxu0 %vm178_vm0, %v162_v11 }
 0x11a   :  { %v10022_v12 = vpop.f32.mrf.mxu0 }
 0x11c   :  { %v257_v14 = vpop.f32.mrf.mxu0 }
 0x11d   :  { %v258_v16 = vadd.f32 %v9328_v13, %v257_v14 }
 0x11e   :  { %v10025_v17 = vpop.f32.mrf.mxu0 }
 0x11f   :  { %v275_v18 = vadd.f32 %v274_v15, %v258_v16 }
 0x120   :  { %v266_v19 = vpop.f32.mrf.mxu0 }
 0x121   :  { %v267_v20 = vadd.f32 %v9328_v13, %v266_v19  ;;  %v280_v21 = vsel %vm279_vm1, %v275_v18, 0.0 }
 0x122   :  { %281 = vadd.xlane.f32.xlu0 %v280_v21 }
 0x123   :  { %v276_v22 = vadd.f32 %v274_v15, %v267_v20 }
 0x125   :  { %v283_v23 = vsel %vm279_vm1, %v276_v22, 0.0 }
 0x126   :  { %284 = vadd.xlane.f32.xlu0 %v283_v23 }
 0x1ab   :  { %v282_v24 = vpop.xlane.xlu0 %281 }
 0x1ac   :  { %v287_v25 = vmul.f32 0.03125, %v282_v24 }
 0x1ae   :  { %v289_v26 = vsub.f32 %v275_v18, %v287_v25 }
 0x1af   :  { %v285_v27 = vpop.xlane.xlu0 %284 }
 0x1b0   :  { %v288_v28 = vmul.f32 0.03125, %v285_v27  ;;  %v291_v29 = vmul.f32 %v289_v26, %v289_v26 }
 0x1b2   :  { %v290_v30 = vsub.f32 %v276_v22, %v288_v28  ;;  %v293_v31 = vsel %vm279_vm1, %v291_v29, 0.0 }
 0x1b3   :  { %294 = vadd.xlane.f32.xlu1 %v293_v31 }
 0x1b4   :  { %v292_v32 = vmul.f32 %v290_v30, %v290_v30 }
 0x1b6   :  { %v296_v33 = vsel %vm279_vm1, %v292_v32, 0.0 }
 0x1b7   :  { %297 = vadd.xlane.f32.xlu1 %v296_v33 }
 0x23c   :  { %v295_v39 = vpop.xlane.xlu1 %294 }
 0x23d   :  { %v299_v40 = vmul.f32 0.03125, %v295_v39 }
 0x23f   :  { %v301_v41 = vadd.f32 1e-05, %v299_v40 }
 0x240   :  { %v298_v42 = vpop.xlane.xlu1 %297 }
 0x241   :  { %10715 = vrsqrt.f32 %v301_v41  ;;  %v300_v43 = vmul.f32 0.03125, %v298_v42 }
 0x243   :  { %v302_v44 = vadd.f32 1e-05, %v300_v43 }
 0x245   :  { %10717 = vrsqrt.f32 %v302_v44 }
 0x24e   :  { %v10716_v45 = vpop.eup %10715 }
 0x24f   :  { %v305_v47 = vmul.f32 %v10716_v45, %v289_v26 }
 0x251   :  { %v313_v49 = vmul.f32 %v9333_v46, %v305_v47 }
 0x252   :  { %v10718_v50 = vpop.eup %10717 }
 0x253   :  { %v306_v51 = vmul.f32 %v10718_v50, %v290_v30  ;;  %v321_v52 = vadd.f32 %v9334_v48, %v313_v49 }
 0x255   :  { %v314_v53 = vmul.f32 %v9333_v46, %v306_v51  ;;  %10034 = vmatprep.mubr.msk.f32.mxu1 %vm279_vm1, %v321_v52 }
 0x257   :  { %v322_v54 = vadd.f32 %v9334_v48, %v314_v53 }
 0x259   :  { %10035 = vmatmul.mubr.msk.f32.vlgmr.msra.gmra.mxu1 %vm279_vm1, %v322_v54 }
 0x25a   :  { %10038 = vmatpush3.msra.mxu1 %v420_v38  ;;  %10045 = vmatprep.mubr.msk.f32.mxu1 %vm279_vm1, %v415_v55 }
 0x25b   :  { %10039 = vmatprep.subr.mxu1 %v419_v56 }
 0x25c   :  { %10040 = vmatpush3.msra.mxu1 %v419_v56 }
 0x25d   :  { %10041 = vmatprep.subr.mxu1 %v418_v57 }
 0x25e   :  { %10042 = vmatpush3.msra.mxu1 %v418_v57 }
 0x25f   :  { %10043 = vmatprep.subr.mxu1 %v417_v58 }
 0x260   :  { %10044 = vmatpush3.msra.mxu1 %v417_v58 }
 0x261   :  { %10046 = vmatmul.mubr.msk.f32.vlgmr.msra.gmra.mxu1 %vm279_vm1, %v416_v59 }
 0x262   :  { %10048 = vmatprep.mubr.msk.f32.mxu1 %vm279_vm1, %v415_v55 }
 0x265   :  { %10049 = vmatmul.mubr.msk.f32.gmra.mxu1 %vm279_vm1, %v416_v59 }
 0x319   :  { %v11357_v60 = vpop.f32.mrf.mxu1 }
 0x31b   :  { %v11359_v61 = vpop.f32.mrf.mxu1 }
 0x321   :  { %v10047_v63 = vpop.f32.mrf.mxu1 }
 0x322   :  { %v11365_v0 = vadd.f32 %v10047_v63, %v11362_v62 }
 0x323   :  { %v498_v1 = vpop.f32.mrf.mxu1 }
 0x324   :  { %v11368_v2 = vadd.f32 %v11362_v62, %v498_v1  ;;  %521 = vrot.lane.b32.xlu0 %v11365_v0, %s12797_s0 }
 0x325   :  { %v11430_v1 = vpop.f32.mrf.mxu1 }
 0x326   :  { %519 = vrot.lane.b32.xlu1 %v11368_v2, %s12797_s0  ;;  %10055 = vmatprep.mubr.msk.f32.mxu0 %vm523_vm2, %v11368_v2 }
 0x328   :  { %719 = vrot.lane.b32.xlu0 %v11368_v2, %s12793_s5 }
 0x32a   :  { %725 = vrot.lane.b32.xlu1 %v11365_v0, %s12795_s9 }
 0x32e   :  { %723 = vrot.lane.b32.xlu1 %v11368_v2, %s12795_s9 }
 0x332   :  { %721 = vrot.lane.b32.xlu1 %v11365_v0, %s12793_s5 }
 0x396   :  { %v522_v3 = vpop.permute.xlu0 %521 }
 0x397   :  { %10051 = vmatprep.subr.msk.mxu0 %vm523_vm2, %v522_v3 }
 0x398   :  { %10052 = vmatpush3.xpose.msk.msra.mxu0 %vm523_vm2, %v522_v3  ;;  %v520_v4 = vpop.permute.xlu1 %519  ;;  %v11432_v3 = vpop.f32.mrf.mxu1 }
 0x399   :  { %10053 = vmatprep.subr.msk.mxu0 %vm523_vm2, %v520_v4 }
 0x39a   :  { %v720_v6 = vpop.permute.xlu0 %719 }
 0x39c   :  { %10054 = vmatpush3.xpose.msk.msra.mxu0 %vm523_vm2, %v520_v4  ;;  %v726_v5 = vpop.permute.xlu1 %725 }
 0x39d   :  { %10065 = vmatprep.subr.msk.mxu0 %vm523_vm2, %v726_v5 }
 0x39f   :  { %10056 = vmatmul.mubr.msk.f32.vlgmr.msra.gmra.mxu0 %vm523_vm2, %v11365_v0 }
 0x3a0   :  { %v724_v7 = vpop.permute.xlu1 %723  ;;  %10066 = vmatpush3.xpose.msk.msra.mxu0 %vm523_vm2, %v726_v5  ;;  %10069 = vmatprep.mubr.msk.f32.mxu0 %vm523_vm2, %v720_v6 }
 0x3a1   :  { %10067 = vmatprep.subr.msk.mxu0 %vm523_vm2, %v724_v7 }
 0x3a4   :  { %10068 = vmatpush3.xpose.msk.msra.mxu0 %vm523_vm2, %v724_v7  ;;  %v722_v8 = vpop.permute.xlu1 %721 }
 0x3a7   :  { %10070 = vmatmul.mubr.msk.f32.vlgmr.msra.gmra.mxu0 %vm523_vm2, %v722_v8 }
 0x45f   :  { %v10057_v9 = vpop.f32.mrf.mxu0 }
 0x460   :  { %v608_v10 = vmul.f32 0.35355338, %v10057_v9 }
 0x461   :  { %v598_v11 = vpop.f32.mrf.mxu0 }
 0x462   :  { %v607_v12 = vmul.f32 0.35355338, %v598_v11  ;;  %v613_v13 = vsel %vm609_vm3, %v608_v10, -inf }
 0x463   :  { %614 = vmax.xlane.f32.xlu1 %v613_v13 }
 0x464   :  { %v610_v14 = vsel %vm609_vm3, %v607_v12, -inf }
 0x465   :  { %611 = vmax.xlane.f32.xlu0 %v610_v14 }
 0x467   :  { %v10071_v15 = vpop.f32.mrf.mxu0 }
 0x468   :  { %v811_v18 = vmul.f32 0.35355338, %v10071_v15 }
 0x469   :  { %v801_v16 = vpop.f32.mrf.mxu0 }
 0x46a   :  { %v810_v17 = vmul.f32 0.35355338, %v801_v16  ;;  %v815_v20 = vsel %vm609_vm3, %v811_v18, -inf }
 0x46c   :  { %v812_v19 = vsel %vm609_vm3, %v810_v17, -inf }
 0x46d   :  { %813 = vmax.xlane.f32.xlu0 %v812_v19 }
 0x471   :  { %816 = vmax.xlane.f32.xlu0 %v815_v20 }
 0x474   :  { %632 = vrot.lane.b32.xlu1 %v11368_v2, %s12787_s13 }
 0x478   :  { %836 = vrot.lane.b32.xlu1 %v11365_v0, %s12785_s17 }
 0x47c   :  { %834 = vrot.lane.b32.xlu1 %v11368_v2, %s12785_s17 }
 0x487   :  { %634 = vrot.lane.b32.xlu0 %v11365_v0, %s12787_s13 }
 0x4ec   :  { %v615_v21 = vpop.xlane.xlu1 %614 }
 0x4ed   :  { %v617_v22 = vsub.f32 %v608_v10, %v615_v21 }
 0x4ee   :  { %v612_v23 = vpop.xlane.xlu0 %611 }
 0x4ef   :  { %v620_v24 = vmul.f32 1.442695, %v617_v22  ;;  %v616_v25 = vsub.f32 %v607_v12, %v612_v23 }
 0x4f0   :  { %v633_v32 = vpop.permute.xlu1 %632 }
 0x4f1   :  { %10719 = vpow2.f32 %v620_v24  ;;  %v618_v26 = vmul.f32 1.442695, %v616_v25 }
 0x4f3   :  { %10721 = vpow2.f32 %v618_v26 }
 0x4f4   :  { %v837_v39 = vpop.permute.xlu1 %836 }
 0x4f6   :  { %v814_v27 = vpop.xlane.xlu0 %813 }
 0x4f7   :  { %v818_v28 = vsub.f32 %v810_v17, %v814_v27 }
 0x4f8   :  { %v835_v44 = vpop.permute.xlu1 %834 }
 0x4f9   :  { %v820_v29 = vmul.f32 1.442695, %v818_v28 }
 0x4fa   :  { %v817_v30 = vpop.xlane.xlu0 %816 }
 0x4fb   :  { %10723 = vpow2.f32 %v820_v29  ;;  %v819_v31 = vsub.f32 %v811_v18, %v817_v30 }
 0x4fd   :  { %v822_v33 = vmul.f32 1.442695, %v819_v31 }
 0x4fe   :  { %v10720_v34 = vpop.eup %10719  ;;  %v635_v35 = vpop.permute.xlu0 %634 }
 0x4ff   :  { %10725 = vpow2.f32 %v822_v33  ;;  %10058 = vmatprep.subr.mxu1 %v635_v35  ;;  %v625_v36 = vsel %vm609_vm3, %v10720_v34, 0.0 }
 0x500   :  { %v10722_v37 = vpop.eup %10721  ;;  %626 = vadd.xlane.f32.xlu1 %v625_v36  ;;  %10059 = vmatpush3.msra.mxu1 %v635_v35 }
 0x501   :  { %10060 = vmatprep.subr.mxu1 %v633_v32  ;;  %v622_v38 = vsel %vm609_vm3, %v10722_v37, 0.0 }
 0x502   :  { %623 = vadd.xlane.f32.xlu0 %v622_v38  ;;  %10061 = vmatpush3.msra.mxu1 %v633_v32 }
 0x503   :  { %10072 = vmatprep.subr.mxu1 %v837_v39 }
 0x508   :  { %v10724_v40 = vpop.eup %10723 }
 0x509   :  { %v824_v41 = vsel %vm609_vm3, %v10724_v40, 0.0 }
 0x50a   :  { %825 = vadd.xlane.f32.xlu0 %v824_v41 }
 0x50c   :  { %v10726_v42 = vpop.eup %10725 }
 0x50d   :  { %v827_v43 = vsel %vm609_vm3, %v10726_v42, 0.0 }
 0x50e   :  { %828 = vadd.xlane.f32.xlu1 %v827_v43 }
 0x51f   :  { %925 = vrot.lane.b32.xlu1 %v11368_v2, %s12791_s21 }
 0x520   :  { %927 = vrot.lane.b32.xlu0 %v11365_v0, %s12791_s21 }
 0x523   :  { %923 = vrot.lane.b32.xlu1 %v11365_v0, %s12789_s25 }
 0x524   :  { %921 = vrot.lane.b32.xlu0 %v11368_v2, %s12789_s25 }
 0x589   :  { %v627_v45 = vpop.xlane.xlu1 %626 }
 0x58a   :  { %10727 = vrcp.f32 %v627_v45  ;;  %v11482_v45 = vadd.f32 %v11362_v62, %v11432_v3 }
 0x58b   :  { %v624_v46 = vpop.xlane.xlu0 %623 }
 0x58c   :  { %10729 = vrcp.f32 %v624_v46 }
 0x593   :  { %v826_v47 = vpop.xlane.xlu0 %825 }
 0x594   :  { %10731 = vrcp.f32 %v826_v47 }
 0x597   :  { %v829_v48 = vpop.xlane.xlu1 %828  ;;  %v10728_v49 = vpop.eup %10727 }
 0x598   :  { %10733 = vrcp.f32 %v829_v48  ;;  %v631_v52 = vmul.f32 %v10728_v49, %v10720_v34  ;;  %v928_v53 = vpop.permute.xlu0 %927 }
 0x599   :  { %v10730_v50 = vpop.eup %10729 }
 0x59a   :  { %v629_v51 = vmul.f32 %v10730_v50, %v10722_v37 }
 0x59b   :  { %v926_v59 = vpop.permute.xlu1 %925 }
 0x59c   :  { %10062 = vmatprep.mubr.msk.f32.mxu1 %vm609_vm3, %v629_v51  ;;  %v922_v58 = vpop.permute.xlu0 %921 }
 0x59d   :  { %10063 = vmatmul.mubr.msk.f32.vlgmr.msra.gmra.mxu1 %vm609_vm3, %v631_v52 }
 0x59e   :  { %10073 = vmatpush3.msra.mxu1 %v837_v39 }
 0x59f   :  { %10074 = vmatprep.subr.mxu1 %v835_v44  ;;  %v924_v63 = vpop.permute.xlu1 %923 }
 0x5a0   :  { %10075 = vmatpush3.msra.mxu1 %v835_v44  ;;  %v11476_v44 = vadd.f32 %v11430_v1, %v11362_v62 }
 0x5a1   :  { %v10732_v54 = vpop.eup %10731  ;;  %10079 = vmatprep.subr.msk.mxu1 %vm523_vm2, %v928_v53 }
 0x5a2   :  { %v831_v55 = vmul.f32 %v10732_v54, %v10724_v40 }
 0x5a4   :  { %10076 = vmatprep.mubr.msk.f32.mxu1 %vm609_vm3, %v831_v55 }
 0x5a5   :  { %v10734_v56 = vpop.eup %10733 }
 0x5a6   :  { %v833_v57 = vmul.f32 %v10734_v56, %v10726_v42 }
 0x5a8   :  { %10077 = vmatmul.mubr.msk.f32.vlgmr.msra.gmra.mxu1 %vm609_vm3, %v833_v57 }
 0x5a9   :  { %10080 = vmatpush3.xpose.msk.msra.mxu1 %vm523_vm2, %v928_v53  ;;  %10083 = vmatprep.mubr.msk.f32.mxu1 %vm523_vm2, %v922_v58 }
 0x5aa   :  { %10081 = vmatprep.subr.msk.mxu1 %vm523_vm2, %v926_v59 }
 0x5ad   :  { %10082 = vmatpush3.xpose.msk.msra.mxu1 %vm523_vm2, %v926_v59 }
 0x5b0   :  { %10084 = vmatmul.mubr.msk.f32.vlgmr.msra.gmra.mxu1 %vm523_vm2, %v924_v63 }
 0x65d   :  { %v11434_v4 = vpop.f32.mrf.mxu1 }
 0x65f   :  { %v11436_v5 = vpop.f32.mrf.mxu1 }
 0x668   :  { %v11438_v6 = vpop.f32.mrf.mxu1 }
 0x66a   :  { %v11440_v7 = vpop.f32.mrf.mxu1 }
 0x670   :  { %v10085_v8 = vpop.f32.mrf.mxu1 }
 0x671   :  { %v1013_v9 = vmul.f32 0.35355338, %v10085_v8 }
 0x672   :  { %v1003_v10 = vpop.f32.mrf.mxu1 }
 0x673   :  { %v1012_v11 = vmul.f32 0.35355338, %v1003_v10  ;;  %v1017_v12 = vsel %vm609_vm3, %v1013_v9, -inf }
 0x674   :  { %1018 = vmax.xlane.f32.xlu1 %v1017_v12 }
 0x675   :  { %v1014_v13 = vsel %vm609_vm3, %v1012_v11, -inf }
 0x676   :  { %1015 = vmax.xlane.f32.xlu0 %v1014_v13 }
 0x685   :  { %1036 = vrot.lane.b32.xlu1 %v11368_v2, %s12783_s15 }
 0x689   :  { %1129 = vrot.lane.b32.xlu1 %v11365_v0, %s12781_s16 }
 0x68d   :  { %1127 = vrot.lane.b32.xlu1 %v11368_v2, %s12781_s16 }
 0x691   :  { %1125 = vrot.lane.b32.xlu1 %v11365_v0, %s12779_s18 }
 0x6fd   :  { %v1019_v14 = vpop.xlane.xlu1 %1018 }
 0x6fe   :  { %v1021_v15 = vsub.f32 %v1013_v9, %v1019_v14 }
 0x6ff   :  { %v1016_v16 = vpop.xlane.xlu0 %1015 }
 0x700   :  { %v1024_v17 = vmul.f32 1.442695, %v1021_v15  ;;  %v1020_v18 = vsub.f32 %v1012_v11, %v1016_v16 }
 0x701   :  { %v1037_v26 = vpop.permute.xlu1 %1036 }
 0x702   :  { %10735 = vpow2.f32 %v1024_v17  ;;  %v1022_v19 = vmul.f32 1.442695, %v1020_v18 }
 0x704   :  { %10737 = vpow2.f32 %v1022_v19 }
 0x705   :  { %v1130_v28 = vpop.permute.xlu1 %1129 }
 0x709   :  { %v1128_v34 = vpop.permute.xlu1 %1127 }
 0x70d   :  { %v1126_v35 = vpop.permute.xlu1 %1125 }
 0x70f   :  { %v10736_v20 = vpop.eup %10735 }
 0x710   :  { %v1029_v21 = vsel %vm609_vm3, %v10736_v20, 0.0 }
 0x711   :  { %v10738_v22 = vpop.eup %10737  ;;  %1030 = vadd.xlane.f32.xlu0 %v1029_v21 }
 0x712   :  { %v1026_v23 = vsel %vm609_vm3, %v10738_v22, 0.0 }
 0x715   :  { %1027 = vadd.xlane.f32.xlu0 %v1026_v23 }
 0x72b   :  { %1038 = vrot.lane.b32.xlu0 %v11365_v0, %s12783_s15 }
 0x72f   :  { %1123 = vrot.lane.b32.xlu0 %v11368_v2, %s12779_s18 }
 0x79a   :  { %v1031_v24 = vpop.xlane.xlu0 %1030 }
 0x79b   :  { %10739 = vrcp.f32 %v1031_v24 }
 0x79e   :  { %v1028_v25 = vpop.xlane.xlu0 %1027 }
 0x79f   :  { %10741 = vrcp.f32 %v1028_v25 }
 0x7a2   :  { %v1039_v27 = vpop.permute.xlu0 %1038 }
 0x7a3   :  { %10086 = vmatprep.subr.mxu0 %v1039_v27 }
 0x7a4   :  { %10087 = vmatpush3.msra.mxu0 %v1039_v27 }
 0x7a5   :  { %10088 = vmatprep.subr.mxu0 %v1037_v26 }
 0x7a6   :  { %10089 = vmatpush3.msra.mxu0 %v1037_v26  ;;  %v1124_v33 = vpop.permute.xlu0 %1123 }
 0x7a7   :  { %10093 = vmatprep.subr.msk.mxu0 %vm523_vm2, %v1130_v28 }
 0x7a8   :  { %v10740_v29 = vpop.eup %10739 }
 0x7a9   :  { %v1035_v32 = vmul.f32 %v10740_v29, %v10736_v20 }
 0x7ac   :  { %v10742_v30 = vpop.eup %10741 }
 0x7ad   :  { %v1033_v31 = vmul.f32 %v10742_v30, %v10738_v22 }
 0x7af   :  { %10090 = vmatprep.mubr.msk.f32.mxu0 %vm609_vm3, %v1033_v31 }
 0x7b0   :  { %10091 = vmatmul.mubr.msk.f32.vlgmr.msra.gmra.mxu0 %vm609_vm3, %v1035_v32 }
 0x7b1   :  { %10094 = vmatpush3.xpose.msk.msra.mxu0 %vm523_vm2, %v1130_v28  ;;  %10097 = vmatprep.mubr.msk.f32.mxu0 %vm523_vm2, %v1124_v33 }
 0x7b2   :  { %10095 = vmatprep.subr.msk.mxu0 %vm523_vm2, %v1128_v34 }
 0x7b5   :  { %10096 = vmatpush3.xpose.msk.msra.mxu0 %vm523_vm2, %v1128_v34 }
 0x7b8   :  { %10098 = vmatmul.mubr.msk.f32.vlgmr.msra.gmra.mxu0 %vm523_vm2, %v1126_v35 }
 0x870   :  { %v11466_v36 = vpop.f32.mrf.mxu0 }
 0x872   :  { %v11468_v37 = vpop.f32.mrf.mxu0 }
 0x878   :  { %v10099_v38 = vpop.f32.mrf.mxu0 }
 0x879   :  { %v1215_v39 = vmul.f32 0.35355338, %v10099_v38 }
 0x87a   :  { %v1205_v40 = vpop.f32.mrf.mxu0 }
 0x87b   :  { %v1214_v41 = vmul.f32 0.35355338, %v1205_v40  ;;  %v1219_v42 = vsel %vm609_vm3, %v1215_v39, -inf }
 0x87c   :  { %1220 = vmax.xlane.f32.xlu1 %v1219_v42 }
 0x87d   :  { %v1216_v43 = vsel %vm609_vm3, %v1214_v41, -inf }
 0x87e   :  { %1217 = vmax.xlane.f32.xlu0 %v1216_v43 }
 0x88d   :  { %1238 = vrot.lane.b32.xlu1 %v11368_v2, %s12771_s22 }
 0x891   :  { %1360 = vrot.lane.b32.xlu1 %v11476_v44, %s12797_s0 }
 0x895   :  { %1358 = vrot.lane.b32.xlu1 %v11482_v45, %s12797_s0 }
 0x905   :  { %v1221_v46 = vpop.xlane.xlu1 %1220 }
 0x906   :  { %v1223_v47 = vsub.f32 %v1215_v39, %v1221_v46 }
 0x907   :  { %v1218_v48 = vpop.xlane.xlu0 %1217 }
 0x908   :  { %v1226_v49 = vmul.f32 1.442695, %v1223_v47  ;;  %v1222_v50 = vsub.f32 %v1214_v41, %v1218_v48 }
 0x909   :  { %v1239_v56 = vpop.permute.xlu1 %1238 }
 0x90a   :  { %10743 = vpow2.f32 %v1226_v49  ;;  %v1224_v2 = vmul.f32 1.442695, %v1222_v50 }
 0x90c   :  { %10745 = vpow2.f32 %v1224_v2 }
 0x90d   :  { %v1361_v58 = vpop.permute.xlu1 %1360 }
 0x917   :  { %v10744_v51 = vpop.eup %10743 }
 0x918   :  { %v1231_v52 = vsel %vm609_vm3, %v10744_v51, 0.0 }
 0x919   :  { %v10746_v53 = vpop.eup %10745  ;;  %1232 = vadd.xlane.f32.xlu0 %v1231_v52 }
 0x91a   :  { %v1228_v54 = vsel %vm609_vm3, %v10746_v53, 0.0 }
 0x91d   :  { %1229 = vadd.xlane.f32.xlu0 %v1228_v54 }
 0x933   :  { %1240 = vrot.lane.b32.xlu0 %v11365_v0, %s12771_s22  ;;  %v1359_v0 = vpop.permute.xlu1 %1358 }
 0x9a2   :  { %v1233_v62 = vpop.xlane.xlu0 %1232 }
 0x9a3   :  { %10747 = vrcp.f32 %v1233_v62 }
 0x9a6   :  { %v1230_v55 = vpop.xlane.xlu0 %1229 }
 0x9a7   :  { %10749 = vrcp.f32 %v1230_v55 }
 0x9aa   :  { %v1241_v57 = vpop.permute.xlu0 %1240 }
 0x9ab   :  { %10100 = vmatprep.subr.mxu1 %v1241_v57 }
 0x9ac   :  { %10101 = vmatpush3.msra.mxu1 %v1241_v57 }
 0x9ad   :  { %10102 = vmatprep.subr.mxu1 %v1239_v56 }
 0x9ae   :  { %10103 = vmatpush3.msra.mxu1 %v1239_v56 }
 0x9af   :  { %10107 = vmatprep.subr.msk.mxu1 %vm523_vm2, %v1361_v58 }
 0x9b0   :  { %v10748_v59 = vpop.eup %10747 }
 0x9b1   :  { %v1237_v3 = vmul.f32 %v10748_v59, %v10744_v51 }
 0x9b4   :  { %v10750_v63 = vpop.eup %10749 }
 0x9b5   :  { %v1235_v1 = vmul.f32 %v10750_v63, %v10746_v53 }
 0x9b7   :  { %10104 = vmatprep.mubr.msk.f32.mxu1 %vm609_vm3, %v1235_v1 }
 0x9b8   :  { %10105 = vmatmul.mubr.msk.f32.vlgmr.msra.gmra.mxu1 %vm609_vm3, %v1237_v3 }
 0x9b9   :  { %10108 = vmatpush3.xpose.msk.msra.mxu1 %vm523_vm2, %v1361_v58  ;;  %10111 = vmatprep.mubr.msk.f32.mxu1 %vm523_vm2, %v11482_v45 }
 0x9ba   :  { %10109 = vmatprep.subr.msk.mxu1 %vm523_vm2, %v1359_v0 }
 0x9bd   :  { %10110 = vmatpush3.xpose.msk.msra.mxu1 %vm523_vm2, %v1359_v0 }
 0x9c0   :  { %10112 = vmatmul.mubr.msk.f32.vlgmr.msra.gmra.mxu1 %vm523_vm2, %v11476_v44 }
 0xa78   :  { %v11500_v8 = vpop.f32.mrf.mxu1 }
 0xa7a   :  { %v11502_v9 = vpop.f32.mrf.mxu1 }
 0xa80   :  { %v10113_v10 = vpop.f32.mrf.mxu1 }
 0xa81   :  { %v1446_v11 = vmul.f32 0.35355338, %v10113_v10 }
 0xa82   :  { %v1436_v12 = vpop.f32.mrf.mxu1 }
 0xa83   :  { %v1445_v13 = vmul.f32 0.35355338, %v1436_v12  ;;  %v1450_v14 = vsel %vm609_vm3, %v1446_v11, -inf }
 0xa84   :  { %1451 = vmax.xlane.f32.xlu1 %v1450_v14 }
 0xa85   :  { %v1447_v15 = vsel %vm609_vm3, %v1445_v13, -inf }
 0xa86   :  { %1448 = vmax.xlane.f32.xlu0 %v1447_v15 }
 0xa95   :  { %1469 = vrot.lane.b32.xlu1 %v11482_v45, %s12787_s13 }
 0xa99   :  { %1562 = vrot.lane.b32.xlu1 %v11476_v44, %s12795_s9 }
 0xa9d   :  { %1560 = vrot.lane.b32.xlu1 %v11482_v45, %s12795_s9 }
 0xaa1   :  { %1558 = vrot.lane.b32.xlu1 %v11476_v44, %s12793_s5 }
 0xb0d   :  { %v1452_v16 = vpop.xlane.xlu1 %1451 }
 0xb0e   :  { %v1454_v17 = vsub.f32 %v1446_v11, %v1452_v16 }
 0xb0f   :  { %v1449_v18 = vpop.xlane.xlu0 %1448 }
 0xb10   :  { %v1457_v19 = vmul.f32 1.442695, %v1454_v17  ;;  %v1453_v20 = vsub.f32 %v1445_v13, %v1449_v18 }
 0xb11   :  { %v1470_v28 = vpop.permute.xlu1 %1469 }
 0xb12   :  { %10751 = vpow2.f32 %v1457_v19  ;;  %v1455_v21 = vmul.f32 1.442695, %v1453_v20 }
 0xb14   :  { %10753 = vpow2.f32 %v1455_v21 }
 0xb15   :  { %v1563_v30 = vpop.permute.xlu1 %1562 }
 0xb19   :  { %v1561_v38 = vpop.permute.xlu1 %1560 }
 0xb1d   :  { %v1559_v39 = vpop.permute.xlu1 %1558 }
 0xb1f   :  { %v10752_v22 = vpop.eup %10751 }
 0xb20   :  { %v1462_v23 = vsel %vm609_vm3, %v10752_v22, 0.0 }
 0xb21   :  { %v10754_v24 = vpop.eup %10753  ;;  %1463 = vadd.xlane.f32.xlu0 %v1462_v23 }
 0xb22   :  { %v1459_v25 = vsel %vm609_vm3, %v10754_v24, 0.0 }
 0xb25   :  { %1460 = vadd.xlane.f32.xlu0 %v1459_v25 }
 0xb3b   :  { %1471 = vrot.lane.b32.xlu0 %v11476_v44, %s12787_s13  ;;  %s12838_s13 = sld [smem:[#allocation20_spill]] }
 0xb3f   :  { %1556 = vrot.lane.b32.xlu0 %v11482_v45, %s12793_s5 }
 0xbaa   :  { %v1464_v26 = vpop.xlane.xlu0 %1463 }
 0xbab   :  { %10755 = vrcp.f32 %v1464_v26 }
 0xbae   :  { %v1461_v27 = vpop.xlane.xlu0 %1460 }
 0xbaf   :  { %10757 = vrcp.f32 %v1461_v27 }
 0xbb2   :  { %v1472_v29 = vpop.permute.xlu0 %1471 }
 0xbb3   :  { %10114 = vmatprep.subr.mxu0 %v1472_v29 }
 0xbb4   :  { %10115 = vmatpush3.msra.mxu0 %v1472_v29 }
 0xbb5   :  { %10116 = vmatprep.subr.mxu0 %v1470_v28 }
 0xbb6   :  { %10117 = vmatpush3.msra.mxu0 %v1470_v28  ;;  %v1557_v35 = vpop.permute.xlu0 %1556 }
 0xbb7   :  { %10121 = vmatprep.subr.msk.mxu0 %vm523_vm2, %v1563_v30 }
 0xbb8   :  { %v10756_v31 = vpop.eup %10755 }
 0xbb9   :  { %v1468_v34 = vmul.f32 %v10756_v31, %v10752_v22 }
 0xbbc   :  { %v10758_v32 = vpop.eup %10757 }
 0xbbd   :  { %v1466_v33 = vmul.f32 %v10758_v32, %v10754_v24 }
 0xbbf   :  { %10118 = vmatprep.mubr.msk.f32.mxu0 %vm609_vm3, %v1466_v33 }
 0xbc0   :  { %10119 = vmatmul.mubr.msk.f32.vlgmr.msra.gmra.mxu0 %vm609_vm3, %v1468_v34 }
 0xbc1   :  { %10122 = vmatpush3.xpose.msk.msra.mxu0 %vm523_vm2, %v1563_v30  ;;  %10125 = vmatprep.mubr.msk.f32.mxu0 %vm523_vm2, %v1557_v35 }
 0xbc2   :  { %10123 = vmatprep.subr.msk.mxu0 %vm523_vm2, %v1561_v38 }
 0xbc5   :  { %10124 = vmatpush3.xpose.msk.msra.mxu0 %vm523_vm2, %v1561_v38 }
 0xbc8   :  { %10126 = vmatmul.mubr.msk.f32.vlgmr.msra.gmra.mxu0 %vm523_vm2, %v1559_v39 }
 0xc80   :  { %v11528_v40 = vpop.f32.mrf.mxu0 }
 0xc82   :  { %v11530_v41 = vpop.f32.mrf.mxu0 }
 0xc88   :  { %v10127_v42 = vpop.f32.mrf.mxu0 }
 0xc89   :  { %v1648_v43 = vmul.f32 0.35355338, %v10127_v42 }
 0xc8a   :  { %v1638_v46 = vpop.f32.mrf.mxu0 }
 0xc8b   :  { %v1647_v47 = vmul.f32 0.35355338, %v1638_v46  ;;  %v1652_v48 = vsel %vm609_vm3, %v1648_v43, -inf }
 0xc8c   :  { %1653 = vmax.xlane.f32.xlu1 %v1652_v48 }
 0xc8d   :  { %v1649_v49 = vsel %vm609_vm3, %v1647_v47, -inf }
 0xc8e   :  { %1650 = vmax.xlane.f32.xlu0 %v1649_v49 }
 0xc9d   :  { %1671 = vrot.lane.b32.xlu1 %v11482_v45, %s12785_s17 }
 0xca1   :  { %1764 = vrot.lane.b32.xlu1 %v11476_v44, %s12791_s21 }
 0xca5   :  { %1762 = vrot.lane.b32.xlu1 %v11482_v45, %s12791_s21 }
 0xca9   :  { %1760 = vrot.lane.b32.xlu1 %v11476_v44, %s12789_s25 }
 0xd15   :  { %v1654_v50 = vpop.xlane.xlu1 %1653 }
 0xd16   :  { %v1656_v2 = vsub.f32 %v1648_v43, %v1654_v50 }
 0xd17   :  { %v1651_v51 = vpop.xlane.xlu0 %1650 }
 0xd18   :  { %v1659_v52 = vmul.f32 1.442695, %v1656_v2  ;;  %v1655_v53 = vsub.f32 %v1647_v47, %v1651_v51 }
 0xd19   :  { %v1672_v63 = vpop.permute.xlu1 %1671 }
 0xd1a   :  { %10759 = vpow2.f32 %v1659_v52  ;;  %v1657_v54 = vmul.f32 1.442695, %v1655_v53 }
 0xd1c   :  { %10761 = vpow2.f32 %v1657_v54 }
 0xd1d   :  { %v1765_v3 = vpop.permute.xlu1 %1764 }
 0xd21   :  { %v1763_v14 = vpop.permute.xlu1 %1762 }
 0xd25   :  { %v1761_v15 = vpop.permute.xlu1 %1760 }
 0xd27   :  { %v10760_v62 = vpop.eup %10759 }
 0xd28   :  { %v1664_v55 = vsel %vm609_vm3, %v10760_v62, 0.0 }
 0xd29   :  { %v10762_v56 = vpop.eup %10761  ;;  %1665 = vadd.xlane.f32.xlu0 %v1664_v55 }
 0xd2a   :  { %v1661_v57 = vsel %vm609_vm3, %v10762_v56, 0.0 }
 0xd2d   :  { %1662 = vadd.xlane.f32.xlu0 %v1661_v57 }
 0xd43   :  { %1673 = vrot.lane.b32.xlu0 %v11476_v44, %s12785_s17  ;;  %s12837_s17 = sld [smem:[#allocation19_spill]] }
 0xd47   :  { %1758 = vrot.lane.b32.xlu0 %v11482_v45, %s12789_s25 }
 0xdb2   :  { %v1666_v58 = vpop.xlane.xlu0 %1665 }
 0xdb3   :  { %10763 = vrcp.f32 %v1666_v58 }
 0xdb6   :  { %v1663_v59 = vpop.xlane.xlu0 %1662 }
 0xdb7   :  { %10765 = vrcp.f32 %v1663_v59 }
 0xdba   :  { %v1674_v1 = vpop.permute.xlu0 %1673 }
 0xdbb   :  { %10128 = vmatprep.subr.mxu1 %v1674_v1 }
 0xdbc   :  { %10129 = vmatpush3.msra.mxu1 %v1674_v1 }
 0xdbd   :  { %10130 = vmatprep.subr.mxu1 %v1672_v63 }
 0xdbe   :  { %10131 = vmatpush3.msra.mxu1 %v1672_v63  ;;  %v1759_v13 = vpop.permute.xlu0 %1758 }
 0xdbf   :  { %10135 = vmatprep.subr.msk.mxu1 %vm523_vm2, %v1765_v3 }
 0xdc0   :  { %v10764_v0 = vpop.eup %10763 }
 0xdc1   :  { %v1670_v12 = vmul.f32 %v10764_v0, %v10760_v62 }
 0xdc4   :  { %v10766_v10 = vpop.eup %10765 }
 0xdc5   :  { %v1668_v11 = vmul.f32 %v10766_v10, %v10762_v56  ;;  %v2195_v10 = vld [vmem:[%s11180_s24 + $0x18] sm:$0xff] }
 0xdc7   :  { %10132 = vmatprep.mubr.msk.f32.mxu1 %vm609_vm3, %v1668_v11 }
 0xdc8   :  { %10133 = vmatmul.mubr.msk.f32.vlgmr.msra.gmra.mxu1 %vm609_vm3, %v1670_v12 }
 0xdc9   :  { %10136 = vmatpush3.xpose.msk.msra.mxu1 %vm523_vm2, %v1765_v3  ;;  %10139 = vmatprep.mubr.msk.f32.mxu1 %vm523_vm2, %v1759_v13 }
 0xdca   :  { %10137 = vmatprep.subr.msk.mxu1 %vm523_vm2, %v1763_v14 }
 0xdcd   :  { %10138 = vmatpush3.xpose.msk.msra.mxu1 %vm523_vm2, %v1763_v14 }
 0xdd0   :  { %10140 = vmatmul.mubr.msk.f32.vlgmr.msra.gmra.mxu1 %vm523_vm2, %v1761_v15 }
 0xe88   :  { %v11556_v16 = vpop.f32.mrf.mxu1 }
 0xe8a   :  { %v11558_v17 = vpop.f32.mrf.mxu1 }
 0xe90   :  { %v10141_v18 = vpop.f32.mrf.mxu1 }
 0xe91   :  { %v1850_v19 = vmul.f32 0.35355338, %v10141_v18 }
 0xe92   :  { %v1840_v20 = vpop.f32.mrf.mxu1 }
 0xe93   :  { %v1849_v21 = vmul.f32 0.35355338, %v1840_v20  ;;  %v1854_v22 = vsel %vm609_vm3, %v1850_v19, -inf }
 0xe94   :  { %1855 = vmax.xlane.f32.xlu1 %v1854_v22  ;;  %v2194_v22 = vld [vmem:[%s11180_s24 + $0x10] sm:$0xff] }
 0xe95   :  { %v1851_v23 = vsel %vm609_vm3, %v1849_v21, -inf }
 0xe96   :  { %1852 = vmax.xlane.f32.xlu0 %v1851_v23 }
 0xea5   :  { %1873 = vrot.lane.b32.xlu1 %v11482_v45, %s12783_s15 }
 0xea9   :  { %1966 = vrot.lane.b32.xlu1 %v11476_v44, %s12781_s16 }
 0xead   :  { %1964 = vrot.lane.b32.xlu1 %v11482_v45, %s12781_s16 }
 0xeb1   :  { %1962 = vrot.lane.b32.xlu1 %v11476_v44, %s12779_s18 }
 0xf1d   :  { %v1856_v24 = vpop.xlane.xlu1 %1855 }
 0xf1e   :  { %v1858_v25 = vsub.f32 %v1850_v19, %v1856_v24  ;;  %v2193_v24 = vld [vmem:[%s11180_s24 + $0x8] sm:$0xff] }
 0xf1f   :  { %v1853_v26 = vpop.xlane.xlu0 %1852 }
 0xf20   :  { %v1861_v27 = vmul.f32 1.442695, %v1858_v25  ;;  %v1857_v28 = vsub.f32 %v1849_v21, %v1853_v26 }
 0xf21   :  { %v1874_v38 = vpop.permute.xlu1 %1873 }
 0xf22   :  { %10767 = vpow2.f32 %v1861_v27  ;;  %v1859_v29 = vmul.f32 1.442695, %v1857_v28 }
 0xf24   :  { %10769 = vpow2.f32 %v1859_v29  ;;  %v2481_v29 = vld [vmem:[%s11200_s20 + $0x18] sm:$0xff] }
 0xf25   :  { %v1967_v42 = vpop.permute.xlu1 %1966 }
 0xf29   :  { %v1965_v50 = vpop.permute.xlu1 %1964 }
 0xf2d   :  { %v1963_v2 = vpop.permute.xlu1 %1962 }
 0xf2f   :  { %v10768_v30 = vpop.eup %10767 }
 0xf30   :  { %v1866_v31 = vsel %vm609_vm3, %v10768_v30, 0.0 }
 0xf31   :  { %v10770_v32 = vpop.eup %10769  ;;  %1867 = vadd.xlane.f32.xlu0 %v1866_v31  ;;  %v2479_v31 = vld [vmem:[%s11200_s20 + $0x8] sm:$0xff] }
 0xf32   :  { %v1863_v33 = vsel %vm609_vm3, %v10770_v32, 0.0 }
 0xf35   :  { %1864 = vadd.xlane.f32.xlu0 %v1863_v33 }
 0xf4b   :  { %1875 = vrot.lane.b32.xlu0 %v11476_v44, %s12783_s15  ;;  %s12836_s15 = sld [smem:[#allocation14_spill]] }
 0xf4f   :  { %1960 = vrot.lane.b32.xlu0 %v11482_v45, %s12779_s18 }
 0xfba   :  { %v1868_v34 = vpop.xlane.xlu0 %1867 }
 0xfbb   :  { %10771 = vrcp.f32 %v1868_v34 }
 0xfbe   :  { %v1865_v35 = vpop.xlane.xlu0 %1864 }
 0xfbf   :  { %10773 = vrcp.f32 %v1865_v35 }
 0xfc2   :  { %v1876_v39 = vpop.permute.xlu0 %1875 }
 0xfc3   :  { %10142 = vmatprep.subr.mxu0 %v1876_v39 }
 0xfc4   :  { %10143 = vmatpush3.msra.mxu0 %v1876_v39 }
 0xfc5   :  { %10144 = vmatprep.subr.mxu0 %v1874_v38 }
 0xfc6   :  { %10145 = vmatpush3.msra.mxu0 %v1874_v38  ;;  %v1961_v49 = vpop.permute.xlu0 %1960  ;;  %v9391_v38 = vld [vmem:[%s11185_s30] ss:$0 sm:$0xff] }
 0xfc7   :  { %10149 = vmatprep.subr.msk.mxu0 %vm523_vm2, %v1967_v42 }
 0xfc8   :  { %v10772_v43 = vpop.eup %10771 }
 0xfc9   :  { %v1872_v48 = vmul.f32 %v10772_v43, %v10768_v30  ;;  %v2480_v30 = vld [vmem:[%s11200_s20 + $0x10] sm:$0xff]  ;;  %v11033_v43 = vld [vmem:[%s11165_s8] sm:$0xff] }
 0xfcc   :  { %v10774_v46 = vpop.eup %10773 }
 0xfcd   :  { %v1870_v47 = vmul.f32 %v10774_v46, %v10770_v32 }
 0xfcf   :  { %10146 = vmatprep.mubr.msk.f32.mxu0 %vm609_vm3, %v1870_v47  ;;  %v11034_v47 = vld [vmem:[%s11165_s8 + $0x8] sm:$0xff]  ;;  %s12824_s8 = sld [smem:[#allocation6_spill]] }
 0xfd0   :  { %10147 = vmatmul.mubr.msk.f32.vlgmr.msra.gmra.mxu0 %vm609_vm3, %v1872_v48 }
 0xfd1   :  { %10150 = vmatpush3.xpose.msk.msra.mxu0 %vm523_vm2, %v1967_v42  ;;  %10153 = vmatprep.mubr.msk.f32.mxu0 %vm523_vm2, %v1961_v49 }
 0xfd2   :  { %10151 = vmatprep.subr.msk.mxu0 %vm523_vm2, %v1965_v50 }
 0xfd5   :  { %10152 = vmatpush3.xpose.msk.msra.mxu0 %vm523_vm2, %v1965_v50 }
 0xfd8   :  { %10154 = vmatmul.mubr.msk.f32.vlgmr.msra.gmra.mxu0 %vm523_vm2, %v1963_v2 }
0x1090   :  { %v10148_v51 = vpop.f32.mrf.mxu0 }
0x1092   :  { %v1951_v52 = vpop.f32.mrf.mxu0 }
0x1098   :  { %v10155_v53 = vpop.f32.mrf.mxu0 }
0x1099   :  { %v2052_v54 = vmul.f32 0.35355338, %v10155_v53 }
0x109a   :  { %v2042_v62 = vpop.f32.mrf.mxu0 }
0x109b   :  { %v2051_v55 = vmul.f32 0.35355338, %v2042_v62  ;;  %v2056_v56 = vsel %vm609_vm3, %v2052_v54, -inf }
0x109c   :  { %2057 = vmax.xlane.f32.xlu1 %v2056_v56 }
0x109d   :  { %v2053_v57 = vsel %vm609_vm3, %v2051_v55, -inf }
0x109e   :  { %2054 = vmax.xlane.f32.xlu0 %v2053_v57 }
0x10ad   :  { %2075 = vrot.lane.b32.xlu1 %v11482_v45, %s12771_s22 }
0x10b1   :  { %1327 = vrot.lane.b32.xlu1 %v11440_v7, %s12777_s23 }
0x10b4   :  { %2077 = vrot.lane.b32.xlu0 %v11476_v44, %s12771_s22  ;;  %s12830_s22 = sld [smem:[#allocation10_spill]] }
0x10b5   :  { %1329 = vrot.lane.b32.xlu1 %v11438_v6, %s12777_s23 }
0x10b9   :  { %1337 = vrot.lane.b32.xlu1 %v11466_v36, %s12775_s26 }
0x10bd   :  { %1345 = vrot.lane.b32.xlu1 %v11500_v8, %s12773_s28 }
0x10c1   :  { %2166 = vrot.lane.b32.xlu1 %v11556_v16, %s12777_s23 }
0x10c5   :  { %2174 = vrot.lane.b32.xlu1 %v10148_v51, %s12775_s26 }
0x1125   :  { %v2058_v7 = vpop.xlane.xlu1 %2057 }
0x1126   :  { %v2060_v45 = vsub.f32 %v2052_v54, %v2058_v7  ;;  %v9335_v7 = vld [vmem:[%s11160_s3] ss:$0 sm:$0xff]  ;;  %s12848_s3 = smov 112  }
0x1127   :  { %v2055_v58 = vpop.xlane.xlu0 %2054 }
0x1128   :  { %v2063_v44 = vmul.f32 1.442695, %v2060_v45  ;;  %v2059_v59 = vsub.f32 %v2051_v55, %v2055_v58 }
0x1129   :  { %v2076_v36 = vpop.permute.xlu1 %2075 }
0x112a   :  { %10775 = vpow2.f32 %v2063_v44  ;;  %v2061_v6 = vmul.f32 1.442695, %v2059_v59  ;;  %v11646_v44 = vadd.f32 %v9335_v7, %v11359_v61 }
0x112b   :  { %v2078_v63 = vpop.permute.xlu0 %2077 }
0x112c   :  { %10777 = vpow2.f32 %v2061_v6  ;;  %10156 = vmatprep.subr.mxu1 %v2078_v63 }
0x112d   :  { %10157 = vmatpush3.msra.mxu1 %v2078_v63  ;;  %v1328_v13 = vpop.permute.xlu1 %1327 }
0x112e   :  { %10158 = vmatprep.subr.mxu1 %v2076_v36  ;;  %v1349_v19 = vsel %vm523_vm2, %v11436_v5, %v1328_v13  ;;  %v2192_v5 = vld [vmem:[%s11180_s24] sm:$0xff] }
0x112f   :  { %10159 = vmatpush3.msra.mxu1 %v2076_v36  ;;  %v2372_v13 = vld [vmem:[%s12824_s8] sm:$0xff] }
0x1130   :  { %10163 = vmatprep.subr.mxu1 %v2195_v10 }
0x1131   :  { %v1330_v15 = vpop.permute.xlu1 %1329 }
0x1132   :  { %v1350_v26 = vsel %vm523_vm2, %v11434_v4, %v1330_v15  ;;  %v2478_v4 = vld [vmem:[%s11200_s20] sm:$0xff] }
0x1137   :  { %v10776_v8 = vpop.eup %10775 }
0x1138   :  { %v2068_v1 = vsel %vm609_vm3, %v10776_v8, 0.0 }
0x1139   :  { %v10778_v3 = vpop.eup %10777  ;;  %2069 = vadd.xlane.f32.xlu0 %v2068_v1 }
0x113a   :  { %v2065_v0 = vsel %vm609_vm3, %v10778_v3, 0.0 }
0x113d   :  { %2066 = vadd.xlane.f32.xlu0 %v2065_v0 }
0x1153   :  { %1335 = vrot.lane.b32.xlu0 %v11468_v37, %s12775_s26 }
0x1157   :  { %1343 = vrot.lane.b32.xlu0 %v11502_v9, %s12773_s28 }
0x115b   :  { %2164 = vrot.lane.b32.xlu0 %v11558_v17, %s12777_s23  ;;  %v1338_v17 = vpop.permute.xlu1 %1337 }
0x115c   :  { %v1352_v27 = vsel %vm609_vm3, %v1350_v26, %v1338_v17 }
0x115f   :  { %2172 = vrot.lane.b32.xlu0 %v1951_v52, %s12775_s26  ;;  %v1346_v25 = vpop.permute.xlu1 %1345 }
0x1160   :  { %v1355_v28 = vsel %vm1353_vm4, %v1352_v27, %v1346_v25 }
0x1163   :  { %v2167_v2 = vpop.permute.xlu1 %2166 }
0x1164   :  { %v2187_v55 = vsel %vm523_vm2, %v11528_v40, %v2167_v2  ;;  %v11654_v40 = vadd.f32 %v11357_v60, %v9335_v7 }
0x1167   :  { %v2175_v52 = vpop.permute.xlu1 %2174 }
0x1168   :  { %v2189_v45 = vsel %vm609_vm3, %v2187_v55, %v2175_v52 }
0x11c2   :  { %v2070_v11 = vpop.xlane.xlu0 %2069 }
0x11c3   :  { %10779 = vrcp.f32 %v2070_v11  ;;  %v2374_v11 = vld [vmem:[%s12824_s8 + $0x10] sm:$0xff] }
0x11c6   :  { %v2067_v12 = vpop.xlane.xlu0 %2066 }
0x11c7   :  { %10781 = vrcp.f32 %v2067_v12  ;;  %v2373_v12 = vld [vmem:[%s12824_s8 + $0x8] sm:$0xff] }
0x11ca   :  { %v1336_v14 = vpop.permute.xlu0 %1335 }
0x11cb   :  { %v1351_v21 = vsel %vm609_vm3, %v1349_v19, %v1336_v14 }
0x11ce   :  { %v1344_v18 = vpop.permute.xlu0 %1343 }
0x11cf   :  { %v1354_v23 = vsel %vm1353_vm4, %v1351_v21, %v1344_v18 }
0x11d0   :  { %v10780_v37 = vpop.eup %10779 }
0x11d1   :  { %v2074_v20 = vmul.f32 %v10780_v37, %v10776_v8 }
0x11d2   :  { %v2165_v51 = vpop.permute.xlu0 %2164 }
0x11d3   :  { %v2186_v54 = vsel %vm523_vm2, %v11530_v41, %v2165_v51 }
0x11d4   :  { %v10782_v16 = vpop.eup %10781 }
0x11d5   :  { %v2072_v9 = vmul.f32 %v10782_v16, %v10778_v3  ;;  %v9403_v16 = vld [vmem:[%s12825_s1] ss:$0 sm:$0xff] }
0x11d6   :  { %v2173_v53 = vpop.permute.xlu0 %2172 }
0x11d7   :  { %10160 = vmatprep.mubr.msk.f32.mxu1 %vm609_vm3, %v2072_v9  ;;  %v2188_v56 = vsel %vm609_vm3, %v2186_v54, %v2173_v53  ;;  %v11692_v54 = vld [vmem:[%s12828_s10] ss:$0 sm:$0xff] }
0x11d8   :  { %10161 = vmatmul.mubr.msk.f32.vlgmr.msra.gmra.mxu1 %vm609_vm3, %v2074_v20 }
0x11d9   :  { %10164 = vmatpush3.msra.mxu1 %v2195_v10  ;;  %10171 = vmatprep.mubr.msk.f32.mxu1 %vm279_vm1, %v1354_v23  ;;  %v2375_v10 = vld [vmem:[%s12824_s8 + $0x18] sm:$0xff] }
0x11da   :  { %10165 = vmatprep.subr.mxu1 %v2194_v22  ;;  %10177 = vmatprep.subr.mxu0 %v2375_v10 }
0x11db   :  { %10166 = vmatpush3.msra.mxu1 %v2194_v22  ;;  %10178 = vmatpush3.msra.mxu0 %v2375_v10 }
0x11dc   :  { %10167 = vmatprep.subr.mxu1 %v2193_v24  ;;  %10179 = vmatprep.subr.mxu0 %v2374_v11 }
0x11dd   :  { %10168 = vmatpush3.msra.mxu1 %v2193_v24  ;;  %10180 = vmatpush3.msra.mxu0 %v2374_v11 }
0x11de   :  { %10169 = vmatprep.subr.mxu1 %v2192_v5  ;;  %10181 = vmatprep.subr.mxu0 %v2373_v12 }
0x11df   :  { %10170 = vmatpush3.msra.mxu1 %v2192_v5  ;;  %10182 = vmatpush3.msra.mxu0 %v2373_v12 }
0x11e0   :  { %10172 = vmatmul.mubr.msk.f32.vlgmr.msra.gmra.mxu1 %vm279_vm1, %v1355_v28  ;;  %10191 = vmatprep.subr.mxu1 %v2481_v29 }
0x11e1   :  { %10192 = vmatpush3.msra.mxu1 %v2481_v29  ;;  %10183 = vmatprep.subr.mxu0 %v2372_v13 }
0x11e2   :  { %10193 = vmatprep.subr.mxu1 %v2480_v30  ;;  %10184 = vmatpush3.msra.mxu0 %v2372_v13 }
0x11e3   :  { %10194 = vmatpush3.msra.mxu1 %v2480_v30 }
0x11e4   :  { %10195 = vmatprep.subr.mxu1 %v2479_v31 }
0x11e5   :  { %10196 = vmatpush3.msra.mxu1 %v2479_v31  ;;  %v9396_v31 = vld [vmem:[%s12826_s2] ss:$0 sm:$0xff] }
0x11e6   :  { %10197 = vmatprep.subr.mxu1 %v2478_v4 }
0x11e7   :  { %10198 = vmatpush3.msra.mxu1 %v2478_v4 }
0x1298   :  { %v10162_v32 = vpop.f32.mrf.mxu1 }
0x1299   :  { %2182 = vrot.lane.b32.xlu1 %v10162_v32, %s12773_s28  ;;  %v9397_v32 = vld [vmem:[%s12827_s7] ss:$0 sm:$0xff] }
0x129a   :  { %v2153_v33 = vpop.f32.mrf.mxu1 }
0x129b   :  { %2180 = vrot.lane.b32.xlu0 %v2153_v33, %s12773_s28 }
0x12a0   :  { %v10173_v34 = vpop.f32.mrf.mxu1 }
0x12a1   :  { %v2285_v42 = vadd.f32 %v10173_v34, %v9391_v38 }
0x12a2   :  { %v2279_v35 = vpop.f32.mrf.mxu1 }
0x12a3   :  { %v2280_v39 = vadd.f32 %v9391_v38, %v2279_v35  ;;  %v2299_v48 = vadd.f32 %v11034_v47, %v2285_v42 }
0x12a5   :  { %v2298_v46 = vadd.f32 %v11033_v43, %v2280_v39  ;;  %v2307_v50 = vsel %vm279_vm1, %v2299_v48, 0.0 }
0x12a7   :  { %v2304_v49 = vsel %vm279_vm1, %v2298_v46, 0.0 }
0x12ba   :  { %2305 = vadd.xlane.f32.xlu0 %v2304_v49 }
0x12bd   :  { %2308 = vadd.xlane.f32.xlu1 %v2307_v50 }
0x130b   :  { %v2183_v62 = vpop.permute.xlu1 %2182 }
0x130c   :  { %v2191_v59 = vsel %vm1353_vm4, %v2189_v45, %v2183_v62 }
0x130d   :  { %v2181_v57 = vpop.permute.xlu0 %2180 }
0x130e   :  { %v2190_v58 = vsel %vm1353_vm4, %v2188_v56, %v2181_v57 }
0x130f   :  { %10174 = vmatprep.mubr.msk.f32.mxu1 %vm279_vm1, %v2190_v58 }
0x1310   :  { %10175 = vmatmul.mubr.msk.f32.gmra.mxu1 %vm279_vm1, %v2191_v59 }
0x1311   :  { %10199 = vmatprep.mubr.msk.f32.mxu1 %vm279_vm1, %v11646_v44 }
0x1314   :  { %10200 = vmatmul.mubr.msk.f32.vlgmr.msra.gmra.mxu1 %vm279_vm1, %v11654_v40 }
0x1343   :  { %v2306_v41 = vpop.xlane.xlu0 %2305 }
0x1344   :  { %v2316_v61 = vmul.f32 0.03125, %v2306_v41 }
0x1346   :  { %v2320_v6 = vsub.f32 %v2298_v46, %v2316_v61  ;;  %v2309_v63 = vpop.xlane.xlu1 %2308 }
0x1347   :  { %v2317_v36 = vmul.f32 0.03125, %v2309_v63 }
0x1348   :  { %v2324_v8 = vmul.f32 %v2320_v6, %v2320_v6 }
0x1349   :  { %v2321_v1 = vsub.f32 %v2299_v48, %v2317_v36 }
0x134a   :  { %v2328_v3 = vsel %vm279_vm1, %v2324_v8, 0.0 }
0x134b   :  { %2329 = vadd.xlane.f32.xlu0 %v2328_v3  ;;  %v2325_v0 = vmul.f32 %v2321_v1, %v2321_v1 }
0x134d   :  { %v2331_v60 = vsel %vm279_vm1, %v2325_v0, 0.0 }
0x134f   :  { %2332 = vadd.xlane.f32.xlu0 %v2331_v60 }
0x13d0   :  { %v10176_v14 = vpop.f32.mrf.mxu1 }
0x13d1   :  { %v2295_v15 = vadd.f32 %v10176_v14, %v9391_v38 }
0x13d2   :  { %v2289_v37 = vpop.f32.mrf.mxu1 }
0x13d3   :  { %v2290_v18 = vadd.f32 %v9391_v38, %v2289_v37  ;;  %v2301_v9 = vadd.f32 %v11034_v47, %v2295_v15 }
0x13d4   :  { %v2330_v19 = vpop.xlane.xlu0 %2329  ;;  %v10201_v17 = vpop.f32.mrf.mxu1 }
0x13d5   :  { %v2340_v20 = vmul.f32 0.03125, %v2330_v19  ;;  %v11665_v21 = vadd.f32 %v10201_v17, %v9403_v16  ;;  %v2313_v22 = vsel %vm279_vm1, %v2301_v9, 0.0  ;;  %v2300_v23 = vadd.f32 %v11033_v43, %v2290_v18 }
0x13d6   :  { %2314 = vadd.xlane.f32.xlu1 %v2313_v22  ;;  %v2559_v24 = vpop.f32.mrf.mxu1 }
0x13d7   :  { %v2344_v5 = vadd.f32 1e-05, %v2340_v20  ;;  %v11668_v25 = vadd.f32 %v9403_v16, %v2559_v24  ;;  %v2310_v26 = vsel %vm279_vm1, %v2300_v23, 0.0 }
0x13d8   :  { %2311 = vadd.xlane.f32.xlu0 %v2310_v26  ;;  %v2333_v27 = vpop.xlane.xlu0 %2332 }
0x13d9   :  { %10783 = vrsqrt.f32 %v2344_v5  ;;  %v2341_v28 = vmul.f32 0.03125, %v2333_v27  ;;  %10202 = vmatprep.subr.msk.mxu0 %vm523_vm2, %v11668_v25 }
0x13db   :  { %v2345_v29 = vadd.f32 1e-05, %v2341_v28 }
0x13dd   :  { %10785 = vrsqrt.f32 %v2345_v29 }
0x13e6   :  { %v10784_v30 = vpop.eup %10783 }
0x13e7   :  { %v2352_v4 = vmul.f32 %v10784_v30, %v2320_v6 }
0x13e9   :  { %v2360_v33 = vmul.f32 %v9396_v31, %v2352_v4 }
0x13ea   :  { %v10786_v34 = vpop.eup %10785 }
0x13eb   :  { %v11675_v35 = vadd.f32 %v9397_v32, %v2360_v33  ;;  %v2353_v38 = vmul.f32 %v10786_v34, %v2321_v1 }
0x13ed   :  { %10185 = vmatprep.mubr.msk.f32.mxu0 %vm279_vm1, %v11675_v35  ;;  %v2361_v39 = vmul.f32 %v9396_v31, %v2353_v38 }
0x13ef   :  { %v11679_v42 = vadd.f32 %v9397_v32, %v2361_v39 }
0x13f1   :  { %10186 = vmatmul.mubr.msk.f32.vlgmr.msra.gmra.mxu0 %vm279_vm1, %v11679_v42 }
0x13f2   :  { %10203 = vmatpush3.xpose.msk.msra.mxu0 %vm523_vm2, %v11668_v25 }
0x145f   :  { %v2315_v43 = vpop.xlane.xlu1 %2314 }
0x1460   :  { %v2319_v46 = vmul.f32 0.03125, %v2315_v43 }
0x1461   :  { %v2312_v47 = vpop.xlane.xlu0 %2311 }
0x1462   :  { %v2323_v48 = vsub.f32 %v2301_v9, %v2319_v46  ;;  %v2318_v49 = vmul.f32 0.03125, %v2312_v47 }
0x1464   :  { %v2322_v50 = vsub.f32 %v2300_v23, %v2318_v49  ;;  %v2327_v2 = vmul.f32 %v2323_v48, %v2323_v48 }
0x1466   :  { %v2337_v51 = vsel %vm279_vm1, %v2327_v2, 0.0  ;;  %v2326_v52 = vmul.f32 %v2322_v50, %v2322_v50 }
0x1467   :  { %2338 = vadd.xlane.f32.xlu1 %v2337_v51 }
0x1468   :  { %v2334_v53 = vsel %vm279_vm1, %v2326_v52, 0.0 }
0x1469   :  { %2335 = vadd.xlane.f32.xlu0 %v2334_v53 }
0x1478   :  { %2959 = vrot.lane.b32.xlu1 %v11668_v25, %s12789_s25 }
0x147f   :  { %2764 = vrot.lane.b32.xlu0 %v11668_v25, %s12793_s5 }
0x14b1   :  { %v10187_v62 = vpop.f32.mrf.mxu0 }
0x14b2   :  { %v2465_v55 = vadd.f32 %v10187_v62, %v11692_v54 }
0x14b3   :  { %v2459_v56 = vpop.f32.mrf.mxu0 }
0x14b4   :  { %v2460_v57 = vadd.f32 %v11692_v54, %v2459_v56  ;;  %2762 = vrot.lane.b32.xlu1 %v2465_v55, %s12793_s5 }
0x14b6   :  { %2955 = vrot.lane.b32.xlu0 %v2460_v57, %s12789_s25 }
0x14b8   :  { %2760 = vrot.lane.b32.xlu1 %v2460_v57, %s12793_s5 }
0x14ba   :  { %3154 = vrot.lane.b32.xlu0 %v11668_v25, %s12779_s18 }
0x14bc   :  { %2957 = vrot.lane.b32.xlu1 %v2465_v55, %s12789_s25 }
0x14be   :  { %3152 = vrot.lane.b32.xlu0 %v2465_v55, %s12779_s18 }
0x14c0   :  { %3150 = vrot.lane.b32.xlu1 %v2460_v57, %s12779_s18 }
0x14c2   :  { %3571 = vrot.lane.b32.xlu0 %v11665_v21, %s12793_s5 }
0x14c4   :  { %3766 = vrot.lane.b32.xlu1 %v11665_v21, %s12789_s25 }
0x14c6   :  { %3961 = vrot.lane.b32.xlu0 %v11665_v21, %s12779_s18 }
0x14f0   :  { %v2339_v7 = vpop.xlane.xlu1 %2338 }
0x14f1   :  { %v2343_v45 = vmul.f32 0.03125, %v2339_v7 }
0x14f2   :  { %v2336_v58 = vpop.xlane.xlu0 %2335 }
0x14f3   :  { %v2347_v59 = vadd.f32 1e-05, %v2343_v45  ;;  %v2342_v41 = vmul.f32 0.03125, %v2336_v58 }
0x14f4   :  { %v2960_v11 = vpop.permute.xlu1 %2959 }
0x14f5   :  { %10787 = vrsqrt.f32 %v2347_v59  ;;  %v2346_v61 = vadd.f32 1e-05, %v2342_v41 }
0x14f6   :  { %v2765_v6 = vpop.permute.xlu0 %2764 }
0x14f7   :  { %10789 = vrsqrt.f32 %v2346_v61  ;;  %10212 = vmatprep.subr.msk.mxu0 %vm523_vm2, %v2765_v6 }
0x1502   :  { %v10788_v63 = vpop.eup %10787 }
0x1503   :  { %v2355_v36 = vmul.f32 %v10788_v63, %v2323_v48 }
0x1504   :  { %v10790_v8 = vpop.eup %10789 }
0x1505   :  { %v2354_v1 = vmul.f32 %v10790_v8, %v2322_v50  ;;  %v2363_v3 = vmul.f32 %v9396_v31, %v2355_v36 }
0x1507   :  { %v2362_v0 = vmul.f32 %v9396_v31, %v2354_v1  ;;  %v11713_v10 = vadd.f32 %v9397_v32, %v2363_v3 }
0x1509   :  { %v11711_v60 = vadd.f32 %v9397_v32, %v2362_v0 }
0x150b   :  { %10188 = vmatprep.mubr.msk.f32.mxu0 %vm279_vm1, %v11711_v60 }
0x150c   :  { %10189 = vmatmul.mubr.msk.f32.gmra.mxu0 %vm279_vm1, %v11713_v10 }
0x150d   :  { %10204 = vmatprep.mubr.msk.f32.mxu0 %vm523_vm2, %v2460_v57 }
0x1510   :  { %10205 = vmatmul.mubr.msk.f32.vlgmr.msra.gmra.mxu0 %vm523_vm2, %v2465_v55 }
0x1511   :  { %10213 = vmatpush3.xpose.msk.msra.mxu0 %vm523_vm2, %v2765_v6 }
0x1512   :  { %10222 = vmatprep.subr.msk.mxu0 %vm523_vm2, %v2960_v11 }
0x1526   :  { %v2763_v12 = vpop.permute.xlu1 %2762 }
0x1528   :  { %v2956_v13 = vpop.permute.xlu0 %2955 }
0x152a   :  { %v2761_v14 = vpop.permute.xlu1 %2760 }
0x152b   :  { %10214 = vmatprep.mubr.msk.f32.mxu0 %vm523_vm2, %v2761_v14 }
0x152c   :  { %v3155_v15 = vpop.permute.xlu0 %3154  ;;  %10215 = vmatmul.mubr.msk.f32.vlgmr.msra.gmra.mxu0 %vm523_vm2, %v2763_v12 }
0x152d   :  { %10223 = vmatpush3.xpose.msk.msra.mxu0 %vm523_vm2, %v2960_v11  ;;  %10224 = vmatprep.mubr.msk.f32.mxu0 %vm523_vm2, %v2956_v13 }
0x152e   :  { %10232 = vmatprep.subr.msk.mxu0 %vm523_vm2, %v3155_v15  ;;  %v2958_v37 = vpop.permute.xlu1 %2957 }
0x1530   :  { %v3153_v16 = vpop.permute.xlu0 %3152  ;;  %10225 = vmatmul.mubr.msk.f32.vlgmr.msra.gmra.mxu0 %vm523_vm2, %v2958_v37 }
0x1531   :  { %10233 = vmatpush3.xpose.msk.msra.mxu0 %vm523_vm2, %v3155_v15 }
0x1532   :  { %10242 = vmatprep.subr.msk.mxu0 %vm523_vm2, %v11665_v21  ;;  %v3151_v18 = vpop.permute.xlu1 %3150 }
0x1533   :  { %10234 = vmatprep.mubr.msk.f32.mxu0 %vm523_vm2, %v3151_v18 }
0x1534   :  { %v3572_v9 = vpop.permute.xlu0 %3571  ;;  %10235 = vmatmul.mubr.msk.f32.vlgmr.msra.gmra.mxu0 %vm523_vm2, %v3153_v16 }
0x1535   :  { %10243 = vmatpush3.xpose.msk.msra.mxu0 %vm523_vm2, %v11665_v21 }
0x1536   :  { %10252 = vmatprep.subr.msk.mxu0 %vm523_vm2, %v3572_v9  ;;  %v3767_v23 = vpop.permute.xlu1 %3766 }
0x1538   :  { %v3962_v55 = vpop.permute.xlu0 %3961 }
0x15cc   :  { %v10190_v19 = vpop.f32.mrf.mxu0 }
0x15cd   :  { %v2475_v17 = vadd.f32 %v10190_v19, %v11692_v54 }
0x15ce   :  { %v2469_v20 = vpop.f32.mrf.mxu0 }
0x15cf   :  { %v2470_v22 = vadd.f32 %v11692_v54, %v2469_v20  ;;  %3569 = vrot.lane.b32.xlu1 %v2475_v17, %s12793_s5 }
0x15d0   :  { %v10206_v24 = vpop.f32.mrf.mxu0 }
0x15d1   :  { %3762 = vrot.lane.b32.xlu0 %v2470_v22, %s12789_s25  ;;  %10244 = vmatprep.mubr.msk.f32.mxu0 %vm523_vm2, %v2470_v22  ;;  %v2653_v26 = vmul.f32 0.35355338, %v10206_v24 }
0x15d2   :  { %10245 = vmatmul.mubr.msk.f32.vlgmr.msra.gmra.mxu0 %vm523_vm2, %v2475_v17  ;;  %v2643_v5 = vpop.f32.mrf.mxu0 }
0x15d3   :  { %10253 = vmatpush3.xpose.msk.msra.mxu0 %vm523_vm2, %v3572_v9  ;;  %3764 = vrot.lane.b32.xlu1 %v2475_v17, %s12789_s25  ;;  %v2657_v30 = vsel %vm523_vm2, %v2653_v26, -inf  ;;  %v2652_v43 = vmul.f32 0.35355338, %v2643_v5 }
0x15d4   :  { %10262 = vmatprep.subr.msk.mxu0 %vm523_vm2, %v3767_v23 }
0x15d5   :  { %v2654_v47 = vsel %vm523_vm2, %v2652_v43, -inf }
0x15d7   :  { %3567 = vrot.lane.b32.xlu1 %v2470_v22, %s12793_s5 }
0x15db   :  { %3957 = vrot.lane.b32.xlu1 %v2470_v22, %s12779_s18 }
0x15ec   :  { %v10216_v27 = vpop.f32.mrf.mxu0 }
0x15ed   :  { %v2848_v29 = vmul.f32 0.35355338, %v10216_v27 }
0x15ee   :  { %v2838_v28 = vpop.f32.mrf.mxu0 }
0x15ef   :  { %v2852_v32 = vsel %vm523_vm2, %v2848_v29, -inf  ;;  %v2847_v46 = vmul.f32 0.35355338, %v2838_v28 }
0x15f0   :  { %2658 = vmax.xlane.f32.xlu0 %v2657_v30  ;;  %v10226_v31 = vpop.f32.mrf.mxu0 }
0x15f1   :  { %v3043_v48 = vmul.f32 0.35355338, %v10226_v31  ;;  %v2849_v49 = vsel %vm523_vm2, %v2847_v46, -inf }
0x15f2   :  { %v3033_v4 = vpop.f32.mrf.mxu0 }
0x15f3   :  { %v3042_v50 = vmul.f32 0.35355338, %v3033_v4  ;;  %v3047_v2 = vsel %vm523_vm2, %v3043_v48, -inf }
0x15f4   :  { %2853 = vmax.xlane.f32.xlu0 %v2852_v32  ;;  %v10236_v33 = vpop.f32.mrf.mxu0 }
0x15f5   :  { %v3238_v51 = vmul.f32 0.35355338, %v10236_v33  ;;  %v3044_v52 = vsel %vm523_vm2, %v3042_v50, -inf }
0x15f6   :  { %v3228_v34 = vpop.f32.mrf.mxu0 }
0x15f7   :  { %v11750_v38 = vmul.f32 0.35355338, %v3228_v34  ;;  %v3242_v53 = vsel %vm523_vm2, %v3238_v51, -inf }
0x15f9   :  { %v3239_v39 = vsel %vm523_vm2, %v11750_v38, -inf }
0x15fa   :  { %3240 = vmax.xlane.f32.xlu0 %v3239_v39 }
0x15ff   :  { %2655 = vmax.xlane.f32.xlu1 %v2654_v47 }
0x1603   :  { %2850 = vmax.xlane.f32.xlu1 %v2849_v49 }
0x1607   :  { %3048 = vmax.xlane.f32.xlu1 %v3047_v2 }
0x160b   :  { %3045 = vmax.xlane.f32.xlu1 %v3044_v52 }
0x160f   :  { %3243 = vmax.xlane.f32.xlu1 %v3242_v53 }
0x1610   :  { %3959 = vrot.lane.b32.xlu0 %v2475_v17, %s12779_s18  ;;  %s12834_s18 = sld [smem:[#allocation18_spill]] }
0x1620   :  { %2676 = vrot.lane.b32.xlu1 %v11668_v25, %s12797_s0 }
0x1624   :  { %3066 = vrot.lane.b32.xlu1 %v11668_v25, %s12791_s21 }
0x1641   :  { %v3570_v54 = vpop.permute.xlu1 %3569 }
0x1643   :  { %v3763_v57 = vpop.permute.xlu0 %3762 }
0x1645   :  { %v3765_v62 = vpop.permute.xlu1 %3764 }
0x1649   :  { %v3568_v56 = vpop.permute.xlu1 %3567 }
0x164a   :  { %10254 = vmatprep.mubr.msk.f32.mxu0 %vm523_vm2, %v3568_v56 }
0x164b   :  { %10255 = vmatmul.mubr.msk.f32.vlgmr.msra.gmra.mxu0 %vm523_vm2, %v3570_v54 }
0x164c   :  { %10263 = vmatpush3.xpose.msk.msra.mxu0 %vm523_vm2, %v3767_v23  ;;  %10264 = vmatprep.mubr.msk.f32.mxu0 %vm523_vm2, %v3763_v57 }
0x164d   :  { %10272 = vmatprep.subr.msk.mxu0 %vm523_vm2, %v3962_v55  ;;  %v3958_v7 = vpop.permute.xlu1 %3957 }
0x164f   :  { %10265 = vmatmul.mubr.msk.f32.vlgmr.msra.gmra.mxu0 %vm523_vm2, %v3765_v62 }
0x1650   :  { %10273 = vmatpush3.xpose.msk.msra.mxu0 %vm523_vm2, %v3962_v55  ;;  %10274 = vmatprep.mubr.msk.f32.mxu0 %vm523_vm2, %v3958_v7 }
0x1679   :  { %v2659_v45 = vpop.xlane.xlu0 %2658 }
0x167a   :  { %v2661_v58 = vsub.f32 %v2653_v26, %v2659_v45 }
0x167c   :  { %v2664_v59 = vmul.f32 1.442695, %v2661_v58 }
0x167d   :  { %v2854_v41 = vpop.xlane.xlu0 %2853 }
0x167e   :  { %10791 = vpow2.f32 %v2664_v59  ;;  %v2856_v6 = vsub.f32 %v2848_v29, %v2854_v41 }
0x1680   :  { %v2859_v3 = vmul.f32 1.442695, %v2856_v6 }
0x1683   :  { %v3241_v61 = vpop.xlane.xlu0 %3240 }
0x1684   :  { %v3245_v23 = vsub.f32 %v11750_v38, %v3241_v61 }
0x1686   :  { %v3247_v28 = vmul.f32 1.442695, %v3245_v23 }
0x1687   :  { %v3960_v63 = vpop.permute.xlu0 %3959 }
0x1688   :  { %10275 = vmatmul.mubr.msk.f32.vlgmr.msra.gmra.mxu0 %vm523_vm2, %v3960_v63  ;;  %v2656_v36 = vpop.xlane.xlu1 %2655 }
0x1689   :  { %v2660_v8 = vsub.f32 %v2652_v43, %v2656_v36 }
0x168b   :  { %v11773_v1 = vpop.eup %10791  ;;  %v2662_v0 = vmul.f32 1.442695, %v2660_v8 }
0x168c   :  { %v2851_v11 = vpop.xlane.xlu1 %2850  ;;  %v2669_v12 = vsel %vm523_vm2, %v11773_v1, 0.0 }
0x168d   :  { %10793 = vpow2.f32 %v2662_v0  ;;  %v2855_v13 = vsub.f32 %v2847_v46, %v2851_v11  ;;  %2670 = vadd.xlane.f32.xlu0 %v2669_v12 }
0x168e   :  { %10795 = vpow2.f32 %v2859_v3 }
0x168f   :  { %v2857_v14 = vmul.f32 1.442695, %v2855_v13 }
0x1690   :  { %v3049_v15 = vpop.xlane.xlu1 %3048 }
0x1691   :  { %v3051_v37 = vsub.f32 %v3043_v48, %v3049_v15  ;;  %10797 = vpow2.f32 %v2857_v14 }
0x1692   :  { %v10246_v47 = vpop.f32.mrf.mxu0 }
0x1693   :  { %v3054_v16 = vmul.f32 1.442695, %v3051_v37  ;;  %v11808_v48 = vmul.f32 0.35355338, %v10246_v47 }
0x1694   :  { %v3046_v18 = vpop.xlane.xlu1 %3045 }
0x1695   :  { %v3050_v9 = vsub.f32 %v3042_v50, %v3046_v18  ;;  %10799 = vpow2.f32 %v3054_v16  ;;  %v3464_v49 = vsel %vm523_vm2, %v11808_v48, -inf  ;;  %v3450_v50 = vpop.f32.mrf.mxu0 }
0x1696   :  { %v11814_v2 = vmul.f32 0.35355338, %v3450_v50 }
0x1697   :  { %v3052_v19 = vmul.f32 1.442695, %v3050_v9 }
0x1698   :  { %v3244_v17 = vpop.xlane.xlu1 %3243 }
0x1699   :  { %v3246_v20 = vsub.f32 %v3238_v51, %v3244_v17  ;;  %10801 = vpow2.f32 %v3052_v19  ;;  %v3461_v51 = vsel %vm523_vm2, %v11814_v2, -inf }
0x169a   :  { %v11777_v22 = vpop.eup %10793 }
0x169b   :  { %v3249_v24 = vmul.f32 1.442695, %v3246_v20  ;;  %v2666_v5 = vsel %vm523_vm2, %v11777_v22, 0.0  ;;  %v11782_v26 = vpop.eup %10795 }
0x169c   :  { %2667 = vadd.xlane.f32.xlu1 %v2666_v5  ;;  %v2677_v27 = vpop.permute.xlu1 %2676  ;;  %v2864_v29 = vsel %vm523_vm2, %v11782_v26, 0.0 }
0x169d   :  { %10207 = vmatprep.subr.mxu1 %v2677_v27  ;;  %10803 = vpow2.f32 %v3249_v24 }
0x169e   :  { %10208 = vmatpush3.msra.mxu1 %v2677_v27  ;;  %v11786_v30 = vpop.eup %10797  ;;  %10805 = vpow2.f32 %v3247_v28 }
0x169f   :  { %v2861_v31 = vsel %vm523_vm2, %v11786_v30, 0.0 }
0x16a0   :  { %2865 = vadd.xlane.f32.xlu1 %v2864_v29  ;;  %v3067_v6 = vpop.permute.xlu1 %3066 }
0x16a2   :  { %v11792_v4 = vpop.eup %10799 }
0x16a3   :  { %2871 = vrot.lane.b32.xlu0 %v11668_v25, %s12795_s9  ;;  %v3059_v32 = vsel %vm523_vm2, %v11792_v4, 0.0 }
0x16a4   :  { %2862 = vadd.xlane.f32.xlu1 %v2861_v31 }
0x16a6   :  { %v11796_v33 = vpop.eup %10801 }
0x16a7   :  { %v3056_v34 = vsel %vm523_vm2, %v11796_v33, 0.0 }
0x16a8   :  { %3060 = vadd.xlane.f32.xlu1 %v3059_v32 }
0x16aa   :  { %v11800_v38 = vpop.eup %10803 }
0x16ab   :  { %v3254_v39 = vsel %vm523_vm2, %v11800_v38, 0.0  ;;  %v11804_v43 = vpop.eup %10805 }
0x16ac   :  { %3057 = vadd.xlane.f32.xlu1 %v3056_v34  ;;  %v3251_v46 = vsel %vm523_vm2, %v11804_v43, 0.0 }
0x16b0   :  { %3255 = vadd.xlane.f32.xlu1 %v3254_v39 }
0x16b4   :  { %3252 = vadd.xlane.f32.xlu1 %v3251_v46 }
0x16c2   :  { %3465 = vmax.xlane.f32.xlu0 %v3464_v49 }
0x16c5   :  { %3261 = vrot.lane.b32.xlu1 %v11668_v25, %s12781_s16 }
0x16e9   :  { %3462 = vmax.xlane.f32.xlu1 %v3461_v51 }
0x170b   :  { %v10256_v52 = vpop.f32.mrf.mxu0 }
0x170c   :  { %v11818_v53 = vmul.f32 0.35355338, %v10256_v52 }
0x170d   :  { %v3645_v54 = vpop.f32.mrf.mxu0 }
0x170e   :  { %v11820_v62 = vmul.f32 0.35355338, %v3645_v54  ;;  %v3659_v55 = vsel %vm523_vm2, %v11818_v53, -inf }
0x170f   :  { %v10266_v56 = vpop.f32.mrf.mxu0  ;;  %3660 = vmax.xlane.f32.xlu1 %v3659_v55 }
0x1710   :  { %v11824_v57 = vmul.f32 0.35355338, %v10266_v56  ;;  %v3656_v25 = vsel %vm523_vm2, %v11820_v62, -inf }
0x1711   :  { %v3840_v7 = vpop.f32.mrf.mxu0  ;;  %3657 = vmax.xlane.f32.xlu0 %v3656_v25 }
0x1712   :  { %v11828_v45 = vmul.f32 0.35355338, %v3840_v7  ;;  %v3854_v58 = vsel %vm523_vm2, %v11824_v57, -inf }
0x1713   :  { %3855 = vmax.xlane.f32.xlu1 %v3854_v58 }
0x1714   :  { %v3851_v59 = vsel %vm523_vm2, %v11828_v45, -inf }
0x1715   :  { %3852 = vmax.xlane.f32.xlu0 %v3851_v59 }
0x1716   :  { %v2671_v41 = vpop.xlane.xlu0 %2670 }
0x1717   :  { %10807 = vrcp.f32 %v2671_v41 }
0x171a   :  { %v2872_v61 = vpop.permute.xlu0 %2871 }
0x171b   :  { %10217 = vmatprep.subr.mxu1 %v2872_v61 }
0x1724   :  { %v10808_v0 = vpop.eup %10807 }
0x1725   :  { %v2668_v63 = vpop.xlane.xlu1 %2667  ;;  %v2675_v14 = vmul.f32 %v10808_v0, %v11773_v1 }
0x1726   :  { %10809 = vrcp.f32 %v2668_v63 }
0x1729   :  { %v2866_v36 = vpop.xlane.xlu1 %2865 }
0x172a   :  { %10811 = vrcp.f32 %v2866_v36 }
0x172d   :  { %v2863_v8 = vpop.xlane.xlu1 %2862 }
0x172e   :  { %10813 = vrcp.f32 %v2863_v8 }
0x1731   :  { %v3061_v3 = vpop.xlane.xlu1 %3060 }
0x1732   :  { %10815 = vrcp.f32 %v3061_v3 }
0x1733   :  { %v10810_v11 = vpop.eup %10809 }
0x1734   :  { %v2673_v12 = vmul.f32 %v10810_v11, %v11777_v22 }
0x1735   :  { %v3058_v13 = vpop.xlane.xlu1 %3057 }
0x1736   :  { %10817 = vrcp.f32 %v3058_v13  ;;  %10209 = vmatprep.mubr.msk.f32.mxu1 %vm523_vm2, %v2673_v12 }
0x1737   :  { %10210 = vmatmul.mubr.msk.f32.vlgmr.msra.gmra.mxu1 %vm523_vm2, %v2675_v14  ;;  %v10812_v37 = vpop.eup %10811 }
0x1738   :  { %10218 = vmatpush3.msra.mxu1 %v2872_v61  ;;  %v2870_v19 = vmul.f32 %v10812_v37, %v11782_v26 }
0x1739   :  { %10227 = vmatprep.subr.mxu1 %v3067_v6  ;;  %v3256_v15 = vpop.xlane.xlu1 %3255 }
0x173a   :  { %10819 = vrcp.f32 %v3256_v15 }
0x173b   :  { %v10814_v16 = vpop.eup %10813 }
0x173c   :  { %v2868_v18 = vmul.f32 %v10814_v16, %v11786_v30 }
0x173d   :  { %v3253_v9 = vpop.xlane.xlu1 %3252 }
0x173e   :  { %10821 = vrcp.f32 %v3253_v9  ;;  %10219 = vmatprep.mubr.msk.f32.mxu1 %vm523_vm2, %v2868_v18 }
0x173f   :  { %10220 = vmatmul.mubr.msk.f32.vlgmr.msra.gmra.mxu1 %vm523_vm2, %v2870_v19  ;;  %v10816_v17 = vpop.eup %10815 }
0x1740   :  { %10228 = vmatpush3.msra.mxu1 %v3067_v6  ;;  %v3065_v23 = vmul.f32 %v10816_v17, %v11792_v4 }
0x1741   :  { %v3262_v1 = vpop.permute.xlu1 %3261 }
0x1742   :  { %10237 = vmatprep.subr.mxu1 %v3262_v1 }
0x1743   :  { %v10818_v20 = vpop.eup %10817 }
0x1744   :  { %v3063_v22 = vmul.f32 %v10818_v20, %v11796_v33 }
0x1746   :  { %10229 = vmatprep.mubr.msk.f32.mxu1 %vm523_vm2, %v3063_v22  ;;  %v4185_v22 = vld [vmem:[%s12829_s11 + $0x18] sm:$0xff] }
0x1747   :  { %10230 = vmatmul.mubr.msk.f32.vlgmr.msra.gmra.mxu1 %vm523_vm2, %v3065_v23  ;;  %v10820_v26 = vpop.eup %10819  ;;  %v4184_v23 = vld [vmem:[%s12829_s11 + $0x10] sm:$0xff]  ;;  %10282 = vmatprep.subr.mxu0 %v4185_v22 }
0x1748   :  { %10238 = vmatpush3.msra.mxu1 %v3262_v1  ;;  %v10276_v24 = vpop.f32.mrf.mxu0  ;;  %v3260_v4 = vmul.f32 %v10820_v26, %v11800_v38  ;;  %10283 = vmatpush3.msra.mxu0 %v4185_v22  ;;  %v4182_v26 = vld [vmem:[%s12829_s11] sm:$0xff] }
0x1749   :  { %v4045_v5 = vmul.f32 0.35355338, %v10276_v24  ;;  %10284 = vmatprep.subr.mxu0 %v4184_v23 }
0x174a   :  { %v4035_v27 = vpop.f32.mrf.mxu0  ;;  %10285 = vmatpush3.msra.mxu0 %v4184_v23 }
0x174b   :  { %v10822_v28 = vpop.eup %10821  ;;  %v4044_v29 = vmul.f32 0.35355338, %v4035_v27  ;;  %v4049_v30 = vsel %vm523_vm2, %v4045_v5, -inf  ;;  %v3466_v33 = vpop.xlane.xlu0 %3465 }
0x174c   :  { %4050 = vmax.xlane.f32.xlu1 %v4049_v30  ;;  %v3258_v31 = vmul.f32 %v10822_v28, %v11804_v43  ;;  %v3468_v34 = vsub.f32 %v11808_v48, %v3466_v33 }
0x174d   :  { %v4046_v32 = vsel %vm523_vm2, %v4044_v29, -inf }
0x174e   :  { %4047 = vmax.xlane.f32.xlu0 %v4046_v32  ;;  %10239 = vmatprep.mubr.msk.f32.mxu1 %vm523_vm2, %v3258_v31  ;;  %v3471_v39 = vmul.f32 1.442695, %v3468_v34 }
0x174f   :  { %10240 = vmatmul.mubr.msk.f32.vlgmr.msra.gmra.mxu1 %vm523_vm2, %v3260_v4 }
0x1750   :  { %10823 = vpow2.f32 %v3471_v39 }
0x175d   :  { %3678 = vrot.lane.b32.xlu1 %v11665_v21, %s12795_s9  ;;  %v11860_v47 = vpop.eup %10823 }
0x175e   :  { %v3476_v49 = vsel %vm523_vm2, %v11860_v47, 0.0 }
0x1764   :  { %3483 = vrot.lane.b32.xlu0 %v11665_v21, %s12797_s0 }
0x1768   :  { %3873 = vrot.lane.b32.xlu0 %v11665_v21, %s12791_s21 }
0x1772   :  { %v3463_v38 = vpop.xlane.xlu1 %3462 }
0x1773   :  { %v3467_v43 = vsub.f32 %v11814_v2, %v3463_v38 }
0x1775   :  { %v3469_v46 = vmul.f32 1.442695, %v3467_v43 }
0x1777   :  { %10825 = vpow2.f32 %v3469_v46 }
0x1781   :  { %3477 = vadd.xlane.f32.xlu1 %v3476_v49 }
0x1784   :  { %v11864_v50 = vpop.eup %10825 }
0x1785   :  { %v3473_v48 = vsel %vm523_vm2, %v11864_v50, 0.0 }
0x1787   :  { %3474 = vadd.xlane.f32.xlu0 %v3473_v48 }
0x1798   :  { %v3661_v51 = vpop.xlane.xlu1 %3660 }
0x1799   :  { %v3663_v52 = vsub.f32 %v11818_v53, %v3661_v51 }
0x179a   :  { %v3658_v54 = vpop.xlane.xlu0 %3657 }
0x179b   :  { %v3666_v55 = vmul.f32 1.442695, %v3663_v52  ;;  %v3662_v2 = vsub.f32 %v11820_v62, %v3658_v54 }
0x179c   :  { %v3856_v56 = vpop.xlane.xlu1 %3855 }
0x179d   :  { %10827 = vpow2.f32 %v3666_v55  ;;  %v3664_v25 = vmul.f32 1.442695, %v3662_v2  ;;  %v3858_v7 = vsub.f32 %v11824_v57, %v3856_v56 }
0x179e   :  { %v3853_v58 = vpop.xlane.xlu0 %3852 }
0x179f   :  { %10829 = vpow2.f32 %v3664_v25  ;;  %v3861_v59 = vmul.f32 1.442695, %v3858_v7  ;;  %v3857_v41 = vsub.f32 %v11828_v45, %v3853_v58 }
0x17a1   :  { %10831 = vpow2.f32 %v3861_v59  ;;  %v3859_v61 = vmul.f32 1.442695, %v3857_v41 }
0x17a3   :  { %10833 = vpow2.f32 %v3859_v61 }
0x17aa   :  { %v11872_v6 = vpop.eup %10827 }
0x17ab   :  { %v3671_v53 = vsel %vm523_vm2, %v11872_v6, 0.0 }
0x17ac   :  { %v11876_v63 = vpop.eup %10829  ;;  %3672 = vadd.xlane.f32.xlu1 %v3671_v53 }
0x17ad   :  { %v3668_v62 = vsel %vm523_vm2, %v11876_v63, 0.0 }
0x17ae   :  { %v11880_v57 = vpop.eup %10831  ;;  %3669 = vadd.xlane.f32.xlu0 %v3668_v62 }
0x17af   :  { %v3866_v45 = vsel %vm523_vm2, %v11880_v57, 0.0 }
0x17b0   :  { %v11884_v36 = vpop.eup %10833  ;;  %3867 = vadd.xlane.f32.xlu1 %v3866_v45 }
0x17b1   :  { %v3863_v8 = vsel %vm523_vm2, %v11884_v36, 0.0 }
0x17b2   :  { %3864 = vadd.xlane.f32.xlu0 %v3863_v8 }
0x17d5   :  { %v4051_v3 = vpop.xlane.xlu1 %4050 }
0x17d6   :  { %v4053_v0 = vsub.f32 %v4045_v5, %v4051_v3  ;;  %v4183_v5 = vld [vmem:[%s12829_s11 + $0x8] sm:$0xff] }
0x17d7   :  { %v4048_v11 = vpop.xlane.xlu0 %4047  ;;  %10286 = vmatprep.subr.mxu0 %v4183_v5 }
0x17d8   :  { %v4056_v12 = vmul.f32 1.442695, %v4053_v0  ;;  %v4052_v13 = vsub.f32 %v4044_v29, %v4048_v11  ;;  %10287 = vmatpush3.msra.mxu0 %v4183_v5 }
0x17d9   :  { %v3679_v37 = vpop.permute.xlu1 %3678  ;;  %10288 = vmatprep.subr.mxu0 %v4182_v26 }
0x17da   :  { %10835 = vpow2.f32 %v4056_v12  ;;  %v4054_v14 = vmul.f32 1.442695, %v4052_v13  ;;  %10289 = vmatpush3.msra.mxu0 %v4182_v26 }
0x17db   :  { %v3484_v15 = vpop.permute.xlu0 %3483 }
0x17dc   :  { %10837 = vpow2.f32 %v4054_v14  ;;  %10247 = vmatprep.subr.mxu1 %v3484_v15 }
0x17dd   :  { %10248 = vmatpush3.msra.mxu1 %v3484_v15 }
0x17de   :  { %10257 = vmatprep.subr.mxu1 %v3679_v37 }
0x17df   :  { %v3874_v29 = vpop.permute.xlu0 %3873 }
0x17e7   :  { %v11888_v16 = vpop.eup %10835 }
0x17e8   :  { %v4061_v18 = vsel %vm523_vm2, %v11888_v16, 0.0 }
0x17e9   :  { %v11892_v9 = vpop.eup %10837  ;;  %4062 = vadd.xlane.f32.xlu1 %v4061_v18 }
0x17ea   :  { %v4058_v19 = vsel %vm523_vm2, %v11892_v9, 0.0 }
0x17eb   :  { %4059 = vadd.xlane.f32.xlu0 %v4058_v19 }
0x17f7   :  { %v11896_v1 = vpop.f32.mrf.mxu1 }
0x17f9   :  { %v11898_v17 = vpop.f32.mrf.mxu1 }
0x17ff   :  { %v10221_v20 = vpop.f32.mrf.mxu1 }
0x1800   :  { %3349 = vrot.lane.b32.xlu1 %v10221_v20, %s12777_s23 }
0x1801   :  { %v2946_v24 = vpop.f32.mrf.mxu1 }
0x1804   :  { %3347 = vrot.lane.b32.xlu1 %v2946_v24, %s12777_s23 }
0x1807   :  { %v10231_v27 = vpop.f32.mrf.mxu1 }
0x1808   :  { %3357 = vrot.lane.b32.xlu1 %v10231_v27, %s12775_s26 }
0x1809   :  { %v3141_v28 = vpop.f32.mrf.mxu1 }
0x180a   :  { %3355 = vrot.lane.b32.xlu0 %v3141_v28, %s12775_s26  ;;  %v3478_v30 = vpop.xlane.xlu1 %3477 }
0x180b   :  { %10839 = vrcp.f32 %v3478_v30 }
0x180f   :  { %v10241_v31 = vpop.f32.mrf.mxu1 }
0x1810   :  { %v3475_v32 = vpop.xlane.xlu0 %3474  ;;  %3365 = vrot.lane.b32.xlu1 %v10241_v31, %s12773_s28 }
0x1811   :  { %10841 = vrcp.f32 %v3475_v32  ;;  %v3336_v4 = vpop.f32.mrf.mxu1 }
0x1812   :  { %3363 = vrot.lane.b32.xlu0 %v3336_v4, %s12773_s28 }
0x1816   :  { %4068 = vrot.lane.b32.xlu0 %v11665_v21, %s12781_s16  ;;  %s12835_s16 = sld [smem:[#allocation12_spill]] }
0x1818   :  { %v10840_v33 = vpop.eup %10839 }
0x1819   :  { %v3482_v38 = vmul.f32 %v10840_v33, %v11860_v47 }
0x181e   :  { %v10842_v34 = vpop.eup %10841 }
0x181f   :  { %v3480_v39 = vmul.f32 %v10842_v34, %v11864_v50 }
0x1821   :  { %10249 = vmatprep.mubr.msk.f32.mxu1 %vm523_vm2, %v3480_v39 }
0x1822   :  { %10250 = vmatmul.mubr.msk.f32.vlgmr.msra.gmra.mxu1 %vm523_vm2, %v3482_v38 }
0x1823   :  { %10258 = vmatpush3.msra.mxu1 %v3679_v37 }
0x1824   :  { %10267 = vmatprep.subr.mxu1 %v3874_v29 }
0x1835   :  { %v3673_v43 = vpop.xlane.xlu1 %3672 }
0x1836   :  { %10843 = vrcp.f32 %v3673_v43 }
0x1837   :  { %v3670_v46 = vpop.xlane.xlu0 %3669 }
0x1838   :  { %10845 = vrcp.f32 %v3670_v46 }
0x1839   :  { %v3868_v49 = vpop.xlane.xlu1 %3867 }
0x183a   :  { %10847 = vrcp.f32 %v3868_v49 }
0x183b   :  { %v3865_v48 = vpop.xlane.xlu0 %3864 }
0x183c   :  { %10849 = vrcp.f32 %v3865_v48 }
0x1843   :  { %v10844_v21 = vpop.eup %10843 }
0x1844   :  { %v3677_v47 = vmul.f32 %v10844_v21, %v11872_v6 }
0x1845   :  { %v10846_v51 = vpop.eup %10845 }
0x1846   :  { %v3675_v50 = vmul.f32 %v10846_v51, %v11876_v63 }
0x1847   :  { %v10848_v52 = vpop.eup %10847 }
0x1848   :  { %10259 = vmatprep.mubr.msk.f32.mxu1 %vm523_vm2, %v3675_v50  ;;  %v3872_v2 = vmul.f32 %v10848_v52, %v11880_v57 }
0x1849   :  { %v10850_v54 = vpop.eup %10849  ;;  %10260 = vmatmul.mubr.msk.f32.vlgmr.msra.gmra.mxu1 %vm523_vm2, %v3677_v47 }
0x184a   :  { %10268 = vmatpush3.msra.mxu1 %v3874_v29  ;;  %v3870_v55 = vmul.f32 %v10850_v54, %v11884_v36 }
0x184c   :  { %10269 = vmatprep.mubr.msk.f32.mxu1 %vm523_vm2, %v3870_v55 }
0x184d   :  { %10270 = vmatmul.mubr.msk.f32.vlgmr.msra.gmra.mxu1 %vm523_vm2, %v3872_v2 }
0x1872   :  { %v4063_v56 = vpop.xlane.xlu1 %4062 }
0x1874   :  { %v4060_v25 = vpop.xlane.xlu0 %4059 }
0x1875   :  { %10851 = vrcp.f32 %v4060_v25 }
0x1876   :  { %v3350_v7 = vpop.permute.xlu1 %3349  ;;  %10853 = vrcp.f32 %v4063_v56 }
0x1877   :  { %v3370_v62 = vsel %vm523_vm2, %v11896_v1, %v3350_v7 }
0x187a   :  { %v3348_v58 = vpop.permute.xlu1 %3347 }
0x187b   :  { %v3369_v61 = vsel %vm523_vm2, %v11898_v17, %v3348_v58  ;;  %v9446_v17 = vld [vmem:[%s12830_s22] ss:$0 sm:$0xff] }
0x187c   :  { %v3356_v41 = vpop.permute.xlu0 %3355 }
0x187d   :  { %v3371_v57 = vsel %vm609_vm3, %v3369_v61, %v3356_v41 }
0x187e   :  { %v3358_v59 = vpop.permute.xlu1 %3357 }
0x187f   :  { %v3372_v36 = vsel %vm609_vm3, %v3370_v62, %v3358_v59 }
0x1882   :  { %v10852_v6 = vpop.eup %10851  ;;  %v3366_v53 = vpop.permute.xlu1 %3365 }
0x1883   :  { %v4065_v63 = vmul.f32 %v10852_v6, %v11892_v9  ;;  %v10854_v3 = vpop.eup %10853  ;;  %v3374_v0 = vsel %vm1353_vm4, %v3372_v36, %v3366_v53 }
0x1884   :  { %v3364_v45 = vpop.permute.xlu0 %3363  ;;  %v4067_v12 = vmul.f32 %v10854_v3, %v11888_v16 }
0x1885   :  { %v3373_v8 = vsel %vm1353_vm4, %v3371_v57, %v3364_v45  ;;  %10279 = vmatprep.mubr.msk.f32.mxu1 %vm523_vm2, %v4065_v63 }
0x1886   :  { %10290 = vmatprep.mubr.msk.f32.mxu0 %vm279_vm1, %v3373_v8 }
0x1887   :  { %10291 = vmatmul.mubr.msk.f32.vlgmr.msra.gmra.mxu0 %vm279_vm1, %v3374_v0 }
0x1888   :  { %v4069_v11 = vpop.permute.xlu0 %4068 }
0x1889   :  { %10277 = vmatprep.subr.mxu1 %v4069_v11 }
0x188a   :  { %10278 = vmatpush3.msra.mxu1 %v4069_v11 }
0x188b   :  { %10280 = vmatmul.mubr.msk.f32.vlgmr.msra.gmra.mxu1 %vm523_vm2, %v4067_v12 }
0x18e2   :  { %v10251_v13 = vpop.f32.mrf.mxu1 }
0x18e4   :  { %v3558_v14 = vpop.f32.mrf.mxu1 }
0x1909   :  { %v10261_v15 = vpop.f32.mrf.mxu1 }
0x190a   :  { %4156 = vrot.lane.b32.xlu0 %v10261_v15, %s12777_s23 }
0x190b   :  { %v3753_v37 = vpop.f32.mrf.mxu1 }
0x190c   :  { %4154 = vrot.lane.b32.xlu1 %v3753_v37, %s12777_s23  ;;  %s12833_s23 = sld [smem:[#allocation17_spill]] }
0x190d   :  { %v10271_v18 = vpop.f32.mrf.mxu1 }
0x190e   :  { %4164 = vrot.lane.b32.xlu0 %v10271_v18, %s12775_s26 }
0x190f   :  { %v3948_v9 = vpop.f32.mrf.mxu1 }
0x1910   :  { %4162 = vrot.lane.b32.xlu1 %v3948_v9, %s12775_s26  ;;  %s12832_s26 = sld [smem:[#allocation13_spill]]  ;;  %v9452_v9 = vld [vmem:[%s12834_s18] ss:$0 sm:$0xff] }
0x1916   :  { %v4479_v11 = vld [vmem:[%s12832_s26 + $0x38] sm:$0xff]  ;;  %v4478_v12 = vld [vmem:[%s12832_s26 + $0x30] sm:$0xff]  ;;  %v4476_v18 = vld [vmem:[%s12832_s26 + $0x20] sm:$0xff] }
0x1917   :  { %10310 = vmatprep.subr.mxu0 %v4479_v11 }
0x1918   :  { %10311 = vmatpush3.msra.mxu0 %v4479_v11 }
0x1919   :  { %10312 = vmatprep.subr.mxu0 %v4478_v12 }
0x191a   :  { %10313 = vmatpush3.msra.mxu0 %v4478_v12 }
0x1947   :  { %v10292_v1 = vpop.f32.mrf.mxu0 }
0x1948   :  { %v4275_v20 = vadd.f32 %v10292_v1, %v9446_v17 }
0x1949   :  { %v4269_v23 = vpop.f32.mrf.mxu0 }
0x194a   :  { %v4289_v22 = vadd.f32 %v4275_v20, %v11679_v42  ;;  %v4270_v24 = vadd.f32 %v9446_v17, %v4269_v23  ;;  %v4474_v20 = vld [vmem:[%s12832_s26 + $0x10] sm:$0xff]  ;;  %v4472_v23 = vld [vmem:[%s12832_s26] sm:$0xff] }
0x194b   :  { %v10281_v19 = vpop.f32.mrf.mxu1 }
0x194c   :  { %4172 = vrot.lane.b32.xlu0 %v10281_v19, %s12773_s28  ;;  %v4297_v5 = vsel %vm279_vm1, %v4289_v22, 0.0  ;;  %v4288_v26 = vadd.f32 %v4270_v24, %v11675_v35 }
0x194d   :  { %v4143_v16 = vpop.f32.mrf.mxu1 }
0x194e   :  { %4170 = vrot.lane.b32.xlu1 %v4143_v16, %s12773_s28  ;;  %v4294_v27 = vsel %vm279_vm1, %v4288_v26, 0.0  ;;  %s12831_s28 = sld [smem:[#allocation11_spill]] }
0x1954   :  { %v4365_v55 = vld [vmem:[%s12831_s28 + $0x18] sm:$0xff]  ;;  %v4364_v2 = vld [vmem:[%s12831_s28 + $0x10] sm:$0xff]  ;;  %v4363_v56 = vld [vmem:[%s12831_s28 + $0x8] sm:$0xff] }
0x1955   :  { %10296 = vmatprep.subr.mxu1 %v4365_v55  ;;  %v4362_v25 = vld [vmem:[%s12831_s28] sm:$0xff] }
0x1956   :  { %10297 = vmatpush3.msra.mxu1 %v4365_v55 }
0x1957   :  { %10298 = vmatprep.subr.mxu1 %v4364_v2 }
0x1958   :  { %10299 = vmatpush3.msra.mxu1 %v4364_v2 }
0x1959   :  { %10300 = vmatprep.subr.mxu1 %v4363_v56 }
0x195a   :  { %10301 = vmatpush3.msra.mxu1 %v4363_v56 }
0x195b   :  { %10302 = vmatprep.subr.mxu1 %v4362_v25 }
0x195c   :  { %10303 = vmatpush3.msra.mxu1 %v4362_v25 }
0x196b   :  { %4298 = vadd.xlane.f32.xlu0 %v4297_v5 }
0x1972   :  { %4295 = vadd.xlane.f32.xlu1 %v4294_v27 }
0x197c   :  { %v4157_v28 = vpop.permute.xlu0 %4156 }
0x197d   :  { %v4177_v33 = vsel %vm523_vm2, %v10251_v13, %v4157_v28 }
0x197e   :  { %v4155_v29 = vpop.permute.xlu1 %4154 }
0x197f   :  { %v4176_v32 = vsel %vm523_vm2, %v3558_v14, %v4155_v29  ;;  %v4477_v14 = vld [vmem:[%s12832_s26 + $0x28] sm:$0xff] }
0x1980   :  { %v4165_v30 = vpop.permute.xlu0 %4164  ;;  %10314 = vmatprep.subr.mxu0 %v4477_v14 }
0x1981   :  { %v4179_v39 = vsel %vm609_vm3, %v4177_v33, %v4165_v30  ;;  %10315 = vmatpush3.msra.mxu0 %v4477_v14  ;;  %v9453_v33 = vld [vmem:[%s12835_s16] ss:$0 sm:$0xff] }
0x1982   :  { %v4163_v31 = vpop.permute.xlu1 %4162  ;;  %10316 = vmatprep.subr.mxu0 %v4476_v18 }
0x1983   :  { %v4178_v42 = vsel %vm609_vm3, %v4176_v32, %v4163_v31  ;;  %10317 = vmatpush3.msra.mxu0 %v4476_v18 }
0x19be   :  { %v4173_v4 = vpop.permute.xlu0 %4172 }
0x19bf   :  { %v4181_v35 = vsel %vm1353_vm4, %v4179_v39, %v4173_v4 }
0x19c0   :  { %v4171_v34 = vpop.permute.xlu1 %4170 }
0x19c1   :  { %v4180_v38 = vsel %vm1353_vm4, %v4178_v42, %v4171_v34 }
0x19c2   :  { %10293 = vmatprep.mubr.msk.f32.mxu0 %vm279_vm1, %v4180_v38 }
0x19c3   :  { %10294 = vmatmul.mubr.msk.f32.gmra.mxu0 %vm279_vm1, %v4181_v35 }
0x19f4   :  { %v4299_v43 = vpop.xlane.xlu0 %4298 }
0x19f5   :  { %v4307_v46 = vmul.f32 0.03125, %v4299_v43 }
0x19f7   :  { %v4311_v49 = vsub.f32 %v4289_v22, %v4307_v46  ;;  %v4473_v22 = vld [vmem:[%s12832_s26 + $0x8] sm:$0xff] }
0x19f9   :  { %v4315_v48 = vmul.f32 %v4311_v49, %v4311_v49 }
0x19fb   :  { %v4296_v21 = vpop.xlane.xlu1 %4295  ;;  %v4321_v51 = vsel %vm279_vm1, %v4315_v48, 0.0 }
0x19fc   :  { %v4306_v50 = vmul.f32 0.03125, %v4296_v21  ;;  %4322 = vadd.xlane.f32.xlu1 %v4321_v51 }
0x19fe   :  { %v4310_v47 = vsub.f32 %v4288_v26, %v4306_v50 }
0x1a00   :  { %v4314_v52 = vmul.f32 %v4310_v47, %v4310_v47 }
0x1a02   :  { %v4318_v54 = vsel %vm279_vm1, %v4314_v52, 0.0 }
0x1a03   :  { %4319 = vadd.xlane.f32.xlu0 %v4318_v54 }
0x1a83   :  { %v10295_v7 = vpop.f32.mrf.mxu0 }
0x1a84   :  { %v4285_v58 = vadd.f32 %v10295_v7, %v9446_v17 }
0x1a85   :  { %v4279_v59 = vpop.f32.mrf.mxu0  ;;  %v4323_v41 = vpop.xlane.xlu1 %4322 }
0x1a86   :  { %v4291_v61 = vadd.f32 %v4285_v58, %v11713_v10  ;;  %v4280_v6 = vadd.f32 %v9446_v17, %v4279_v59  ;;  %v4331_v53 = vmul.f32 0.03125, %v4323_v41  ;;  %v4475_v17 = vld [vmem:[%s12832_s26 + $0x18] sm:$0xff]  ;;  %v9458_v58 = vld [vmem:[%s12836_s15] ss:$0 sm:$0xff] }
0x1a87   :  { %10318 = vmatprep.subr.mxu0 %v4475_v17 }
0x1a88   :  { %v4290_v63 = vadd.f32 %v4280_v6, %v11711_v60  ;;  %v4335_v62 = vadd.f32 1e-05, %v4331_v53  ;;  %v4303_v57 = vsel %vm279_vm1, %v4291_v61, 0.0  ;;  %v11970_v60 = vld [vmem:[%s12833_s23] ss:$0 sm:$0xff]  ;;  %10319 = vmatpush3.msra.mxu0 %v4475_v17  ;;  %v9466_v17 = vld [vmem:[%s11170_s14 + $0x28] sm:$0xff] }
0x1a89   :  { %4304 = vadd.xlane.f32.xlu1 %v4303_v57  ;;  %10320 = vmatprep.subr.mxu0 %v4474_v20 }
0x1a8a   :  { %v4300_v45 = vsel %vm279_vm1, %v4290_v63, 0.0  ;;  %10855 = vrsqrt.f32 %v4335_v62  ;;  %10321 = vmatpush3.msra.mxu0 %v4474_v20  ;;  %v9465_v20 = vld [vmem:[%s11170_s14 + $0x20] sm:$0xff] }
0x1a8b   :  { %4301 = vadd.xlane.f32.xlu0 %v4300_v45  ;;  %10322 = vmatprep.subr.mxu0 %v4473_v22 }
0x1a8c   :  { %v4320_v36 = vpop.xlane.xlu0 %4319  ;;  %10323 = vmatpush3.msra.mxu0 %v4473_v22 }
0x1a8d   :  { %v4330_v8 = vmul.f32 0.03125, %v4320_v36  ;;  %10324 = vmatprep.subr.mxu0 %v4472_v23 }
0x1a8e   :  { %10325 = vmatpush3.msra.mxu0 %v4472_v23 }
0x1a8f   :  { %v4334_v10 = vadd.f32 1e-05, %v4330_v8 }
0x1a91   :  { %10857 = vrsqrt.f32 %v4334_v10 }
0x1a97   :  { %v10856_v3 = vpop.eup %10855 }
0x1a98   :  { %v4343_v0 = vmul.f32 %v10856_v3, %v4311_v49 }
0x1a9a   :  { %v4351_v37 = vmul.f32 %v11970_v60, %v4343_v0 }
0x1a9c   :  { %v4359_v1 = vadd.f32 %v9452_v9, %v4351_v37 }
0x1a9e   :  { %v10858_v13 = vpop.eup %10857 }
0x1a9f   :  { %v4342_v15 = vmul.f32 %v10858_v13, %v4310_v47 }
0x1aa1   :  { %v4350_v19 = vmul.f32 %v11970_v60, %v4342_v15 }
0x1aa3   :  { %v11977_v16 = vadd.f32 %v9452_v9, %v4350_v19 }
0x1aa5   :  { %10304 = vmatprep.mubr.msk.f32.mxu1 %vm279_vm1, %v11977_v16 }
0x1aa6   :  { %10305 = vmatmul.mubr.msk.f32.vlgmr.msra.gmra.mxu1 %vm279_vm1, %v4359_v1 }
0x1b12   :  { %v4305_v24 = vpop.xlane.xlu1 %4304 }
0x1b13   :  { %v4309_v5 = vmul.f32 0.03125, %v4305_v24 }
0x1b14   :  { %v4302_v26 = vpop.xlane.xlu0 %4301 }
0x1b15   :  { %v4313_v27 = vsub.f32 %v4291_v61, %v4309_v5  ;;  %v4308_v28 = vmul.f32 0.03125, %v4302_v26 }
0x1b17   :  { %v4312_v29 = vsub.f32 %v4290_v63, %v4308_v28  ;;  %v4317_v30 = vmul.f32 %v4313_v27, %v4313_v27 }
0x1b19   :  { %v4327_v31 = vsel %vm279_vm1, %v4317_v30, 0.0  ;;  %v4316_v32 = vmul.f32 %v4312_v29, %v4312_v29 }
0x1b1a   :  { %4328 = vadd.xlane.f32.xlu1 %v4327_v31 }
0x1b1b   :  { %v4324_v4 = vsel %vm279_vm1, %v4316_v32, 0.0 }
0x1b1c   :  { %4325 = vadd.xlane.f32.xlu0 %v4324_v4 }
0x1b66   :  { %v10306_v42 = vpop.f32.mrf.mxu1 }
0x1b67   :  { %v4455_v34 = vadd.f32 %v10306_v42, %v9453_v33 }
0x1b68   :  { %v4449_v39 = vpop.f32.mrf.mxu1 }
0x1b69   :  { %v4450_v38 = vadd.f32 %v9453_v33, %v4449_v39  ;;  %v4469_v43 = vmax.f32 %v4455_v34, 0.0 }
0x1b6b   :  { %v4468_v35 = vmax.f32 %v4450_v38, 0.0  ;;  %v9463_v38 = vld [vmem:[%s12837_s17] ss:$0 sm:$0xff] }
0x1b6d   :  { %10326 = vmatprep.mubr.msk.f32.mxu0 %vm178_vm0, %v4468_v35 }
0x1b6e   :  { %10327 = vmatmul.mubr.msk.f32.vlgmr.msra.gmra.mxu0 %vm178_vm0, %v4469_v43 }
0x1ba3   :  { %v4329_v46 = vpop.xlane.xlu1 %4328 }
0x1ba4   :  { %v4333_v49 = vmul.f32 0.03125, %v4329_v46 }
0x1ba5   :  { %v4326_v48 = vpop.xlane.xlu0 %4325 }
0x1ba6   :  { %v4337_v21 = vadd.f32 1e-05, %v4333_v49  ;;  %v4332_v51 = vmul.f32 0.03125, %v4326_v48  ;;  %v9464_v49 = vld [vmem:[%s12838_s13] ss:$0 sm:$0xff] }
0x1ba8   :  { %10859 = vrsqrt.f32 %v4337_v21  ;;  %v4336_v50 = vadd.f32 1e-05, %v4332_v51 }
0x1baa   :  { %10861 = vrsqrt.f32 %v4336_v50 }
0x1bb5   :  { %v10860_v47 = vpop.eup %10859 }
0x1bb6   :  { %v4345_v52 = vmul.f32 %v10860_v47, %v4313_v27 }
0x1bb7   :  { %v10862_v54 = vpop.eup %10861 }
0x1bb8   :  { %v4344_v55 = vmul.f32 %v10862_v54, %v4312_v29  ;;  %v4353_v2 = vmul.f32 %v11970_v60, %v4345_v52 }
0x1bba   :  { %v4352_v56 = vmul.f32 %v11970_v60, %v4344_v55  ;;  %v4361_v7 = vadd.f32 %v9452_v9, %v4353_v2 }
0x1bbc   :  { %v4360_v25 = vadd.f32 %v9452_v9, %v4352_v56 }
0x1bbe   :  { %10307 = vmatprep.mubr.msk.f32.mxu1 %vm279_vm1, %v4360_v25 }
0x1bbf   :  { %10308 = vmatmul.mubr.msk.f32.gmra.mxu1 %vm279_vm1, %v4361_v7 }
0x1c2e   :  { %v10328_v59 = vpop.f32.mrf.mxu0 }
0x1c2f   :  { %v4569_v41 = vadd.f32 %v10328_v59, %v9458_v58  ;;  %v12022_v59 = vld [vmem:[%s11175_s19 + $0x1] ss:$0 sm:$0xff]  ;;  %s12840_s19 = smov 56  }
0x1c30   :  { %v4563_v61 = vpop.f32.mrf.mxu0 }
0x1c31   :  { %v4583_v6 = vadd.f32 %v4569_v41, %v4359_v1  ;;  %v4564_v53 = vadd.f32 %v9458_v58, %v4563_v61  ;;  %v9467_v1 = vld [vmem:[%s11170_s14 + $0x30] sm:$0xff] }
0x1c33   :  { %v4582_v63 = vadd.f32 %v4564_v53, %v11977_v16  ;;  %v4591_v62 = vsel %vm279_vm1, %v4583_v6, 0.0  ;;  %v9468_v16 = vld [vmem:[%s11170_s14 + $0x38] sm:$0xff]  ;;  %s12839_s14 = smov 64  }
0x1c34   :  { %4592 = vadd.xlane.f32.xlu1 %v4591_v62  ;;  %10332 = vmatprep.subr.mxu1 %v9468_v16 }
0x1c35   :  { %v4588_v57 = vsel %vm279_vm1, %v4582_v63, 0.0  ;;  %10333 = vmatpush3.msra.mxu1 %v9468_v16 }
0x1c36   :  { %4589 = vadd.xlane.f32.xlu0 %v4588_v57  ;;  %10334 = vmatprep.subr.mxu1 %v9467_v1 }
0x1c37   :  { %10335 = vmatpush3.msra.mxu1 %v9467_v1 }
0x1c38   :  { %10336 = vmatprep.subr.mxu1 %v9466_v17 }
0x1c39   :  { %10337 = vmatpush3.msra.mxu1 %v9466_v17 }
0x1c3a   :  { %10338 = vmatprep.subr.mxu1 %v9465_v20 }
0x1c3b   :  { %10339 = vmatpush3.msra.mxu1 %v9465_v20 }
0x1c7f   :  { %v10309_v45 = vpop.f32.mrf.mxu1 }
0x1c80   :  { %v4465_v36 = vadd.f32 %v10309_v45, %v9453_v33 }
0x1c81   :  { %v4459_v8 = vpop.f32.mrf.mxu1 }
0x1c82   :  { %v4460_v10 = vadd.f32 %v9453_v33, %v4459_v8  ;;  %v4471_v0 = vmax.f32 %v4465_v36, 0.0 }
0x1c84   :  { %v4470_v3 = vmax.f32 %v4460_v10, 0.0 }
0x1c86   :  { %10329 = vmatprep.mubr.msk.f32.mxu0 %vm178_vm0, %v4470_v3 }
0x1c87   :  { %10330 = vmatmul.mubr.msk.f32.gmra.mxu0 %vm178_vm0, %v4471_v0 }
0x1cbd   :  { %v4593_v11 = vpop.xlane.xlu1 %4592 }
0x1cbe   :  { %v4601_v12 = vmul.f32 0.03125, %v4593_v11 }
0x1cbf   :  { %v4590_v60 = vpop.xlane.xlu0 %4589 }
0x1cc0   :  { %v4605_v13 = vsub.f32 %v4583_v6, %v4601_v12  ;;  %v4600_v14 = vmul.f32 0.03125, %v4590_v60 }
0x1cc2   :  { %v4604_v15 = vsub.f32 %v4582_v63, %v4600_v14  ;;  %v4609_v37 = vmul.f32 %v4605_v13, %v4605_v13 }
0x1cc4   :  { %v4615_v18 = vsel %vm279_vm1, %v4609_v37, 0.0  ;;  %v4608_v9 = vmul.f32 %v4604_v15, %v4604_v15 }
0x1cc5   :  { %4616 = vadd.xlane.f32.xlu1 %v4615_v18 }
0x1cc6   :  { %v4612_v19 = vsel %vm279_vm1, %v4608_v9, 0.0 }
0x1cc7   :  { %4613 = vadd.xlane.f32.xlu0 %v4612_v19 }
0x1d47   :  { %v10331_v22 = vpop.f32.mrf.mxu0 }
0x1d48   :  { %v4579_v23 = vadd.f32 %v10331_v22, %v9458_v58 }
0x1d49   :  { %v4573_v24 = vpop.f32.mrf.mxu0 }
0x1d4a   :  { %v4585_v5 = vadd.f32 %v4579_v23, %v4361_v7  ;;  %v4574_v26 = vadd.f32 %v9458_v58, %v4573_v24 }
0x1d4c   :  { %v4584_v27 = vadd.f32 %v4574_v26, %v4360_v25  ;;  %v4597_v28 = vsel %vm279_vm1, %v4585_v5, 0.0 }
0x1d4d   :  { %4598 = vadd.xlane.f32.xlu1 %v4597_v28 }
0x1d4e   :  { %v4617_v29 = vpop.xlane.xlu1 %4616  ;;  %v4594_v30 = vsel %vm279_vm1, %v4584_v27, 0.0 }
0x1d4f   :  { %v4625_v31 = vmul.f32 0.03125, %v4617_v29  ;;  %4595 = vadd.xlane.f32.xlu0 %v4594_v30 }
0x1d50   :  { %v4614_v32 = vpop.xlane.xlu0 %4613 }
0x1d51   :  { %v4629_v4 = vadd.f32 1e-05, %v4625_v31  ;;  %v4624_v33 = vmul.f32 0.03125, %v4614_v32 }
0x1d53   :  { %10863 = vrsqrt.f32 %v4629_v4  ;;  %v4628_v42 = vadd.f32 1e-05, %v4624_v33 }
0x1d55   :  { %10865 = vrsqrt.f32 %v4628_v42 }
0x1d60   :  { %v10864_v34 = vpop.eup %10863 }
0x1d61   :  { %v4637_v39 = vmul.f32 %v10864_v34, %v4605_v13 }
0x1d62   :  { %v10866_v35 = vpop.eup %10865 }
0x1d63   :  { %v4636_v43 = vmul.f32 %v10866_v35, %v4604_v15  ;;  %v4645_v46 = vmul.f32 %v9463_v38, %v4637_v39 }
0x1d65   :  { %v4644_v48 = vmul.f32 %v9463_v38, %v4636_v43  ;;  %v12013_v51 = vadd.f32 %v9464_v49, %v4645_v46 }
0x1d67   :  { %v12011_v21 = vadd.f32 %v9464_v49, %v4644_v48 }
0x1d69   :  { %10340 = vmatprep.mubr.msk.f32.mxu1 %vm279_vm1, %v12011_v21 }
0x1d6a   :  { %10341 = vmatmul.mubr.msk.f32.vlgmr.msra.gmra.mxu1 %vm279_vm1, %v12013_v51 }
0x1dd6   :  { %v4599_v50 = vpop.xlane.xlu1 %4598 }
0x1dd7   :  { %v4603_v47 = vmul.f32 0.03125, %v4599_v50 }
0x1dd8   :  { %v4596_v52 = vpop.xlane.xlu0 %4595 }
0x1dd9   :  { %v4607_v54 = vsub.f32 %v4585_v5, %v4603_v47  ;;  %v4602_v55 = vmul.f32 0.03125, %v4596_v52 }
0x1ddb   :  { %v4606_v2 = vsub.f32 %v4584_v27, %v4602_v55  ;;  %v4611_v56 = vmul.f32 %v4607_v54, %v4607_v54 }
0x1ddd   :  { %v4621_v25 = vsel %vm279_vm1, %v4611_v56, 0.0  ;;  %v4610_v7 = vmul.f32 %v4606_v2, %v4606_v2 }
0x1dde   :  { %4622 = vadd.xlane.f32.xlu1 %v4621_v25 }
0x1ddf   :  { %v4618_v58 = vsel %vm279_vm1, %v4610_v7, 0.0 }
0x1de0   :  { %4619 = vadd.xlane.f32.xlu0 %v4618_v58 }
0x1e2a   :  { %v10342_v41 = vpop.f32.mrf.mxu1 }
0x1e2b   :  { %v12025_v61 = vadd.f32 %v10342_v41, %v12022_v59 }
0x1e2c   :  { %v4744_v6 = vpop.f32.mrf.mxu1 }
0x1e2d   :  { %4767 = vrot.lane.b32.xlu0 %v12025_v61, %s12797_s0  ;;  %4969 = vrot.lane.b32.xlu1 %v12025_v61, %s12795_s9  ;;  %v12032_v53 = vadd.f32 %v12022_v59, %v4744_v6 }
0x1e31   :  { %4967 = vrot.lane.b32.xlu0 %v12032_v53, %s12795_s9  ;;  %4765 = vrot.lane.b32.xlu1 %v12032_v53, %s12797_s0  ;;  %s12844_s9 = smov 40  }
0x1e35   :  { %5171 = vrot.lane.b32.xlu0 %v12025_v61, %s12791_s21  ;;  %4963 = vrot.lane.b32.xlu1 %v12032_v53, %s12793_s5 }
0x1e39   :  { %5169 = vrot.lane.b32.xlu0 %v12032_v53, %s12791_s21  ;;  %4965 = vrot.lane.b32.xlu1 %v12025_v61, %s12793_s5  ;;  %s12842_s21 = smov 72   ;;  %s12843_s5 = smov 104  }
0x1e3d   :  { %5167 = vrot.lane.b32.xlu0 %v12025_v61, %s12789_s25  ;;  %5165 = vrot.lane.b32.xlu1 %v12032_v53, %s12789_s25  ;;  %s12841_s25 = smov 48  }
0x1e67   :  { %v4623_v63 = vpop.xlane.xlu1 %4622 }
0x1e68   :  { %v4627_v62 = vmul.f32 0.03125, %v4623_v63 }
0x1e69   :  { %v4620_v57 = vpop.xlane.xlu0 %4619 }
0x1e6a   :  { %v4631_v45 = vadd.f32 1e-05, %v4627_v62  ;;  %v4626_v36 = vmul.f32 0.03125, %v4620_v57 }
0x1e6c   :  { %10867 = vrsqrt.f32 %v4631_v45  ;;  %v4630_v8 = vadd.f32 1e-05, %v4626_v36 }
0x1e6e   :  { %10869 = vrsqrt.f32 %v4630_v8 }
0x1e79   :  { %v10868_v10 = vpop.eup %10867 }
0x1e7a   :  { %v4639_v3 = vmul.f32 %v10868_v10, %v4607_v54 }
0x1e7b   :  { %v10870_v0 = vpop.eup %10869 }
0x1e7c   :  { %v4638_v11 = vmul.f32 %v10870_v0, %v4606_v2  ;;  %v4647_v12 = vmul.f32 %v9463_v38, %v4639_v3 }
0x1e7e   :  { %v4646_v60 = vmul.f32 %v9463_v38, %v4638_v11  ;;  %v12052_v14 = vadd.f32 %v9464_v49, %v4647_v12 }
0x1e80   :  { %v12050_v13 = vadd.f32 %v9464_v49, %v4646_v60 }
0x1e82   :  { %10343 = vmatprep.mubr.msk.f32.mxu1 %vm279_vm1, %v12050_v13 }
0x1e83   :  { %10344 = vmatmul.mubr.msk.f32.gmra.mxu1 %vm279_vm1, %v12052_v14 }
0x1e84   :  { %10350 = vmatprep.mubr.msk.f32.mxu1 %vm523_vm2, %v12032_v53 }
0x1e9f   :  { %v4768_v15 = vpop.permute.xlu0 %4767  ;;  %v4970_v37 = vpop.permute.xlu1 %4969 }
0x1ea0   :  { %10346 = vmatprep.subr.msk.mxu1 %vm523_vm2, %v4768_v15  ;;  %10360 = vmatprep.subr.msk.mxu0 %vm523_vm2, %v4970_v37 }
0x1ea1   :  { %10347 = vmatpush3.xpose.msk.msra.mxu1 %vm523_vm2, %v4768_v15  ;;  %10361 = vmatpush3.xpose.msk.msra.mxu0 %vm523_vm2, %v4970_v37 }
0x1ea3   :  { %v4968_v18 = vpop.permute.xlu0 %4967  ;;  %v4766_v9 = vpop.permute.xlu1 %4765 }
0x1ea4   :  { %10348 = vmatprep.subr.msk.mxu1 %vm523_vm2, %v4766_v9  ;;  %10362 = vmatprep.subr.msk.mxu0 %vm523_vm2, %v4968_v18 }
0x1ea5   :  { %10349 = vmatpush3.xpose.msk.msra.mxu1 %vm523_vm2, %v4766_v9  ;;  %10363 = vmatpush3.xpose.msk.msra.mxu0 %vm523_vm2, %v4968_v18 }
0x1ea7   :  { %v5172_v19 = vpop.permute.xlu0 %5171  ;;  %v4964_v16 = vpop.permute.xlu1 %4963 }
0x1ea8   :  { %10351 = vmatmul.mubr.msk.f32.vlgmr.msra.gmra.mxu1 %vm523_vm2, %v12025_v61  ;;  %10364 = vmatprep.mubr.msk.f32.mxu0 %vm523_vm2, %v4964_v16 }
0x1ea9   :  { %10374 = vmatprep.subr.msk.mxu0 %vm523_vm2, %v5172_v19 }
0x1eab   :  { %v5170_v1 = vpop.permute.xlu0 %5169  ;;  %v4966_v17 = vpop.permute.xlu1 %4965 }
0x1eac   :  { %10365 = vmatmul.mubr.msk.f32.vlgmr.msra.gmra.mxu0 %vm523_vm2, %v4966_v17 }
0x1ead   :  { %10375 = vmatpush3.xpose.msk.msra.mxu0 %vm523_vm2, %v5172_v19 }
0x1eae   :  { %10376 = vmatprep.subr.msk.mxu0 %vm523_vm2, %v5170_v1 }
0x1eaf   :  { %v5166_v20 = vpop.permute.xlu1 %5165  ;;  %v5168_v22 = vpop.permute.xlu0 %5167 }
0x1eb0   :  { %10378 = vmatprep.mubr.msk.f32.mxu0 %vm523_vm2, %v5166_v20 }
0x1eb1   :  { %10377 = vmatpush3.xpose.msk.msra.mxu0 %vm523_vm2, %v5170_v1 }
0x1eb4   :  { %10379 = vmatmul.mubr.msk.f32.vlgmr.msra.gmra.mxu0 %vm523_vm2, %v5168_v22 }
0x1f43   :  { %v12078_v23 = vpop.f32.mrf.mxu1 }
0x1f45   :  { %v12080_v24 = vpop.f32.mrf.mxu1 }
0x1f68   :  { %v10352_v5 = vpop.f32.mrf.mxu1 }
0x1f69   :  { %v4853_v26 = vmul.f32 0.35355338, %v10352_v5 }
0x1f6a   :  { %v4843_v27 = vpop.f32.mrf.mxu1 }
0x1f6b   :  { %v4852_v28 = vmul.f32 0.35355338, %v4843_v27  ;;  %v4857_v29 = vsel %vm609_vm3, %v4853_v26, -inf }
0x1f6c   :  { %4858 = vmax.xlane.f32.xlu0 %v4857_v29  ;;  %v10366_v30 = vpop.f32.mrf.mxu0 }
0x1f6d   :  { %v5055_v31 = vmul.f32 0.35355338, %v10366_v30  ;;  %v4854_v32 = vsel %vm609_vm3, %v4852_v28, -inf }
0x1f6e   :  { %4855 = vmax.xlane.f32.xlu1 %v4854_v32  ;;  %v5045_v4 = vpop.f32.mrf.mxu0 }
0x1f6f   :  { %v5054_v33 = vmul.f32 0.35355338, %v5045_v4  ;;  %v5059_v42 = vsel %vm609_vm3, %v5055_v31, -inf }
0x1f71   :  { %v5056_v34 = vsel %vm609_vm3, %v5054_v33, -inf }
0x1f72   :  { %5060 = vmax.xlane.f32.xlu1 %v5059_v42  ;;  %5057 = vmax.xlane.f32.xlu0 %v5056_v34 }
0x1f74   :  { %v10380_v39 = vpop.f32.mrf.mxu0 }
0x1f75   :  { %v5257_v38 = vmul.f32 0.35355338, %v10380_v39 }
0x1f76   :  { %v5247_v35 = vpop.f32.mrf.mxu0 }
0x1f77   :  { %v5256_v43 = vmul.f32 0.35355338, %v5247_v35  ;;  %v5261_v46 = vsel %vm609_vm3, %v5257_v38, -inf }
0x1f78   :  { %5262 = vmax.xlane.f32.xlu1 %v5261_v46 }
0x1f79   :  { %v5258_v49 = vsel %vm609_vm3, %v5256_v43, -inf }
0x1f7a   :  { %5259 = vmax.xlane.f32.xlu0 %v5258_v49 }
0x1f89   :  { %4876 = vrot.lane.b32.xlu1 %v12032_v53, %s12839_s14 }
0x1f8d   :  { %5080 = vrot.lane.b32.xlu1 %v12025_v61, %s12840_s19 }
0x1f90   :  { %4878 = vrot.lane.b32.xlu0 %v12025_v61, %s12839_s14 }
0x1f91   :  { %5282 = vrot.lane.b32.xlu1 %v12025_v61, %s12841_s25 }
0x1f94   :  { %5078 = vrot.lane.b32.xlu0 %v12032_v53, %s12840_s19 }
0x1ff5   :  { %v4859_v48 = vpop.xlane.xlu0 %4858 }
0x1ff6   :  { %v4861_v50 = vsub.f32 %v4853_v26, %v4859_v48 }
0x1ff7   :  { %v4856_v47 = vpop.xlane.xlu1 %4855 }
0x1ff8   :  { %v4864_v52 = vmul.f32 1.442695, %v4861_v50  ;;  %v4860_v54 = vsub.f32 %v4852_v28, %v4856_v47 }
0x1ffa   :  { %10871 = vpow2.f32 %v4864_v52  ;;  %v4862_v55 = vmul.f32 1.442695, %v4860_v54 }
0x1ffb   :  { %v5058_v2 = vpop.xlane.xlu0 %5057  ;;  %v5061_v56 = vpop.xlane.xlu1 %5060 }
0x1ffc   :  { %10873 = vpow2.f32 %v4862_v55  ;;  %v5062_v25 = vsub.f32 %v5054_v33, %v5058_v2  ;;  %v5063_v7 = vsub.f32 %v5055_v31, %v5061_v56 }
0x1ffe   :  { %v5064_v58 = vmul.f32 1.442695, %v5062_v25  ;;  %v5066_v41 = vmul.f32 1.442695, %v5063_v7 }
0x2000   :  { %10875 = vpow2.f32 %v5064_v58 }
0x2001   :  { %10877 = vpow2.f32 %v5066_v41  ;;  %v5263_v6 = vpop.xlane.xlu1 %5262 }
0x2002   :  { %v5265_v63 = vsub.f32 %v5257_v38, %v5263_v6 }
0x2003   :  { %v5260_v62 = vpop.xlane.xlu0 %5259 }
0x2004   :  { %v5268_v57 = vmul.f32 1.442695, %v5265_v63  ;;  %v5264_v45 = vsub.f32 %v5256_v43, %v5260_v62 }
0x2005   :  { %v4877_v36 = vpop.permute.xlu1 %4876 }
0x2006   :  { %10879 = vpow2.f32 %v5268_v57  ;;  %v5266_v8 = vmul.f32 1.442695, %v5264_v45 }
0x2007   :  { %v10872_v10 = vpop.eup %10871  ;;  %v4879_v3 = vpop.permute.xlu0 %4878 }
0x2008   :  { %10881 = vpow2.f32 %v5266_v8  ;;  %10353 = vmatprep.subr.mxu1 %v4879_v3  ;;  %v4869_v0 = vsel %vm609_vm3, %v10872_v10, 0.0 }
0x2009   :  { %v10874_v11 = vpop.eup %10873  ;;  %10354 = vmatpush3.msra.mxu1 %v4879_v3  ;;  %4870 = vadd.xlane.f32.xlu1 %v4869_v0  ;;  %v5081_v60 = vpop.permute.xlu1 %5080 }
0x200a   :  { %10355 = vmatprep.subr.mxu1 %v4877_v36  ;;  %v4866_v12 = vsel %vm609_vm3, %v10874_v11, 0.0 }
0x200b   :  { %10356 = vmatpush3.msra.mxu1 %v4877_v36  ;;  %4867 = vadd.xlane.f32.xlu0 %v4866_v12  ;;  %v5079_v22 = vpop.permute.xlu0 %5078 }
0x200c   :  { %10367 = vmatprep.subr.mxu1 %v5081_v60 }
0x200d   :  { %v10876_v15 = vpop.eup %10875  ;;  %v5283_v20 = vpop.permute.xlu1 %5282 }
0x200e   :  { %v10878_v37 = vpop.eup %10877  ;;  %v5068_v18 = vsel %vm609_vm3, %v10876_v15, 0.0 }
0x200f   :  { %5069 = vadd.xlane.f32.xlu0 %v5068_v18  ;;  %v5071_v9 = vsel %vm609_vm3, %v10878_v37, 0.0  ;;  %v12146_v18 = vadd.f32 %v12078_v23, %v12022_v59 }
0x2010   :  { %5072 = vadd.xlane.f32.xlu1 %v5071_v9  ;;  %v12154_v9 = vadd.f32 %v12022_v59, %v12080_v24 }
0x2013   :  { %v10880_v19 = vpop.eup %10879 }
0x2014   :  { %v5273_v16 = vsel %vm609_vm3, %v10880_v19, 0.0 }
0x2015   :  { %v10882_v1 = vpop.eup %10881  ;;  %5274 = vadd.xlane.f32.xlu1 %v5273_v16 }
0x2016   :  { %v5270_v17 = vsel %vm609_vm3, %v10882_v1, 0.0 }
0x2017   :  { %5271 = vadd.xlane.f32.xlu0 %v5270_v17 }
0x2026   :  { %5373 = vrot.lane.b32.xlu1 %v12025_v61, %s12842_s21 }
0x202a   :  { %5367 = vrot.lane.b32.xlu1 %v12032_v53, %s12843_s5 }
0x202d   :  { %5280 = vrot.lane.b32.xlu0 %v12032_v53, %s12841_s25 }
0x2031   :  { %5371 = vrot.lane.b32.xlu0 %v12032_v53, %s12842_s21 }
0x2035   :  { %5369 = vrot.lane.b32.xlu0 %v12025_v61, %s12843_s5 }
0x2092   :  { %v4871_v5 = vpop.xlane.xlu1 %4870 }
0x2093   :  { %10883 = vrcp.f32 %v4871_v5 }
0x2094   :  { %v4868_v26 = vpop.xlane.xlu0 %4867 }
0x2095   :  { %10885 = vrcp.f32 %v4868_v26 }
0x2098   :  { %v5070_v27 = vpop.xlane.xlu0 %5069 }
0x2099   :  { %10887 = vrcp.f32 %v5070_v27  ;;  %v5073_v28 = vpop.xlane.xlu1 %5072 }
0x209a   :  { %10889 = vrcp.f32 %v5073_v28 }
0x209e   :  { %v5275_v29 = vpop.xlane.xlu1 %5274 }
0x209f   :  { %10891 = vrcp.f32 %v5275_v29 }
0x20a0   :  { %v5272_v30 = vpop.xlane.xlu0 %5271  ;;  %v10884_v31 = vpop.eup %10883 }
0x20a1   :  { %10893 = vrcp.f32 %v5272_v30  ;;  %v4875_v33 = vmul.f32 %v10884_v31, %v10872_v10 }
0x20a2   :  { %v10886_v32 = vpop.eup %10885  ;;  %v5374_v43 = vpop.permute.xlu1 %5373 }
0x20a3   :  { %v4873_v4 = vmul.f32 %v10886_v32, %v10874_v11 }
0x20a4   :  { %v5281_v35 = vpop.permute.xlu0 %5280 }
0x20a5   :  { %10357 = vmatprep.mubr.msk.f32.mxu1 %vm609_vm3, %v4873_v4 }
0x20a6   :  { %v10888_v42 = vpop.eup %10887  ;;  %10358 = vmatmul.mubr.msk.f32.vlgmr.msra.gmra.mxu1 %vm609_vm3, %v4875_v33  ;;  %v5368_v47 = vpop.permute.xlu1 %5367 }
0x20a7   :  { %v10890_v34 = vpop.eup %10889  ;;  %10368 = vmatpush3.msra.mxu1 %v5081_v60  ;;  %v5075_v39 = vmul.f32 %v10888_v42, %v10876_v15 }
0x20a8   :  { %10369 = vmatprep.subr.mxu1 %v5079_v22  ;;  %v5077_v38 = vmul.f32 %v10890_v34, %v10878_v37  ;;  %v5372_v52 = vpop.permute.xlu0 %5371 }
0x20a9   :  { %10370 = vmatpush3.msra.mxu1 %v5079_v22  ;;  %10371 = vmatprep.mubr.msk.f32.mxu1 %vm609_vm3, %v5075_v39 }
0x20aa   :  { %10381 = vmatprep.subr.mxu1 %v5283_v20  ;;  %10372 = vmatmul.mubr.msk.f32.vlgmr.msra.gmra.mxu1 %vm609_vm3, %v5077_v38 }
0x20ab   :  { %10382 = vmatpush3.msra.mxu1 %v5283_v20 }
0x20ac   :  { %10383 = vmatprep.subr.mxu1 %v5281_v35  ;;  %v10892_v46 = vpop.eup %10891  ;;  %v5370_v54 = vpop.permute.xlu0 %5369 }
0x20ad   :  { %10384 = vmatpush3.msra.mxu1 %v5281_v35  ;;  %v5279_v50 = vmul.f32 %v10892_v46, %v10880_v19 }
0x20ae   :  { %v10894_v49 = vpop.eup %10893  ;;  %10388 = vmatprep.subr.msk.mxu1 %vm523_vm2, %v5374_v43 }
0x20af   :  { %v5277_v48 = vmul.f32 %v10894_v49, %v10882_v1 }
0x20b1   :  { %10385 = vmatprep.mubr.msk.f32.mxu1 %vm609_vm3, %v5277_v48 }
0x20b2   :  { %10386 = vmatmul.mubr.msk.f32.vlgmr.msra.gmra.mxu1 %vm609_vm3, %v5279_v50 }
0x20b3   :  { %10389 = vmatpush3.xpose.msk.msra.mxu1 %vm523_vm2, %v5374_v43  ;;  %10392 = vmatprep.mubr.msk.f32.mxu1 %vm523_vm2, %v5368_v47 }
0x20b4   :  { %10390 = vmatprep.subr.msk.mxu1 %vm523_vm2, %v5372_v52 }
0x20b7   :  { %10391 = vmatpush3.xpose.msk.msra.mxu1 %vm523_vm2, %v5372_v52 }
0x20ba   :  { %10393 = vmatmul.mubr.msk.f32.vlgmr.msra.gmra.mxu1 %vm523_vm2, %v5370_v54 }
0x2166   :  { %v12126_v55 = vpop.f32.mrf.mxu1 }
0x2168   :  { %v12128_v2 = vpop.f32.mrf.mxu1 }
0x216a   :  { %v12130_v56 = vpop.f32.mrf.mxu1 }
0x216c   :  { %v12132_v25 = vpop.f32.mrf.mxu1 }
0x2172   :  { %v12134_v7 = vpop.f32.mrf.mxu1 }
0x2174   :  { %v12136_v58 = vpop.f32.mrf.mxu1 }
0x217a   :  { %v10394_v41 = vpop.f32.mrf.mxu1 }
0x217b   :  { %v5459_v6 = vmul.f32 0.35355338, %v10394_v41 }
0x217c   :  { %v5449_v63 = vpop.f32.mrf.mxu1 }
0x217d   :  { %v5458_v62 = vmul.f32 0.35355338, %v5449_v63  ;;  %v5463_v57 = vsel %vm609_vm3, %v5459_v6, -inf }
0x217e   :  { %5464 = vmax.xlane.f32.xlu0 %v5463_v57 }
0x217f   :  { %v5460_v45 = vsel %vm609_vm3, %v5458_v62, -inf }
0x2180   :  { %5461 = vmax.xlane.f32.xlu1 %v5460_v45 }
0x2207   :  { %v5465_v36 = vpop.xlane.xlu0 %5464 }
0x2208   :  { %v5467_v8 = vsub.f32 %v5459_v6, %v5465_v36 }
0x2209   :  { %v5462_v10 = vpop.xlane.xlu1 %5461 }
0x220a   :  { %v5470_v3 = vmul.f32 1.442695, %v5467_v8  ;;  %v5466_v0 = vsub.f32 %v5458_v62, %v5462_v10 }
0x220c   :  { %10895 = vpow2.f32 %v5470_v3  ;;  %v5468_v11 = vmul.f32 1.442695, %v5466_v0 }
0x220e   :  { %10897 = vpow2.f32 %v5468_v11 }
0x2219   :  { %v10896_v12 = vpop.eup %10895 }
0x221a   :  { %v5475_v60 = vsel %vm609_vm3, %v10896_v12, 0.0 }
0x221b   :  { %v10898_v15 = vpop.eup %10897  ;;  %5476 = vadd.xlane.f32.xlu1 %v5475_v60 }
0x221c   :  { %v5472_v37 = vsel %vm609_vm3, %v10898_v15, 0.0 }
0x221d   :  { %5473 = vadd.xlane.f32.xlu0 %v5472_v37 }
0x222c   :  { %5482 = vrot.lane.b32.xlu1 %v12032_v53, %s12844_s9 }
0x2230   :  { %5603 = vrot.lane.b32.xlu1 %v12146_v18, %s12797_s0 }
0x2233   :  { %5484 = vrot.lane.b32.xlu0 %v12025_v61, %s12844_s9 }
0x2237   :  { %5601 = vrot.lane.b32.xlu0 %v12154_v9, %s12797_s0  ;;  %s12845_s0 = smov 88  }
0x22a4   :  { %v5477_v19 = vpop.xlane.xlu1 %5476 }
0x22a5   :  { %10899 = vrcp.f32 %v5477_v19 }
0x22a6   :  { %v5474_v53 = vpop.xlane.xlu0 %5473 }
0x22a7   :  { %10901 = vrcp.f32 %v5474_v53 }
0x22a8   :  { %v5483_v16 = vpop.permute.xlu1 %5482 }
0x22aa   :  { %v5485_v23 = vpop.permute.xlu0 %5484 }
0x22ab   :  { %10395 = vmatprep.subr.mxu0 %v5485_v23 }
0x22ac   :  { %10396 = vmatpush3.msra.mxu0 %v5485_v23  ;;  %v5604_v1 = vpop.permute.xlu1 %5603 }
0x22ad   :  { %10397 = vmatprep.subr.mxu0 %v5483_v16 }
0x22ae   :  { %10398 = vmatpush3.msra.mxu0 %v5483_v16  ;;  %v5602_v20 = vpop.permute.xlu0 %5601 }
0x22af   :  { %10402 = vmatprep.subr.msk.mxu0 %vm523_vm2, %v5604_v1 }
0x22b2   :  { %v10900_v61 = vpop.eup %10899 }
0x22b3   :  { %v5481_v24 = vmul.f32 %v10900_v61, %v10896_v12 }
0x22b4   :  { %v10902_v17 = vpop.eup %10901 }
0x22b5   :  { %v5479_v59 = vmul.f32 %v10902_v17, %v10898_v15 }
0x22b7   :  { %10399 = vmatprep.mubr.msk.f32.mxu0 %vm609_vm3, %v5479_v59 }
0x22b8   :  { %10400 = vmatmul.mubr.msk.f32.vlgmr.msra.gmra.mxu0 %vm609_vm3, %v5481_v24 }
0x22b9   :  { %10403 = vmatpush3.xpose.msk.msra.mxu0 %vm523_vm2, %v5604_v1  ;;  %10406 = vmatprep.mubr.msk.f32.mxu0 %vm523_vm2, %v12154_v9 }
0x22ba   :  { %10404 = vmatprep.subr.msk.mxu0 %vm523_vm2, %v5602_v20 }
0x22bd   :  { %10405 = vmatpush3.xpose.msk.msra.mxu0 %vm523_vm2, %v5602_v20 }
0x22c0   :  { %10407 = vmatmul.mubr.msk.f32.vlgmr.msra.gmra.mxu0 %vm523_vm2, %v12146_v18 }
0x2378   :  { %v12168_v22 = vpop.f32.mrf.mxu0 }
0x237a   :  { %v12170_v5 = vpop.f32.mrf.mxu0 }
0x2380   :  { %v10408_v26 = vpop.f32.mrf.mxu0 }
0x2381   :  { %v5689_v27 = vmul.f32 0.35355338, %v10408_v26 }
0x2382   :  { %v5679_v28 = vpop.f32.mrf.mxu0 }
0x2383   :  { %v5688_v29 = vmul.f32 0.35355338, %v5679_v28  ;;  %v5693_v30 = vsel %vm609_vm3, %v5689_v27, -inf }
0x2384   :  { %5694 = vmax.xlane.f32.xlu0 %v5693_v30 }
0x2385   :  { %v5690_v31 = vsel %vm609_vm3, %v5688_v29, -inf }
0x2386   :  { %5691 = vmax.xlane.f32.xlu1 %v5690_v31 }
0x240d   :  { %v5695_v32 = vpop.xlane.xlu0 %5694 }
0x240e   :  { %v5697_v4 = vsub.f32 %v5689_v27, %v5695_v32 }
0x240f   :  { %v5692_v33 = vpop.xlane.xlu1 %5691 }
0x2410   :  { %v5700_v42 = vmul.f32 1.442695, %v5697_v4  ;;  %v5696_v34 = vsub.f32 %v5688_v29, %v5692_v33 }
0x2412   :  { %10903 = vpow2.f32 %v5700_v42  ;;  %v5698_v39 = vmul.f32 1.442695, %v5696_v34 }
0x2414   :  { %10905 = vpow2.f32 %v5698_v39 }
0x241f   :  { %v10904_v38 = vpop.eup %10903 }
0x2420   :  { %v5705_v35 = vsel %vm609_vm3, %v10904_v38, 0.0 }
0x2421   :  { %v10906_v43 = vpop.eup %10905  ;;  %5706 = vadd.xlane.f32.xlu1 %v5705_v35 }
0x2422   :  { %v5702_v46 = vsel %vm609_vm3, %v10906_v43, 0.0 }
0x2423   :  { %5703 = vadd.xlane.f32.xlu0 %v5702_v46 }
0x2432   :  { %5712 = vrot.lane.b32.xlu1 %v12154_v9, %s12839_s14 }
0x2436   :  { %5805 = vrot.lane.b32.xlu1 %v12146_v18, %s12845_s0 }
0x2439   :  { %5714 = vrot.lane.b32.xlu0 %v12146_v18, %s12839_s14  ;;  %s12847_s14 = smov 80  }
0x243a   :  { %5799 = vrot.lane.b32.xlu1 %v12154_v9, %s12846_s12 }
0x243d   :  { %5803 = vrot.lane.b32.xlu0 %v12154_v9, %s12845_s0 }
0x2441   :  { %5801 = vrot.lane.b32.xlu0 %v12146_v18, %s12846_s12 }
0x24aa   :  { %v5707_v49 = vpop.xlane.xlu1 %5706 }
0x24ab   :  { %10907 = vrcp.f32 %v5707_v49 }
0x24ac   :  { %v5704_v48 = vpop.xlane.xlu0 %5703 }
0x24ad   :  { %10909 = vrcp.f32 %v5704_v48 }
0x24ae   :  { %v5713_v50 = vpop.permute.xlu1 %5712 }
0x24b0   :  { %v5715_v47 = vpop.permute.xlu0 %5714 }
0x24b1   :  { %10409 = vmatprep.subr.mxu1 %v5715_v47 }
0x24b2   :  { %10410 = vmatpush3.msra.mxu1 %v5715_v47  ;;  %v5806_v52 = vpop.permute.xlu1 %5805 }
0x24b3   :  { %10411 = vmatprep.subr.mxu1 %v5713_v50 }
0x24b4   :  { %10412 = vmatpush3.msra.mxu1 %v5713_v50  ;;  %v5804_v57 = vpop.permute.xlu0 %5803 }
0x24b5   :  { %10416 = vmatprep.subr.msk.mxu1 %vm523_vm2, %v5806_v52 }
0x24b6   :  { %v5800_v62 = vpop.permute.xlu1 %5799 }
0x24b8   :  { %v10908_v54 = vpop.eup %10907  ;;  %v5802_v45 = vpop.permute.xlu0 %5801 }
0x24b9   :  { %v5711_v63 = vmul.f32 %v10908_v54, %v10904_v38 }
0x24ba   :  { %v10910_v41 = vpop.eup %10909 }
0x24bb   :  { %v5709_v6 = vmul.f32 %v10910_v41, %v10906_v43 }
0x24bd   :  { %10413 = vmatprep.mubr.msk.f32.mxu1 %vm609_vm3, %v5709_v6 }
0x24be   :  { %10414 = vmatmul.mubr.msk.f32.vlgmr.msra.gmra.mxu1 %vm609_vm3, %v5711_v63 }
0x24bf   :  { %10417 = vmatpush3.xpose.msk.msra.mxu1 %vm523_vm2, %v5806_v52  ;;  %10420 = vmatprep.mubr.msk.f32.mxu1 %vm523_vm2, %v5800_v62 }
0x24c0   :  { %10418 = vmatprep.subr.msk.mxu1 %vm523_vm2, %v5804_v57 }
0x24c3   :  { %10419 = vmatpush3.xpose.msk.msra.mxu1 %vm523_vm2, %v5804_v57 }
0x24c6   :  { %10421 = vmatmul.mubr.msk.f32.vlgmr.msra.gmra.mxu1 %vm523_vm2, %v5802_v45 }
0x257e   :  { %v12196_v36 = vpop.f32.mrf.mxu1 }
0x2580   :  { %v12198_v8 = vpop.f32.mrf.mxu1 }
0x2586   :  { %v10422_v10 = vpop.f32.mrf.mxu1 }
0x2587   :  { %v5891_v3 = vmul.f32 0.35355338, %v10422_v10 }
0x2588   :  { %v5881_v0 = vpop.f32.mrf.mxu1 }
0x2589   :  { %v5890_v11 = vmul.f32 0.35355338, %v5881_v0  ;;  %v5895_v12 = vsel %vm609_vm3, %v5891_v3, -inf }
0x258a   :  { %5896 = vmax.xlane.f32.xlu0 %v5895_v12 }
0x258b   :  { %v5892_v60 = vsel %vm609_vm3, %v5890_v11, -inf }
0x258c   :  { %5893 = vmax.xlane.f32.xlu1 %v5892_v60 }
0x2613   :  { %v5897_v15 = vpop.xlane.xlu0 %5896 }
0x2614   :  { %v5899_v37 = vsub.f32 %v5891_v3, %v5897_v15 }
0x2615   :  { %v5894_v19 = vpop.xlane.xlu1 %5893 }
0x2616   :  { %v5902_v53 = vmul.f32 1.442695, %v5899_v37  ;;  %v5898_v16 = vsub.f32 %v5890_v11, %v5894_v19 }
0x2618   :  { %10911 = vpow2.f32 %v5902_v53  ;;  %v5900_v23 = vmul.f32 1.442695, %v5898_v16 }
0x261a   :  { %10913 = vpow2.f32 %v5900_v23 }
0x2625   :  { %v10912_v1 = vpop.eup %10911 }
0x2626   :  { %v5907_v61 = vsel %vm609_vm3, %v10912_v1, 0.0 }
0x2627   :  { %v10914_v17 = vpop.eup %10913  ;;  %5908 = vadd.xlane.f32.xlu1 %v5907_v61 }
0x2628   :  { %v5904_v59 = vsel %vm609_vm3, %v10914_v17, 0.0 }
0x2629   :  { %5905 = vadd.xlane.f32.xlu0 %v5904_v59 }
0x2638   :  { %5914 = vrot.lane.b32.xlu1 %v12154_v9, %s12840_s19 }
0x263c   :  { %6007 = vrot.lane.b32.xlu1 %v12146_v18, %s12847_s14 }
0x263f   :  { %5916 = vrot.lane.b32.xlu0 %v12146_v18, %s12840_s19  ;;  %s12850_s19 = smov 16  }
0x2640   :  { %6001 = vrot.lane.b32.xlu1 %v12154_v9, %s12848_s3 }
0x2643   :  { %6005 = vrot.lane.b32.xlu0 %v12154_v9, %s12847_s14 }
0x2647   :  { %6003 = vrot.lane.b32.xlu0 %v12146_v18, %s12848_s3 }
0x26b0   :  { %v5909_v24 = vpop.xlane.xlu1 %5908 }
0x26b1   :  { %10915 = vrcp.f32 %v5909_v24 }
0x26b2   :  { %v5906_v20 = vpop.xlane.xlu0 %5905 }
0x26b3   :  { %10917 = vrcp.f32 %v5906_v20 }
0x26b4   :  { %v5915_v26 = vpop.permute.xlu1 %5914 }
0x26b6   :  { %v5917_v27 = vpop.permute.xlu0 %5916 }
0x26b7   :  { %10423 = vmatprep.subr.mxu0 %v5917_v27 }
0x26b8   :  { %10424 = vmatpush3.msra.mxu0 %v5917_v27  ;;  %v6008_v28 = vpop.permute.xlu1 %6007 }
0x26b9   :  { %10425 = vmatprep.subr.mxu0 %v5915_v26 }
0x26ba   :  { %10426 = vmatpush3.msra.mxu0 %v5915_v26  ;;  %v6006_v33 = vpop.permute.xlu0 %6005 }
0x26bb   :  { %10430 = vmatprep.subr.msk.mxu0 %vm523_vm2, %v6008_v28 }
0x26bc   :  { %v6002_v4 = vpop.permute.xlu1 %6001 }
0x26be   :  { %v10916_v29 = vpop.eup %10915  ;;  %v6004_v42 = vpop.permute.xlu0 %6003 }
0x26bf   :  { %v5913_v32 = vmul.f32 %v10916_v29, %v10912_v1 }
0x26c0   :  { %v10918_v30 = vpop.eup %10917 }
0x26c1   :  { %v5911_v31 = vmul.f32 %v10918_v30, %v10914_v17 }
0x26c3   :  { %10427 = vmatprep.mubr.msk.f32.mxu0 %vm609_vm3, %v5911_v31 }
0x26c4   :  { %10428 = vmatmul.mubr.msk.f32.vlgmr.msra.gmra.mxu0 %vm609_vm3, %v5913_v32 }
0x26c5   :  { %10431 = vmatpush3.xpose.msk.msra.mxu0 %vm523_vm2, %v6008_v28  ;;  %10434 = vmatprep.mubr.msk.f32.mxu0 %vm523_vm2, %v6002_v4 }
0x26c6   :  { %10432 = vmatprep.subr.msk.mxu0 %vm523_vm2, %v6006_v33 }
0x26c9   :  { %10433 = vmatpush3.xpose.msk.msra.mxu0 %vm523_vm2, %v6006_v33 }
0x26cc   :  { %10435 = vmatmul.mubr.msk.f32.vlgmr.msra.gmra.mxu0 %vm523_vm2, %v6004_v42 }
0x2784   :  { %v12224_v34 = vpop.f32.mrf.mxu0 }
0x2786   :  { %v12226_v39 = vpop.f32.mrf.mxu0 }
0x278c   :  { %v10436_v38 = vpop.f32.mrf.mxu0 }
0x278d   :  { %v6093_v35 = vmul.f32 0.35355338, %v10436_v38 }
0x278e   :  { %v6083_v43 = vpop.f32.mrf.mxu0 }
0x278f   :  { %v6092_v46 = vmul.f32 0.35355338, %v6083_v43  ;;  %v6097_v49 = vsel %vm609_vm3, %v6093_v35, -inf }
0x2790   :  { %6098 = vmax.xlane.f32.xlu0 %v6097_v49 }
0x2791   :  { %v6094_v48 = vsel %vm609_vm3, %v6092_v46, -inf }
0x2792   :  { %6095 = vmax.xlane.f32.xlu1 %v6094_v48 }
0x2819   :  { %v6099_v50 = vpop.xlane.xlu0 %6098 }
0x281a   :  { %v6101_v47 = vsub.f32 %v6093_v35, %v6099_v50 }
0x281b   :  { %v6096_v52 = vpop.xlane.xlu1 %6095 }
0x281c   :  { %v6104_v54 = vmul.f32 1.442695, %v6101_v47  ;;  %v6100_v41 = vsub.f32 %v6092_v46, %v6096_v52  ;;  %v9524_v52 = vld [vmem:[%s11180_s24 + $0x30] sm:$0xff] }
0x281e   :  { %10919 = vpow2.f32 %v6104_v54  ;;  %v6102_v6 = vmul.f32 1.442695, %v6100_v41  ;;  %v9523_v41 = vld [vmem:[%s11180_s24 + $0x28] sm:$0xff] }
0x2820   :  { %10921 = vpow2.f32 %v6102_v6 }
0x282b   :  { %v10920_v63 = vpop.eup %10919 }
0x282c   :  { %v6109_v62 = vsel %vm609_vm3, %v10920_v63, 0.0 }
0x282d   :  { %v10922_v57 = vpop.eup %10921  ;;  %6110 = vadd.xlane.f32.xlu1 %v6109_v62 }
0x282e   :  { %v6106_v45 = vsel %vm609_vm3, %v10922_v57, 0.0 }
0x282f   :  { %6107 = vadd.xlane.f32.xlu0 %v6106_v45  ;;  %v9545_v45 = vld [vmem:[%s11200_s20 + $0x38] sm:$0xff] }
0x283e   :  { %6116 = vrot.lane.b32.xlu1 %v12154_v9, %s12841_s25 }
0x2842   :  { %6209 = vrot.lane.b32.xlu1 %v12146_v18, %s12842_s21 }
0x2845   :  { %6118 = vrot.lane.b32.xlu0 %v12146_v18, %s12841_s25  ;;  %s12849_s25 = smov 8  }
0x2846   :  { %6203 = vrot.lane.b32.xlu1 %v12154_v9, %s12843_s5 }
0x2849   :  { %6207 = vrot.lane.b32.xlu0 %v12154_v9, %s12842_s21 }
0x284d   :  { %6205 = vrot.lane.b32.xlu0 %v12146_v18, %s12843_s5 }
0x28b6   :  { %v6111_v10 = vpop.xlane.xlu1 %6110 }
0x28b7   :  { %10923 = vrcp.f32 %v6111_v10  ;;  %v9544_v10 = vld [vmem:[%s11200_s20 + $0x30] sm:$0xff] }
0x28b8   :  { %v6108_v3 = vpop.xlane.xlu0 %6107 }
0x28b9   :  { %10925 = vrcp.f32 %v6108_v3  ;;  %v9543_v3 = vld [vmem:[%s11200_s20 + $0x28] sm:$0xff] }
0x28ba   :  { %v6117_v0 = vpop.permute.xlu1 %6116 }
0x28bc   :  { %v6119_v11 = vpop.permute.xlu0 %6118 }
0x28bd   :  { %10437 = vmatprep.subr.mxu1 %v6119_v11 }
0x28be   :  { %10438 = vmatpush3.msra.mxu1 %v6119_v11  ;;  %v6210_v12 = vpop.permute.xlu1 %6209 }
0x28bf   :  { %10439 = vmatprep.subr.mxu1 %v6117_v0 }
0x28c0   :  { %10440 = vmatpush3.msra.mxu1 %v6117_v0  ;;  %v6208_v16 = vpop.permute.xlu0 %6207  ;;  %v9542_v0 = vld [vmem:[%s11200_s20 + $0x20] sm:$0xff]  ;;  %s12858_s20 = sld [smem:[#allocation5_spill]] }
0x28c1   :  { %10444 = vmatprep.subr.msk.mxu1 %vm523_vm2, %v6210_v12 }
0x28c2   :  { %v6204_v53 = vpop.permute.xlu1 %6203 }
0x28c4   :  { %v10924_v60 = vpop.eup %10923  ;;  %v6206_v23 = vpop.permute.xlu0 %6205 }
0x28c5   :  { %v6115_v19 = vmul.f32 %v10924_v60, %v10920_v63  ;;  %v9526_v60 = vld [vmem:[%s11185_s30 + $0x1] ss:$0 sm:$0xff]  ;;  %s12854_s30 = sld [smem:[#allocation22_spill]] }
0x28c6   :  { %v10926_v15 = vpop.eup %10925 }
0x28c7   :  { %v6113_v37 = vmul.f32 %v10926_v15, %v10922_v57 }
0x28c9   :  { %10441 = vmatprep.mubr.msk.f32.mxu1 %vm609_vm3, %v6113_v37 }
0x28ca   :  { %10442 = vmatmul.mubr.msk.f32.vlgmr.msra.gmra.mxu1 %vm609_vm3, %v6115_v19 }
0x28cb   :  { %10445 = vmatpush3.xpose.msk.msra.mxu1 %vm523_vm2, %v6210_v12  ;;  %10448 = vmatprep.mubr.msk.f32.mxu1 %vm523_vm2, %v6204_v53 }
0x28cc   :  { %10446 = vmatprep.subr.msk.mxu1 %vm523_vm2, %v6208_v16 }
0x28cf   :  { %10447 = vmatpush3.xpose.msk.msra.mxu1 %vm523_vm2, %v6208_v16 }
0x28d2   :  { %10449 = vmatmul.mubr.msk.f32.vlgmr.msra.gmra.mxu1 %vm523_vm2, %v6206_v23 }
0x298a   :  { %v10443_v1 = vpop.f32.mrf.mxu1 }
0x298c   :  { %v6194_v61 = vpop.f32.mrf.mxu1 }
0x2992   :  { %v10450_v17 = vpop.f32.mrf.mxu1 }
0x2993   :  { %v6295_v59 = vmul.f32 0.35355338, %v10450_v17 }
0x2994   :  { %v6285_v24 = vpop.f32.mrf.mxu1 }
0x2995   :  { %v6294_v20 = vmul.f32 0.35355338, %v6285_v24  ;;  %v6299_v26 = vsel %vm609_vm3, %v6295_v59, -inf }
0x2996   :  { %6300 = vmax.xlane.f32.xlu0 %v6299_v26 }
0x2997   :  { %v6296_v27 = vsel %vm609_vm3, %v6294_v20, -inf }
0x2998   :  { %6297 = vmax.xlane.f32.xlu1 %v6296_v27 }
0x2a1f   :  { %v6301_v28 = vpop.xlane.xlu0 %6300 }
0x2a20   :  { %v6303_v29 = vsub.f32 %v6295_v59, %v6301_v28 }
0x2a21   :  { %v6298_v30 = vpop.xlane.xlu1 %6297 }
0x2a22   :  { %v6306_v31 = vmul.f32 1.442695, %v6303_v29  ;;  %v6302_v32 = vsub.f32 %v6294_v20, %v6298_v30 }
0x2a24   :  { %10927 = vpow2.f32 %v6306_v31  ;;  %v6304_v4 = vmul.f32 1.442695, %v6302_v32  ;;  %v9534_v31 = vld [vmem:[%s12824_s8 + $0x28] sm:$0xff]  ;;  %v9533_v32 = vld [vmem:[%s12824_s8 + $0x20] sm:$0xff] }
0x2a26   :  { %10929 = vpow2.f32 %v6304_v4 }
0x2a31   :  { %v10928_v33 = vpop.eup %10927 }
0x2a32   :  { %v6311_v42 = vsel %vm609_vm3, %v10928_v33, 0.0 }
0x2a33   :  { %v10930_v38 = vpop.eup %10929  ;;  %6312 = vadd.xlane.f32.xlu1 %v6311_v42 }
0x2a34   :  { %v6308_v35 = vsel %vm609_vm3, %v10930_v38, 0.0 }
0x2a35   :  { %6309 = vadd.xlane.f32.xlu0 %v6308_v35 }
0x2a44   :  { %6318 = vrot.lane.b32.xlu1 %v12154_v9, %s12844_s9  ;;  %v9525_v9 = vld [vmem:[%s11180_s24 + $0x38] sm:$0xff] }
0x2a48   :  { %5571 = vrot.lane.b32.xlu1 %v12132_v25, %s12849_s25 }
0x2a4b   :  { %6320 = vrot.lane.b32.xlu0 %v12146_v18, %s12844_s9 }
0x2a4c   :  { %5579 = vrot.lane.b32.xlu1 %v12136_v58, %s12850_s19 }
0x2a4f   :  { %5573 = vrot.lane.b32.xlu0 %v12130_v56, %s12849_s25 }
0x2a50   :  { %5587 = vrot.lane.b32.xlu1 %v12170_v5, %s12851_s4 }
0x2a53   :  { %5581 = vrot.lane.b32.xlu0 %v12134_v7, %s12850_s19 }
0x2a54   :  { %6407 = vrot.lane.b32.xlu1 %v12226_v39, %s12849_s25 }
0x2a57   :  { %5589 = vrot.lane.b32.xlu0 %v12168_v22, %s12851_s4 }
0x2a58   :  { %6415 = vrot.lane.b32.xlu1 %v6194_v61, %s12850_s19 }
0x2a5b   :  { %6409 = vrot.lane.b32.xlu0 %v12224_v34, %s12849_s25 }
0x2a5f   :  { %6417 = vrot.lane.b32.xlu0 %v10443_v1, %s12850_s19 }
0x2abc   :  { %v6313_v56 = vpop.xlane.xlu1 %6312 }
0x2abd   :  { %10931 = vrcp.f32 %v6313_v56 }
0x2abe   :  { %v6310_v25 = vpop.xlane.xlu0 %6309 }
0x2abf   :  { %10933 = vrcp.f32 %v6310_v25  ;;  %v9546_v25 = vld [vmem:[%s12825_s1 + $0x1] ss:$0 sm:$0xff] }
0x2ac0   :  { %v6319_v58 = vpop.permute.xlu1 %6318 }
0x2ac2   :  { %v6321_v18 = vpop.permute.xlu0 %6320 }
0x2ac3   :  { %10451 = vmatprep.subr.mxu0 %v6321_v18 }
0x2ac4   :  { %10452 = vmatpush3.msra.mxu0 %v6321_v18  ;;  %v5572_v7 = vpop.permute.xlu1 %5571 }
0x2ac5   :  { %10453 = vmatprep.subr.mxu0 %v6319_v58  ;;  %v5593_v49 = vsel %vm523_vm2, %v12128_v2, %v5572_v7  ;;  %v9522_v2 = vld [vmem:[%s11180_s24 + $0x20] sm:$0xff]  ;;  %s12853_s24 = sld [smem:[#allocation21_spill]] }
0x2ac6   :  { %10454 = vmatpush3.msra.mxu0 %v6319_v58  ;;  %v5574_v22 = vpop.permute.xlu0 %5573 }
0x2ac7   :  { %10458 = vmatprep.subr.mxu0 %v9525_v9  ;;  %v5594_v63 = vsel %vm523_vm2, %v12126_v55, %v5574_v22 }
0x2ac8   :  { %v5580_v5 = vpop.permute.xlu1 %5579 }
0x2ac9   :  { %v5595_v47 = vsel %vm609_vm3, %v5593_v49, %v5580_v5 }
0x2aca   :  { %v10932_v34 = vpop.eup %10931  ;;  %v5582_v48 = vpop.permute.xlu0 %5581 }
0x2acb   :  { %v6317_v50 = vmul.f32 %v10932_v34, %v10928_v33  ;;  %v5596_v62 = vsel %vm609_vm3, %v5594_v63, %v5582_v48 }
0x2acc   :  { %v10934_v39 = vpop.eup %10933  ;;  %v5588_v43 = vpop.permute.xlu1 %5587 }
0x2acd   :  { %v6315_v46 = vmul.f32 %v10934_v39, %v10930_v38  ;;  %v5597_v54 = vsel %vm1353_vm4, %v5595_v47, %v5588_v43 }
0x2ace   :  { %v5590_v6 = vpop.permute.xlu0 %5589 }
0x2acf   :  { %10455 = vmatprep.mubr.msk.f32.mxu0 %vm609_vm3, %v6315_v46  ;;  %v5598_v57 = vsel %vm1353_vm4, %v5596_v62, %v5590_v6 }
0x2ad0   :  { %10456 = vmatmul.mubr.msk.f32.vlgmr.msra.gmra.mxu0 %vm609_vm3, %v6317_v50  ;;  %v6408_v17 = vpop.permute.xlu1 %6407 }
0x2ad1   :  { %10459 = vmatpush3.msra.mxu0 %v9525_v9  ;;  %10466 = vmatprep.mubr.msk.f32.mxu0 %vm279_vm1, %v5597_v54  ;;  %v6429_v20 = vsel %vm523_vm2, %v12198_v8, %v6408_v17  ;;  %v9535_v8 = vld [vmem:[%s12824_s8 + $0x30] sm:$0xff] }
0x2ad2   :  { %10460 = vmatprep.subr.mxu0 %v9524_v52  ;;  %v6410_v61 = vpop.permute.xlu0 %6409 }
0x2ad3   :  { %10461 = vmatpush3.msra.mxu0 %v9524_v52  ;;  %v6430_v26 = vsel %vm523_vm2, %v12196_v36, %v6410_v61  ;;  %v9536_v36 = vld [vmem:[%s12824_s8 + $0x38] sm:$0xff] }
0x2ad4   :  { %10462 = vmatprep.subr.mxu0 %v9523_v41  ;;  %v6416_v24 = vpop.permute.xlu1 %6415  ;;  %10472 = vmatprep.subr.mxu1 %v9536_v36 }
0x2ad5   :  { %10463 = vmatpush3.msra.mxu0 %v9523_v41  ;;  %v6431_v27 = vsel %vm609_vm3, %v6429_v20, %v6416_v24  ;;  %10473 = vmatpush3.msra.mxu1 %v9536_v36 }
0x2ad6   :  { %10464 = vmatprep.subr.mxu0 %v9522_v2  ;;  %v6418_v59 = vpop.permute.xlu0 %6417  ;;  %10474 = vmatprep.subr.mxu1 %v9535_v8 }
0x2ad7   :  { %10465 = vmatpush3.msra.mxu0 %v9522_v2  ;;  %v6432_v28 = vsel %vm609_vm3, %v6430_v26, %v6418_v59  ;;  %10475 = vmatpush3.msra.mxu1 %v9535_v8 }
0x2ad8   :  { %10467 = vmatmul.mubr.msk.f32.vlgmr.msra.gmra.mxu0 %vm279_vm1, %v5598_v57  ;;  %10486 = vmatprep.subr.mxu0 %v9545_v45 }
0x2ad9   :  { %10487 = vmatpush3.msra.mxu0 %v9545_v45  ;;  %10476 = vmatprep.subr.mxu1 %v9534_v31 }
0x2ada   :  { %10488 = vmatprep.subr.mxu0 %v9544_v10  ;;  %10477 = vmatpush3.msra.mxu1 %v9534_v31 }
0x2adb   :  { %10489 = vmatpush3.msra.mxu0 %v9544_v10  ;;  %10478 = vmatprep.subr.mxu1 %v9533_v32 }
0x2adc   :  { %10490 = vmatprep.subr.mxu0 %v9543_v3  ;;  %10479 = vmatpush3.msra.mxu1 %v9533_v32 }
0x2add   :  { %10491 = vmatpush3.msra.mxu0 %v9543_v3 }
0x2ade   :  { %10492 = vmatprep.subr.mxu0 %v9542_v0 }
0x2adf   :  { %10493 = vmatpush3.msra.mxu0 %v9542_v0 }
0x2b90   :  { %v10457_v55 = vpop.f32.mrf.mxu0 }
0x2b91   :  { %6425 = vrot.lane.b32.xlu0 %v10457_v55, %s12851_s4 }
0x2b92   :  { %v6396_v11 = vpop.f32.mrf.mxu0 }
0x2b93   :  { %6423 = vrot.lane.b32.xlu1 %v6396_v11, %s12851_s4 }
0x2b98   :  { %v10468_v12 = vpop.f32.mrf.mxu0 }
0x2b99   :  { %v6529_v15 = vadd.f32 %v10468_v12, %v9526_v60 }
0x2b9a   :  { %v6523_v19 = vpop.f32.mrf.mxu0 }
0x2b9b   :  { %v6543_v37 = vadd.f32 %v6529_v15, %v12013_v51  ;;  %v6524_v53 = vadd.f32 %v9526_v60, %v6523_v19 }
0x2b9d   :  { %v6551_v16 = vsel %vm279_vm1, %v6543_v37, 0.0  ;;  %v6542_v23 = vadd.f32 %v6524_v53, %v12011_v21 }
0x2b9f   :  { %v6548_v1 = vsel %vm279_vm1, %v6542_v23, 0.0 }
0x2bb0   :  { %6552 = vadd.xlane.f32.xlu0 %v6551_v16  ;;  %v9532_v16 = vld [vmem:[%s12827_s7 + $0x1] ss:$0 sm:$0xff] }
0x2bb7   :  { %6549 = vadd.xlane.f32.xlu1 %v6548_v1 }
0x2c03   :  { %v6426_v51 = vpop.permute.xlu0 %6425 }
0x2c04   :  { %v6434_v30 = vsel %vm1353_vm4, %v6432_v28, %v6426_v51 }
0x2c05   :  { %v6424_v21 = vpop.permute.xlu1 %6423 }
0x2c06   :  { %v6433_v29 = vsel %vm1353_vm4, %v6431_v27, %v6424_v21 }
0x2c07   :  { %10469 = vmatprep.mubr.msk.f32.mxu0 %vm279_vm1, %v6433_v29 }
0x2c08   :  { %10470 = vmatmul.mubr.msk.f32.gmra.mxu0 %vm279_vm1, %v6434_v30 }
0x2c09   :  { %10494 = vmatprep.mubr.msk.f32.mxu0 %vm279_vm1, %v11646_v44 }
0x2c0c   :  { %10495 = vmatmul.mubr.msk.f32.vlgmr.msra.gmra.mxu0 %vm279_vm1, %v11654_v40 }
0x2c39   :  { %v6553_v4 = vpop.xlane.xlu0 %6552 }
0x2c3a   :  { %v6561_v42 = vmul.f32 0.03125, %v6553_v4  ;;  %v9537_v4 = vld [vmem:[%s12828_s10 + $0x1] ss:$0 sm:$0xff] }
0x2c3c   :  { %v6565_v35 = vsub.f32 %v6543_v37, %v6561_v42 }
0x2c3e   :  { %v6569_v39 = vmul.f32 %v6565_v35, %v6565_v35 }
0x2c40   :  { %v6550_v33 = vpop.xlane.xlu1 %6549 }
0x2c41   :  { %v6560_v44 = vmul.f32 0.03125, %v6550_v33 }
0x2c43   :  { %v6564_v58 = vsub.f32 %v6542_v23, %v6560_v44 }
0x2c45   :  { %v6568_v48 = vmul.f32 %v6564_v58, %v6564_v58 }
0x2cc8   :  { %v10471_v38 = vpop.f32.mrf.mxu0 }
0x2cc9   :  { %v6539_v40 = vadd.f32 %v10471_v38, %v9526_v60 }
0x2cca   :  { %v6533_v56 = vpop.f32.mrf.mxu0 }
0x2ccb   :  { %v6545_v18 = vadd.f32 %v6539_v40, %v12052_v14  ;;  %v6534_v7 = vadd.f32 %v9526_v60, %v6533_v56  ;;  %v6575_v14 = vsel %vm279_vm1, %v6569_v39, 0.0  ;;  %v9531_v60 = vld [vmem:[%s12826_s2 + $0x1] ss:$0 sm:$0xff] }
0x2ccc   :  { %v10496_v9 = vpop.f32.mrf.mxu0 }
0x2ccd   :  { %v6544_v22 = vadd.f32 %v6534_v7, %v12050_v13  ;;  %v12326_v5 = vadd.f32 %v10496_v9, %v9546_v25  ;;  %v6557_v34 = vsel %vm279_vm1, %v6545_v18, 0.0  ;;  %v6572_v13 = vsel %vm279_vm1, %v6568_v48, 0.0 }
0x2cce   :  { %6558 = vadd.xlane.f32.xlu1 %v6557_v34  ;;  %v6799_v43 = vpop.f32.mrf.mxu0 }
0x2ccf   :  { %v12329_v46 = vadd.f32 %v9546_v25, %v6799_v43  ;;  %v6554_v49 = vsel %vm279_vm1, %v6544_v22, 0.0 }
0x2cd0   :  { %6555 = vadd.xlane.f32.xlu0 %v6554_v49 }
0x2cd1   :  { %10497 = vmatprep.subr.msk.mxu1 %vm523_vm2, %v12329_v46 }
0x2cd2   :  { %6576 = vadd.xlane.f32.xlu1 %v6575_v14 }
0x2cd4   :  { %6573 = vadd.xlane.f32.xlu0 %v6572_v13 }
0x2d57   :  { %v6559_v50 = vpop.xlane.xlu1 %6558 }
0x2d58   :  { %v6563_v47 = vmul.f32 0.03125, %v6559_v50 }
0x2d59   :  { %v6556_v52 = vpop.xlane.xlu0 %6555 }
0x2d5a   :  { %v6567_v54 = vsub.f32 %v6545_v18, %v6563_v47  ;;  %v6562_v41 = vmul.f32 0.03125, %v6556_v52 }
0x2d5b   :  { %v6577_v2 = vpop.xlane.xlu1 %6576 }
0x2d5c   :  { %v6566_v6 = vsub.f32 %v6544_v22, %v6562_v41  ;;  %v6585_v63 = vmul.f32 0.03125, %v6577_v2  ;;  %v6571_v62 = vmul.f32 %v6567_v54, %v6567_v54 }
0x2d5d   :  { %v6574_v57 = vpop.xlane.xlu0 %6573 }
0x2d5e   :  { %v6589_v45 = vadd.f32 1e-05, %v6585_v63  ;;  %v6584_v10 = vmul.f32 0.03125, %v6574_v57  ;;  %v6581_v3 = vsel %vm279_vm1, %v6571_v62, 0.0  ;;  %v6570_v0 = vmul.f32 %v6566_v6, %v6566_v6 }
0x2d5f   :  { %6582 = vadd.xlane.f32.xlu1 %v6581_v3 }
0x2d60   :  { %10935 = vrsqrt.f32 %v6589_v45  ;;  %v6588_v55 = vadd.f32 1e-05, %v6584_v10  ;;  %v6578_v11 = vsel %vm279_vm1, %v6570_v0, 0.0 }
0x2d61   :  { %6579 = vadd.xlane.f32.xlu0 %v6578_v11 }
0x2d62   :  { %10937 = vrsqrt.f32 %v6588_v55 }
0x2d6d   :  { %v10936_v12 = vpop.eup %10935 }
0x2d6e   :  { %v6597_v15 = vmul.f32 %v10936_v12, %v6565_v35 }
0x2d6f   :  { %v10938_v37 = vpop.eup %10937 }
0x2d70   :  { %7394 = vrot.lane.b32.xlu1 %v12329_v46, %s12843_s5  ;;  %v6596_v19 = vmul.f32 %v10938_v37, %v6564_v58  ;;  %v6605_v53 = vmul.f32 %v9531_v60, %v6597_v15 }
0x2d72   :  { %v6604_v23 = vmul.f32 %v9531_v60, %v6596_v19  ;;  %v12344_v61 = vadd.f32 %v9532_v16, %v6605_v53 }
0x2d74   :  { %v12342_v1 = vadd.f32 %v9532_v16, %v6604_v23 }
0x2d76   :  { %10480 = vmatprep.mubr.msk.f32.mxu1 %vm279_vm1, %v12342_v1 }
0x2d77   :  { %7004 = vrot.lane.b32.xlu0 %v12329_v46, %s12846_s12  ;;  %10481 = vmatmul.mubr.msk.f32.vlgmr.msra.gmra.mxu1 %vm279_vm1, %v12344_v61 }
0x2d78   :  { %10498 = vmatpush3.xpose.msk.msra.mxu1 %vm523_vm2, %v12329_v46 }
0x2d7b   :  { %7199 = vrot.lane.b32.xlu0 %v12329_v46, %s12848_s3 }
0x2de8   :  { %v6583_v17 = vpop.xlane.xlu1 %6582 }
0x2de9   :  { %v6587_v59 = vmul.f32 0.03125, %v6583_v17 }
0x2dea   :  { %v6580_v24 = vpop.xlane.xlu0 %6579 }
0x2deb   :  { %v6591_v20 = vadd.f32 1e-05, %v6587_v59  ;;  %v6586_v51 = vmul.f32 0.03125, %v6580_v24 }
0x2dec   :  { %v7395_v40 = vpop.permute.xlu1 %7394 }
0x2ded   :  { %10939 = vrsqrt.f32 %v6591_v20  ;;  %v6590_v26 = vadd.f32 1e-05, %v6586_v51 }
0x2dee   :  { %v7005_v27 = vpop.permute.xlu0 %7004 }
0x2def   :  { %10941 = vrsqrt.f32 %v6590_v26  ;;  %10507 = vmatprep.subr.msk.mxu1 %vm523_vm2, %v7005_v27 }
0x2df2   :  { %v7200_v35 = vpop.permute.xlu0 %7199 }
0x2dfa   :  { %v10940_v21 = vpop.eup %10939 }
0x2dfb   :  { %v6599_v28 = vmul.f32 %v10940_v21, %v6567_v54 }
0x2dfc   :  { %v10942_v29 = vpop.eup %10941 }
0x2dfd   :  { %v6598_v30 = vmul.f32 %v10942_v29, %v6566_v6  ;;  %v6607_v36 = vmul.f32 %v9531_v60, %v6599_v28 }
0x2dff   :  { %v6606_v8 = vmul.f32 %v9531_v60, %v6598_v30  ;;  %v12359_v32 = vadd.f32 %v9532_v16, %v6607_v36 }
0x2e01   :  { %v12357_v31 = vadd.f32 %v9532_v16, %v6606_v8 }
0x2e03   :  { %10483 = vmatprep.mubr.msk.f32.mxu1 %vm279_vm1, %v12357_v31 }
0x2e04   :  { %10484 = vmatmul.mubr.msk.f32.gmra.mxu1 %vm279_vm1, %v12359_v32 }
0x2e37   :  { %v10482_v33 = vpop.f32.mrf.mxu1 }
0x2e38   :  { %v6710_v42 = vadd.f32 %v10482_v33, %v9537_v4 }
0x2e39   :  { %v6704_v44 = vpop.f32.mrf.mxu1 }
0x2e3a   :  { %v6705_v38 = vadd.f32 %v9537_v4, %v6704_v44  ;;  %7197 = vrot.lane.b32.xlu0 %v6710_v42, %s12848_s3  ;;  %7002 = vrot.lane.b32.xlu1 %v6710_v42, %s12846_s12 }
0x2e3c   :  { %10499 = vmatprep.mubr.msk.f32.mxu1 %vm523_vm2, %v6705_v38 }
0x2e3d   :  { %10500 = vmatmul.mubr.msk.f32.vlgmr.msra.gmra.mxu1 %vm523_vm2, %v6710_v42 }
0x2e3e   :  { %10508 = vmatpush3.xpose.msk.msra.mxu1 %vm523_vm2, %v7005_v27  ;;  %7390 = vrot.lane.b32.xlu0 %v6705_v38, %s12843_s5 }
0x2e3f   :  { %7000 = vrot.lane.b32.xlu1 %v6705_v38, %s12846_s12  ;;  %10517 = vmatprep.subr.msk.mxu1 %vm523_vm2, %v7200_v35 }
0x2e42   :  { %7811 = vrot.lane.b32.xlu0 %v12326_v5, %s12846_s12 }
0x2e43   :  { %7195 = vrot.lane.b32.xlu1 %v6705_v38, %s12848_s3 }
0x2e47   :  { %7392 = vrot.lane.b32.xlu1 %v6710_v42, %s12843_s5 }
0x2e4b   :  { %8006 = vrot.lane.b32.xlu1 %v12326_v5, %s12848_s3 }
0x2eac   :  { %v7003_v56 = vpop.permute.xlu1 %7002  ;;  %v7198_v25 = vpop.permute.xlu0 %7197 }
0x2eb0   :  { %v7391_v7 = vpop.permute.xlu0 %7390 }
0x2eb1   :  { %v7001_v58 = vpop.permute.xlu1 %7000 }
0x2eb2   :  { %10509 = vmatprep.mubr.msk.f32.mxu1 %vm523_vm2, %v7001_v58 }
0x2eb3   :  { %10510 = vmatmul.mubr.msk.f32.vlgmr.msra.gmra.mxu1 %vm523_vm2, %v7003_v56 }
0x2eb4   :  { %10518 = vmatpush3.xpose.msk.msra.mxu1 %vm523_vm2, %v7200_v35  ;;  %v7812_v22 = vpop.permute.xlu0 %7811 }
0x2eb5   :  { %10527 = vmatprep.subr.msk.mxu1 %vm523_vm2, %v7395_v40  ;;  %v7196_v18 = vpop.permute.xlu1 %7195 }
0x2eb6   :  { %10519 = vmatprep.mubr.msk.f32.mxu1 %vm523_vm2, %v7196_v18 }
0x2eb7   :  { %10520 = vmatmul.mubr.msk.f32.vlgmr.msra.gmra.mxu1 %vm523_vm2, %v7198_v25 }
0x2eb8   :  { %10528 = vmatpush3.xpose.msk.msra.mxu1 %vm523_vm2, %v7395_v40  ;;  %10529 = vmatprep.mubr.msk.f32.mxu1 %vm523_vm2, %v7391_v7 }
0x2eb9   :  { %10537 = vmatprep.subr.msk.mxu1 %vm523_vm2, %v12326_v5  ;;  %v7393_v9 = vpop.permute.xlu1 %7392 }
0x2ebb   :  { %10530 = vmatmul.mubr.msk.f32.vlgmr.msra.gmra.mxu1 %vm523_vm2, %v7393_v9 }
0x2ebc   :  { %10538 = vmatpush3.xpose.msk.msra.mxu1 %vm523_vm2, %v12326_v5 }
0x2ebd   :  { %10547 = vmatprep.subr.msk.mxu1 %vm523_vm2, %v7812_v22  ;;  %v8007_v48 = vpop.permute.xlu1 %8006 }
0x2ec4   :  { %v10485_v34 = vpop.f32.mrf.mxu1 }
0x2ec5   :  { %v6720_v39 = vadd.f32 %v10485_v34, %v9537_v4 }
0x2ec6   :  { %v6714_v43 = vpop.f32.mrf.mxu1 }
0x2ec7   :  { %v6715_v49 = vadd.f32 %v9537_v4, %v6714_v43  ;;  %7809 = vrot.lane.b32.xlu0 %v6720_v39, %s12846_s12 }
0x2ec9   :  { %7807 = vrot.lane.b32.xlu1 %v6715_v49, %s12846_s12  ;;  %10539 = vmatprep.mubr.msk.f32.mxu1 %vm523_vm2, %v6715_v49  ;;  %s12857_s12 = sld [smem:[#allocation27_spill]] }
0x2eca   :  { %10540 = vmatmul.mubr.msk.f32.vlgmr.msra.gmra.mxu1 %vm523_vm2, %v6720_v39 }
0x2ecb   :  { %10548 = vmatpush3.xpose.msk.msra.mxu1 %vm523_vm2, %v7812_v22  ;;  %8002 = vrot.lane.b32.xlu0 %v6715_v49, %s12848_s3 }
0x2ecc   :  { %10557 = vmatprep.subr.msk.mxu1 %vm523_vm2, %v8007_v48 }
0x2ecd   :  { %8004 = vrot.lane.b32.xlu1 %v6720_v39, %s12848_s3  ;;  %s12852_s3 = smov 96  }
0x2ecf   :  { %8201 = vrot.lane.b32.xlu0 %v12326_v5, %s12843_s5 }
0x2ed1   :  { %8197 = vrot.lane.b32.xlu1 %v6715_v49, %s12843_s5 }
0x2ed3   :  { %8199 = vrot.lane.b32.xlu0 %v6720_v39, %s12843_s5 }
0x2efd   :  { %v10501_v14 = vpop.f32.mrf.mxu1 }
0x2efe   :  { %v6893_v13 = vmul.f32 0.35355338, %v10501_v14 }
0x2eff   :  { %v6883_v50 = vpop.f32.mrf.mxu1 }
0x2f00   :  { %v6892_v47 = vmul.f32 0.35355338, %v6883_v50  ;;  %v6897_v52 = vsel %vm523_vm2, %v6893_v13, -inf }
0x2f01   :  { %6898 = vmax.xlane.f32.xlu0 %v6897_v52 }
0x2f02   :  { %v6894_v54 = vsel %vm523_vm2, %v6892_v47, -inf }
0x2f03   :  { %6895 = vmax.xlane.f32.xlu1 %v6894_v54 }
0x2f39   :  { %v7810_v41 = vpop.permute.xlu0 %7809 }
0x2f3b   :  { %v7808_v2 = vpop.permute.xlu1 %7807 }
0x2f3c   :  { %10549 = vmatprep.mubr.msk.f32.mxu1 %vm523_vm2, %v7808_v2 }
0x2f3d   :  { %v8003_v6 = vpop.permute.xlu0 %8002  ;;  %10550 = vmatmul.mubr.msk.f32.vlgmr.msra.gmra.mxu1 %vm523_vm2, %v7810_v41 }
0x2f3e   :  { %10558 = vmatpush3.xpose.msk.msra.mxu1 %vm523_vm2, %v8007_v48  ;;  %10559 = vmatprep.mubr.msk.f32.mxu1 %vm523_vm2, %v8003_v6 }
0x2f3f   :  { %v8005_v63 = vpop.permute.xlu1 %8004 }
0x2f41   :  { %v8202_v62 = vpop.permute.xlu0 %8201  ;;  %10560 = vmatmul.mubr.msk.f32.vlgmr.msra.gmra.mxu1 %vm523_vm2, %v8005_v63 }
0x2f42   :  { %10567 = vmatprep.subr.msk.mxu1 %vm523_vm2, %v8202_v62 }
0x2f43   :  { %10568 = vmatpush3.xpose.msk.msra.mxu1 %vm523_vm2, %v8202_v62  ;;  %v8198_v57 = vpop.permute.xlu1 %8197 }
0x2f44   :  { %10569 = vmatprep.mubr.msk.f32.mxu1 %vm523_vm2, %v8198_v57 }
0x2f45   :  { %v8200_v45 = vpop.permute.xlu0 %8199 }
0x2f46   :  { %10570 = vmatmul.mubr.msk.f32.vlgmr.msra.gmra.mxu1 %vm523_vm2, %v8200_v45 }
0x2f73   :  { %v10511_v10 = vpop.f32.mrf.mxu1 }
0x2f74   :  { %v7088_v3 = vmul.f32 0.35355338, %v10511_v10 }
0x2f75   :  { %v7078_v0 = vpop.f32.mrf.mxu1 }
0x2f76   :  { %v12417_v55 = vmul.f32 0.35355338, %v7078_v0  ;;  %v7092_v11 = vsel %vm523_vm2, %v7088_v3, -inf }
0x2f77   :  { %7093 = vmax.xlane.f32.xlu1 %v7092_v11  ;;  %v10521_v12 = vpop.f32.mrf.mxu1 }
0x2f78   :  { %v12420_v60 = vmul.f32 0.35355338, %v10521_v12  ;;  %v7089_v15 = vsel %vm523_vm2, %v12417_v55, -inf }
0x2f79   :  { %7090 = vmax.xlane.f32.xlu0 %v7089_v15  ;;  %v7273_v37 = vpop.f32.mrf.mxu1 }
0x2f7a   :  { %v12424_v19 = vmul.f32 0.35355338, %v7273_v37  ;;  %v7287_v53 = vsel %vm523_vm2, %v12420_v60, -inf }
0x2f7b   :  { %7288 = vmax.xlane.f32.xlu1 %v7287_v53  ;;  %v10531_v16 = vpop.f32.mrf.mxu1 }
0x2f7c   :  { %v12428_v23 = vmul.f32 0.35355338, %v10531_v16  ;;  %v7284_v17 = vsel %vm523_vm2, %v12424_v19, -inf }
0x2f7d   :  { %7285 = vmax.xlane.f32.xlu0 %v7284_v17  ;;  %v7468_v59 = vpop.f32.mrf.mxu1 }
0x2f7e   :  { %v12432_v24 = vmul.f32 0.35355338, %v7468_v59  ;;  %v7482_v20 = vsel %vm523_vm2, %v12428_v23, -inf }
0x2f7f   :  { %7483 = vmax.xlane.f32.xlu1 %v7482_v20 }
0x2f80   :  { %v7479_v51 = vsel %vm523_vm2, %v12432_v24, -inf }
0x2f81   :  { %7480 = vmax.xlane.f32.xlu0 %v7479_v51 }
0x2f8a   :  { %v6899_v26 = vpop.xlane.xlu0 %6898  ;;  %v10541_v36 = vpop.f32.mrf.mxu1 }
0x2f8b   :  { %v6901_v27 = vsub.f32 %v6893_v13, %v6899_v26  ;;  %v12440_v33 = vmul.f32 0.35355338, %v10541_v36 }
0x2f8c   :  { %v6896_v21 = vpop.xlane.xlu1 %6895  ;;  %v7690_v4 = vpop.f32.mrf.mxu1 }
0x2f8d   :  { %v6904_v28 = vmul.f32 1.442695, %v6901_v27  ;;  %v6900_v29 = vsub.f32 %v6892_v47, %v6896_v21  ;;  %v12446_v38 = vmul.f32 0.35355338, %v7690_v4  ;;  %v7704_v40 = vsel %vm523_vm2, %v12440_v33, -inf }
0x2f8f   :  { %10943 = vpow2.f32 %v6904_v28  ;;  %v6902_v30 = vmul.f32 1.442695, %v6900_v29  ;;  %v7701_v56 = vsel %vm523_vm2, %v12446_v38, -inf }
0x2f91   :  { %10945 = vpow2.f32 %v6902_v30 }
0x2f9c   :  { %v12438_v8 = vpop.eup %10943 }
0x2f9d   :  { %v6909_v42 = vsel %vm523_vm2, %v12438_v8, 0.0 }
0x2f9e   :  { %v12444_v44 = vpop.eup %10945  ;;  %6910 = vadd.xlane.f32.xlu1 %v6909_v42 }
0x2f9f   :  { %v6906_v35 = vsel %vm523_vm2, %v12444_v44, 0.0 }
0x2fa0   :  { %6907 = vadd.xlane.f32.xlu0 %v6906_v35 }
0x2fa2   :  { %7705 = vmax.xlane.f32.xlu1 %v7704_v40 }
0x2fa4   :  { %7702 = vmax.xlane.f32.xlu0 %v7701_v56 }
0x2ffd   :  { %v10551_v25 = vpop.f32.mrf.mxu1 }
0x2ffe   :  { %v12454_v58 = vmul.f32 0.35355338, %v10551_v25 }
0x2fff   :  { %v7885_v18 = vpop.f32.mrf.mxu1 }
0x3000   :  { %v12456_v7 = vmul.f32 0.35355338, %v7885_v18  ;;  %v7094_v9 = vpop.xlane.xlu1 %7093  ;;  %v7899_v22 = vsel %vm523_vm2, %v12454_v58, -inf }
0x3001   :  { %v7096_v34 = vsub.f32 %v7088_v3, %v7094_v9  ;;  %7900 = vmax.xlane.f32.xlu1 %v7899_v22  ;;  %v10561_v39 = vpop.f32.mrf.mxu1 }
0x3002   :  { %v7091_v43 = vpop.xlane.xlu0 %7090  ;;  %v12460_v49 = vmul.f32 0.35355338, %v10561_v39  ;;  %v7896_v48 = vsel %vm523_vm2, %v12456_v7, -inf }
0x3003   :  { %v7099_v14 = vmul.f32 1.442695, %v7096_v34  ;;  %v7095_v13 = vsub.f32 %v12417_v55, %v7091_v43  ;;  %v8080_v50 = vpop.f32.mrf.mxu1  ;;  %7897 = vmax.xlane.f32.xlu0 %v7896_v48 }
0x3004   :  { %v12465_v47 = vmul.f32 0.35355338, %v8080_v50  ;;  %v7289_v52 = vpop.xlane.xlu1 %7288  ;;  %v8094_v54 = vsel %vm523_vm2, %v12460_v49, -inf }
0x3005   :  { %10947 = vpow2.f32 %v7099_v14  ;;  %v7097_v41 = vmul.f32 1.442695, %v7095_v13  ;;  %v7291_v2 = vsub.f32 %v12420_v60, %v7289_v52  ;;  %8095 = vmax.xlane.f32.xlu1 %v8094_v54 }
0x3006   :  { %v7286_v6 = vpop.xlane.xlu0 %7285  ;;  %v10571_v63 = vpop.f32.mrf.mxu1  ;;  %v8091_v62 = vsel %vm523_vm2, %v12465_v47, -inf }
0x3007   :  { %10949 = vpow2.f32 %v7097_v41  ;;  %v7294_v57 = vmul.f32 1.442695, %v7291_v2  ;;  %v7290_v45 = vsub.f32 %v12424_v19, %v7286_v6  ;;  %v12473_v10 = vmul.f32 0.35355338, %v10571_v63  ;;  %8092 = vmax.xlane.f32.xlu0 %v8091_v62 }
0x3008   :  { %v7484_v3 = vpop.xlane.xlu1 %7483  ;;  %v8275_v0 = vpop.f32.mrf.mxu1 }
0x3009   :  { %10951 = vpow2.f32 %v7294_v57  ;;  %v7292_v55 = vmul.f32 1.442695, %v7290_v45  ;;  %v7486_v11 = vsub.f32 %v12428_v23, %v7484_v3  ;;  %v12476_v12 = vmul.f32 0.35355338, %v8275_v0 }
0x300a   :  { %v7481_v60 = vpop.xlane.xlu0 %7480  ;;  %v8289_v15 = vsel %vm523_vm2, %v12473_v10, -inf }
0x300b   :  { %10953 = vpow2.f32 %v7292_v55  ;;  %v7489_v37 = vmul.f32 1.442695, %v7486_v11  ;;  %v7485_v53 = vsub.f32 %v12432_v24, %v7481_v60  ;;  %8290 = vmax.xlane.f32.xlu1 %v8289_v15  ;;  %v8286_v19 = vsel %vm523_vm2, %v12476_v12, -inf }
0x300c   :  { %8287 = vmax.xlane.f32.xlu0 %v8286_v19 }
0x300d   :  { %10955 = vpow2.f32 %v7489_v37  ;;  %v7487_v16 = vmul.f32 1.442695, %v7485_v53 }
0x300f   :  { %10957 = vpow2.f32 %v7487_v16 }
0x3012   :  { %v12483_v17 = vpop.eup %10947 }
0x3013   :  { %v7104_v23 = vsel %vm523_vm2, %v12483_v17, 0.0 }
0x3014   :  { %v12487_v59 = vpop.eup %10949  ;;  %7105 = vadd.xlane.f32.xlu1 %v7104_v23 }
0x3015   :  { %v7101_v20 = vsel %vm523_vm2, %v12487_v59, 0.0 }
0x3016   :  { %v12491_v24 = vpop.eup %10951  ;;  %7102 = vadd.xlane.f32.xlu0 %v7101_v20 }
0x3017   :  { %v7299_v51 = vsel %vm523_vm2, %v12491_v24, 0.0 }
0x3018   :  { %v12495_v26 = vpop.eup %10953  ;;  %7300 = vadd.xlane.f32.xlu1 %v7299_v51 }
0x3019   :  { %v7296_v27 = vsel %vm523_vm2, %v12495_v26, 0.0 }
0x301a   :  { %v12499_v21 = vpop.eup %10955  ;;  %7297 = vadd.xlane.f32.xlu0 %v7296_v27 }
0x301b   :  { %v7494_v28 = vsel %vm523_vm2, %v12499_v21, 0.0 }
0x301c   :  { %v12503_v29 = vpop.eup %10957  ;;  %7495 = vadd.xlane.f32.xlu1 %v7494_v28 }
0x301d   :  { %v7491_v30 = vsel %vm523_vm2, %v12503_v29, 0.0 }
0x301e   :  { %7492 = vadd.xlane.f32.xlu0 %v7491_v30 }
0x3027   :  { %v6911_v4 = vpop.xlane.xlu1 %6910 }
0x3029   :  { %v6908_v36 = vpop.xlane.xlu0 %6907 }
0x302a   :  { %10959 = vrcp.f32 %v6908_v36 }
0x302b   :  { %v7706_v40 = vpop.xlane.xlu1 %7705 }
0x302c   :  { %v7708_v56 = vsub.f32 %v12440_v33, %v7706_v40 }
0x302d   :  { %7111 = vrot.lane.b32.xlu1 %v12329_v46, %s12845_s0  ;;  %v7703_v18 = vpop.xlane.xlu0 %7702 }
0x302e   :  { %v7711_v25 = vmul.f32 1.442695, %v7708_v56  ;;  %v7707_v9 = vsub.f32 %v12446_v38, %v7703_v18 }
0x3030   :  { %10961 = vpow2.f32 %v7711_v25  ;;  %v7709_v22 = vmul.f32 1.442695, %v7707_v9 }
0x3031   :  { %7723 = vrot.lane.b32.xlu1 %v12326_v5, %s12852_s3 }
0x3032   :  { %10963 = vpow2.f32 %v7709_v22 }
0x3034   :  { %6916 = vrot.lane.b32.xlu0 %v12329_v46, %s12852_s3 }
0x3037   :  { %v10960_v42 = vpop.eup %10959 }
0x3038   :  { %7306 = vrot.lane.b32.xlu0 %v12329_v46, %s12847_s14  ;;  %v6913_v35 = vmul.f32 %v10960_v42, %v12444_v44 }
0x303a   :  { %10504 = vmatprep.mubr.msk.f32.mxu0 %vm523_vm2, %v6913_v35 }
0x303c   :  { %7501 = vrot.lane.b32.xlu0 %v12329_v46, %s12842_s21 }
0x303d   :  { %v12523_v34 = vpop.eup %10961 }
0x303e   :  { %v7716_v44 = vsel %vm523_vm2, %v12523_v34, 0.0 }
0x303f   :  { %v12527_v33 = vpop.eup %10963 }
0x3040   :  { %7918 = vrot.lane.b32.xlu0 %v12326_v5, %s12845_s0  ;;  %v7713_v46 = vsel %vm523_vm2, %v12527_v33, 0.0  ;;  %s12860_s0 = sld [smem:[#allocation24_spill]] }
0x3055   :  { %7717 = vadd.xlane.f32.xlu1 %v7716_v44 }
0x305f   :  { %7714 = vadd.xlane.f32.xlu0 %v7713_v46 }
0x308a   :  { %v7901_v39 = vpop.xlane.xlu1 %7900 }
0x308b   :  { %v7903_v43 = vsub.f32 %v12454_v58, %v7901_v39 }
0x308c   :  { %v7898_v48 = vpop.xlane.xlu0 %7897 }
0x308d   :  { %v7906_v14 = vmul.f32 1.442695, %v7903_v43  ;;  %v7902_v38 = vsub.f32 %v12456_v7, %v7898_v48 }
0x308e   :  { %v8096_v13 = vpop.xlane.xlu1 %8095 }
0x308f   :  { %10965 = vpow2.f32 %v7906_v14  ;;  %v7904_v50 = vmul.f32 1.442695, %v7902_v38  ;;  %v8098_v52 = vsub.f32 %v12460_v49, %v8096_v13 }
0x3090   :  { %v8093_v54 = vpop.xlane.xlu0 %8092 }
0x3091   :  { %10967 = vpow2.f32 %v7904_v50  ;;  %v8101_v41 = vmul.f32 1.442695, %v8098_v52  ;;  %v8097_v2 = vsub.f32 %v12465_v47, %v8093_v54 }
0x3093   :  { %10969 = vpow2.f32 %v8101_v41  ;;  %v8099_v6 = vmul.f32 1.442695, %v8097_v2 }
0x3094   :  { %v8291_v63 = vpop.xlane.xlu1 %8290 }
0x3095   :  { %10971 = vpow2.f32 %v8099_v6  ;;  %v8293_v58 = vsub.f32 %v12473_v10, %v8291_v63  ;;  %v8288_v62 = vpop.xlane.xlu0 %8287 }
0x3096   :  { %v8292_v57 = vsub.f32 %v12476_v12, %v8288_v62 }
0x3097   :  { %v8296_v7 = vmul.f32 1.442695, %v8293_v58 }
0x3098   :  { %v8294_v45 = vmul.f32 1.442695, %v8292_v57 }
0x3099   :  { %10973 = vpow2.f32 %v8296_v7 }
0x309a   :  { %10975 = vpow2.f32 %v8294_v45 }
0x309b   :  { %10977 = vrcp.f32 %v6911_v4 }
0x309c   :  { %v12537_v3 = vpop.eup %10965 }
0x309d   :  { %v7106_v49 = vpop.xlane.xlu1 %7105  ;;  %v7911_v47 = vsel %vm523_vm2, %v12537_v3, 0.0 }
0x309e   :  { %v12541_v0 = vpop.eup %10967  ;;  %7912 = vadd.xlane.f32.xlu1 %v7911_v47  ;;  %10979 = vrcp.f32 %v7106_v49 }
0x309f   :  { %v7103_v55 = vpop.xlane.xlu0 %7102  ;;  %v7908_v10 = vsel %vm523_vm2, %v12541_v0, 0.0 }
0x30a0   :  { %v12545_v11 = vpop.eup %10969  ;;  %10981 = vrcp.f32 %v7103_v55  ;;  %7909 = vadd.xlane.f32.xlu0 %v7908_v10  ;;  %v9592_v55 = vld [vmem:[%s12829_s11 + $0x38] sm:$0xff]  ;;  %v9591_v10 = vld [vmem:[%s12829_s11 + $0x30] sm:$0xff] }
0x30a1   :  { %v7301_v12 = vpop.xlane.xlu1 %7300  ;;  %v8106_v60 = vsel %vm523_vm2, %v12545_v11, 0.0  ;;  %10577 = vmatprep.subr.mxu1 %v9592_v55 }
0x30a2   :  { %v12549_v15 = vpop.eup %10971  ;;  %8107 = vadd.xlane.f32.xlu1 %v8106_v60  ;;  %10983 = vrcp.f32 %v7301_v12  ;;  %10578 = vmatpush3.msra.mxu1 %v9592_v55  ;;  %v9590_v12 = vld [vmem:[%s12829_s11 + $0x28] sm:$0xff] }
0x30a3   :  { %v7298_v37 = vpop.xlane.xlu0 %7297  ;;  %v8103_v53 = vsel %vm523_vm2, %v12549_v15, 0.0  ;;  %10579 = vmatprep.subr.mxu1 %v9591_v10 }
0x30a4   :  { %10985 = vrcp.f32 %v7298_v37  ;;  %8104 = vadd.xlane.f32.xlu0 %v8103_v53  ;;  %10580 = vmatpush3.msra.mxu1 %v9591_v10 }
0x30a5   :  { %v7496_v19 = vpop.xlane.xlu1 %7495  ;;  %10581 = vmatprep.subr.mxu1 %v9590_v12 }
0x30a6   :  { %v12553_v16 = vpop.eup %10973  ;;  %10987 = vrcp.f32 %v7496_v19  ;;  %10582 = vmatpush3.msra.mxu1 %v9590_v12 }
0x30a7   :  { %v7493_v23 = vpop.xlane.xlu0 %7492  ;;  %v8301_v20 = vsel %vm523_vm2, %v12553_v16, 0.0  ;;  %v12557_v51 = vpop.eup %10975 }
0x30a8   :  { %10989 = vrcp.f32 %v7493_v23  ;;  %8302 = vadd.xlane.f32.xlu1 %v8301_v20  ;;  %v10978_v27 = vpop.eup %10977  ;;  %v8298_v30 = vsel %vm523_vm2, %v12557_v51, 0.0 }
0x30a9   :  { %v6915_v4 = vmul.f32 %v10978_v27, %v12438_v8  ;;  %v7112_v35 = vpop.permute.xlu1 %7111 }
0x30ab   :  { %v6917_v28 = vpop.permute.xlu0 %6916  ;;  %v10980_v36 = vpop.eup %10979 }
0x30ac   :  { %10502 = vmatprep.subr.mxu0 %v6917_v28  ;;  %8299 = vadd.xlane.f32.xlu1 %v8298_v30  ;;  %v7110_v18 = vmul.f32 %v10980_v36, %v12483_v17 }
0x30ad   :  { %v10982_v42 = vpop.eup %10981  ;;  %10503 = vmatpush3.msra.mxu0 %v6917_v28  ;;  %v7724_v43 = vpop.permute.xlu1 %7723 }
0x30ae   :  { %10505 = vmatmul.mubr.msk.f32.vlgmr.msra.gmra.mxu0 %vm523_vm2, %v6915_v4  ;;  %10512 = vmatprep.subr.mxu0 %v7112_v35  ;;  %v7108_v40 = vmul.f32 %v10982_v42, %v12487_v59 }
0x30af   :  { %v7307_v56 = vpop.permute.xlu0 %7306  ;;  %10513 = vmatpush3.msra.mxu0 %v7112_v35  ;;  %v10984_v25 = vpop.eup %10983 }
0x30b0   :  { %10514 = vmatprep.mubr.msk.f32.mxu0 %vm523_vm2, %v7108_v40  ;;  %10522 = vmatprep.subr.mxu0 %v7307_v56  ;;  %v7305_v59 = vmul.f32 %v10984_v25, %v12491_v24 }
0x30b1   :  { %v10986_v9 = vpop.eup %10985 }
0x30b2   :  { %10515 = vmatmul.mubr.msk.f32.vlgmr.msra.gmra.mxu0 %vm523_vm2, %v7110_v18  ;;  %v7303_v8 = vmul.f32 %v10986_v9, %v12495_v26 }
0x30b3   :  { %10523 = vmatpush3.msra.mxu0 %v7307_v56  ;;  %v7502_v22 = vpop.permute.xlu0 %7501  ;;  %v10988_v44 = vpop.eup %10987 }
0x30b4   :  { %10524 = vmatprep.mubr.msk.f32.mxu0 %vm523_vm2, %v7303_v8  ;;  %10532 = vmatprep.subr.mxu0 %v7502_v22  ;;  %v7500_v17 = vmul.f32 %v10988_v44, %v12499_v21 }
0x30b5   :  { %v10990_v46 = vpop.eup %10989 }
0x30b6   :  { %10525 = vmatmul.mubr.msk.f32.vlgmr.msra.gmra.mxu0 %vm523_vm2, %v7305_v59  ;;  %v7498_v39 = vmul.f32 %v10990_v46, %v12503_v29 }
0x30b7   :  { %10533 = vmatpush3.msra.mxu0 %v7502_v22  ;;  %v7919_v26 = vpop.permute.xlu0 %7918 }
0x30b8   :  { %10542 = vmatprep.subr.mxu0 %v7724_v43  ;;  %10534 = vmatprep.mubr.msk.f32.mxu0 %vm523_vm2, %v7498_v39 }
0x30ba   :  { %10535 = vmatmul.mubr.msk.f32.vlgmr.msra.gmra.mxu0 %vm523_vm2, %v7500_v17  ;;  %8308 = vrot.lane.b32.xlu0 %v12326_v5, %s12842_s21 }
0x30bb   :  { %10543 = vmatpush3.msra.mxu0 %v7724_v43 }
0x30bc   :  { %10552 = vmatprep.subr.mxu0 %v7919_v26 }
0x30bd   :  { %8113 = vrot.lane.b32.xlu1 %v12326_v5, %s12847_s14 }
0x30de   :  { %v7718_v24 = vpop.xlane.xlu1 %7717 }
0x30df   :  { %10991 = vrcp.f32 %v7718_v24 }
0x30e8   :  { %v7715_v29 = vpop.xlane.xlu0 %7714 }
0x30e9   :  { %10993 = vrcp.f32 %v7715_v29 }
0x30ec   :  { %v10992_v48 = vpop.eup %10991 }
0x30ed   :  { %v7722_v21 = vmul.f32 %v10992_v48, %v12523_v34 }
0x30f6   :  { %v10994_v14 = vpop.eup %10993 }
0x30f7   :  { %v7720_v38 = vmul.f32 %v10994_v14, %v12527_v33 }
0x30f9   :  { %10544 = vmatprep.mubr.msk.f32.mxu0 %vm523_vm2, %v7720_v38 }
0x30fa   :  { %10545 = vmatmul.mubr.msk.f32.vlgmr.msra.gmra.mxu0 %vm523_vm2, %v7722_v21 }
0x30fb   :  { %10553 = vmatpush3.msra.mxu0 %v7919_v26 }
0x3127   :  { %v7913_v13 = vpop.xlane.xlu1 %7912 }
0x3128   :  { %10995 = vrcp.f32 %v7913_v13 }
0x3129   :  { %v7910_v50 = vpop.xlane.xlu0 %7909 }
0x312a   :  { %10997 = vrcp.f32 %v7910_v50 }
0x312b   :  { %v8108_v5 = vpop.xlane.xlu1 %8107 }
0x312c   :  { %10999 = vrcp.f32 %v8108_v5 }
0x312d   :  { %v8105_v52 = vpop.xlane.xlu0 %8104 }
0x312e   :  { %11001 = vrcp.f32 %v8105_v52 }
0x3131   :  { %v8303_v54 = vpop.xlane.xlu1 %8302  ;;  %v8309_v57 = vpop.permute.xlu0 %8308 }
0x3132   :  { %11003 = vrcp.f32 %v8303_v54  ;;  %v9593_v54 = vld [vmem:[%s12830_s22 + $0x1] ss:$0 sm:$0xff] }
0x3135   :  { %v8300_v41 = vpop.xlane.xlu1 %8299  ;;  %v10996_v2 = vpop.eup %10995 }
0x3136   :  { %11005 = vrcp.f32 %v8300_v41  ;;  %v7917_v63 = vmul.f32 %v10996_v2, %v12537_v3 }
0x3137   :  { %v10998_v33 = vpop.eup %10997 }
0x3138   :  { %v7915_v34 = vmul.f32 %v10998_v33, %v12541_v0 }
0x3139   :  { %v8114_v6 = vpop.permute.xlu1 %8113  ;;  %v11000_v58 = vpop.eup %10999 }
0x313a   :  { %10562 = vmatprep.subr.mxu0 %v8114_v6  ;;  %10554 = vmatprep.mubr.msk.f32.mxu0 %vm523_vm2, %v7915_v34  ;;  %v8112_v45 = vmul.f32 %v11000_v58, %v12545_v11 }
0x313b   :  { %v11002_v62 = vpop.eup %11001  ;;  %10555 = vmatmul.mubr.msk.f32.vlgmr.msra.gmra.mxu0 %vm523_vm2, %v7917_v63 }
0x313c   :  { %10563 = vmatpush3.msra.mxu0 %v8114_v6  ;;  %v8110_v7 = vmul.f32 %v11002_v62, %v12549_v15  ;;  %v9589_v15 = vld [vmem:[%s12829_s11 + $0x20] sm:$0xff] }
0x313d   :  { %10572 = vmatprep.subr.mxu0 %v8309_v57  ;;  %10583 = vmatprep.subr.mxu1 %v9589_v15 }
0x313e   :  { %10564 = vmatprep.mubr.msk.f32.mxu0 %vm523_vm2, %v8110_v7  ;;  %10584 = vmatpush3.msra.mxu1 %v9589_v15 }
0x313f   :  { %10565 = vmatmul.mubr.msk.f32.vlgmr.msra.gmra.mxu0 %vm523_vm2, %v8112_v45  ;;  %v11004_v3 = vpop.eup %11003 }
0x3140   :  { %10573 = vmatpush3.msra.mxu0 %v8309_v57  ;;  %v8307_v0 = vmul.f32 %v11004_v3, %v12553_v16 }
0x3143   :  { %v11006_v49 = vpop.eup %11005 }
0x3144   :  { %v8305_v47 = vmul.f32 %v11006_v49, %v12557_v51 }
0x3146   :  { %10574 = vmatprep.mubr.msk.f32.mxu0 %vm523_vm2, %v8305_v47 }
0x3147   :  { %10575 = vmatmul.mubr.msk.f32.vlgmr.msra.gmra.mxu0 %vm523_vm2, %v8307_v0 }
0x316e   :  { %v10506_v11 = vpop.f32.mrf.mxu0 }
0x3170   :  { %v6991_v60 = vpop.f32.mrf.mxu0 }
0x3172   :  { %v10516_v37 = vpop.f32.mrf.mxu0 }
0x3173   :  { %7589 = vrot.lane.b32.xlu0 %v10516_v37, %s12849_s25 }
0x3174   :  { %v7186_v53 = vpop.f32.mrf.mxu0 }
0x3175   :  { %7587 = vrot.lane.b32.xlu1 %v7186_v53, %s12849_s25 }
0x3176   :  { %v10526_v19 = vpop.f32.mrf.mxu0 }
0x3177   :  { %7597 = vrot.lane.b32.xlu0 %v10526_v19, %s12850_s19  ;;  %v9603_v19 = vld [vmem:[%s12831_s28 + $0x38] sm:$0xff] }
0x3178   :  { %v7381_v16 = vpop.f32.mrf.mxu0  ;;  %10591 = vmatprep.subr.mxu0 %v9603_v19 }
0x3179   :  { %7595 = vrot.lane.b32.xlu1 %v7381_v16, %s12850_s19  ;;  %10592 = vmatpush3.msra.mxu0 %v9603_v19  ;;  %v9601_v16 = vld [vmem:[%s12831_s28 + $0x28] sm:$0xff] }
0x317a   :  { %v10536_v23 = vpop.f32.mrf.mxu0 }
0x317b   :  { %7605 = vrot.lane.b32.xlu0 %v10536_v23, %s12851_s4  ;;  %v9600_v23 = vld [vmem:[%s12831_s28 + $0x20] sm:$0xff] }
0x317c   :  { %v7576_v20 = vpop.f32.mrf.mxu0 }
0x317d   :  { %7603 = vrot.lane.b32.xlu1 %v7576_v20, %s12851_s4 }
0x31ba   :  { %v10546_v9 = vpop.f32.mrf.mxu0 }
0x31bc   :  { %v7798_v8 = vpop.f32.mrf.mxu0 }
0x31e5   :  { %v7590_v51 = vpop.permute.xlu0 %7589 }
0x31e6   :  { %v7610_v42 = vsel %vm523_vm2, %v10506_v11, %v7590_v51 }
0x31e7   :  { %v7588_v27 = vpop.permute.xlu1 %7587 }
0x31e8   :  { %v7609_v36 = vsel %vm523_vm2, %v6991_v60, %v7588_v27 }
0x31e9   :  { %v7598_v28 = vpop.permute.xlu0 %7597 }
0x31ea   :  { %v7612_v56 = vsel %vm609_vm3, %v7610_v42, %v7598_v28 }
0x31eb   :  { %v7596_v30 = vpop.permute.xlu1 %7595 }
0x31ec   :  { %v7611_v35 = vsel %vm609_vm3, %v7609_v36, %v7596_v30 }
0x31ed   :  { %v7606_v4 = vpop.permute.xlu0 %7605 }
0x31ee   :  { %v7614_v18 = vsel %vm1353_vm4, %v7612_v56, %v7606_v4 }
0x31ef   :  { %v7604_v40 = vpop.permute.xlu1 %7603 }
0x31f0   :  { %v7613_v25 = vsel %vm1353_vm4, %v7611_v35, %v7604_v40 }
0x31f1   :  { %10585 = vmatprep.mubr.msk.f32.mxu1 %vm279_vm1, %v7613_v25 }
0x31f2   :  { %10586 = vmatmul.mubr.msk.f32.vlgmr.msra.gmra.mxu1 %vm279_vm1, %v7614_v18 }
0x31fb   :  { %v10556_v22 = vpop.f32.mrf.mxu0 }
0x31fc   :  { %8396 = vrot.lane.b32.xlu0 %v10556_v22, %s12849_s25 }
0x31fd   :  { %v7993_v44 = vpop.f32.mrf.mxu0 }
0x31fe   :  { %8394 = vrot.lane.b32.xlu1 %v7993_v44, %s12849_s25 }
0x31ff   :  { %v10566_v59 = vpop.f32.mrf.mxu0 }
0x3200   :  { %8404 = vrot.lane.b32.xlu0 %v10566_v59, %s12850_s19 }
0x3201   :  { %v8188_v46 = vpop.f32.mrf.mxu0 }
0x3202   :  { %8402 = vrot.lane.b32.xlu1 %v8188_v46, %s12850_s19  ;;  %v9598_v46 = vld [vmem:[%s12833_s23 + $0x1] ss:$0 sm:$0xff] }
0x3207   :  { %v10576_v39 = vpop.f32.mrf.mxu0 }
0x3208   :  { %8412 = vrot.lane.b32.xlu0 %v10576_v39, %s12851_s4 }
0x3209   :  { %v8383_v43 = vpop.f32.mrf.mxu0 }
0x320a   :  { %8410 = vrot.lane.b32.xlu1 %v8383_v43, %s12851_s4  ;;  %s12859_s4 = sld [smem:[#allocation26_spill]] }
0x326e   :  { %v8397_v17 = vpop.permute.xlu0 %8396 }
0x326f   :  { %v8417_v38 = vsel %vm523_vm2, %v10546_v9, %v8397_v17 }
0x3270   :  { %v8395_v26 = vpop.permute.xlu1 %8394 }
0x3271   :  { %v8416_v48 = vsel %vm523_vm2, %v7798_v8, %v8395_v26  ;;  %v9599_v26 = vld [vmem:[%s12834_s18 + $0x1] ss:$0 sm:$0xff] }
0x3272   :  { %v8405_v24 = vpop.permute.xlu0 %8404 }
0x3273   :  { %v8419_v50 = vsel %vm609_vm3, %v8417_v38, %v8405_v24  ;;  %v9615_v38 = vld [vmem:[%s12832_s26 + $0x70] sm:$0xff] }
0x3274   :  { %v8403_v29 = vpop.permute.xlu1 %8402 }
0x3275   :  { %v8418_v21 = vsel %vm609_vm3, %v8416_v48, %v8403_v29 }
0x327a   :  { %v8413_v14 = vpop.permute.xlu0 %8412 }
0x327b   :  { %v8421_v52 = vsel %vm1353_vm4, %v8419_v50, %v8413_v14  ;;  %v9616_v14 = vld [vmem:[%s12832_s26 + $0x78] sm:$0xff] }
0x327c   :  { %v8411_v13 = vpop.permute.xlu1 %8410  ;;  %10605 = vmatprep.subr.mxu1 %v9616_v14  ;;  %v9612_v50 = vld [vmem:[%s12832_s26 + $0x58] sm:$0xff] }
0x327d   :  { %v8420_v5 = vsel %vm1353_vm4, %v8418_v21, %v8411_v13  ;;  %10606 = vmatpush3.msra.mxu1 %v9616_v14  ;;  %v9614_v21 = vld [vmem:[%s12832_s26 + $0x68] sm:$0xff]  ;;  %v9613_v13 = vld [vmem:[%s12832_s26 + $0x60] sm:$0xff] }
0x327e   :  { %10588 = vmatprep.mubr.msk.f32.mxu1 %vm279_vm1, %v8420_v5  ;;  %10607 = vmatprep.subr.mxu1 %v9615_v38  ;;  %v9611_v5 = vld [vmem:[%s12832_s26 + $0x50] sm:$0xff] }
0x327f   :  { %10589 = vmatmul.mubr.msk.f32.gmra.mxu1 %vm279_vm1, %v8421_v52  ;;  %v9610_v52 = vld [vmem:[%s12832_s26 + $0x48] sm:$0xff] }
0x3280   :  { %10608 = vmatpush3.msra.mxu1 %v9615_v38 }
0x3281   :  { %10609 = vmatprep.subr.mxu1 %v9614_v21 }
0x3282   :  { %10610 = vmatpush3.msra.mxu1 %v9614_v21 }
0x3283   :  { %10611 = vmatprep.subr.mxu1 %v9613_v13 }
0x3284   :  { %10612 = vmatpush3.msra.mxu1 %v9613_v13 }
0x3285   :  { %10613 = vmatprep.subr.mxu1 %v9612_v50 }
0x3286   :  { %10614 = vmatpush3.msra.mxu1 %v9612_v50 }
0x3287   :  { %10615 = vmatprep.subr.mxu1 %v9611_v5 }
0x3288   :  { %10616 = vmatpush3.msra.mxu1 %v9611_v5 }
0x3289   :  { %10617 = vmatprep.subr.mxu1 %v9610_v52 }
0x328a   :  { %10618 = vmatpush3.msra.mxu1 %v9610_v52 }
0x32b2   :  { %v10587_v41 = vpop.f32.mrf.mxu1 }
0x32b3   :  { %v8516_v2 = vadd.f32 %v10587_v41, %v9593_v54 }
0x32b4   :  { %v8510_v33 = vpop.f32.mrf.mxu1 }
0x32b5   :  { %v8530_v34 = vadd.f32 %v8516_v2, %v12344_v61  ;;  %v8511_v6 = vadd.f32 %v9593_v54, %v8510_v33 }
0x32b7   :  { %v8529_v63 = vadd.f32 %v8511_v6, %v12342_v1  ;;  %v8538_v58 = vsel %vm279_vm1, %v8530_v34, 0.0 }
0x32b8   :  { %8539 = vadd.xlane.f32.xlu0 %v8538_v58 }
0x32b9   :  { %v8535_v62 = vsel %vm279_vm1, %v8529_v63, 0.0 }
0x32ba   :  { %8536 = vadd.xlane.f32.xlu1 %v8535_v62 }
0x333f   :  { %v10590_v57 = vpop.f32.mrf.mxu1 }
0x3340   :  { %v8526_v7 = vadd.f32 %v10590_v57, %v9593_v54 }
0x3341   :  { %v8540_v45 = vpop.xlane.xlu0 %8539  ;;  %v8520_v3 = vpop.f32.mrf.mxu1 }
0x3342   :  { %v8532_v49 = vadd.f32 %v8526_v7, %v12359_v32  ;;  %v8548_v47 = vmul.f32 0.03125, %v8540_v45  ;;  %v8521_v0 = vadd.f32 %v9593_v54, %v8520_v3  ;;  %v9609_v54 = vld [vmem:[%s12832_s26 + $0x40] sm:$0xff] }
0x3343   :  { %v8537_v55 = vpop.xlane.xlu1 %8536  ;;  %10619 = vmatprep.subr.mxu1 %v9609_v54 }
0x3344   :  { %v8552_v61 = vsub.f32 %v8530_v34, %v8548_v47  ;;  %v8531_v1 = vadd.f32 %v8521_v0, %v12357_v31  ;;  %v8547_v10 = vmul.f32 0.03125, %v8537_v55  ;;  %v8544_v11 = vsel %vm279_vm1, %v8532_v49, 0.0  ;;  %v9602_v31 = vld [vmem:[%s12831_s28 + $0x30] sm:$0xff]  ;;  %10620 = vmatpush3.msra.mxu1 %v9609_v54  ;;  %v9604_v0 = vld [vmem:[%s12835_s16 + $0x1] ss:$0 sm:$0xff] }
0x3345   :  { %8545 = vadd.xlane.f32.xlu1 %v8544_v11  ;;  %10593 = vmatprep.subr.mxu0 %v9602_v31 }
0x3346   :  { %v8551_v12 = vsub.f32 %v8529_v63, %v8547_v10  ;;  %v8541_v60 = vsel %vm279_vm1, %v8531_v1, 0.0  ;;  %v8556_v15 = vmul.f32 %v8552_v61, %v8552_v61  ;;  %10594 = vmatpush3.msra.mxu0 %v9602_v31  ;;  %v9617_v31 = vld [vmem:[%s12836_s15 + $0x1] ss:$0 sm:$0xff] }
0x3347   :  { %8542 = vadd.xlane.f32.xlu0 %v8541_v60  ;;  %10595 = vmatprep.subr.mxu0 %v9601_v16 }
0x3348   :  { %v8562_v32 = vsel %vm279_vm1, %v8556_v15, 0.0  ;;  %v8555_v37 = vmul.f32 %v8551_v12, %v8551_v12  ;;  %10596 = vmatpush3.msra.mxu0 %v9601_v16 }
0x3349   :  { %8563 = vadd.xlane.f32.xlu1 %v8562_v32  ;;  %10597 = vmatprep.subr.mxu0 %v9600_v23 }
0x334a   :  { %v8559_v53 = vsel %vm279_vm1, %v8555_v37, 0.0  ;;  %10598 = vmatpush3.msra.mxu0 %v9600_v23 }
0x334b   :  { %8560 = vadd.xlane.f32.xlu0 %v8559_v53 }
0x33ce   :  { %v8546_v20 = vpop.xlane.xlu1 %8545 }
0x33cf   :  { %v8550_v51 = vmul.f32 0.03125, %v8546_v20 }
0x33d0   :  { %v8543_v27 = vpop.xlane.xlu0 %8542 }
0x33d1   :  { %v8554_v28 = vsub.f32 %v8532_v49, %v8550_v51  ;;  %v8549_v30 = vmul.f32 0.03125, %v8543_v27 }
0x33d2   :  { %v8564_v36 = vpop.xlane.xlu1 %8563 }
0x33d3   :  { %v8553_v4 = vsub.f32 %v8531_v1, %v8549_v30  ;;  %v8572_v42 = vmul.f32 0.03125, %v8564_v36  ;;  %v8558_v35 = vmul.f32 %v8554_v28, %v8554_v28 }
0x33d4   :  { %v8561_v40 = vpop.xlane.xlu0 %8560 }
0x33d5   :  { %v8576_v56 = vadd.f32 1e-05, %v8572_v42  ;;  %v8571_v25 = vmul.f32 0.03125, %v8561_v40  ;;  %v8568_v18 = vsel %vm279_vm1, %v8558_v35, 0.0  ;;  %v8557_v9 = vmul.f32 %v8553_v4, %v8553_v4 }
0x33d6   :  { %8569 = vadd.xlane.f32.xlu1 %v8568_v18 }
0x33d7   :  { %11007 = vrsqrt.f32 %v8576_v56  ;;  %v8575_v8 = vadd.f32 1e-05, %v8571_v25  ;;  %v8565_v22 = vsel %vm279_vm1, %v8557_v9, 0.0 }
0x33d8   :  { %8566 = vadd.xlane.f32.xlu0 %v8565_v22 }
0x33d9   :  { %11009 = vrsqrt.f32 %v8575_v8 }
0x33e4   :  { %v11008_v44 = vpop.eup %11007 }
0x33e5   :  { %v8584_v59 = vmul.f32 %v11008_v44, %v8552_v61 }
0x33e6   :  { %v11010_v39 = vpop.eup %11009 }
0x33e7   :  { %v8583_v43 = vmul.f32 %v11010_v39, %v8551_v12  ;;  %v8592_v17 = vmul.f32 %v9598_v46, %v8584_v59 }
0x33e9   :  { %v8591_v24 = vmul.f32 %v9598_v46, %v8583_v43  ;;  %v12648_v48 = vadd.f32 %v9599_v26, %v8592_v17 }
0x33eb   :  { %v12646_v29 = vadd.f32 %v9599_v26, %v8591_v24 }
0x33ed   :  { %10599 = vmatprep.mubr.msk.f32.mxu0 %vm279_vm1, %v12646_v29 }
0x33ee   :  { %10600 = vmatmul.mubr.msk.f32.vlgmr.msra.gmra.mxu0 %vm279_vm1, %v12648_v48 }
0x345f   :  { %v8570_v41 = vpop.xlane.xlu1 %8569 }
0x3460   :  { %v8574_v2 = vmul.f32 0.03125, %v8570_v41 }
0x3461   :  { %v8567_v33 = vpop.xlane.xlu0 %8566 }
0x3462   :  { %v8578_v34 = vadd.f32 1e-05, %v8574_v2  ;;  %v8573_v6 = vmul.f32 0.03125, %v8567_v33 }
0x3464   :  { %11011 = vrsqrt.f32 %v8578_v34  ;;  %v8577_v63 = vadd.f32 1e-05, %v8573_v6 }
0x3466   :  { %11013 = vrsqrt.f32 %v8577_v63 }
0x3471   :  { %v11012_v58 = vpop.eup %11011 }
0x3472   :  { %v8586_v62 = vmul.f32 %v11012_v58, %v8554_v28 }
0x3473   :  { %v11014_v57 = vpop.eup %11013 }
0x3474   :  { %v8585_v7 = vmul.f32 %v11014_v57, %v8553_v4  ;;  %v8594_v45 = vmul.f32 %v9598_v46, %v8586_v62  ;;  %v9622_v62 = vld [vmem:[%s12837_s17 + $0x1] ss:$0 sm:$0xff] }
0x3476   :  { %v8593_v3 = vmul.f32 %v9598_v46, %v8585_v7  ;;  %v8602_v47 = vadd.f32 %v9599_v26, %v8594_v45  ;;  %v9623_v45 = vld [vmem:[%s12838_s13 + $0x1] ss:$0 sm:$0xff] }
0x3478   :  { %v8601_v49 = vadd.f32 %v9599_v26, %v8593_v3 }
0x347a   :  { %10602 = vmatprep.mubr.msk.f32.mxu0 %vm279_vm1, %v8601_v49 }
0x347b   :  { %10603 = vmatmul.mubr.msk.f32.gmra.mxu0 %vm279_vm1, %v8602_v47 }
0x34ae   :  { %v10601_v55 = vpop.f32.mrf.mxu0 }
0x34af   :  { %v8697_v61 = vadd.f32 %v10601_v55, %v9604_v0 }
0x34b0   :  { %v8691_v1 = vpop.f32.mrf.mxu0 }
0x34b1   :  { %v8692_v10 = vadd.f32 %v9604_v0, %v8691_v1  ;;  %v8711_v12 = vmax.f32 %v8697_v61, 0.0 }
0x34b3   :  { %v8710_v11 = vmax.f32 %v8692_v10, 0.0 }
0x34b5   :  { %10621 = vmatprep.mubr.msk.f32.mxu1 %vm178_vm0, %v8710_v11 }
0x34b6   :  { %10622 = vmatmul.mubr.msk.f32.vlgmr.msra.gmra.mxu1 %vm178_vm0, %v8711_v12 }
0x353b   :  { %v10604_v60 = vpop.f32.mrf.mxu0 }
0x353c   :  { %v8707_v15 = vadd.f32 %v10604_v60, %v9604_v0 }
0x353d   :  { %v8701_v32 = vpop.f32.mrf.mxu0 }
0x353e   :  { %v8702_v37 = vadd.f32 %v9604_v0, %v8701_v32  ;;  %v8713_v19 = vmax.f32 %v8707_v15, 0.0 }
0x3540   :  { %v8712_v53 = vmax.f32 %v8702_v37, 0.0 }
0x3542   :  { %10624 = vmatprep.mubr.msk.f32.mxu1 %vm178_vm0, %v8712_v53 }
0x3543   :  { %10625 = vmatmul.mubr.msk.f32.gmra.mxu1 %vm178_vm0, %v8713_v19 }
0x3576   :  { %v10623_v16 = vpop.f32.mrf.mxu1 }
0x3577   :  { %v8812_v23 = vadd.f32 %v10623_v16, %v9617_v31 }
0x3578   :  { %v8806_v20 = vpop.f32.mrf.mxu1 }
0x3579   :  { %v8826_v51 = vadd.f32 %v8812_v23, %v12648_v48  ;;  %v8807_v27 = vadd.f32 %v9617_v31, %v8806_v20 }
0x357b   :  { %v8825_v28 = vadd.f32 %v8807_v27, %v12646_v29  ;;  %v8834_v30 = vsel %vm279_vm1, %v8826_v51, 0.0 }
0x357c   :  { %8835 = vadd.xlane.f32.xlu1 %v8834_v30 }
0x357d   :  { %v8831_v36 = vsel %vm279_vm1, %v8825_v28, 0.0 }
0x357e   :  { %8832 = vadd.xlane.f32.xlu0 %v8831_v36 }
0x3603   :  { %v10626_v4 = vpop.f32.mrf.mxu1 }
0x3604   :  { %v8822_v42 = vadd.f32 %v10626_v4, %v9617_v31 }
0x3605   :  { %v8816_v35 = vpop.f32.mrf.mxu1  ;;  %v8836_v40 = vpop.xlane.xlu1 %8835 }
0x3606   :  { %v8828_v56 = vadd.f32 %v8822_v42, %v8602_v47  ;;  %v8817_v25 = vadd.f32 %v9617_v31, %v8816_v35  ;;  %v8844_v18 = vmul.f32 0.03125, %v8836_v40 }
0x3607   :  { %v8833_v9 = vpop.xlane.xlu0 %8832 }
0x3608   :  { %v8827_v8 = vadd.f32 %v8817_v25, %v8601_v49  ;;  %v8848_v22 = vsub.f32 %v8826_v51, %v8844_v18  ;;  %v8843_v44 = vmul.f32 0.03125, %v8833_v9  ;;  %v8840_v59 = vsel %vm279_vm1, %v8828_v56, 0.0 }
0x3609   :  { %8841 = vadd.xlane.f32.xlu1 %v8840_v59 }
0x360a   :  { %v8847_v46 = vsub.f32 %v8825_v28, %v8843_v44  ;;  %v8837_v39 = vsel %vm279_vm1, %v8827_v8, 0.0  ;;  %v8852_v43 = vmul.f32 %v8848_v22, %v8848_v22 }
0x360b   :  { %8838 = vadd.xlane.f32.xlu0 %v8837_v39 }
0x360c   :  { %v8858_v17 = vsel %vm279_vm1, %v8852_v43, 0.0  ;;  %v8851_v26 = vmul.f32 %v8847_v46, %v8847_v46 }
0x360d   :  { %8859 = vadd.xlane.f32.xlu1 %v8858_v17 }
0x360e   :  { %v8855_v24 = vsel %vm279_vm1, %v8851_v26, 0.0 }
0x360f   :  { %8856 = vadd.xlane.f32.xlu0 %v8855_v24  ;;  %v9153_v24 = vld [vmem:[%s11300_s6] sm:$0x1]  ;;  %s12856_s6 = sld [smem:[#allocation23_spill]] }
0x3692   :  { %v8842_v29 = vpop.xlane.xlu1 %8841 }
0x3693   :  { %v8846_v48 = vmul.f32 0.03125, %v8842_v29 }
0x3694   :  { %v8839_v14 = vpop.xlane.xlu0 %8838 }
0x3695   :  { %v8850_v38 = vsub.f32 %v8828_v56, %v8846_v48  ;;  %v8845_v21 = vmul.f32 0.03125, %v8839_v14  ;;  %v9157_v48 = vsel %vm9156_vm5, %v9153_v24, 0.0  ;;  %v11114_v14 = vmov 0.0  }
0x3696   :  { %v8860_v13 = vpop.xlane.xlu1 %8859  ;;  %10627 = vmatprep.subr.mxu0 %v11114_v14  ;;  %10635 = vmatprep.mubr.msk.f32.mxu0 %vm11115_vm6, %v11114_v14 }
0x3697   :  { %v8849_v50 = vsub.f32 %v8827_v8, %v8845_v21  ;;  %v8868_v5 = vmul.f32 0.03125, %v8860_v13  ;;  %v8854_v52 = vmul.f32 %v8850_v38, %v8850_v38  ;;  %10649 = vmatprep.subr.mxu1 %v11114_v14  ;;  %10657 = vmatprep.mubr.msk.f32.mxu1 %vm11115_vm6, %v11114_v14  ;;  %v11036_v21 = vld [vmem:[%s11155_s29 + $0x10] sm:$0xff]  ;;  %v11037_v13 = vld [vmem:[%s11155_s29 + $0x8] sm:$0xff] }
0x3698   :  { %v8857_v54 = vpop.xlane.xlu0 %8856 }
0x3699   :  { %v8872_v41 = vadd.f32 1e-05, %v8868_v5  ;;  %v8867_v2 = vmul.f32 0.03125, %v8857_v54  ;;  %v8864_v33 = vsel %vm279_vm1, %v8854_v52, 0.0  ;;  %v8853_v34 = vmul.f32 %v8849_v50, %v8849_v50 }
0x369a   :  { %8865 = vadd.xlane.f32.xlu1 %v8864_v33 }
0x369b   :  { %11015 = vrsqrt.f32 %v8872_v41  ;;  %v8871_v6 = vadd.f32 1e-05, %v8867_v2  ;;  %v8861_v63 = vsel %vm279_vm1, %v8853_v34, 0.0 }
0x369c   :  { %8862 = vadd.xlane.f32.xlu0 %v8861_v63 }
0x369d   :  { %11017 = vrsqrt.f32 %v8871_v6 }
0x36a8   :  { %v11016_v58 = vpop.eup %11015 }
0x36a9   :  { %v8880_v57 = vmul.f32 %v11016_v58, %v8848_v22 }
0x36aa   :  { %v11018_v7 = vpop.eup %11017 }
0x36ab   :  { %v8888_v3 = vmul.f32 %v9622_v62, %v8880_v57  ;;  %v8879_v49 = vmul.f32 %v11018_v7, %v8847_v46  ;;  %v9624_v7 = vld [vmem:[%s12853_s24] ss:$0 sm:$0xff] }
0x36ad   :  { %v8896_v47 = vadd.f32 %v9623_v45, %v8888_v3  ;;  %v8887_v0 = vmul.f32 %v9622_v62, %v8879_v49 }
0x36af   :  { %v8904_v55 = vsel %vm279_vm1, %v8896_v47, 0.0  ;;  %v8895_v61 = vadd.f32 %v9623_v45, %v8887_v0 }
0x36b0   :  { %8905 = vadd.xlane.f32.xlu1 %v8904_v55 }
0x36b1   :  { %v8901_v1 = vsel %vm279_vm1, %v8895_v61, 0.0 }
0x36b2   :  { %8902 = vadd.xlane.f32.xlu0 %v8901_v1 }
0x3723   :  { %v8866_v10 = vpop.xlane.xlu1 %8865 }
0x3724   :  { %v8870_v11 = vmul.f32 0.03125, %v8866_v10 }
0x3725   :  { %v8863_v12 = vpop.xlane.xlu0 %8862 }
0x3726   :  { %v8874_v60 = vadd.f32 1e-05, %v8870_v11  ;;  %v8869_v15 = vmul.f32 0.03125, %v8863_v12 }
0x3728   :  { %11019 = vrsqrt.f32 %v8874_v60  ;;  %v8873_v32 = vadd.f32 1e-05, %v8869_v15 }
0x372a   :  { %11021 = vrsqrt.f32 %v8873_v32 }
0x3735   :  { %v11020_v37 = vpop.eup %11019 }
0x3736   :  { %v8882_v53 = vmul.f32 %v11020_v37, %v8850_v38  ;;  %v11035_v38 = vld [vmem:[%s11155_s29 + $0x18] sm:$0xff] }
0x3737   :  { %v11022_v19 = vpop.eup %11021  ;;  %10628 = vmatpush3.msra.mxu0 %v11035_v38 }
0x3738   :  { %v8890_v31 = vmul.f32 %v9622_v62, %v8882_v53  ;;  %v8881_v16 = vmul.f32 %v11022_v19, %v8849_v50  ;;  %10629 = vmatprep.subr.mxu0 %v11114_v14  ;;  %v11038_v50 = vld [vmem:[%s11155_s29] sm:$0xff]  ;;  %s12855_s29 = sld [smem:[#allocation25_spill]] }
0x3739   :  { %v8906_v23 = vpop.xlane.xlu1 %8905  ;;  %10630 = vmatpush3.msra.mxu0 %v11036_v21  ;;  %v9072_v21 = vld [vmem:[%s12856_s6 + $0x18] sm:$0xff] }
0x373a   :  { %v8914_v20 = vmul.f32 0.03125, %v8906_v23  ;;  %v8898_v51 = vadd.f32 %v9623_v45, %v8890_v31  ;;  %v8889_v27 = vmul.f32 %v9622_v62, %v8881_v16  ;;  %10631 = vmatprep.subr.mxu0 %v11114_v14 }
0x373b   :  { %v8903_v28 = vpop.xlane.xlu0 %8902  ;;  %10632 = vmatpush3.msra.mxu0 %v11037_v13  ;;  %v9071_v13 = vld [vmem:[%s12856_s6 + $0x10] sm:$0xff] }
0x373c   :  { %v8918_v30 = vsub.f32 %v8896_v47, %v8914_v20  ;;  %v8913_v36 = vmul.f32 0.03125, %v8903_v28  ;;  %v8910_v4 = vsel %vm279_vm1, %v8898_v51, 0.0  ;;  %v8897_v42 = vadd.f32 %v9623_v45, %v8889_v27  ;;  %10633 = vmatprep.subr.mxu0 %v11114_v14 }
0x373d   :  { %8911 = vadd.xlane.f32.xlu1 %v8910_v4  ;;  %10634 = vmatpush3.msra.mxu0 %v11038_v50  ;;  %v9070_v50 = vld [vmem:[%s12856_s6 + $0x8] sm:$0xff] }
0x373e   :  { %v8917_v35 = vsub.f32 %v8895_v61, %v8913_v36  ;;  %v8907_v40 = vsel %vm279_vm1, %v8897_v42, 0.0  ;;  %v8922_v56 = vmul.f32 %v8918_v30, %v8918_v30  ;;  %10638 = vmatprep.subr.mxu0 %v11114_v14  ;;  %v9625_v61 = vld [vmem:[%s12854_s30] ss:$0 sm:$0xff] }
0x373f   :  { %8908 = vadd.xlane.f32.xlu0 %v8907_v40  ;;  %v9172_v38 = vld [vmem:[%s12855_s29] sm:$0xff] }
0x3740   :  { %v8928_v25 = vsel %vm279_vm1, %v8922_v56, 0.0  ;;  %v8921_v18 = vmul.f32 %v8917_v35, %v8917_v35 }
0x3741   :  { %8929 = vadd.xlane.f32.xlu1 %v8928_v25 }
0x3742   :  { %v8925_v9 = vsel %vm279_vm1, %v8921_v18, 0.0 }
0x3743   :  { %8926 = vadd.xlane.f32.xlu0 %v8925_v9 }
0x37c6   :  { %v8912_v8 = vpop.xlane.xlu1 %8911 }
0x37c7   :  { %v8916_v22 = vmul.f32 0.03125, %v8912_v8 }
0x37c8   :  { %v8909_v44 = vpop.xlane.xlu0 %8908 }
0x37c9   :  { %v12688_v59 = vsub.f32 %v8898_v51, %v8916_v22  ;;  %v8915_v46 = vmul.f32 0.03125, %v8909_v44 }
0x37ca   :  { %v8930_v52 = vpop.xlane.xlu1 %8929 }
0x37cb   :  { %v12690_v39 = vsub.f32 %v8897_v42, %v8915_v46  ;;  %v8924_v43 = vmul.f32 %v12688_v59, %v12688_v59  ;;  %v8938_v41 = vmul.f32 0.03125, %v8930_v52 }
0x37cc   :  { %v8927_v5 = vpop.xlane.xlu0 %8926 }
0x37cd   :  { %v8934_v17 = vsel %vm279_vm1, %v8924_v43, 0.0  ;;  %v8923_v26 = vmul.f32 %v12690_v39, %v12690_v39  ;;  %v8937_v54 = vmul.f32 0.03125, %v8927_v5  ;;  %v8942_v33 = vadd.f32 1e-05, %v8938_v41  ;;  %v9175_v43 = vld [vmem:[%s12855_s29 + $0x18] sm:$0xff]  ;;  %v9069_v5 = vld [vmem:[%s12856_s6] sm:$0xff] }
0x37ce   :  { %8935 = vadd.xlane.f32.xlu1 %v8934_v17  ;;  %10650 = vmatpush3.msra.mxu1 %v9175_v43 }
0x37cf   :  { %v8931_v29 = vsel %vm279_vm1, %v8923_v26, 0.0  ;;  %v8941_v2 = vadd.f32 1e-05, %v8937_v54  ;;  %10651 = vmatprep.subr.mxu1 %v11114_v14 }
0x37d0   :  { %8932 = vadd.xlane.f32.xlu0 %v8931_v29 }
0x37d1   :  { %11023 = vrsqrt.f32 %v8941_v2 }
0x37d2   :  { %11025 = vrsqrt.f32 %v8942_v33  ;;  %v9154_v33 = vld [vmem:[%s11305_s27] sm:$0x1]  ;;  %s11116_s27 = smov [#allocation2]  }
0x37d3   :  { %s9282_s5 = sshll.u32 %s11116_s27, 4  ;;  %s9283_s5 = int_to_ptr.vmem [resolvable:$true] %s9282_s5 }
0x37d4   :  { %9158 = vadd.xlane.f32.xlu0 %v9157_v48  ;;  %v9173_v48 = vld [vmem:[%s12855_s29 + $0x8] sm:$0xff]  ;;  %s11040_s9 = scalar_lea.vmem %s9283_s5, 16  ;;  %s11044_s13 = scalar_lea.vmem %s9283_s5, 32 }
0x37d5   :  { %p11041_p0 = scmp.ne.s32.totalorder %s9283_s5, %s11040_s9  ;;  %p11045_p1 = scmp.lt.s32.totalorder %s9283_s5, %s9283_s5 }
0x37d6   :  { %p11046_p2 = scmp.lt.s32.totalorder %s11044_s13, %s11040_s9 }
0x37d8   :  { %p11047_p3 = por %p11046_p2, %p11045_p1 }
0x37da   :  { %p11048_p4 = pnand %p11047_p3, %p11041_p0 }
0x37de   :  { %v11024_v34 = vpop.eup %11023 }
0x37df   :  { %v11026_v6 = vpop.eup %11025  ;;  %v8949_v63 = vmul.f32 %v11024_v34, %v8917_v35 }
0x37e0   :  { %v8950_v62 = vmul.f32 %v11026_v6, %v8918_v30  ;;  %v9155_v6 = vld [vmem:[%s12857_s12] sm:$0x1] }
0x37e1   :  { %v8959_v3 = vmul.f32 %v9624_v7, %v8949_v63 }
0x37e2   :  { %v8960_v0 = vmul.f32 %v9624_v7, %v8950_v62 }
0x37e3   :  { %v8969_v10 = vadd.f32 %v9625_v61, %v8959_v3 }
0x37e4   :  { %v8970_v12 = vadd.f32 %v9625_v61, %v8960_v0  ;;  %v9176_v0 = vld [vmem:[%s12859_s4] sm:$0x1] }
0x37e5   :  { %v8973_v32 = vsel %vm279_vm1, %v8969_v10, 0.0 }
0x37e6   :  { %v8974_v53 = vsel %vm279_vm1, %v8970_v12, 0.0 }
0x37e7   :  { %v8975_v19 = vadd.f32 %v8974_v53, %v8973_v32 }
0x37e9   :  { %v8976_v16 = vrot.slane %v8975_v19, 4 }
0x37eb   :  { %v8977_v28 = vadd.f32 %v8976_v16, %v8975_v19 }
0x37ed   :  { %v8978_v42 = vrot.slane %v8977_v28, 2 }
0x37ef   :  { %v8979_v25 = vadd.f32 %v8978_v42, %v8977_v28 }
0x37f1   :  { %v8980_v8 = vrot.slane %v8979_v25, 1 }
0x3857   :  { %v8936_v58 = vpop.xlane.xlu1 %8935 }
0x3858   :  { %v8940_v57 = vmul.f32 0.03125, %v8936_v58 }
0x3859   :  { %v8933_v45 = vpop.xlane.xlu0 %8932 }
0x385a   :  { %v8944_v49 = vadd.f32 1e-05, %v8940_v57  ;;  %v8939_v47 = vmul.f32 0.03125, %v8933_v45  ;;  %v11039_v57 = vld [vmem:[%s12858_s20] ss:$0 sm:$0xff] }
0x385c   :  { %11027 = vrsqrt.f32 %v8944_v49  ;;  %v8943_v55 = vadd.f32 1e-05, %v8939_v47  ;;  %v9250_v49 = vlaneseq }
0x385d   :  { %v9159_v1 = vpop.xlane.xlu0 %9158 }
0x385e   :  { %11029 = vrsqrt.f32 %v8943_v55  ;;  %v9160_v11 = vmul.f32 0.03125, %v9159_v1  ;;  %v9251_v47 = vshrl.u32 %v9250_v49, 7  ;;  %v9627_v1 = vld [vmem:[%s12860_s0] ss:$0 sm:$0xff] }
0x3860   :  { %v12716_v60 = vsub.f32 %v9153_v24, %v9160_v11  ;;  %v9174_v24 = vld [vmem:[%s12855_s29 + $0x10] sm:$0xff] }
0x3861   :  { %10652 = vmatpush3.msra.mxu1 %v9174_v24 }
0x3862   :  { %v9162_v15 = vmul.f32 %v12716_v60, %v12716_v60  ;;  %10653 = vmatprep.subr.mxu1 %v11114_v14 }
0x3863   :  { %10654 = vmatpush3.msra.mxu1 %v9173_v48 }
0x3864   :  { %v9163_v37 = vsel %vm9156_vm5, %v9162_v15, 0.0  ;;  %10655 = vmatprep.subr.mxu1 %v11114_v14 }
0x3865   :  { %9164 = vadd.xlane.f32.xlu1 %v9163_v37  ;;  %10656 = vmatpush3.msra.mxu1 %v9172_v38 }
0x3869   :  { %v11028_v31 = vpop.eup %11027 }
0x386a   :  { %v8952_v23 = vmul.f32 %v11028_v31, %v12688_v59  ;;  %v8981_v59 = vadd.f32 %v8980_v8, %v8979_v25 }
0x386b   :  { %v11030_v20 = vpop.eup %11029 }
0x386c   :  { %v8962_v51 = vmul.f32 %v9624_v7, %v8952_v23  ;;  %v8951_v27 = vmul.f32 %v11030_v20, %v12690_v39  ;;  %v8983_v17 = vmul.f32 0.0625, %v8981_v59 }
0x386e   :  { %v8972_v30 = vadd.f32 %v9625_v61, %v8962_v51  ;;  %v8961_v36 = vmul.f32 %v9624_v7, %v8951_v27 }
0x3870   :  { %v8971_v4 = vadd.f32 %v9625_v61, %v8961_v36  ;;  %v8985_v40 = vsel %vm279_vm1, %v8972_v30, 0.0  ;;  %v9252_v61 = vsub.s32 0, %v9251_v47 }
0x3872   :  { %v8984_v35 = vsel %vm279_vm1, %v8971_v4, 0.0 }
0x3873   :  { %v8986_v56 = vadd.f32 %v8985_v40, %v8984_v35 }
0x3875   :  { %v8987_v18 = vrot.slane %v8986_v56, 4 }
0x3877   :  { %v8988_v9 = vadd.f32 %v8987_v18, %v8986_v56 }
0x3879   :  { %v8989_v22 = vrot.slane %v8988_v9, 2 }
0x387b   :  { %v8990_v44 = vadd.f32 %v8989_v22, %v8988_v9 }
0x387d   :  { %v8991_v46 = vrot.slane %v8990_v44, 1 }
0x387f   :  { %v8992_v39 = vadd.f32 %v8991_v46, %v8990_v44 }
0x3881   :  { %v8993_v26 = vmul.f32 0.0625, %v8992_v39 }
0x3883   :  { %v8995_v29 = vsel %vm8994_vm7, %v8983_v17, %v8993_v26 }
0x3884   :  { %10636 = vmatmul.mubr.msk.f32.vlgmr.msra.gmra.mxu0 %vm279_vm1, %v8995_v29 }
0x3885   :  { %10646 = vmatprep.mubr.msk.f32.mxu0 %vm11115_vm6, %v11114_v14  ;;  %10639 = vmatpush3.msra.mxu0 %v9072_v21 }
0x3886   :  { %10640 = vmatprep.subr.mxu0 %v11114_v14 }
0x3887   :  { %10641 = vmatpush3.msra.mxu0 %v9071_v13 }
0x3888   :  { %10642 = vmatprep.subr.mxu0 %v11114_v14 }
0x3889   :  { %10643 = vmatpush3.msra.mxu0 %v9070_v50 }
0x388a   :  { %10644 = vmatprep.subr.mxu0 %v11114_v14 }
0x388b   :  { %10645 = vmatpush3.msra.mxu0 %v9069_v5 }
0x38ee   :  { %v9165_v52 = vpop.xlane.xlu1 %9164 }
0x38ef   :  { %v9166_v54 = vmul.f32 0.03125, %v9165_v52 }
0x38f1   :  { %v9167_v41 = vadd.f32 1e-05, %v9166_v54 }
0x38f3   :  { %11031 = vrsqrt.f32 %v9167_v41 }
0x3900   :  { %v11032_v2 = vpop.eup %11031 }
0x3901   :  { %v9169_v34 = vmul.f32 %v11032_v2, %v12716_v60 }
0x3903   :  { %v9170_v63 = vmul.f32 %v9169_v34, %v9154_v33 }
0x3905   :  { %v9171_v58 = vadd.f32 %v9170_v63, %v9155_v6 }
0x3907   :  { %10658 = vmatmul.mubr.msk.f32.vlgmr.msra.gmra.mxu1 %vm279_vm1, %v9171_v58 }
0x3944   :  { %v9065_v62 = vpop.f32.mrf.mxu0 }
0x3945   :  { %v9066_v14 = vadd.f32 %v11039_v57, %v9065_v62 }
0x3946   :  { %v10637_v7 = vpop.f32.mrf.mxu0 }
0x3947   :  { %10647 = vmatmul.mubr.msk.f32.vlgmr.msra.gmra.mxu0 %vm279_vm1, %v9066_v14 }
0x39c7   :  { %v9246_v45 = vpop.f32.mrf.mxu1 }
0x39c8   :  { %v9247_v55 = vadd.f32 %v9246_v45, %v9176_v0 }
0x39c9   :  { %v10659_v3 = vpop.f32.mrf.mxu1 }
0x39ca   :  { %v9253_v11 = vrot.slane %v9247_v55, %v9252_v61 }
0x3a07   :  { %v9149_v10 = vpop.f32.mrf.mxu0 }
0x3a08   :  { %v9150_v12 = vadd.f32 %v9627_v1, %v9149_v10 }
0x3a09   :  { %v10648_v60 = vpop.f32.mrf.mxu0 }
0x3a0a   :  { %v9254_v15 = vsub.f32 %v9150_v12, %v9253_v11 }
0x3a0c   :  { %v9257_v32 = vmul.f32 0.5, %v9254_v15  ;;  %v9255_v37 = vand.u32 2147483647, %v9254_v15 }
0x3a0e   :  { %v9258_v53 = vmul.f32 %v9257_v32, %v9254_v15  ;;  %vm9256_vm8 = vcmp.lt.f32.partialorder %v9255_v37, 1.0  ;;  %v9630_v19 = vadd.f32 -0.5, %v9255_v37 }
0x3a10   :  { %v9260_v31 = vsel %vm9256_vm8, %v9258_v53, %v9630_v19 }
0x3a11   :  { %v9262_v16 = vsel %vm9261_vm9, %v9260_v31, 0.0 }
0x3a12   :  { %9263 = vadd.xlane.f32.xlu0 %v9262_v16 }
0x3a9b   :  { %v9264_v23 = vpop.xlane.xlu0 %9263 }
0x3a9c   :  { %v9266_v20 = vsel %vm9265_vm10, %v9264_v23, 0.0 }
0x3a9d   :  { %v9267_v51 = vrot.slane %v9266_v20, 4 }
0x3a9f   :  { %v9268_v27 = vadd.f32 %v9267_v51, %v9266_v20 }
0x3aa1   :  { %v9269_v28 = vrot.slane %v9268_v27, 2 }
0x3aa3   :  { %v9270_v30 = vadd.f32 %v9269_v28, %v9268_v27 }
0x3aa5   :  { %v9271_v36 = vrot.slane %v9270_v30, 1 }
0x3aa7   :  { %v9272_v4 = vadd.f32 %v9271_v36, %v9270_v30 }
0x3aa9   :  { %v9273_v42 = vmul.f32 0.015625, %v9272_v4 }
0x3aab   :  { %9275 = vst.msk [vmem:[#allocation2] sm:$0x1] %vm9274_vm11, %v9273_v42 }
0x3aac   :  { %11051 = shalt.err (!%p11048_p4)
}
0x3aad   :  { %s12861_s17 = sld [smem:[#allocation28_spill]] }
0x3ab3   :  { %9285 = dma.vmem_to_hbm [thread:$0]  %s9283_s5, 16, %s12861_s17, [#allocation3]  }
0x3ab4   :  { %11060 = dma.done.wait [#allocation3], 16  }
0x3ab5   :  { %11061 = vsyncadd [#allocation3], 4294967280 }
0x3ab6   :  { %9289 = vsyncpa [#allocation3], 1 }

</bundles_post_ra>
